<compile_context>
chip_gen: v5e
topology: v5e:2x2
jax: 0.10.0
libtpu: 0.0.40
codegen_flags: <defaults>
</compile_context>

<pallas_src>
import jax
import jax.numpy as jnp
from jax.experimental import pallas as pl
from jax.experimental.pallas import tpu as pltpu


IN_DIM = 1296        # HOG dims for 48x48, 9 orient, (8,8) cells, (3,3) blocks
H1 = 512
H2 = 128
NUM_HEADS = 6
HEADS_PER_STEP = 3   # heads fused per grid step (must divide NUM_HEADS)
BN_EPS = 1e-5

assert NUM_HEADS % HEADS_PER_STEP == 0
N_STEPS = NUM_HEADS // HEADS_PER_STEP
GH1 = HEADS_PER_STEP * H1            # 1536 fused hidden columns per grid step


def _hd_heads_kernel(x_ref, w1_ref, cst_ref, out_ref):
    """One grid step == HEADS_PER_STEP classifier heads, fused into one MXU pass.

    Per step:
        z1      = x @ W1'                      (MXU, bf16 inputs, f32 accum)
        a1      = relu(z1 + t1')               (VPU, f32; dropout = identity)
        logit_g = sum(a1[:, g*512:(g+1)*512] * v[g*512:(g+1)*512])   (VPU+reduce)
    where W1' has bias+BN1 folded in and v = W2'.w3 folds the whole tail.
    The per-head scalar c_g (= w3.t2' + b3) is added in the wrapper.
    """
    x = x_ref[...]                                                   # (B, 1296) bf16
    z1 = jnp.dot(x, w1_ref[...], preferred_element_type=jnp.float32)  # (B, 1536) f32
    cst = cst_ref[...]                                               # (2, 1536) f32
    a1 = jnp.maximum(z1 + cst[0:1, :], 0.0)                          # folded bias+BN1, ReLU
    prod = a1 * cst[1:2, :]                                          # * packed v = W2'.w3
    cols = [
        jnp.sum(prod[:, g * H1:(g + 1) * H1], axis=-1, keepdims=True)
        for g in range(HEADS_PER_STEP)
    ]
    out_ref[...] = jnp.concatenate(cols, axis=-1)                    # (B, G)


@jax.jit
def hd_model_forward(hog_features, params):
    """hog_features: (B, 1296) f32. Returns (B, 6) f32 — hstack of the 6 heads."""
    B = hog_features.shape[0]
    w1f, cst, cvec = params
    x = hog_features.astype(jnp.bfloat16)
    G = HEADS_PER_STEP

    grid_spec = pltpu.PrefetchScalarGridSpec(
        num_scalar_prefetch=0,
        grid=(N_STEPS,),
        in_specs=[
            pl.BlockSpec((B, IN_DIM), lambda i: (0, 0)),            # x (shared, bf16)
            pl.BlockSpec((None, IN_DIM, GH1), lambda i: (i, 0, 0)),  # W1' packed bf16
            pl.BlockSpec((None, 2, GH1), lambda i: (i, 0, 0)),       # [t1'; v] packed f32
        ],
        out_specs=pl.BlockSpec((None, B, G), lambda i: (i, 0, 0)),
    )

    cost = pl.CostEstimate(
        flops=2 * B * IN_DIM * NUM_HEADS * H1 + 4 * B * NUM_HEADS * H1,
        transcendentals=0,
        bytes_accessed=(w1f.size * 2 + cst.size * 4 + x.size * 2
                        + N_STEPS * B * G * 4),
    )

    out = pl.pallas_call(
        _hd_heads_kernel,
        out_shape=jax.ShapeDtypeStruct((N_STEPS, B, G), jnp.float32),
        grid_spec=grid_spec,
        compiler_params=pltpu.CompilerParams(
            dimension_semantics=("parallel",),       # lets v7x split steps across 2 TCs
            vmem_limit_bytes=32 * 1024 * 1024,       # live set ~8 MB (W1 block x2 bufs)
        ),
        cost_estimate=cost,
    )(x, w1f, cst)

    # Add the folded per-head constants (6 floats) and assemble (B, 6):
    # out[s, b, g] + c[s, g] is the logit for head h = s*G + g.
    out = out + cvec
    return jnp.transpose(out, (1, 0, 2)).reshape(B, NUM_HEADS)


def init_raw_params(key):
    """Deterministic synthetic torch-style params, stacked over the 6 heads."""
    ks = jax.random.split(key, 18)
    w1 = jax.random.normal(ks[0], (NUM_HEADS, IN_DIM, H1), jnp.float32) / jnp.sqrt(IN_DIM)
    b1 = jax.random.normal(ks[1], (NUM_HEADS, 1, H1), jnp.float32) * 0.01
    g1 = 0.5 + jax.random.uniform(ks[2], (NUM_HEADS, 1, H1), jnp.float32)
    be1 = jax.random.normal(ks[3], (NUM_HEADS, 1, H1), jnp.float32) * 0.05
    m1 = jax.random.normal(ks[4], (NUM_HEADS, 1, H1), jnp.float32) * 0.1
    v1 = 0.5 + jax.random.uniform(ks[5], (NUM_HEADS, 1, H1), jnp.float32)

    w2 = jax.random.normal(ks[6], (NUM_HEADS, H1, H2), jnp.float32) / jnp.sqrt(H1)
    b2 = jax.random.normal(ks[7], (NUM_HEADS, 1, H2), jnp.float32) * 0.01
    g2 = 0.5 + jax.random.uniform(ks[8], (NUM_HEADS, 1, H2), jnp.float32)
    be2 = jax.random.normal(ks[9], (NUM_HEADS, 1, H2), jnp.float32) * 0.05
    m2 = jax.random.normal(ks[10], (NUM_HEADS, 1, H2), jnp.float32) * 0.1
    v2 = 0.5 + jax.random.uniform(ks[11], (NUM_HEADS, 1, H2), jnp.float32)

    w3 = jax.random.normal(ks[12], (NUM_HEADS, H2, 1), jnp.float32) / jnp.sqrt(H2)
    b3 = jax.random.normal(ks[13], (NUM_HEADS, 1, 1), jnp.float32) * 0.01
    return (w1, b1, g1, be1, m1, v1, w2, b2, g2, be2, m2, v2, w3, b3)


def fold_params(raw):
    """Fold Linear bias + BN1d(eval) into W1'/t1', and the whole dl2/bn2/dl3 tail
    into (v, c). Pack per grid step; cast the big W1' stream to bf16."""
    (w1, b1, g1, be1, m1, v1, w2, b2, g2, be2, m2, v2, w3, b3) = raw
    s1 = g1 / jnp.sqrt(v1 + BN_EPS)                 # (H,1,512)
    t1 = b1 * s1 + (be1 - m1 * s1)                  # (H,1,512) folded bias + BN1 shift
    s2 = g2 / jnp.sqrt(v2 + BN_EPS)                 # (H,1,128)
    t2 = b2 * s2 + (be2 - m2 * s2)                  # (H,1,128) folded bias + BN2 shift

    w1p = w1 * s1                                   # (H,1296,512) per-output-column scale
    w2p = w2 * s2                                   # (H,512,128)
    w3v = w3[:, :, 0]                               # (H,128)

    # Exact tail fold: logit_h = relu(x@W1'_h + t1'_h) @ v_h + c_h
    v = jnp.einsum('hij,hj->hi', w2p, w3v)          # (H,512)
    c = jnp.einsum('hj,hj->h', t2[:, 0, :], w3v) + b3[:, 0, 0]   # (H,)

    # Pack per grid step: head h = s*G + g occupies columns [g*512, (g+1)*512).
    w1f = (w1p.reshape(N_STEPS, HEADS_PER_STEP, IN_DIM, H1)
               .transpose(0, 2, 1, 3)
               .reshape(N_STEPS, IN_DIM, GH1)
               .astype(jnp.bfloat16))                               # (S,1296,1536) bf16
    t1_flat = t1.reshape(NUM_HEADS, H1).reshape(N_STEPS, GH1)
    v_flat = v.reshape(N_STEPS, GH1)
    cst = jnp.stack([t1_flat, v_flat], axis=1).astype(jnp.float32)  # (S,2,1536) f32
    cvec = c.reshape(N_STEPS, 1, HEADS_PER_STEP).astype(jnp.float32)  # (S,1,G) f32
    return (w1f, cst, cvec)


def hd_model_reference_folded(x_bf16, params):
    """Pure-JAX reference of exactly what the kernel + wrapper compute (bf16 W1')."""
    w1f, cst, cvec = params
    x = x_bf16.astype(jnp.float32)
    outs = []
    for s in range(N_STEPS):
        z1 = x @ w1f[s].astype(jnp.float32) + cst[s, 0]
        a1 = jnp.maximum(z1, 0.0)
        prod = a1 * cst[s, 1]
        cols = [prod[:, g * H1:(g + 1) * H1].sum(axis=-1, keepdims=True)
                for g in range(HEADS_PER_STEP)]
        outs.append(jnp.concatenate(cols, axis=-1) + cvec[s])
    return jnp.concatenate(outs, axis=-1)


def hd_model_reference_f32(x, raw):
    """Module-faithful f32 reference (Linear -> BN1d eval -> Dropout(id) -> ReLU ...)."""
    (w1, b1, g1, be1, m1, v1, w2, b2, g2, be2, m2, v2, w3, b3) = raw
    cols = []
    for h in range(NUM_HEADS):
        z1 = x @ w1[h] + b1[h]
        z1 = g1[h] * (z1 - m1[h]) / jnp.sqrt(v1[h] + BN_EPS) + be1[h]
        a1 = jnp.maximum(z1, 0.0)
        z2 = a1 @ w2[h] + b2[h]
        z2 = g2[h] * (z2 - m2[h]) / jnp.sqrt(v2[h] + BN_EPS) + be2[h]
        cols.append(z2 @ w3[h] + b3[h])
    return jnp.concatenate(cols, axis=-1)


if __name__ == "__main__":
    key = jax.random.PRNGKey(0)
    k_params, k_x = jax.random.split(key)

    B = 8
    # HOG features for 48x48 grayscale images with (9 orient, 8x8 cells, 3x3 blocks)
    # are exactly 1296-dim; we synthesize them directly (HOG itself is CPU glue).
    hog_features = jax.random.uniform(k_x, (B, IN_DIM), jnp.float32)

    raw = init_raw_params(k_params)
    params = fold_params(raw)

    out = jax.block_until_ready(hd_model_forward(hog_features, params))
    assert out.shape == (B, NUM_HEADS)

    # Tight check vs a reference that mirrors the kernel's bf16/fold choices exactly.
    ref_matched = hd_model_reference_folded(hog_features.astype(jnp.bfloat16), params)
    assert jnp.allclose(out, ref_matched, atol=2e-3, rtol=2e-3), "mismatch vs folded ref"

    # Loose check vs the module-faithful full-f32 reference (bf16 x/W1 rounding only;
    # the dl2/bn2/dl3 fold is exact and a1 stays f32).
    ref_f32 = hd_model_reference_f32(hog_features, raw)
    assert jnp.allclose(out, ref_f32, atol=5e-2, rtol=5e-2), "mismatch vs f32 ref"

    print("KERNEL_OK")
</pallas_src>

<mosaic_0001>
module attributes {stable_mosaic.version = 11 : i64} {
  func.func @_hd_heads_kernel(%arg0: i32, %arg1: memref<8x1296xbf16, #tpu.memory_space<vmem>>, %arg2: memref<1x1296x1536xbf16, #tpu.memory_space<vmem>>, %arg3: memref<1x2x1536xf32, #tpu.memory_space<vmem>>, %arg4: memref<1x8x3xf32, #tpu.memory_space<vmem>>) attributes {dimension_semantics = [#tpu.dimension_semantics<parallel>], iteration_bounds = array<i64: 2>, scalar_prefetch = 0 : i64, scratch_operands = 0 : i64, tpu.core_type = #tpu.core_type<tc>, window_params = [{pipeline_mode = #tpu.pipeline_mode<synchronous>, transform_indices = @transform_0, window_bounds = array<i64: 8, 1296>}, {transform_indices = @transform_1, window_bounds = array<i64: 1, 1296, 1536>}, {transform_indices = @transform_2, window_bounds = array<i64: 1, 2, 1536>}, {transform_indices = @transform_3, window_bounds = array<i64: 1, 8, 3>}]} {
    %c0 = arith.constant 0 : index
    %c0_0 = arith.constant 0 : index
    %0 = vector.load %arg1[%c0, %c0_0] : memref<8x1296xbf16, #tpu.memory_space<vmem>>, vector<8x1296xbf16>
    %c0_1 = arith.constant 0 : index
    %c0_2 = arith.constant 0 : index
    %c0_3 = arith.constant 0 : index
    %1 = vector.load %arg2[%c0_1, %c0_2, %c0_3] : memref<1x1296x1536xbf16, #tpu.memory_space<vmem>>, vector<1x1296x1536xbf16>
    %2 = vector.shape_cast %1 : vector<1x1296x1536xbf16> to vector<1296x1536xbf16>
    %cst = arith.constant dense<0.000000e+00> : vector<8x1536xf32>
    %3 = tpu.matmul %0, %2, %cst {dimension_numbers = #tpu.dot_dimension_numbers<[1], [0], [0], [1], [0, 0, 1, 1], [], []>} : vector<8x1296xbf16>, vector<1296x1536xbf16>, vector<8x1536xf32> -> vector<8x1536xf32>
    %c0_4 = arith.constant 0 : index
    %c0_5 = arith.constant 0 : index
    %c0_6 = arith.constant 0 : index
    %4 = vector.load %arg3[%c0_4, %c0_5, %c0_6] : memref<1x2x1536xf32, #tpu.memory_space<vmem>>, vector<1x2x1536xf32>
    %5 = vector.shape_cast %4 : vector<1x2x1536xf32> to vector<2x1536xf32>
    %6 = vector.extract_strided_slice %5 {offsets = [0, 0], sizes = [1, 1536], strides = [1, 1]} : vector<2x1536xf32> to vector<1x1536xf32>
    %7 = vector.broadcast %6 : vector<1x1536xf32> to vector<8x1536xf32>
    %8 = arith.addf %3, %7 : vector<8x1536xf32>
    %cst_7 = arith.constant 0.000000e+00 : f32
    %9 = vector.broadcast %cst_7 : f32 to vector<8x1536xf32>
    %10 = arith.maximumf %8, %9 : vector<8x1536xf32>
    %11 = vector.extract_strided_slice %5 {offsets = [1, 0], sizes = [1, 1536], strides = [1, 1]} : vector<2x1536xf32> to vector<1x1536xf32>
    %12 = vector.broadcast %11 : vector<1x1536xf32> to vector<8x1536xf32>
    %13 = arith.mulf %10, %12 : vector<8x1536xf32>
    %14 = vector.extract_strided_slice %13 {offsets = [0, 0], sizes = [8, 512], strides = [1, 1]} : vector<8x1536xf32> to vector<8x512xf32>
    %cst_8 = arith.constant dense<0.000000e+00> : vector<8xf32>
    %15 = vector.multi_reduction <add>, %14, %cst_8 [1] : vector<8x512xf32> to vector<8xf32>
    %16 = vector.shape_cast %15 : vector<8xf32> to vector<8x1xf32>
    %17 = vector.extract_strided_slice %13 {offsets = [0, 512], sizes = [8, 512], strides = [1, 1]} : vector<8x1536xf32> to vector<8x512xf32>
    %cst_9 = arith.constant dense<0.000000e+00> : vector<8xf32>
    %18 = vector.multi_reduction <add>, %17, %cst_9 [1] : vector<8x512xf32> to vector<8xf32>
    %19 = vector.shape_cast %18 : vector<8xf32> to vector<8x1xf32>
    %20 = vector.extract_strided_slice %13 {offsets = [0, 1024], sizes = [8, 512], strides = [1, 1]} : vector<8x1536xf32> to vector<8x512xf32>
    %cst_10 = arith.constant dense<0.000000e+00> : vector<8xf32>
    %21 = vector.multi_reduction <add>, %20, %cst_10 [1] : vector<8x512xf32> to vector<8xf32>
    %22 = vector.shape_cast %21 : vector<8xf32> to vector<8x1xf32>
    %23 = tpu.concatenate %16, %19, %22 in 1 : vector<8x1xf32>, vector<8x1xf32>, vector<8x1xf32> -> vector<8x3xf32>
    %c0_11 = arith.constant 0 : index
    %c0_12 = arith.constant 0 : index
    %c0_13 = arith.constant 0 : index
    %24 = vector.load %arg4[%c0_11, %c0_12, %c0_13] : memref<1x8x3xf32, #tpu.memory_space<vmem>>, vector<1x8x3xf32>
    %25 = vector.shape_cast %24 : vector<1x8x3xf32> to vector<8x3xf32>
    %26 = vector.shape_cast %23 : vector<8x3xf32> to vector<1x8x3xf32>
    tpu.vector_store %arg4[%c0_11, %c0_12, %c0_13], %26 {strides = array<i32>} : memref<1x8x3xf32, #tpu.memory_space<vmem>>, vector<1x8x3xf32>,
    return
  }
  func.func @transform_0(%arg0: i32) -> (i32, i32) {
    %c0_i32 = arith.constant 0 : i32
    %c0_i32_0 = arith.constant 0 : i32
    %c0_i32_1 = arith.constant 0 : i32
    return %c0_i32, %c0_i32_0 : i32, i32
  }
  func.func @transform_1(%arg0: i32) -> (i32, i32, i32) {
    %c0_i32 = arith.constant 0 : i32
    %c0_i32_0 = arith.constant 0 : i32
    %c0_i32_1 = arith.constant 0 : i32
    return %arg0, %c0_i32, %c0_i32_0 : i32, i32, i32
  }
  func.func @transform_2(%arg0: i32) -> (i32, i32, i32) {
    %c0_i32 = arith.constant 0 : i32
    %c0_i32_0 = arith.constant 0 : i32
    %c0_i32_1 = arith.constant 0 : i32
    return %arg0, %c0_i32, %c0_i32_0 : i32, i32, i32
  }
  func.func @transform_3(%arg0: i32) -> (i32, i32, i32) {
    %c0_i32 = arith.constant 0 : i32
    %c0_i32_0 = arith.constant 0 : i32
    %c0_i32_1 = arith.constant 0 : i32
    return %arg0, %c0_i32, %c0_i32_0 : i32, i32, i32
  }
}

</mosaic_0001>

<bundles_post_ra>
// kernel: hd_model_forward.1
= control target key start
LH: loop header
LB: loop body
LE: loop exit
PB: predicated region body
PF: predicated region fallthrough
CT: control target
= control target key end

     0   :  { %8 = vsyncpa [#allocation3], 0  ;;  %s15519_s0 = inlined_call_operand.vmem [shape: bf16[8,1296], index: 0, kind: input, shape index: {}]   ;;  %s15520_s1 = inlined_call_operand.hbm [shape: bf16[2,1296,1536], index: 1, kind: input, shape index: {}]   ;;  %s15521_s2 = inlined_call_operand.hbm [shape: f32[2,2,1536], index: 2, kind: input, shape index: {}]   ;;  %s15522_s3 = inlined_call_operand.vmem [shape: f32[2,8,3], index: 3, kind: output, shape index: {}]  }
   0x1   :  { %10 = vsyncpa [#allocation3 + $0x1], 0 }
   0x2   :  { %11 = vsyncpa [#allocation5], 0 }
   0x3   :  { %13 = vsyncpa [#allocation5 + $0x1], 0  ;;  %s13099_s12 = smov 0   ;;  %s13101_s13 = smov 0  }
   0x4   :  { %s13103_s14 = smov 0   ;;  %s13105_s15 = smov 0  }
   0x5 LB: > { %s13118_s16 = sadd.s32 4294967295, %s13075_s15   ;;  %s13121_s17 = sadd.s32 1, %s13075_s15   ;;  %s13075_s15 = sphi %s13105_s15, %s15529_s15   ;;  %s13071_s14 = sphi %s13103_s14, %s15528_s14   ;;  %s13067_s13 = sphi %s13101_s13, %s15527_s13   ;;  %s13063_s12 = sphi %s13099_s12, %s15526_s12  }
   0x6   : > { %s44_s18 = ssub.s32 %s13075_s15, %s13121_s17  ;;  %s47_s19 = sadd.s32 1, %s13071_s14 }
   0x7   : > { %p45_p0 = scmp.eq.s32.totalorder %s44_s18, 0  ;;  %p54_p1 = scmp.ne.s32.totalorder %s13071_s14, %s13067_s13 }
   0x8   : > { %p55_p2 = scmp.eq.s32.totalorder %s13075_s15, 0  ;;  %p60_p3 = scmp.ne.s32.totalorder %s13067_s13, %s13063_s12 }
   0x9   : > { %s13131_s20 = scalar_select %p45_p0, %s13071_s14, %s47_s19  }
   0xa   : > { %p56_p4 = por %p55_p2, %p54_p1  ;;  %p61_p5 = scmp.eq.s32.totalorder %s13118_s16, 0 }
   0xb   : > { %p12937_p6 = scmp.lt.s32.totalorder %s13075_s15, 2  ;;  %s13140_s22 = sand.u32 1, %s13071_s14  }
   0xc   : > { %p13135_p7 = por %p61_p5, %p60_p3  ;;  %s12920_s23 = smul.u32 7776, %s13140_s22 }
   0xd   : > { %s12921_s24 = smul.u32 7776, %s13075_s15  ;;  %p13144_p8 = pnand %p12937_p6, %p56_p4 }
   0xe   : > { %s143_s29 = scalar_lea.vmem [#allocation2], %s12920_s23  ;;  %p8044_p9 = scmp.ge.s32.totalorder %s13075_s15, 1 }
   0xf   : > { %s148_s28 = scalar_lea.hbm %s15520_s1, %s12921_s24  ;;  %s151_s30 = sshll.u32 %s143_s29, 4  ;;  %s152_s30 = int_to_ptr.vmem [resolvable:$true] %s151_s30 }
  0x10   : > { %s149_s4 = sshll.u32 %s148_s28, 4  ;;  %s140_s5 = scalar_lea.sflag [#allocation3], %s13140_s22  ;;  %s150_s4 = int_to_ptr.hbm [resolvable:$true] %s149_s4 }
  0x11   : > { %s12977_s6 = sshra.s32 %s150_s4, 4  ;;  %p12981_p11 = pneg %p13144_p8  ;;  %s12978_s6 = int_to_ptr.hbm [resolvable:$true] %s12977_s6 }
  0x12   : > { %s12979_s7 = scalar_lea.hbm %s12978_s6, 7776  ;;  %s12984_s10 = scalar_lea.hbm %s15520_s1, 15552 }
  0x13   : > { %p12980_p10 = scmp.ne.s32.totalorder %s12978_s6, %s12979_s7  ;;  %p12985_p0 = scmp.lt.s32.totalorder %s12978_s6, %s15520_s1 }
  0x14   : > { %p12986_p1 = scmp.lt.s32.totalorder %s12984_s10, %s12979_s7 }
  0x15   : > { %p12982_p12 = pnand %p12981_p11, %p12980_p10 }
  0x16   : > { %p12987_p2 = por %p12986_p1, %p12985_p0 }
  0x17   : > { %p12983_p13 = pneg %p12982_p12 }
  0x19   : > { %p12988_p3 = pnand %p12987_p2, %p12983_p13 }
  0x1b   : > { %12991 = shalt.err (!%p12988_p3)
}
  0x1c   : > { %s13077_s18 = smov 768   ;;  %s13078_s19 = smov 48  }
  0x1d   : > { %12933 = dma.hbm_to_vmem [thread:$0]  (!%p13144_p8), %s150_s4, 124416, %s152_s30, %s140_s5, %s13077_s18, %s13077_s18, %s13078_s19  }
  0x1e   : > { %p179_p4 = scmp.lt.s32.totalorder %s13075_s15, 3  ;;  %s12922_s23 = smul.u32 24, %s13140_s22 }
  0x1f   : > { %s12923_s26 = smul.u32 24, %s13075_s15  ;;  %s162_s9 = scalar_lea.sflag [#allocation5], %s13140_s22 }
  0x20   : > { %p13170_p5 = pnand %p8044_p9, %p179_p4  ;;  %s165_s6 = scalar_lea.vmem [#allocation4], %s12922_s23 }
  0x21   : > { %s170_s29 = scalar_lea.hbm %s15521_s2, %s12923_s26  ;;  %s174_s7 = sshll.u32 %s165_s6, 4  ;;  %s175_s7 = int_to_ptr.vmem [resolvable:$true] %s174_s7 }
  0x22   : > { %s172_s8 = sshll.u32 %s170_s29, 4  ;;  %s13014_s10 = scalar_lea.hbm %s15521_s2, 48  ;;  %s173_s8 = int_to_ptr.hbm [resolvable:$true] %s172_s8 }
  0x23   : > { %s13007_s30 = sshra.s32 %s173_s8, 4  ;;  %s13008_s30 = int_to_ptr.hbm [resolvable:$true] %s13007_s30 }
  0x24   : > { %s13009_s4 = scalar_lea.hbm %s13008_s30, 24  ;;  %p13015_p12 = scmp.lt.s32.totalorder %s13008_s30, %s15521_s2 }
  0x25   : > { %p13010_p6 = scmp.ne.s32.totalorder %s13008_s30, %s13009_s4  ;;  %p13016_p13 = scmp.lt.s32.totalorder %s13014_s10, %s13009_s4 }
  0x27   : > { %p13012_p9 = pnand %p13010_p6, %p12981_p11  ;;  %p13017_p0 = por %p13016_p13, %p13015_p12 }
  0x29   : > { %p13013_p10 = pneg %p13012_p9 }
  0x2b   : > { %p13018_p1 = pnand %p13017_p0, %p13013_p10 }
  0x2d   : > { %13021 = shalt.err (!%p13018_p1)
}
  0x2e   : > { %12936 = dma.hbm_to_vmem [thread:$0]  (!%p13144_p8), %s173_s8, 384, %s175_s7, %s162_s9  }
  0x2f   : > { %183 = sbr.rel (%p13170_p5) target bundleno = 1299 (0x513), region = 32  ;;  %s185_s22 = sand.u32 (!%p13170_p5), 1, %s13067_s13  }
  0x30   : > { %s12924_s18 = smul.u32 (!%p13170_p5), 7776, %s185_s22  ;;  %s186_s19 = scalar_lea.sflag (!%p13170_p5), [#allocation3], %s185_s22 }
  0x32   : > { %s13193_s23 = scalar_lea.vmem (!%p13170_p5), [#allocation2], %s12924_s18 }
  0x34   : > { %13054 = dma.done.wait (%p13135_p7), %s186_s19, 124416  }
  0x35   : > { %13056 = vsyncadd (%p13135_p7), %s186_s19, 4294842880  ;;  %s12925_s26 = smul.u32 24, %s185_s22  ;;  %s196_s27 = scalar_lea.sflag [#allocation5], %s185_s22 }
  0x37   : > { %s13199_s25 = scalar_lea.vmem [#allocation4], %s12925_s26 }
  0x38   : > { %13058 = dma.done.wait (%p13135_p7), %s196_s27, 384  }
  0x39   : > { %13060 = vsyncadd (%p13135_p7), %s196_s27, 4294966912  ;;  %v8384_v0 = vld [vmem:[%s13193_s23 + $0x2a0] sm:$0xf]  ;;  %v12038_v1 = vld [vmem:[%s13193_s23 + $0x2cc] sm:$0xf0]  ;;  %vm6150_vm0 = vcmask 130048  }
  0x3a   : > { %v8768_v2 = vld [vmem:[%s13193_s23 + $0x5a0] sm:$0xf]  ;;  %v8385_v3 = vor.u32 %v12038_v1, %v8384_v0  ;;  %v12134_v4 = vld [vmem:[%s13193_s23 + $0x5cc] sm:$0xf0]  ;;  %p227_p7 = scmp.lt.s32.totalorder %s13118_s16, 1  ;;  %vm7945_vm1 = vcmask 7168  }
  0x3b   : > { %v9152_v5 = vld [vmem:[%s13193_s23 + $0x8a0] sm:$0xf]  ;;  %v12230_v6 = vld [vmem:[%s13193_s23 + $0x8cc] sm:$0xf0]  ;;  %v8769_v7 = vor.u32 %v12134_v4, %v8768_v2  ;;  %vm7947_vm2 = vcmask 15360   ;;  %vm7949_vm3 = vcmask 23552  }
  0x3c   : > { %v9153_v8 = vor.u32 %v12230_v6, %v9152_v5  ;;  %v9536_v9 = vld [vmem:[%s13193_s23 + $0xba0] sm:$0xf]  ;;  %v12326_v10 = vld [vmem:[%s13193_s23 + $0xbcc] sm:$0xf0]  ;;  %6154 = vmatpush.bf16.msra.mxu0 %v8385_v3  ;;  %s15531_s16 = smov (!%p227_p7, %s13118_s16), 1 }
  0x3d   : > { %v8336_v11 = vld [vmem:[%s13193_s23 + $0x240] sm:$0xf]  ;;  %v9537_v12 = vor.u32 %v12326_v10, %v9536_v9  ;;  %v12026_v13 = vld [vmem:[%s13193_s23 + $0x26c] sm:$0xf0]  ;;  %6167 = vmatpush.bf16.msra.mxu1 %v8769_v7  ;;  %s8045_s10 = sshll.u32 %s15531_s16, 3 }
  0x3e   : > { %v8720_v14 = vld [vmem:[%s13193_s23 + $0x540] sm:$0xf]  ;;  %v12122_v15 = vld [vmem:[%s13193_s23 + $0x56c] sm:$0xf0]  ;;  %6180 = vmatpush.bf16.msra.mxu2 %v9153_v8  ;;  %v8337_v16 = vor.u32 %v12026_v13, %v8336_v11  ;;  %s230_s22 = scalar_lea.vmem %s15522_s3, %s8045_s10 }
  0x3f   : > { %v8721_v17 = vor.u32 %v12122_v15, %v8720_v14  ;;  %v9104_v18 = vld [vmem:[%s13193_s23 + $0x840] sm:$0xf]  ;;  %v12218_v19 = vld [vmem:[%s13193_s23 + $0x86c] sm:$0xf0]  ;;  %6193 = vmatpush.bf16.msra.mxu3 %v9537_v12 }
  0x40   : > { %v9488_v20 = vld [vmem:[%s13193_s23 + $0xb40] sm:$0xf]  ;;  %v9105_v21 = vor.u32 %v12218_v19, %v9104_v18  ;;  %v12314_v22 = vld [vmem:[%s13193_s23 + $0xb6c] sm:$0xf0]  ;;  %6155 = vmatpush.bf16.msra.mxu0 %v8337_v16 }
  0x41   : > { %v8288_v23 = vld [vmem:[%s13193_s23 + $0x1e0] sm:$0xf]  ;;  %v12014_v24 = vld [vmem:[%s13193_s23 + $0x20c] sm:$0xf0]  ;;  %v9489_v25 = vor.u32 %v12314_v22, %v9488_v20  ;;  %6168 = vmatpush.bf16.msra.mxu1 %v8721_v17 }
  0x42   : > { %v8672_v26 = vld [vmem:[%s13193_s23 + $0x4e0] sm:$0xf]  ;;  %v12110_v27 = vld [vmem:[%s13193_s23 + $0x50c] sm:$0xf0]  ;;  %v8289_v29 = vor.u32 %v12014_v24, %v8288_v23  ;;  %6181 = vmatpush.bf16.msra.mxu2 %v9105_v21 }
  0x43   : > { %v9056_v28 = vld [vmem:[%s13193_s23 + $0x7e0] sm:$0xf]  ;;  %v12206_v30 = vld [vmem:[%s13193_s23 + $0x80c] sm:$0xf0]  ;;  %v8673_v33 = vor.u32 %v12110_v27, %v8672_v26  ;;  %6194 = vmatpush.bf16.msra.mxu3 %v9489_v25 }
  0x44   : > { %v9440_v31 = vld [vmem:[%s13193_s23 + $0xae0] sm:$0xf]  ;;  %v12302_v32 = vld [vmem:[%s13193_s23 + $0xb0c] sm:$0xf0]  ;;  %v9057_v34 = vor.u32 %v12206_v30, %v9056_v28  ;;  %6156 = vmatpush.bf16.msra.mxu0 %v8289_v29 }
  0x45   : > { %v8240_v35 = vld [vmem:[%s13193_s23 + $0x180] sm:$0xf]  ;;  %v12002_v36 = vld [vmem:[%s13193_s23 + $0x1ac] sm:$0xf0]  ;;  %v9441_v38 = vor.u32 %v12302_v32, %v9440_v31  ;;  %6169 = vmatpush.bf16.msra.mxu1 %v8673_v33 }
  0x46   : > { %v8624_v37 = vld [vmem:[%s13193_s23 + $0x480] sm:$0xf]  ;;  %v12098_v39 = vld [vmem:[%s13193_s23 + $0x4ac] sm:$0xf0]  ;;  %v8241_v44 = vor.u32 %v12002_v36, %v8240_v35  ;;  %6182 = vmatpush.bf16.msra.mxu2 %v9057_v34 }
  0x47   : > { %v9008_v40 = vld [vmem:[%s13193_s23 + $0x780] sm:$0xf]  ;;  %v12194_v41 = vld [vmem:[%s13193_s23 + $0x7ac] sm:$0xf0]  ;;  %v8625_v45 = vor.u32 %v12098_v39, %v8624_v37  ;;  %6195 = vmatpush.bf16.msra.mxu3 %v9441_v38 }
  0x48   : > { %v9392_v42 = vld [vmem:[%s13193_s23 + $0xa80] sm:$0xf]  ;;  %v12290_v43 = vld [vmem:[%s13193_s23 + $0xaac] sm:$0xf0]  ;;  %v9009_v46 = vor.u32 %v12194_v41, %v9008_v40  ;;  %6157 = vmatpush.bf16.msra.mxu0 %v8241_v44  ;;  %v233_v41 = vld [vmem:[%s15519_s0 + $0x8] sm:$0xff] }
  0x49   : > { %v8192_v47 = vld [vmem:[%s13193_s23 + $0x120] sm:$0xf]  ;;  %v11990_v48 = vld [vmem:[%s13193_s23 + $0x14c] sm:$0xf0]  ;;  %v9393_v50 = vor.u32 %v12290_v43, %v9392_v42  ;;  %6170 = vmatpush.bf16.msra.mxu1 %v8625_v45 }
  0x4a   : > { %v8576_v49 = vld [vmem:[%s13193_s23 + $0x420] sm:$0xf]  ;;  %v12086_v51 = vld [vmem:[%s13193_s23 + $0x44c] sm:$0xf0]  ;;  %v8193_v56 = vor.u32 %v11990_v48, %v8192_v47  ;;  %6183 = vmatpush.bf16.msra.mxu2 %v9009_v46  ;;  %v1260_v47 = vunpack.c.l.b16 %v233_v41  ;;  %v1261_v48 = vunpack.c.h.b16 %v233_v41 }
  0x4b   : > { %v8960_v52 = vld [vmem:[%s13193_s23 + $0x720] sm:$0xf]  ;;  %v12182_v53 = vld [vmem:[%s13193_s23 + $0x74c] sm:$0xf0]  ;;  %v8577_v57 = vor.u32 %v12086_v51, %v8576_v49  ;;  %6196 = vmatpush.bf16.msra.mxu3 %v9393_v50 }
  0x4c   : > { %v9344_v54 = vld [vmem:[%s13193_s23 + $0xa20] sm:$0xf]  ;;  %v12278_v55 = vld [vmem:[%s13193_s23 + $0xa4c] sm:$0xf0]  ;;  %v8961_v58 = vor.u32 %v12182_v53, %v8960_v52  ;;  %6158 = vmatpush.bf16.msra.mxu0 %v8193_v56 }
  0x4d   : > { %v8144_v59 = vld [vmem:[%s13193_s23 + $0xc0] sm:$0xf]  ;;  %v11978_v60 = vld [vmem:[%s13193_s23 + $0xec] sm:$0xf0]  ;;  %v9345_v62 = vor.u32 %v12278_v55, %v9344_v54  ;;  %6171 = vmatpush.bf16.msra.mxu1 %v8577_v57  ;;  %v13288_v55 = vpack.c.b16 %v1260_v47, %v1260_v47  ;;  %v13293_v57 = vpack.c.b16 %v1261_v48, %v1261_v48 }
  0x4e   : > { %v8528_v61 = vld [vmem:[%s13193_s23 + $0x3c0] sm:$0xf]  ;;  %v12074_v63 = vld [vmem:[%s13193_s23 + $0x3ec] sm:$0xf0]  ;;  %v8145_v4 = vor.u32 %v11978_v60, %v8144_v59  ;;  %6184 = vmatpush.bf16.msra.mxu2 %v8961_v58 }
  0x4f   : > { %v8912_v0 = vld [vmem:[%s13193_s23 + $0x6c0] sm:$0xf]  ;;  %v12170_v1 = vld [vmem:[%s13193_s23 + $0x6ec] sm:$0xf0]  ;;  %v8529_v5 = vor.u32 %v12074_v63, %v8528_v61  ;;  %6197 = vmatpush.bf16.msra.mxu3 %v9345_v62 }
  0x50   : > { %v9296_v2 = vld [vmem:[%s13193_s23 + $0x9c0] sm:$0xf]  ;;  %v12266_v3 = vld [vmem:[%s13193_s23 + $0x9ec] sm:$0xf0]  ;;  %v8913_v6 = vor.u32 %v12170_v1, %v8912_v0  ;;  %6159 = vmatpush.bf16.msra.mxu0 %v8145_v4 }
  0x51   : > { %v8096_v7 = vld [vmem:[%s13193_s23 + $0x60] sm:$0xf]  ;;  %v11966_v8 = vld [vmem:[%s13193_s23 + $0x8c] sm:$0xf0]  ;;  %v9297_v10 = vor.u32 %v12266_v3, %v9296_v2  ;;  %6172 = vmatpush.bf16.msra.mxu1 %v8529_v5 }
  0x52   : > { %v8480_v9 = vld [vmem:[%s13193_s23 + $0x360] sm:$0xf]  ;;  %v12062_v11 = vld [vmem:[%s13193_s23 + $0x38c] sm:$0xf0]  ;;  %v8097_v16 = vor.u32 %v11966_v8, %v8096_v7  ;;  %6185 = vmatpush.bf16.msra.mxu2 %v8913_v6 }
  0x53   : > { %v8864_v12 = vld [vmem:[%s13193_s23 + $0x660] sm:$0xf]  ;;  %v12158_v13 = vld [vmem:[%s13193_s23 + $0x68c] sm:$0xf0]  ;;  %v8481_v19 = vor.u32 %v12062_v11, %v8480_v9  ;;  %6198 = vmatpush.bf16.msra.mxu3 %v9297_v10 }
  0x54   : > { %v9248_v14 = vld [vmem:[%s13193_s23 + $0x960] sm:$0xf]  ;;  %v12254_v15 = vld [vmem:[%s13193_s23 + $0x98c] sm:$0xf0]  ;;  %v8865_v20 = vor.u32 %v12158_v13, %v8864_v12  ;;  %6160 = vmatpush.bf16.msra.mxu0 %v8097_v16 }
  0x55   : > { %v8048_v17 = vld [vmem:[%s13193_s23] sm:$0xf]  ;;  %v11954_v18 = vld [vmem:[%s13193_s23 + $0x2c] sm:$0xf0]  ;;  %v9249_v24 = vor.u32 %v12254_v15, %v9248_v14  ;;  %6173 = vmatpush.bf16.msra.mxu1 %v8481_v19 }
  0x56   : > { %v8432_v21 = vld [vmem:[%s13193_s23 + $0x300] sm:$0xf]  ;;  %v12050_v22 = vld [vmem:[%s13193_s23 + $0x32c] sm:$0xf0]  ;;  %v8049_v31 = vor.u32 %v11954_v18, %v8048_v17  ;;  %6186 = vmatpush.bf16.msra.mxu2 %v8865_v20 }
  0x57   : > { %v8816_v23 = vld [vmem:[%s13193_s23 + $0x600] sm:$0xf]  ;;  %v12146_v25 = vld [vmem:[%s13193_s23 + $0x62c] sm:$0xf0]  ;;  %v8433_v35 = vor.u32 %v12050_v22, %v8432_v21  ;;  %6199 = vmatpush.bf16.msra.mxu3 %v9249_v24 }
  0x58   : > { %v9200_v26 = vld [vmem:[%s13193_s23 + $0x900] sm:$0xf]  ;;  %v12242_v27 = vld [vmem:[%s13193_s23 + $0x92c] sm:$0xf0]  ;;  %v8817_v36 = vor.u32 %v12146_v25, %v8816_v23  ;;  %6161 = vmatpush.bf16.msra.mxu0 %v8049_v31 }
  0x59   : > { %v9920_v28 = vld [vmem:[%s13193_s23 + $0xea0] sm:$0xf]  ;;  %v12422_v29 = vld [vmem:[%s13193_s23 + $0xecc] sm:$0xf0]  ;;  %v9201_v39 = vor.u32 %v12242_v27, %v9200_v26  ;;  %6174 = vmatpush.bf16.msra.mxu1 %v8433_v35 }
  0x5a   : > { %v10304_v30 = vld [vmem:[%s13193_s23 + $0x11a0] sm:$0xf]  ;;  %v12518_v32 = vld [vmem:[%s13193_s23 + $0x11cc] sm:$0xf0]  ;;  %v9921_v40 = vor.u32 %v12422_v29, %v9920_v28  ;;  %6187 = vmatpush.bf16.msra.mxu2 %v8817_v36 }
  0x5b   : > { %v10688_v33 = vld [vmem:[%s13193_s23 + $0x14a0] sm:$0xf]  ;;  %v12614_v34 = vld [vmem:[%s13193_s23 + $0x14cc] sm:$0xf0]  ;;  %v10305_v42 = vor.u32 %v12518_v32, %v10304_v30  ;;  %6200 = vmatpush.bf16.msra.mxu3 %v9201_v39 }
  0x5c   : > { %v11072_v37 = vld [vmem:[%s13193_s23 + $0x17a0] sm:$0xf]  ;;  %v12710_v38 = vld [vmem:[%s13193_s23 + $0x17cc] sm:$0xf0]  ;;  %v10689_v43 = vor.u32 %v12614_v34, %v10688_v33  ;;  %6206 = vmatpush.bf16.msrb.mxu0 %v9921_v40 }
  0x5d   : > { %v9872_v44 = vld [vmem:[%s13193_s23 + $0xe40] sm:$0xf]  ;;  %v12410_v45 = vld [vmem:[%s13193_s23 + $0xe6c] sm:$0xf0]  ;;  %v11073_v49 = vor.u32 %v12710_v38, %v11072_v37  ;;  %6219 = vmatpush.bf16.msrb.mxu1 %v10305_v42  ;;  %6188 = vmatmul.bf16.vlgmr.msra.gmra.mxu2 %v13288_v55 }
  0x5e   : > { %v10256_v46 = vld [vmem:[%s13193_s23 + $0x1140] sm:$0xf]  ;;  %v12506_v50 = vld [vmem:[%s13193_s23 + $0x116c] sm:$0xf0]  ;;  %v9873_v58 = vor.u32 %v12410_v45, %v9872_v44  ;;  %6232 = vmatpush.bf16.msrb.mxu2 %v10689_v43  ;;  %6201 = vmatmul.bf16.vlgmr.msra.gmra.mxu3 %v13293_v57 }
  0x5f   : > { %v10640_v51 = vld [vmem:[%s13193_s23 + $0x1440] sm:$0xf]  ;;  %v12602_v52 = vld [vmem:[%s13193_s23 + $0x146c] sm:$0xf0]  ;;  %v10257_v61 = vor.u32 %v12506_v50, %v10256_v46  ;;  %6245 = vmatpush.bf16.msrb.mxu3 %v11073_v49 }
  0x60   : > { %v11024_v53 = vld [vmem:[%s13193_s23 + $0x1740] sm:$0xf]  ;;  %v12698_v54 = vld [vmem:[%s13193_s23 + $0x176c] sm:$0xf0]  ;;  %v10641_v62 = vor.u32 %v12602_v52, %v10640_v51  ;;  %6207 = vmatpush.bf16.msrb.mxu0 %v9873_v58 }
  0x61   : > { %v232_v56 = vld [vmem:[%s15519_s0] sm:$0xff]  ;;  %v12398_v0 = vld [vmem:[%s13193_s23 + $0xe0c] sm:$0xf0]  ;;  %v11025_v2 = vor.u32 %v12698_v54, %v11024_v53  ;;  %6220 = vmatpush.bf16.msrb.mxu1 %v10257_v61 }
  0x62   : > { %v1258_v59 = vunpack.c.l.b16 %v232_v56  ;;  %v1259_v60 = vunpack.c.h.b16 %v232_v56  ;;  %v9824_v63 = vld [vmem:[%s13193_s23 + $0xde0] sm:$0xf]  ;;  %v12494_v3 = vld [vmem:[%s13193_s23 + $0x110c] sm:$0xf0]  ;;  %6233 = vmatpush.bf16.msrb.mxu2 %v10641_v62 }
  0x63   : > { %v10208_v1 = vld [vmem:[%s13193_s23 + $0x10e0] sm:$0xf]  ;;  %v12590_v5 = vld [vmem:[%s13193_s23 + $0x140c] sm:$0xf0]  ;;  %v9825_v10 = vor.u32 %v12398_v0, %v9824_v63  ;;  %6246 = vmatpush.bf16.msrb.mxu3 %v11025_v2 }
  0x64   : > { %v10592_v4 = vld [vmem:[%s13193_s23 + $0x13e0] sm:$0xf]  ;;  %v13302_v6 = vpack.c.b16 %v1258_v59, %v1258_v59  ;;  %v13304_v7 = vpack.c.b16 %v1259_v60, %v1259_v60  ;;  %v12686_v9 = vld [vmem:[%s13193_s23 + $0x170c] sm:$0xf0]  ;;  %v10209_v11 = vor.u32 %v12494_v3, %v10208_v1 }
  0x65   : > { %v10976_v8 = vld [vmem:[%s13193_s23 + $0x16e0] sm:$0xf]  ;;  %v10593_v12 = vor.u32 %v12590_v5, %v10592_v4  ;;  %v12386_v14 = vld [vmem:[%s13193_s23 + $0xdac] sm:$0xf0]  ;;  %6208 = vmatpush.bf16.msrb.mxu0 %v9825_v10  ;;  %v235_v5 = vld [vmem:[%s15519_s0 + $0x18] sm:$0xff] }
  0x66   : > { %6175 = vmatmul.bf16.vlgmr.msra.gmra.mxu1 %v13304_v7  ;;  %v9776_v13 = vld [vmem:[%s13193_s23 + $0xd80] sm:$0xf]  ;;  %v10977_v16 = vor.u32 %v12686_v9, %v10976_v8  ;;  %v12482_v17 = vld [vmem:[%s13193_s23 + $0x10ac] sm:$0xf0]  ;;  %6162 = vmatmul.bf16.vlgmr.msra.gmra.mxu0 %v13302_v6 }
  0x67   : > { %v10160_v15 = vld [vmem:[%s13193_s23 + $0x1080] sm:$0xf]  ;;  %v12578_v19 = vld [vmem:[%s13193_s23 + $0x13ac] sm:$0xf0]  ;;  %v9777_v22 = vor.u32 %v12386_v14, %v9776_v13  ;;  %6221 = vmatpush.bf16.msrb.mxu1 %v10209_v11  ;;  %6234 = vmatpush.bf16.msrb.mxu2 %v10593_v12 }
  0x68   : > { %v10544_v18 = vld [vmem:[%s13193_s23 + $0x1380] sm:$0xf]  ;;  %v12674_v21 = vld [vmem:[%s13193_s23 + $0x16ac] sm:$0xf0]  ;;  %v10161_v23 = vor.u32 %v12482_v17, %v10160_v15  ;;  %6247 = vmatpush.bf16.msrb.mxu3 %v10977_v16  ;;  %v12032_v17 = vld [vmem:[%s13193_s23 + $0x2a4] sm:$0xf] }
  0x69   : > { %v10928_v20 = vld [vmem:[%s13193_s23 + $0x1680] sm:$0xf]  ;;  %v10545_v24 = vor.u32 %v12578_v19, %v10544_v18  ;;  %v12374_v26 = vld [vmem:[%s13193_s23 + $0xd4c] sm:$0xf0]  ;;  %6209 = vmatpush.bf16.msrb.mxu0 %v9777_v22  ;;  %v8386_v18 = vld [vmem:[%s13193_s23 + $0x2d0] sm:$0xf0] }
  0x6a   : > { %v9728_v25 = vld [vmem:[%s13193_s23 + $0xd20] sm:$0xf]  ;;  %v10929_v28 = vor.u32 %v12674_v21, %v10928_v20  ;;  %v12470_v29 = vld [vmem:[%s13193_s23 + $0x104c] sm:$0xf0]  ;;  %v1264_v20 = vunpack.c.l.b16 %v235_v5 }
  0x6b   : > { %v10112_v27 = vld [vmem:[%s13193_s23 + $0x1020] sm:$0xf]  ;;  %v12566_v31 = vld [vmem:[%s13193_s23 + $0x134c] sm:$0xf0]  ;;  %v9729_v34 = vor.u32 %v12374_v26, %v9728_v25  ;;  %6222 = vmatpush.bf16.msrb.mxu1 %v10161_v23  ;;  %6235 = vmatpush.bf16.msrb.mxu2 %v10545_v24 }
  0x6c   : > { %v10496_v30 = vld [vmem:[%s13193_s23 + $0x1320] sm:$0xf]  ;;  %v12662_v33 = vld [vmem:[%s13193_s23 + $0x164c] sm:$0xf0]  ;;  %v10113_v35 = vor.u32 %v12470_v29, %v10112_v27  ;;  %6248 = vmatpush.bf16.msrb.mxu3 %v10929_v28  ;;  %v1265_v28 = vunpack.c.h.b16 %v235_v5  ;;  %v8242_v5 = vld [vmem:[%s13193_s23 + $0x1b0] sm:$0xf0] }
  0x6d   : > { %v10880_v32 = vld [vmem:[%s13193_s23 + $0x1620] sm:$0xf]  ;;  %v10497_v36 = vor.u32 %v12566_v31, %v10496_v30  ;;  %v12362_v38 = vld [vmem:[%s13193_s23 + $0xcec] sm:$0xf0]  ;;  %6210 = vmatpush.bf16.msrb.mxu0 %v9729_v34  ;;  %v8389_v30 = vor.u32 %v12032_v17, %v8386_v18  ;;  %v12128_v31 = vld [vmem:[%s13193_s23 + $0x5a4] sm:$0xf] }
  0x6e   : > { %v9680_v37 = vld [vmem:[%s13193_s23 + $0xcc0] sm:$0xf]  ;;  %v10881_v40 = vor.u32 %v12662_v33, %v10880_v32  ;;  %v12458_v41 = vld [vmem:[%s13193_s23 + $0xfec] sm:$0xf0]  ;;  %v8770_v32 = vld [vmem:[%s13193_s23 + $0x5d0] sm:$0xf0] }
  0x6f   : > { %v10064_v39 = vld [vmem:[%s13193_s23 + $0xfc0] sm:$0xf]  ;;  %v12554_v43 = vld [vmem:[%s13193_s23 + $0x12ec] sm:$0xf0]  ;;  %v9681_v46 = vor.u32 %v12362_v38, %v9680_v37  ;;  %6223 = vmatpush.bf16.msrb.mxu1 %v10113_v35  ;;  %6236 = vmatpush.bf16.msrb.mxu2 %v10497_v36  ;;  %v13370_v35 = vpack.c.b16 %v1264_v20, %v1264_v20  ;;  %v11984_v20 = vld [vmem:[%s13193_s23 + $0x124] sm:$0xf] }
  0x70   : > { %v10448_v42 = vld [vmem:[%s13193_s23 + $0x12c0] sm:$0xf]  ;;  %v12650_v45 = vld [vmem:[%s13193_s23 + $0x15ec] sm:$0xf0]  ;;  %v10065_v47 = vor.u32 %v12458_v41, %v10064_v39  ;;  %6249 = vmatpush.bf16.msrb.mxu3 %v10881_v40  ;;  %v12020_v41 = vld [vmem:[%s13193_s23 + $0x244] sm:$0xf] }
  0x71   : > { %v10832_v44 = vld [vmem:[%s13193_s23 + $0x15c0] sm:$0xf]  ;;  %v10449_v48 = vor.u32 %v12554_v43, %v10448_v42  ;;  %v12350_v50 = vld [vmem:[%s13193_s23 + $0xc8c] sm:$0xf0]  ;;  %6211 = vmatpush.bf16.msrb.mxu0 %v9681_v46  ;;  %v8338_v42 = vld [vmem:[%s13193_s23 + $0x270] sm:$0xf0]  ;;  %v8773_v43 = vor.u32 %v12128_v31, %v8770_v32 }
  0x72   : > { %v9632_v49 = vld [vmem:[%s13193_s23 + $0xc60] sm:$0xf]  ;;  %v10833_v52 = vor.u32 %v12650_v45, %v10832_v44  ;;  %v12446_v53 = vld [vmem:[%s13193_s23 + $0xf8c] sm:$0xf0]  ;;  %v13379_v44 = vpack.c.b16 %v1265_v28, %v1265_v28 }
  0x73   : > { %v10016_v51 = vld [vmem:[%s13193_s23 + $0xf60] sm:$0xf]  ;;  %v12542_v56 = vld [vmem:[%s13193_s23 + $0x128c] sm:$0xf0]  ;;  %v9633_v61 = vor.u32 %v12350_v50, %v9632_v49  ;;  %6224 = vmatpush.bf16.msrb.mxu1 %v10065_v47  ;;  %6237 = vmatpush.bf16.msrb.mxu2 %v10449_v48  ;;  %v12116_v47 = vld [vmem:[%s13193_s23 + $0x544] sm:$0xf]  ;;  %v8341_v50 = vor.u32 %v12020_v41, %v8338_v42 }
  0x74   : > { %v10400_v54 = vld [vmem:[%s13193_s23 + $0x1260] sm:$0xf]  ;;  %v12638_v59 = vld [vmem:[%s13193_s23 + $0x158c] sm:$0xf0]  ;;  %v10017_v1 = vor.u32 %v12446_v53, %v10016_v51  ;;  %6250 = vmatpush.bf16.msrb.mxu3 %v10833_v52  ;;  %v8722_v48 = vld [vmem:[%s13193_s23 + $0x570] sm:$0xf0] }
  0x75   : > { %v10784_v58 = vld [vmem:[%s13193_s23 + $0x1560] sm:$0xf]  ;;  %v12338_v62 = vld [vmem:[%s13193_s23 + $0xc2c] sm:$0xf0]  ;;  %v10401_v2 = vor.u32 %v12542_v56, %v10400_v54  ;;  %6212 = vmatpush.bf16.msrb.mxu0 %v9633_v61  ;;  %v12008_v54 = vld [vmem:[%s13193_s23 + $0x1e4] sm:$0xf] }
  0x76   : > { %v9584_v60 = vld [vmem:[%s13193_s23 + $0xc00] sm:$0xf]  ;;  %v12434_v0 = vld [vmem:[%s13193_s23 + $0xf2c] sm:$0xf0]  ;;  %v10785_v8 = vor.u32 %v12638_v59, %v10784_v58  ;;  %v8290_v56 = vld [vmem:[%s13193_s23 + $0x210] sm:$0xf0]  ;;  %v8725_v58 = vor.u32 %v12116_v47, %v8722_v48 }
  0x77   : > { %v9968_v63 = vld [vmem:[%s13193_s23 + $0xf00] sm:$0xf]  ;;  %v234_v4 = vld [vmem:[%s15519_s0 + $0x10] sm:$0xff]  ;;  %v9585_v15 = vor.u32 %v12338_v62, %v9584_v60  ;;  %6225 = vmatpush.bf16.msrb.mxu1 %v10017_v1  ;;  %6238 = vmatpush.bf16.msrb.mxu2 %v10401_v2  ;;  %v12104_v61 = vld [vmem:[%s13193_s23 + $0x4e4] sm:$0xf] }
  0x78   : > { %v10352_v3 = vld [vmem:[%s13193_s23 + $0x1200] sm:$0xf]  ;;  %v12530_v9 = vld [vmem:[%s13193_s23 + $0x122c] sm:$0xf0]  ;;  %v1262_v19 = vunpack.c.l.b16 %v234_v4  ;;  %v9969_v21 = vor.u32 %v12434_v0, %v9968_v63  ;;  %v1263_v23 = vunpack.c.h.b16 %v234_v4  ;;  %6251 = vmatpush.bf16.msrb.mxu3 %v10785_v8  ;;  %v8674_v62 = vld [vmem:[%s13193_s23 + $0x510] sm:$0xf0]  ;;  %v8293_v0 = vor.u32 %v12008_v54, %v8290_v56 }
  0x79   : > { %v10736_v10 = vld [vmem:[%s13193_s23 + $0x1500] sm:$0xf]  ;;  %v12626_v11 = vld [vmem:[%s13193_s23 + $0x152c] sm:$0xf0]  ;;  %v10353_v22 = vor.u32 %v12530_v9, %v10352_v3  ;;  %6213 = vmatpush.bf16.msrb.mxu0 %v9585_v15  ;;  %v11996_v4 = vld [vmem:[%s13193_s23 + $0x184] sm:$0xf]  ;;  %v8677_v9 = vor.u32 %v12104_v61, %v8674_v62 }
  0x7a   : > { %v11456_v12 = vld [vmem:[%s13193_s23 + $0x1aa0] sm:$0xf]  ;;  %v12806_v13 = vld [vmem:[%s13193_s23 + $0x1acc] sm:$0xf0]  ;;  %v10737_v24 = vor.u32 %v12626_v11, %v10736_v10  ;;  %v13368_v34 = vpack.c.b16 %v1262_v19, %v1262_v19  ;;  %v13375_v40 = vpack.c.b16 %v1263_v23, %v1263_v23  ;;  %v237_v8 = vld [vmem:[%s15519_s0 + $0x28] sm:$0xf]  ;;  %v8245_v15 = vor.u32 %v11996_v4, %v8242_v5 }
  0x7b   : > { %v11840_v14 = vld [vmem:[%s13193_s23 + $0x1da0] sm:$0xf]  ;;  %v12902_v16 = vld [vmem:[%s13193_s23 + $0x1dcc] sm:$0xf0]  ;;  %v11457_v25 = vor.u32 %v12806_v13, %v11456_v12  ;;  %6226 = vmatpush.bf16.msrb.mxu1 %v9969_v21  ;;  %6239 = vmatpush.bf16.msrb.mxu2 %v10353_v22  ;;  %v12092_v12 = vld [vmem:[%s13193_s23 + $0x484] sm:$0xf]  ;;  %v1268_v19 = vunpack.c.l.b16 %v237_v8 }
  0x7c   : > { %v11888_v26 = vld [vmem:[%s13193_s23 + $0x1e00] sm:$0xf]  ;;  %v12914_v27 = vld [vmem:[%s13193_s23 + $0x1e2c] sm:$0xf0]  ;;  %v11841_v29 = vor.u32 %v12902_v16, %v11840_v14  ;;  %6252 = vmatpush.bf16.msrb.mxu3 %v10737_v24  ;;  %6214 = vmatmul.bf16.vlgmr.msrb.gmra.mxu0 %v13368_v34  ;;  %v8626_v13 = vld [vmem:[%s13193_s23 + $0x4b0] sm:$0xf0] }
  0x7d   : > { %v11408_v33 = vld [vmem:[%s13193_s23 + $0x1a40] sm:$0xf]  ;;  %v12794_v36 = vld [vmem:[%s13193_s23 + $0x1a6c] sm:$0xf0]  ;;  %v11889_v39 = vor.u32 %v12914_v27, %v11888_v26  ;;  %6258 = vmatpush.bf16.msra.mxu0 %v11457_v25  ;;  %v8194_v21 = vld [vmem:[%s13193_s23 + $0x150] sm:$0xf0]  ;;  %v8629_v22 = vor.u32 %v12092_v12, %v8626_v13  ;;  %v13418_v32 = vpack.c.b16 %v1268_v19, %v1268_v19 }
  0x7e   : > { %v11792_v37 = vld [vmem:[%s13193_s23 + $0x1d40] sm:$0xf]  ;;  %v12890_v38 = vld [vmem:[%s13193_s23 + $0x1d6c] sm:$0xf0]  ;;  %v11409_v45 = vor.u32 %v12794_v36, %v11408_v33  ;;  %6240 = vmatmul.bf16.vlgmr.msrb.gmra.mxu2 %v13370_v35  ;;  %6227 = vmatmul.bf16.vlgmr.msrb.gmra.mxu1 %v13375_v40  ;;  %v12080_v25 = vld [vmem:[%s13193_s23 + $0x424] sm:$0xf]  ;;  %v8197_v28 = vor.u32 %v11984_v20, %v8194_v21 }
  0x7f   : > { %6271 = vmatpush.bf16.msra.mxu1 %v11841_v29  ;;  %v11793_v46 = vor.u32 %v12890_v38, %v11792_v37  ;;  %v11360_v49 = vld [vmem:[%s13193_s23 + $0x19e0] sm:$0xf]  ;;  %v12782_v51 = vld [vmem:[%s13193_s23 + $0x1a0c] sm:$0xf0]  ;;  %6291 = vmatpush.bf16.msra.mxu2 %v11889_v39  ;;  %v8578_v26 = vld [vmem:[%s13193_s23 + $0x450] sm:$0xf0] }
  0x80   : > { %6297 = vmatpush.bf16.msra.mxu3 %v8389_v30  ;;  %v11744_v52 = vld [vmem:[%s13193_s23 + $0x1ce0] sm:$0xf]  ;;  %v12878_v53 = vld [vmem:[%s13193_s23 + $0x1d0c] sm:$0xf0]  ;;  %v11361_v59 = vor.u32 %v12782_v51, %v11360_v49  ;;  %v11972_v33 = vld [vmem:[%s13193_s23 + $0xc4] sm:$0xf]  ;;  %v8581_v37 = vor.u32 %v12080_v25, %v8578_v26 }
  0x81   : > { %6253 = vmatmul.bf16.vlgmr.msrb.gmra.mxu3 %v13379_v44  ;;  %6259 = vmatpush.bf16.msra.mxu0 %v11409_v45  ;;  %v11745_v60 = vor.u32 %v12878_v53, %v11744_v52  ;;  %v11312_v63 = vld [vmem:[%s13193_s23 + $0x1980] sm:$0xf]  ;;  %v12770_v1 = vld [vmem:[%s13193_s23 + $0x19ac] sm:$0xf0]  ;;  %v8146_v36 = vld [vmem:[%s13193_s23 + $0xf0] sm:$0xf0] }
  0x82   : > { %v11696_v2 = vld [vmem:[%s13193_s23 + $0x1c80] sm:$0xf]  ;;  %v12866_v3 = vld [vmem:[%s13193_s23 + $0x1cac] sm:$0xf0]  ;;  %v11313_v10 = vor.u32 %v12770_v1, %v11312_v63  ;;  %v12068_v41 = vld [vmem:[%s13193_s23 + $0x3c4] sm:$0xf]  ;;  %v8149_v45 = vor.u32 %v11972_v33, %v8146_v36 }
  0x83   : > { %6310 = vmatpush.bf16.msrb.mxu2 %v8773_v43  ;;  %6272 = vmatpush.bf16.msra.mxu1 %v11793_v46  ;;  %v11697_v11 = vor.u32 %v12866_v3, %v11696_v2  ;;  %v11264_v14 = vld [vmem:[%s13193_s23 + $0x1920] sm:$0xf]  ;;  %v12758_v16 = vld [vmem:[%s13193_s23 + $0x194c] sm:$0xf0]  ;;  %v8530_v42 = vld [vmem:[%s13193_s23 + $0x3f0] sm:$0xf0] }
  0x84   : > { %6298 = vmatpush.bf16.msra.mxu3 %v8341_v50  ;;  %v11648_v17 = vld [vmem:[%s13193_s23 + $0x1c20] sm:$0xf]  ;;  %v12854_v18 = vld [vmem:[%s13193_s23 + $0x1c4c] sm:$0xf0]  ;;  %v11265_v23 = vor.u32 %v12758_v16, %v11264_v14  ;;  %v11960_v49 = vld [vmem:[%s13193_s23 + $0x64] sm:$0xf]  ;;  %v8533_v51 = vor.u32 %v12068_v41, %v8530_v42 }
  0x85   : > { %6260 = vmatpush.bf16.msra.mxu0 %v11361_v59  ;;  %v11649_v24 = vor.u32 %v12854_v18, %v11648_v17  ;;  %v11216_v27 = vld [vmem:[%s13193_s23 + $0x18c0] sm:$0xf]  ;;  %v12746_v29 = vld [vmem:[%s13193_s23 + $0x18ec] sm:$0xf0]  ;;  %v8098_v50 = vld [vmem:[%s13193_s23 + $0x90] sm:$0xf0] }
  0x86   : > { %v11600_v30 = vld [vmem:[%s13193_s23 + $0x1bc0] sm:$0xf]  ;;  %v12842_v31 = vld [vmem:[%s13193_s23 + $0x1bec] sm:$0xf0]  ;;  %v11217_v38 = vor.u32 %v12746_v29, %v11216_v27  ;;  %v12056_v52 = vld [vmem:[%s13193_s23 + $0x364] sm:$0xf]  ;;  %v8101_v62 = vor.u32 %v11960_v49, %v8098_v50 }
  0x87   : > { %6311 = vmatpush.bf16.msrb.mxu2 %v8725_v58  ;;  %6273 = vmatpush.bf16.msra.mxu1 %v11745_v60  ;;  %v11601_v39 = vor.u32 %v12842_v31, %v11600_v30  ;;  %v11168_v43 = vld [vmem:[%s13193_s23 + $0x1860] sm:$0xf]  ;;  %v12734_v46 = vld [vmem:[%s13193_s23 + $0x188c] sm:$0xf0]  ;;  %v8482_v53 = vld [vmem:[%s13193_s23 + $0x390] sm:$0xf0] }
  0x88   : > { %6299 = vmatpush.bf16.msra.mxu3 %v8293_v0  ;;  %v11552_v47 = vld [vmem:[%s13193_s23 + $0x1b60] sm:$0xf]  ;;  %v12830_v48 = vld [vmem:[%s13193_s23 + $0x1b8c] sm:$0xf0]  ;;  %v11169_v56 = vor.u32 %v12734_v46, %v11168_v43  ;;  %v11948_v0 = vld [vmem:[%s13193_s23 + $0x4] sm:$0xf]  ;;  %v8485_v5 = vor.u32 %v12056_v52, %v8482_v53 }
  0x89   : > { %6261 = vmatpush.bf16.msra.mxu0 %v11313_v10  ;;  %v236_v54 = vld [vmem:[%s15519_s0 + $0x20] sm:$0xff]  ;;  %v11553_v58 = vor.u32 %v12830_v48, %v11552_v47  ;;  %v12722_v60 = vld [vmem:[%s13193_s23 + $0x182c] sm:$0xf0]  ;;  %v8050_v1 = vld [vmem:[%s13193_s23 + $0x30] sm:$0xf0] }
  0x8a   : > { %v11120_v59 = vld [vmem:[%s13193_s23 + $0x1800] sm:$0xf]  ;;  %v12818_v63 = vld [vmem:[%s13193_s23 + $0x1b2c] sm:$0xf0]  ;;  %v12224_v2 = vld [vmem:[%s13193_s23 + $0x8a4] sm:$0xf]  ;;  %v1267_v16 = vunpack.c.h.b16 %v236_v54  ;;  %v8053_v17 = vor.u32 %v11948_v0, %v8050_v1 }
  0x8b   : > { %6312 = vmatpush.bf16.msrb.mxu2 %v8677_v9  ;;  %6274 = vmatpush.bf16.msra.mxu1 %v11697_v11  ;;  %v11504_v61 = vld [vmem:[%s13193_s23 + $0x1b00] sm:$0xf]  ;;  %v9154_v3 = vld [vmem:[%s13193_s23 + $0x8d0] sm:$0xf0]  ;;  %v12320_v4 = vld [vmem:[%s13193_s23 + $0xba4] sm:$0xf]  ;;  %v1266_v11 = vunpack.c.l.b16 %v236_v54  ;;  %v11121_v12 = vor.u32 %v12722_v60, %v11120_v59 }
  0x8c   : > { %6300 = vmatpush.bf16.msra.mxu3 %v8245_v15  ;;  %v9538_v8 = vld [vmem:[%s13193_s23 + $0xbd0] sm:$0xf0]  ;;  %v12416_v9 = vld [vmem:[%s13193_s23 + $0xea4] sm:$0xf]  ;;  %v11505_v13 = vor.u32 %v12818_v63, %v11504_v61  ;;  %v9157_v18 = vor.u32 %v12224_v2, %v9154_v3  ;;  %v13461_v33 = vpack.c.b16 %v1267_v16, %v1267_v16 }
  0x8d   : > { %6262 = vmatpush.bf16.msra.mxu0 %v11265_v23  ;;  %v9922_v10 = vld [vmem:[%s13193_s23 + $0xed0] sm:$0xf0]  ;;  %v12044_v14 = vld [vmem:[%s13193_s23 + $0x304] sm:$0xf]  ;;  %v9541_v21 = vor.u32 %v12320_v4, %v9538_v8  ;;  %v13456_v26 = vpack.c.b16 %v1266_v11, %v1266_v11 }
  0x8e   : > { %11934 = vmatmul.msk.bf16.vlgmr.msra.gmra.mxu2 %vm6150_vm0, %v13418_v32  ;;  %v8434_v15 = vld [vmem:[%s13193_s23 + $0x330] sm:$0xf0]  ;;  %v12512_v19 = vld [vmem:[%s13193_s23 + $0x11a4] sm:$0xf] }
  0x8f   : > { %6313 = vmatpush.bf16.msrb.mxu2 %v8629_v22  ;;  %6275 = vmatpush.bf16.msra.mxu1 %v11649_v24  ;;  %v10306_v20 = vld [vmem:[%s13193_s23 + $0x11d0] sm:$0xf0]  ;;  %v9925_v22 = vor.u32 %v12416_v9, %v9922_v10  ;;  %v12212_v23 = vld [vmem:[%s13193_s23 + $0x844] sm:$0xf]  ;;  %v8437_v27 = vor.u32 %v12044_v14, %v8434_v15 }
  0x90   : > { %6301 = vmatpush.bf16.msra.mxu3 %v8197_v28  ;;  %v9106_v24 = vld [vmem:[%s13193_s23 + $0x870] sm:$0xf0]  ;;  %v12308_v25 = vld [vmem:[%s13193_s23 + $0xb44] sm:$0xf]  ;;  %v10309_v31 = vor.u32 %v12512_v19, %v10306_v20 }
  0x91   : > { %6263 = vmatpush.bf16.msra.mxu0 %v11217_v38  ;;  %v9490_v28 = vld [vmem:[%s13193_s23 + $0xb70] sm:$0xf0]  ;;  %v12404_v29 = vld [vmem:[%s13193_s23 + $0xe44] sm:$0xf]  ;;  %v9109_v36 = vor.u32 %v12212_v23, %v9106_v24 }
  0x92   : > { %v9874_v30 = vld [vmem:[%s13193_s23 + $0xe70] sm:$0xf0]  ;;  %v12200_v42 = vld [vmem:[%s13193_s23 + $0x7e4] sm:$0xf] }
  0x93   : > { %6314 = vmatpush.bf16.msrb.mxu2 %v8581_v37  ;;  %6276 = vmatpush.bf16.msra.mxu1 %v11601_v39  ;;  %v12500_v37 = vld [vmem:[%s13193_s23 + $0x1144] sm:$0xf]  ;;  %v10258_v38 = vld [vmem:[%s13193_s23 + $0x1170] sm:$0xf0]  ;;  %v9493_v39 = vor.u32 %v12308_v25, %v9490_v28  ;;  %v9877_v41 = vor.u32 %v12404_v29, %v9874_v30 }
  0x94   : > { %6302 = vmatpush.bf16.msra.mxu3 %v8149_v45  ;;  %v9058_v43 = vld [vmem:[%s13193_s23 + $0x810] sm:$0xf0]  ;;  %v12296_v45 = vld [vmem:[%s13193_s23 + $0xae4] sm:$0xf]  ;;  %v10261_v49 = vor.u32 %v12500_v37, %v10258_v38 }
  0x95   : > { %6264 = vmatpush.bf16.msra.mxu0 %v11169_v56  ;;  %v9442_v46 = vld [vmem:[%s13193_s23 + $0xb10] sm:$0xf0]  ;;  %v12392_v47 = vld [vmem:[%s13193_s23 + $0xde4] sm:$0xf]  ;;  %v9061_v50 = vor.u32 %v12200_v42, %v9058_v43 }
  0x96   : > { %v9826_v48 = vld [vmem:[%s13193_s23 + $0xe10] sm:$0xf0]  ;;  %v9445_v53 = vor.u32 %v12296_v45, %v9442_v46  ;;  %v12188_v56 = vld [vmem:[%s13193_s23 + $0x784] sm:$0xf] }
  0x97   : > { %6315 = vmatpush.bf16.msrb.mxu2 %v8533_v51  ;;  %6277 = vmatpush.bf16.msra.mxu1 %v11553_v58  ;;  %v12488_v51 = vld [vmem:[%s13193_s23 + $0x10e4] sm:$0xf]  ;;  %v10210_v52 = vld [vmem:[%s13193_s23 + $0x1110] sm:$0xf0]  ;;  %v9829_v54 = vor.u32 %v12392_v47, %v9826_v48 }
  0x98   : > { %6303 = vmatpush.bf16.msra.mxu3 %v8101_v62  ;;  %v9010_v58 = vld [vmem:[%s13193_s23 + $0x7b0] sm:$0xf0]  ;;  %v12284_v59 = vld [vmem:[%s13193_s23 + $0xa84] sm:$0xf]  ;;  %v10213_v63 = vor.u32 %v12488_v51, %v10210_v52 }
  0x99   : > { %6265 = vmatpush.bf16.msra.mxu0 %v11121_v12  ;;  %v9394_v60 = vld [vmem:[%s13193_s23 + $0xab0] sm:$0xf0]  ;;  %v12380_v61 = vld [vmem:[%s13193_s23 + $0xd84] sm:$0xf]  ;;  %v9013_v0 = vor.u32 %v12188_v56, %v9010_v58 }
  0x9a   : > { %v9778_v62 = vld [vmem:[%s13193_s23 + $0xdb0] sm:$0xf0]  ;;  %v12476_v1 = vld [vmem:[%s13193_s23 + $0x1084] sm:$0xf]  ;;  %v9397_v3 = vor.u32 %v12284_v59, %v9394_v60 }
  0x9b   : > { %6316 = vmatpush.bf16.msrb.mxu2 %v8485_v5  ;;  %6278 = vmatpush.bf16.msra.mxu1 %v11505_v13  ;;  %v10162_v2 = vld [vmem:[%s13193_s23 + $0x10b0] sm:$0xf0]  ;;  %v9781_v4 = vor.u32 %v12380_v61, %v9778_v62  ;;  %v12176_v5 = vld [vmem:[%s13193_s23 + $0x724] sm:$0xf] }
  0x9c   : > { %6304 = vmatpush.bf16.msra.mxu3 %v8053_v17  ;;  %6266 = vmatmul.bf16.vlgmr.msra.gmra.mxu0 %v13456_v26  ;;  %v8962_v8 = vld [vmem:[%s13193_s23 + $0x750] sm:$0xf0]  ;;  %v12272_v9 = vld [vmem:[%s13193_s23 + $0xa24] sm:$0xf]  ;;  %v10165_v13 = vor.u32 %v12476_v1, %v10162_v2 }
  0x9d   : > { %6323 = vmatpush.bf16.msrb.mxu0 %v9157_v18  ;;  %v9346_v10 = vld [vmem:[%s13193_s23 + $0xa50] sm:$0xf0]  ;;  %v12368_v11 = vld [vmem:[%s13193_s23 + $0xd24] sm:$0xf]  ;;  %v8965_v14 = vor.u32 %v12176_v5, %v8962_v8 }
  0x9e   : > { %6279 = vmatmul.bf16.vlgmr.msra.gmra.mxu1 %v13461_v33  ;;  %v9730_v12 = vld [vmem:[%s13193_s23 + $0xd50] sm:$0xf0]  ;;  %v12464_v15 = vld [vmem:[%s13193_s23 + $0x1024] sm:$0xf]  ;;  %v9349_v17 = vor.u32 %v12272_v9, %v9346_v10 }
  0x9f   : > { %6336 = vmatpush.bf16.msrb.mxu1 %v9541_v21  ;;  %6317 = vmatpush.bf16.msrb.mxu2 %v8437_v27  ;;  %v10114_v16 = vld [vmem:[%s13193_s23 + $0x1050] sm:$0xf0]  ;;  %v9733_v18 = vor.u32 %v12368_v11, %v9730_v12  ;;  %v12164_v19 = vld [vmem:[%s13193_s23 + $0x6c4] sm:$0xf] }
  0xa0   : > { %6349 = vmatpush.bf16.msrb.mxu3 %v9925_v22  ;;  %v8914_v20 = vld [vmem:[%s13193_s23 + $0x6f0] sm:$0xf0]  ;;  %v12260_v21 = vld [vmem:[%s13193_s23 + $0x9c4] sm:$0xf]  ;;  %v10117_v25 = vor.u32 %v12464_v15, %v10114_v16 }
  0xa1   : > { %6324 = vmatpush.bf16.msrb.mxu0 %v9109_v36  ;;  %6305 = vmatmul.bf16.vlgmr.msra.gmra.mxu3 %v13302_v6  ;;  %v9298_v22 = vld [vmem:[%s13193_s23 + $0x9f0] sm:$0xf0]  ;;  %v12356_v23 = vld [vmem:[%s13193_s23 + $0xcc4] sm:$0xf]  ;;  %v8917_v27 = vor.u32 %v12164_v19, %v8914_v20 }
  0xa2   : > { %6318 = vmatmul.bf16.vlgmr.msrb.gmra.mxu2 %v13304_v7  ;;  %v9682_v24 = vld [vmem:[%s13193_s23 + $0xcf0] sm:$0xf0]  ;;  %v12452_v28 = vld [vmem:[%s13193_s23 + $0xfc4] sm:$0xf]  ;;  %v9301_v30 = vor.u32 %v12260_v21, %v9298_v22 }
  0xa3   : > { %6362 = vmatpush.bf16.msra.mxu2 %v10309_v31  ;;  %6337 = vmatpush.bf16.msrb.mxu1 %v9493_v39  ;;  %v10066_v29 = vld [vmem:[%s13193_s23 + $0xff0] sm:$0xf0]  ;;  %v9685_v31 = vor.u32 %v12356_v23, %v9682_v24  ;;  %v12152_v36 = vld [vmem:[%s13193_s23 + $0x664] sm:$0xf] }
  0xa4   : > { %6350 = vmatpush.bf16.msrb.mxu3 %v9877_v41  ;;  %v8866_v37 = vld [vmem:[%s13193_s23 + $0x690] sm:$0xf0]  ;;  %v12248_v38 = vld [vmem:[%s13193_s23 + $0x964] sm:$0xf]  ;;  %v10069_v43 = vor.u32 %v12452_v28, %v10066_v29 }
  0xa5   : > { %6325 = vmatpush.bf16.msrb.mxu0 %v9061_v50  ;;  %v9250_v39 = vld [vmem:[%s13193_s23 + $0x990] sm:$0xf0]  ;;  %v12344_v41 = vld [vmem:[%s13193_s23 + $0xc64] sm:$0xf]  ;;  %v8869_v46 = vor.u32 %v12152_v36, %v8866_v37 }
  0xa6   : > { %v9634_v42 = vld [vmem:[%s13193_s23 + $0xc90] sm:$0xf0]  ;;  %v12440_v45 = vld [vmem:[%s13193_s23 + $0xf64] sm:$0xf]  ;;  %v9253_v50 = vor.u32 %v12248_v38, %v9250_v39 }
  0xa7   : > { %6363 = vmatpush.bf16.msra.mxu2 %v10261_v49  ;;  %6338 = vmatpush.bf16.msrb.mxu1 %v9445_v53  ;;  %v10018_v47 = vld [vmem:[%s13193_s23 + $0xf90] sm:$0xf0]  ;;  %v12140_v48 = vld [vmem:[%s13193_s23 + $0x604] sm:$0xf]  ;;  %v9637_v51 = vor.u32 %v12344_v41, %v9634_v42 }
  0xa8   : > { %6351 = vmatpush.bf16.msrb.mxu3 %v9829_v54  ;;  %v8818_v49 = vld [vmem:[%s13193_s23 + $0x630] sm:$0xf0]  ;;  %v12236_v52 = vld [vmem:[%s13193_s23 + $0x904] sm:$0xf]  ;;  %v10021_v60 = vor.u32 %v12440_v45, %v10018_v47 }
  0xa9   : > { %6326 = vmatpush.bf16.msrb.mxu0 %v9013_v0  ;;  %v9202_v53 = vld [vmem:[%s13193_s23 + $0x930] sm:$0xf0]  ;;  %v12332_v54 = vld [vmem:[%s13193_s23 + $0xc04] sm:$0xf]  ;;  %v8821_v0 = vor.u32 %v12140_v48, %v8818_v49 }
  0xaa   : > { %v9586_v56 = vld [vmem:[%s13193_s23 + $0xc30] sm:$0xf0]  ;;  %v12608_v58 = vld [vmem:[%s13193_s23 + $0x14a4] sm:$0xf] }
  0xab   : > { %6364 = vmatpush.bf16.msra.mxu2 %v10213_v63  ;;  %6339 = vmatpush.bf16.msrb.mxu1 %v9397_v3  ;;  %v10690_v59 = vld [vmem:[%s13193_s23 + $0x14d0] sm:$0xf0]  ;;  %v12704_v61 = vld [vmem:[%s13193_s23 + $0x17a4] sm:$0xf]  ;;  %v9589_v5 = vor.u32 %v12332_v54, %v9586_v56 }
  0xac   : > { %6352 = vmatpush.bf16.msrb.mxu3 %v9781_v4  ;;  %v11074_v62 = vld [vmem:[%s13193_s23 + $0x17d0] sm:$0xf0]  ;;  %v12800_v63 = vld [vmem:[%s13193_s23 + $0x1aa4] sm:$0xf]  ;;  %v9205_v4 = vor.u32 %v12236_v52, %v9202_v53  ;;  %v10693_v10 = vor.u32 %v12608_v58, %v10690_v59 }
  0xad   : > { %6327 = vmatpush.bf16.msrb.mxu0 %v8965_v14  ;;  %v11458_v1 = vld [vmem:[%s13193_s23 + $0x1ad0] sm:$0xf0]  ;;  %v12428_v2 = vld [vmem:[%s13193_s23 + $0xf04] sm:$0xf]  ;;  %v11077_v11 = vor.u32 %v12704_v61, %v11074_v62 }
  0xae   : > { %v9970_v3 = vld [vmem:[%s13193_s23 + $0xf30] sm:$0xf0]  ;;  %v12896_v8 = vld [vmem:[%s13193_s23 + $0x1da4] sm:$0xf] }
  0xaf   : > { %6365 = vmatpush.bf16.msra.mxu2 %v10165_v13  ;;  %6340 = vmatpush.bf16.msrb.mxu1 %v9349_v17  ;;  %v11842_v9 = vld [vmem:[%s13193_s23 + $0x1dd0] sm:$0xf0]  ;;  %v12596_v12 = vld [vmem:[%s13193_s23 + $0x1444] sm:$0xf]  ;;  %v11461_v13 = vor.u32 %v12800_v63, %v11458_v1  ;;  %v9973_v14 = vor.u32 %v12428_v2, %v9970_v3 }
  0xb0   : > { %6353 = vmatpush.bf16.msrb.mxu3 %v9733_v18  ;;  %v10642_v15 = vld [vmem:[%s13193_s23 + $0x1470] sm:$0xf0]  ;;  %v12692_v16 = vld [vmem:[%s13193_s23 + $0x1744] sm:$0xf]  ;;  %v11845_v18 = vor.u32 %v12896_v8, %v11842_v9 }
  0xb1   : > { %6328 = vmatpush.bf16.msrb.mxu0 %v8917_v27  ;;  %v11026_v17 = vld [vmem:[%s13193_s23 + $0x1770] sm:$0xf0]  ;;  %v12788_v19 = vld [vmem:[%s13193_s23 + $0x1a44] sm:$0xf]  ;;  %v10645_v23 = vor.u32 %v12596_v12, %v10642_v15 }
  0xb2   : > { %v11410_v20 = vld [vmem:[%s13193_s23 + $0x1a70] sm:$0xf0]  ;;  %v12884_v21 = vld [vmem:[%s13193_s23 + $0x1d44] sm:$0xf]  ;;  %v11029_v24 = vor.u32 %v12692_v16, %v11026_v17 }
  0xb3   : > { %6366 = vmatpush.bf16.msra.mxu2 %v10117_v25  ;;  %6341 = vmatpush.bf16.msrb.mxu1 %v9301_v30  ;;  %v11794_v22 = vld [vmem:[%s13193_s23 + $0x1d70] sm:$0xf0]  ;;  %v12584_v25 = vld [vmem:[%s13193_s23 + $0x13e4] sm:$0xf]  ;;  %v11413_v27 = vor.u32 %v12788_v19, %v11410_v20 }
  0xb4   : > { %6354 = vmatpush.bf16.msrb.mxu3 %v9685_v31  ;;  %v10594_v28 = vld [vmem:[%s13193_s23 + $0x1410] sm:$0xf0]  ;;  %v12680_v29 = vld [vmem:[%s13193_s23 + $0x16e4] sm:$0xf]  ;;  %v11797_v31 = vor.u32 %v12884_v21, %v11794_v22 }
  0xb5   : > { %6329 = vmatpush.bf16.msrb.mxu0 %v8869_v46  ;;  %v10978_v30 = vld [vmem:[%s13193_s23 + $0x1710] sm:$0xf0]  ;;  %v12776_v36 = vld [vmem:[%s13193_s23 + $0x19e4] sm:$0xf]  ;;  %v10597_v41 = vor.u32 %v12584_v25, %v10594_v28 }
  0xb6   : > { %v11362_v37 = vld [vmem:[%s13193_s23 + $0x1a10] sm:$0xf0]  ;;  %v12872_v38 = vld [vmem:[%s13193_s23 + $0x1ce4] sm:$0xf]  ;;  %v10981_v42 = vor.u32 %v12680_v29, %v10978_v30 }
  0xb7   : > { %6367 = vmatpush.bf16.msra.mxu2 %v10069_v43  ;;  %6342 = vmatpush.bf16.msrb.mxu1 %v9253_v50  ;;  %v11746_v39 = vld [vmem:[%s13193_s23 + $0x1d10] sm:$0xf0]  ;;  %v12572_v43 = vld [vmem:[%s13193_s23 + $0x1384] sm:$0xf]  ;;  %v11365_v45 = vor.u32 %v12776_v36, %v11362_v37 }
  0xb8   : > { %6355 = vmatpush.bf16.msrb.mxu3 %v9637_v51  ;;  %v10546_v46 = vld [vmem:[%s13193_s23 + $0x13b0] sm:$0xf0]  ;;  %v12668_v47 = vld [vmem:[%s13193_s23 + $0x1684] sm:$0xf]  ;;  %v11749_v49 = vor.u32 %v12872_v38, %v11746_v39 }
  0xb9   : > { %6330 = vmatpush.bf16.msrb.mxu0 %v8821_v0  ;;  %v10930_v48 = vld [vmem:[%s13193_s23 + $0x16b0] sm:$0xf0]  ;;  %v12764_v50 = vld [vmem:[%s13193_s23 + $0x1984] sm:$0xf]  ;;  %v10549_v54 = vor.u32 %v12572_v43, %v10546_v46 }
  0xba   : > { %v11314_v51 = vld [vmem:[%s13193_s23 + $0x19b0] sm:$0xf0]  ;;  %v12860_v52 = vld [vmem:[%s13193_s23 + $0x1c84] sm:$0xf]  ;;  %v10933_v56 = vor.u32 %v12668_v47, %v10930_v48  ;;  %v8392_v47 = vld [vmem:[%s13193_s23 + $0x2a8] sm:$0xf] }
  0xbb   : > { %6368 = vmatpush.bf16.msra.mxu2 %v10021_v60  ;;  %6343 = vmatpush.bf16.msrb.mxu1 %v9205_v4  ;;  %v11698_v53 = vld [vmem:[%s13193_s23 + $0x1cb0] sm:$0xf0]  ;;  %v12560_v58 = vld [vmem:[%s13193_s23 + $0x1324] sm:$0xf]  ;;  %v11317_v59 = vor.u32 %v12764_v50, %v11314_v51  ;;  %v12039_v48 = vld [vmem:[%s13193_s23 + $0x2d4] sm:$0xf0] }
  0xbc   : > { %6356 = vmatpush.bf16.msrb.mxu3 %v9589_v5  ;;  %6331 = vmatmul.bf16.vlgmr.msrb.gmra.mxu0 %v13288_v55  ;;  %v10498_v60 = vld [vmem:[%s13193_s23 + $0x1350] sm:$0xf0]  ;;  %v12656_v61 = vld [vmem:[%s13193_s23 + $0x1624] sm:$0xf]  ;;  %v11701_v63 = vor.u32 %v12860_v52, %v11698_v53 }
  0xbd   : > { %6375 = vmatpush.bf16.msra.mxu0 %v10693_v10  ;;  %v10882_v62 = vld [vmem:[%s13193_s23 + $0x1650] sm:$0xf0]  ;;  %v12752_v0 = vld [vmem:[%s13193_s23 + $0x1924] sm:$0xf]  ;;  %v10501_v4 = vor.u32 %v12560_v58, %v10498_v60  ;;  %v12327_v58 = vld [vmem:[%s13193_s23 + $0xbd4] sm:$0xf0]  ;;  %v8393_v60 = vor.u32 %v12039_v48, %v8392_v47 }
  0xbe   : > { %6344 = vmatmul.bf16.vlgmr.msrb.gmra.mxu1 %v13293_v57  ;;  %v11266_v1 = vld [vmem:[%s13193_s23 + $0x1950] sm:$0xf0]  ;;  %v12848_v2 = vld [vmem:[%s13193_s23 + $0x1c24] sm:$0xf]  ;;  %v10885_v5 = vor.u32 %v12656_v61, %v10882_v62  ;;  %v9160_v61 = vld [vmem:[%s13193_s23 + $0x8a8] sm:$0xf] }
  0xbf   : > { %6388 = vmatpush.bf16.msra.mxu1 %v11077_v11  ;;  %6369 = vmatpush.bf16.msra.mxu2 %v9973_v14  ;;  %v11650_v3 = vld [vmem:[%s13193_s23 + $0x1c50] sm:$0xf0]  ;;  %v12548_v8 = vld [vmem:[%s13193_s23 + $0x12c4] sm:$0xf]  ;;  %v11269_v9 = vor.u32 %v12752_v0, %v11266_v1  ;;  %v12231_v62 = vld [vmem:[%s13193_s23 + $0x8d4] sm:$0xf0] }
  0xc0   : > { %6401 = vmatpush.bf16.msra.mxu3 %v11461_v13  ;;  %v10450_v10 = vld [vmem:[%s13193_s23 + $0x12f0] sm:$0xf0]  ;;  %v12644_v11 = vld [vmem:[%s13193_s23 + $0x15c4] sm:$0xf]  ;;  %v11653_v13 = vor.u32 %v12848_v2, %v11650_v3  ;;  %v8776_v1 = vld [vmem:[%s13193_s23 + $0x5a8] sm:$0xf] }
  0xc1   : > { %6357 = vmatmul.bf16.vlgmr.msrb.gmra.mxu3 %v13368_v34  ;;  %6376 = vmatpush.bf16.msra.mxu0 %v10645_v23  ;;  %v10834_v12 = vld [vmem:[%s13193_s23 + $0x15f0] sm:$0xf0]  ;;  %v12740_v14 = vld [vmem:[%s13193_s23 + $0x18c4] sm:$0xf]  ;;  %v12135_v2 = vld [vmem:[%s13193_s23 + $0x5d4] sm:$0xf0] }
  0xc2   : > { %6370 = vmatmul.bf16.vlgmr.msra.gmra.mxu2 %v13375_v40  ;;  %v11218_v15 = vld [vmem:[%s13193_s23 + $0x18f0] sm:$0xf0]  ;;  %v12836_v16 = vld [vmem:[%s13193_s23 + $0x1bc4] sm:$0xf]  ;;  %v10837_v19 = vor.u32 %v12644_v11, %v10834_v12  ;;  %v8777_v11 = vor.u32 %v12135_v2, %v8776_v1  ;;  %v9112_v12 = vld [vmem:[%s13193_s23 + $0x848] sm:$0xf] }
  0xc3   : > { %6414 = vmatpush.bf16.msrb.mxu2 %v11845_v18  ;;  %6389 = vmatpush.bf16.msra.mxu1 %v11029_v24  ;;  %v11602_v17 = vld [vmem:[%s13193_s23 + $0x1bf0] sm:$0xf0]  ;;  %v10453_v18 = vor.u32 %v12548_v8, %v10450_v10  ;;  %v12536_v20 = vld [vmem:[%s13193_s23 + $0x1264] sm:$0xf]  ;;  %v11221_v21 = vor.u32 %v12740_v14, %v11218_v15  ;;  %v9161_v8 = vor.u32 %v12231_v62, %v9160_v61  ;;  %v12315_v10 = vld [vmem:[%s13193_s23 + $0xb74] sm:$0xf0] }
  0xc4   : > { %6402 = vmatpush.bf16.msra.mxu3 %v11413_v27  ;;  %v10402_v22 = vld [vmem:[%s13193_s23 + $0x1290] sm:$0xf0]  ;;  %v12632_v23 = vld [vmem:[%s13193_s23 + $0x1564] sm:$0xf]  ;;  %v11605_v25 = vor.u32 %v12836_v16, %v11602_v17  ;;  %v8728_v15 = vld [vmem:[%s13193_s23 + $0x548] sm:$0xf] }
  0xc5   : > { %6377 = vmatpush.bf16.msra.mxu0 %v10597_v41  ;;  %v10786_v24 = vld [vmem:[%s13193_s23 + $0x1590] sm:$0xf0]  ;;  %v12728_v27 = vld [vmem:[%s13193_s23 + $0x1864] sm:$0xf]  ;;  %v12123_v16 = vld [vmem:[%s13193_s23 + $0x574] sm:$0xf0] }
  0xc6   : > { %v11170_v28 = vld [vmem:[%s13193_s23 + $0x1890] sm:$0xf0]  ;;  %v12824_v29 = vld [vmem:[%s13193_s23 + $0x1b64] sm:$0xf]  ;;  %v10789_v36 = vor.u32 %v12632_v23, %v10786_v24  ;;  %v12303_v23 = vld [vmem:[%s13193_s23 + $0xb14] sm:$0xf0]  ;;  %v8729_v24 = vor.u32 %v12123_v16, %v8728_v15 }
  0xc7   : > { %6415 = vmatpush.bf16.msrb.mxu2 %v11797_v31  ;;  %6390 = vmatpush.bf16.msra.mxu1 %v10981_v42  ;;  %v11554_v30 = vld [vmem:[%s13193_s23 + $0x1b90] sm:$0xf0]  ;;  %v10405_v31 = vor.u32 %v12536_v20, %v10402_v22  ;;  %v12524_v37 = vld [vmem:[%s13193_s23 + $0x1204] sm:$0xf]  ;;  %v11173_v41 = vor.u32 %v12728_v27, %v11170_v28  ;;  %v9448_v22 = vld [vmem:[%s13193_s23 + $0xae8] sm:$0xf] }
  0xc8   : > { %6403 = vmatpush.bf16.msra.mxu3 %v11365_v45  ;;  %v10354_v38 = vld [vmem:[%s13193_s23 + $0x1230] sm:$0xf0]  ;;  %v12620_v39 = vld [vmem:[%s13193_s23 + $0x1504] sm:$0xf]  ;;  %v11557_v46 = vor.u32 %v12824_v29, %v11554_v30  ;;  %v12207_v27 = vld [vmem:[%s13193_s23 + $0x814] sm:$0xf0] }
  0xc9   : > { %6378 = vmatpush.bf16.msra.mxu0 %v10549_v54  ;;  %v10738_v42 = vld [vmem:[%s13193_s23 + $0x1530] sm:$0xf0]  ;;  %v12716_v43 = vld [vmem:[%s13193_s23 + $0x1804] sm:$0xf]  ;;  %v10357_v53 = vor.u32 %v12524_v37, %v10354_v38  ;;  %v8680_v29 = vld [vmem:[%s13193_s23 + $0x4e8] sm:$0xf] }
  0xca   : > { %v11122_v45 = vld [vmem:[%s13193_s23 + $0x1830] sm:$0xf0]  ;;  %v12908_v51 = vld [vmem:[%s13193_s23 + $0x1e04] sm:$0xf]  ;;  %v10741_v54 = vor.u32 %v12620_v39, %v10738_v42  ;;  %v12111_v30 = vld [vmem:[%s13193_s23 + $0x514] sm:$0xf0] }
  0xcb   : > { %6416 = vmatpush.bf16.msrb.mxu2 %v11749_v49  ;;  %6391 = vmatpush.bf16.msra.mxu1 %v10933_v56  ;;  %v12812_v49 = vld [vmem:[%s13193_s23 + $0x1b04] sm:$0xf]  ;;  %v11506_v50 = vld [vmem:[%s13193_s23 + $0x1b30] sm:$0xf0]  ;;  %v9544_v56 = vld [vmem:[%s13193_s23 + $0xba8] sm:$0xf] }
  0xcc   : > { %6404 = vmatpush.bf16.msra.mxu3 %v11317_v59  ;;  %v11890_v52 = vld [vmem:[%s13193_s23 + $0x1e30] sm:$0xf0]  ;;  %v11125_v59 = vor.u32 %v12716_v43, %v11122_v45  ;;  %v9545_v3 = vor.u32 %v12327_v58, %v9544_v56  ;;  %v13607_v20 = vld [vmem:[%s13199_s25] sm:$0xff]  ;;  %v8248_v37 = vld [vmem:[%s13193_s23 + $0x188] sm:$0xf]  ;;  %v8681_v43 = vor.u32 %v12111_v30, %v8680_v29 }
  0xcd   : > { %6379 = vmatpush.bf16.msra.mxu0 %v10501_v4  ;;  %v11893_v0 = vor.u32 %v12908_v51, %v11890_v52  ;;  %v8344_v4 = vld [vmem:[%s13193_s23 + $0x248] sm:$0xf]  ;;  %v12003_v38 = vld [vmem:[%s13193_s23 + $0x1b4] sm:$0xf0] }
  0xce   : > { %v12291_v42 = vld [vmem:[%s13193_s23 + $0xab4] sm:$0xf0]  ;;  %v9016_v45 = vld [vmem:[%s13193_s23 + $0x788] sm:$0xf]  ;;  %v8249_v47 = vor.u32 %v12003_v38, %v8248_v37 }
  0xcf   : > { %6417 = vmatpush.bf16.msrb.mxu2 %v11701_v63  ;;  %6392 = vmatpush.bf16.msra.mxu1 %v10885_v5  ;;  %v11509_v63 = vor.u32 %v12812_v49, %v11506_v50  ;;  %v12027_v5 = vld [vmem:[%s13193_s23 + $0x274] sm:$0xf0]  ;;  %v8632_v48 = vld [vmem:[%s13193_s23 + $0x488] sm:$0xf] }
  0xd0   : > { %6405 = vmatpush.bf16.msra.mxu3 %v11269_v9  ;;  %v9496_v9 = vld [vmem:[%s13193_s23 + $0xb48] sm:$0xf]  ;;  %v8345_v14 = vor.u32 %v12027_v5, %v8344_v4  ;;  %v12099_v49 = vld [vmem:[%s13193_s23 + $0x4b4] sm:$0xf0] }
  0xd1   : > { %6380 = vmatpush.bf16.msra.mxu0 %v10453_v18  ;;  %v9497_v17 = vor.u32 %v12315_v10, %v9496_v9  ;;  %v8296_v18 = vld [vmem:[%s13193_s23 + $0x1e8] sm:$0xf]  ;;  %v12183_v62 = vld [vmem:[%s13193_s23 + $0x754] sm:$0xf0] }
  0xd2   : > { %v8200_v52 = vld [vmem:[%s13193_s23 + $0x128] sm:$0xf]  ;;  %v12087_v2 = vld [vmem:[%s13193_s23 + $0x454] sm:$0xf0] }
  0xd3   : > { %6418 = vmatpush.bf16.msrb.mxu2 %v11653_v13  ;;  %6393 = vmatpush.bf16.msra.mxu1 %v10837_v19  ;;  %v12219_v13 = vld [vmem:[%s13193_s23 + $0x874] sm:$0xf0]  ;;  %v9352_v58 = vld [vmem:[%s13193_s23 + $0xa28] sm:$0xf] }
  0xd4   : > { %6406 = vmatpush.bf16.msra.mxu3 %v11221_v21  ;;  %v12015_v19 = vld [vmem:[%s13193_s23 + $0x214] sm:$0xf0]  ;;  %v9113_v21 = vor.u32 %v12219_v13, %v9112_v12  ;;  %v8968_v61 = vld [vmem:[%s13193_s23 + $0x728] sm:$0xf] }
  0xd5   : > { %6381 = vmatpush.bf16.msra.mxu0 %v10405_v31  ;;  %v8297_v28 = vor.u32 %v12015_v19, %v8296_v18  ;;  %v1216_v31 = vperm.slane %v13607_v20, 0  ;;  %v8584_v1 = vld [vmem:[%s13193_s23 + $0x428] sm:$0xf]  ;;  %v8969_v10 = vor.u32 %v12183_v62, %v8968_v61  ;;  %v12267_v12 = vld [vmem:[%s13193_s23 + $0x9f4] sm:$0xf0] }
  0xd6   : > { %v8152_v5 = vld [vmem:[%s13193_s23 + $0xc8] sm:$0xf]  ;;  %v8585_v15 = vor.u32 %v12087_v2, %v8584_v1  ;;  %v12255_v30 = vld [vmem:[%s13193_s23 + $0x994] sm:$0xf0] }
  0xd7   : > { %6419 = vmatpush.bf16.msrb.mxu2 %v11605_v25  ;;  %6394 = vmatpush.bf16.msra.mxu1 %v10789_v36  ;;  %v9064_v25 = vld [vmem:[%s13193_s23 + $0x7e8] sm:$0xf]  ;;  %v9449_v36 = vor.u32 %v12303_v23, %v9448_v22  ;;  %v1240_v50 = vperm.slane %v1216_v31, 0  ;;  %v12159_v38 = vld [vmem:[%s13193_s23 + $0x694] sm:$0xf0] }
  0xd8   : > { %6407 = vmatpush.bf16.msra.mxu3 %v11173_v41  ;;  %v9065_v39 = vor.u32 %v12207_v27, %v9064_v25  ;;  %v9400_v41 = vld [vmem:[%s13193_s23 + $0xa88] sm:$0xf]  ;;  %v11967_v25 = vld [vmem:[%s13193_s23 + $0x94] sm:$0xf0] }
  0xd9   : > { %6382 = vmatpush.bf16.msra.mxu0 %v10357_v53  ;;  %v9401_v51 = vor.u32 %v12291_v42, %v9400_v41  ;;  %v11991_v53 = vld [vmem:[%s13193_s23 + $0x154] sm:$0xf0]  ;;  %v8920_v16 = vld [vmem:[%s13193_s23 + $0x6c8] sm:$0xf] }
  0xda   : > { %v8536_v19 = vld [vmem:[%s13193_s23 + $0x3c8] sm:$0xf]  ;;  %v12711_v62 = vld [vmem:[%s13193_s23 + $0x17d4] sm:$0xf0] }
  0xdb   : > { %6420 = vmatpush.bf16.msrb.mxu2 %v11557_v46  ;;  %6395 = vmatpush.bf16.msra.mxu1 %v10741_v54  ;;  %v12195_v46 = vld [vmem:[%s13193_s23 + $0x7b4] sm:$0xf0]  ;;  %v9256_v29 = vld [vmem:[%s13193_s23 + $0x968] sm:$0xf] }
  0xdc   : > { %6408 = vmatpush.bf16.msra.mxu3 %v11125_v59  ;;  %6383 = vmatmul.bf16.vlgmr.msra.gmra.mxu0 %v13370_v35  ;;  %v9017_v56 = vor.u32 %v12195_v46, %v9016_v45  ;;  %v12279_v59 = vld [vmem:[%s13193_s23 + $0xa54] sm:$0xf0]  ;;  %v8872_v37 = vld [vmem:[%s13193_s23 + $0x668] sm:$0xf]  ;;  %v9257_v46 = vor.u32 %v12255_v30, %v9256_v29 }
  0xdd   : > { %6466 = vmatpush.bf16.msrb.mxu0 %v9161_v8  ;;  %v9353_v4 = vor.u32 %v12279_v59, %v9352_v58  ;;  %v11979_v8 = vld [vmem:[%s13193_s23 + $0xf4] sm:$0xf0]  ;;  %v8488_v42 = vld [vmem:[%s13193_s23 + $0x368] sm:$0xf] }
  0xde   : > { %6396 = vmatmul.bf16.vlgmr.msra.gmra.mxu1 %v13379_v44  ;;  %v8153_v18 = vor.u32 %v11979_v8, %v8152_v5  ;;  %v8056_v45 = vld [vmem:[%s13193_s23 + $0x8] sm:$0xf]  ;;  %v12615_v2 = vld [vmem:[%s13193_s23 + $0x14d4] sm:$0xf0] }
  0xdf   : > { %6440 = vmatpush.bf16.msrb.mxu1 %v8393_v60  ;;  %6421 = vmatpush.bf16.msrb.mxu2 %v11509_v63  ;;  %v8633_v60 = vor.u32 %v12099_v49, %v8632_v48  ;;  %v9928_v48 = vld [vmem:[%s13193_s23 + $0xea8] sm:$0xf]  ;;  %v12423_v49 = vld [vmem:[%s13193_s23 + $0xed4] sm:$0xf0] }
  0xe0   : > { %6434 = vmatpush.bf16.msrb.mxu3 %v11893_v0  ;;  %v8201_v0 = vor.u32 %v11991_v53, %v8200_v52  ;;  %v6189_v9 = vpop.f32.mrf.mxu2  ;;  %v8440_v52 = vld [vmem:[%s13193_s23 + $0x308] sm:$0xf]  ;;  %v12519_v8 = vld [vmem:[%s13193_s23 + $0x11d4] sm:$0xf0] }
  0xe1   : > { %6409 = vmatmul.bf16.vlgmr.msra.gmra.mxu3 %v13456_v26  ;;  %6467 = vmatpush.bf16.msrb.mxu0 %v9113_v21  ;;  %v12075_v21 = vld [vmem:[%s13193_s23 + $0x3f4] sm:$0xf0]  ;;  %v8824_v53 = vld [vmem:[%s13193_s23 + $0x608] sm:$0xf] }
  0xe2   : > { %6422 = vmatmul.bf16.vlgmr.msrb.gmra.mxu2 %v13461_v33  ;;  %v11080_v61 = vld [vmem:[%s13193_s23 + $0x17a8] sm:$0xf]  ;;  %v12687_v30 = vld [vmem:[%s13193_s23 + $0x1714] sm:$0xf0] }
  0xe3   : > { %6479 = vmatpush.bf16.msra.mxu2 %v9545_v3  ;;  %6441 = vmatpush.bf16.msrb.mxu1 %v8345_v14  ;;  %v6176_v54 = vpop.f32.mrf.mxu1  ;;  %v6163_v63 = vpop.f32.mrf.mxu0  ;;  %v10696_v1 = vld [vmem:[%s13193_s23 + $0x14a8] sm:$0xf] }
  0xe4   : > { %6453 = vmatpush.bf16.msra.mxu3 %v8777_v11  ;;  %v6164_v3 = vadd.f32 %v6163_v63, %v1240_v50  ;;  %v9304_v11 = vld [vmem:[%s13193_s23 + $0x9c8] sm:$0xf]  ;;  %v6202_v14 = vpop.f32.mrf.mxu3 }
  0xe5   : > { %6468 = vmatpush.bf16.msrb.mxu0 %v9065_v39  ;;  %v9305_v23 = vor.u32 %v12267_v12, %v9304_v11  ;;  %v10312_v5 = vld [vmem:[%s13193_s23 + $0x11a8] sm:$0xf]  ;;  %v12411_v12 = vld [vmem:[%s13193_s23 + $0xe74] sm:$0xf0] }
  0xe6   : > { %v6177_v13 = vadd.f32 %v6176_v54, %v6164_v3  ;;  %v9208_v54 = vld [vmem:[%s13193_s23 + $0x908] sm:$0xf]  ;;  %v9929_v3 = vor.u32 %v12423_v49, %v9928_v48  ;;  %v12675_v49 = vld [vmem:[%s13193_s23 + $0x16b4] sm:$0xf0] }
  0xe7   : > { %6480 = vmatpush.bf16.msra.mxu2 %v9497_v17  ;;  %6442 = vmatpush.bf16.msrb.mxu1 %v8297_v28  ;;  %v12171_v17 = vld [vmem:[%s13193_s23 + $0x6f4] sm:$0xf0]  ;;  %v9880_v11 = vld [vmem:[%s13193_s23 + $0xe48] sm:$0xf] }
  0xe8   : > { %6454 = vmatpush.bf16.msra.mxu3 %v8729_v24  ;;  %v6190_v22 = vadd.f32 %v6189_v9, %v6177_v13  ;;  %v8104_v24 = vld [vmem:[%s13193_s23 + $0x68] sm:$0xf]  ;;  %v8921_v28 = vor.u32 %v12171_v17, %v8920_v16  ;;  %v6191_v50 = vpop.f32.mrf.mxu2  ;;  %v12699_v16 = vld [vmem:[%s13193_s23 + $0x1774] sm:$0xf0]  ;;  %v10313_v17 = vor.u32 %v12519_v8, %v10312_v5 }
  0xe9   : > { %6469 = vmatpush.bf16.msrb.mxu0 %v9017_v56  ;;  %v8105_v41 = vor.u32 %v11967_v25, %v8104_v24  ;;  %v12243_v56 = vld [vmem:[%s13193_s23 + $0x934] sm:$0xf0]  ;;  %v9832_v25 = vld [vmem:[%s13193_s23 + $0xde8] sm:$0xf] }
  0xea   : > { %v13649_v31 = vadd.f32 %v6202_v14, %v6190_v22  ;;  %v10697_v14 = vor.u32 %v12615_v2, %v10696_v1  ;;  %v10264_v22 = vld [vmem:[%s13193_s23 + $0x1148] sm:$0xf]  ;;  %v12663_v2 = vld [vmem:[%s13193_s23 + $0x1654] sm:$0xf0] }
  0xeb   : > { %6481 = vmatpush.bf16.msra.mxu2 %v9449_v36  ;;  %6443 = vmatpush.bf16.msrb.mxu1 %v8249_v47  ;;  %v6178_v27 = vpop.f32.mrf.mxu1  ;;  %v8537_v36 = vor.u32 %v12075_v21, %v8536_v19  ;;  %v6165_v39 = vpop.f32.mrf.mxu0  ;;  %v11955_v47 = vld [vmem:[%s13193_s23 + $0x34] sm:$0xf0]  ;;  %v9881_v21 = vor.u32 %v12411_v12, %v9880_v11  ;;  %v10984_v29 = vld [vmem:[%s13193_s23 + $0x16e8] sm:$0xf] }
  0xec   : > { %6455 = vmatpush.bf16.msra.mxu3 %v8681_v43  ;;  %v12063_v43 = vld [vmem:[%s13193_s23 + $0x394] sm:$0xf0]  ;;  %v6204_v58 = vpop.f32.mrf.mxu3  ;;  %v8057_v63 = vor.u32 %v11955_v47, %v8056_v45  ;;  %v9784_v45 = vld [vmem:[%s13193_s23 + $0xd88] sm:$0xf] }
  0xed   : > { %6470 = vmatpush.bf16.msrb.mxu0 %v8969_v10  ;;  %v8489_v59 = vor.u32 %v12063_v43, %v8488_v42  ;;  %v11081_v10 = vor.u32 %v12711_v62, %v11080_v61  ;;  %v12603_v19 = vld [vmem:[%s13193_s23 + $0x1474] sm:$0xf0]  ;;  %v10985_v43 = vor.u32 %v12687_v30, %v10984_v29  ;;  %v10936_v48 = vld [vmem:[%s13193_s23 + $0x1688] sm:$0xf] }
  0xee   : > { %v12399_v27 = vld [vmem:[%s13193_s23 + $0xe14] sm:$0xf0]  ;;  %v10937_v61 = vor.u32 %v12675_v49, %v10936_v48  ;;  %v9736_v62 = vld [vmem:[%s13193_s23 + $0xd28] sm:$0xf] }
  0xef   : > { %6482 = vmatpush.bf16.msra.mxu2 %v9401_v51  ;;  %6444 = vmatpush.bf16.msrb.mxu1 %v8201_v0  ;;  %v8873_v51 = vor.u32 %v12159_v38, %v8872_v37  ;;  %v12051_v0 = vld [vmem:[%s13193_s23 + $0x334] sm:$0xf0]  ;;  %v10600_v37 = vld [vmem:[%s13193_s23 + $0x13e8] sm:$0xf]  ;;  %v9833_v39 = vor.u32 %v12399_v27, %v9832_v25 }
  0xf0   : > { %6456 = vmatpush.bf16.msra.mxu3 %v8633_v60  ;;  %v12147_v60 = vld [vmem:[%s13193_s23 + $0x634] sm:$0xf0]  ;;  %v8441_v13 = vor.u32 %v12051_v0, %v8440_v52  ;;  %v10888_v1 = vld [vmem:[%s13193_s23 + $0x1628] sm:$0xf] }
  0xf1   : > { %11935 = vmatmul.msk.bf16.vlgmr.msrb.gmra.mxu3 %vm6150_vm0, %v13418_v32  ;;  %6471 = vmatpush.bf16.msrb.mxu0 %v8921_v28  ;;  %v8825_v9 = vor.u32 %v12147_v60, %v8824_v53  ;;  %v12591_v38 = vld [vmem:[%s13193_s23 + $0x1414] sm:$0xf0]  ;;  %v10504_v5 = vld [vmem:[%s13193_s23 + $0x1328] sm:$0xf]  ;;  %v10889_v11 = vor.u32 %v12663_v2, %v10888_v1  ;;  %v8394_v1 = vld [vmem:[%s13193_s23 + $0x2d8] sm:$0xf0] }
  0xf2   : > { %v12495_v42 = vld [vmem:[%s13193_s23 + $0x1114] sm:$0xf0]  ;;  %v10601_v47 = vor.u32 %v12591_v38, %v10600_v37  ;;  %v9688_v12 = vld [vmem:[%s13193_s23 + $0xcc8] sm:$0xf] }
  0xf3   : > { %6483 = vmatpush.bf16.msra.mxu2 %v9353_v4  ;;  %6445 = vmatpush.bf16.msrb.mxu1 %v8153_v18  ;;  %v9209_v4 = vor.u32 %v12243_v56, %v9208_v54  ;;  %v10648_v18 = vld [vmem:[%s13193_s23 + $0x1448] sm:$0xf]  ;;  %v12579_v52 = vld [vmem:[%s13193_s23 + $0x13b4] sm:$0xf0] }
  0xf4   : > { %6457 = vmatpush.bf16.msra.mxu3 %v8585_v15  ;;  %v11032_v15 = vld [vmem:[%s13193_s23 + $0x1748] sm:$0xf]  ;;  %v10649_v28 = vor.u32 %v12603_v19, %v10648_v18  ;;  %v12483_v58 = vld [vmem:[%s13193_s23 + $0x10b4] sm:$0xf0] }
  0xf5   : > { %6472 = vmatpush.bf16.msrb.mxu0 %v8873_v51  ;;  %v11033_v24 = vor.u32 %v12699_v16, %v11032_v15  ;;  %v10552_v51 = vld [vmem:[%s13193_s23 + $0x1388] sm:$0xf]  ;;  %v12459_v27 = vld [vmem:[%s13193_s23 + $0xff4] sm:$0xf0] }
  0xf6   : > { %v10168_v56 = vld [vmem:[%s13193_s23 + $0x1088] sm:$0xf]  ;;  %v10553_v0 = vor.u32 %v12579_v52, %v10552_v51  ;;  %v12351_v37 = vld [vmem:[%s13193_s23 + $0xc94] sm:$0xf0] }
  0xf7   : > { %6484 = vmatpush.bf16.msra.mxu2 %v9305_v23  ;;  %6446 = vmatpush.bf16.msrb.mxu1 %v8105_v41  ;;  %v12507_v23 = vld [vmem:[%s13193_s23 + $0x1174] sm:$0xf0]  ;;  %v10216_v41 = vld [vmem:[%s13193_s23 + $0x10e8] sm:$0xf] }
  0xf8   : > { %6458 = vmatpush.bf16.msra.mxu3 %v8537_v36  ;;  %v10265_v36 = vor.u32 %v12507_v23, %v10264_v22  ;;  %v10217_v50 = vor.u32 %v12495_v42, %v10216_v41  ;;  %v10840_v16 = vld [vmem:[%s13193_s23 + $0x15c8] sm:$0xf]  ;;  %v12555_v22 = vld [vmem:[%s13193_s23 + $0x12f4] sm:$0xf0] }
  0xf9   : > { %6473 = vmatpush.bf16.msrb.mxu0 %v8825_v9  ;;  %v6215_v53 = vpop.f32.mrf.mxu0  ;;  %v10120_v9 = vld [vmem:[%s13193_s23 + $0x1028] sm:$0xf]  ;;  %v12639_v42 = vld [vmem:[%s13193_s23 + $0x1594] sm:$0xf0] }
  0xfa   : > { %v10072_v25 = vld [vmem:[%s13193_s23 + $0xfc8] sm:$0xf]  ;;  %v12447_v49 = vld [vmem:[%s13193_s23 + $0xf94] sm:$0xf0] }
  0xfb   : > { %6485 = vmatpush.bf16.msra.mxu2 %v9257_v46  ;;  %6447 = vmatpush.bf16.msrb.mxu1 %v8057_v63  ;;  %v12387_v46 = vld [vmem:[%s13193_s23 + $0xdb4] sm:$0xf0]  ;;  %v6228_v60 = vpop.f32.mrf.mxu1  ;;  %v10792_v41 = vld [vmem:[%s13193_s23 + $0x1568] sm:$0xf] }
  0xfc   : > { %6459 = vmatpush.bf16.msra.mxu3 %v8489_v59  ;;  %6474 = vmatmul.bf16.vlgmr.msrb.gmra.mxu0 %v13288_v55  ;;  %v9785_v54 = vor.u32 %v12387_v46, %v9784_v45  ;;  %v6216_v59 = vadd.f32 %v6215_v53, %v13649_v31  ;;  %v12375_v63 = vld [vmem:[%s13193_s23 + $0xd54] sm:$0xf0]  ;;  %v10408_v45 = vld [vmem:[%s13193_s23 + $0x1268] sm:$0xf]  ;;  %v10793_v51 = vor.u32 %v12639_v42, %v10792_v41  ;;  %v12117_v41 = vld [vmem:[%s13193_s23 + $0x54c] sm:$0xf] }
  0xfd   : > { %6518 = vmatpush.bf16.msra.mxu0 %v10697_v14  ;;  %v12567_v31 = vld [vmem:[%s13193_s23 + $0x1354] sm:$0xf0]  ;;  %v9737_v8 = vor.u32 %v12375_v63, %v9736_v62  ;;  %v10024_v48 = vld [vmem:[%s13193_s23 + $0xf68] sm:$0xf]  ;;  %v8730_v42 = vld [vmem:[%s13193_s23 + $0x578] sm:$0xf0] }
  0xfe   : > { %6448 = vmatmul.bf16.vlgmr.msrb.gmra.mxu1 %v13302_v6  ;;  %v10505_v15 = vor.u32 %v12567_v31, %v10504_v5  ;;  %v12543_v46 = vld [vmem:[%s13193_s23 + $0x1294] sm:$0xf0]  ;;  %v11464_v53 = vld [vmem:[%s13193_s23 + $0x1aa8] sm:$0xf]  ;;  %v10025_v62 = vor.u32 %v12447_v49, %v10024_v48 }
  0xff   : > { %6492 = vmatpush.bf16.msra.mxu1 %v9929_v3  ;;  %6486 = vmatpush.bf16.msra.mxu2 %v9209_v4  ;;  %v6229_v3 = vadd.f32 %v6228_v60, %v6216_v59  ;;  %v10169_v4 = vor.u32 %v12483_v58, %v10168_v56  ;;  %v12339_v52 = vld [vmem:[%s13193_s23 + $0xc34] sm:$0xf0]  ;;  %v10409_v58 = vor.u32 %v12543_v46, %v10408_v45  ;;  %v10360_v59 = vld [vmem:[%s13193_s23 + $0x1208] sm:$0xf]  ;;  %v12009_v45 = vld [vmem:[%s13193_s23 + $0x1ec] sm:$0xf] }
 0x100   : > { %6460 = vmatpush.bf16.msra.mxu3 %v8441_v13  ;;  %v12363_v13 = vld [vmem:[%s13193_s23 + $0xcf4] sm:$0xf0]  ;;  %v10744_v60 = vld [vmem:[%s13193_s23 + $0x1508] sm:$0xf]  ;;  %v8298_v46 = vld [vmem:[%s13193_s23 + $0x218] sm:$0xf0] }
 0x101   : > { %6519 = vmatpush.bf16.msra.mxu0 %v10649_v28  ;;  %v6241_v14 = vpop.f32.mrf.mxu2  ;;  %v6217_v28 = vpop.f32.mrf.mxu0  ;;  %v12531_v63 = vld [vmem:[%s13193_s23 + $0x1234] sm:$0xf0]  ;;  %v11848_v5 = vld [vmem:[%s13193_s23 + $0x1da8] sm:$0xf] }
 0x102   : > { %6487 = vmatmul.bf16.vlgmr.msra.gmra.mxu2 %v13293_v57  ;;  %v6242_v18 = vadd.f32 %v6241_v14, %v6229_v3  ;;  %v9976_v3 = vld [vmem:[%s13193_s23 + $0xf08] sm:$0xf]  ;;  %v12891_v28 = vld [vmem:[%s13193_s23 + $0x1d74] sm:$0xf0] }
 0x103   : > { %6531 = vmatpush.bf16.msrb.mxu2 %v11081_v10  ;;  %6493 = vmatpush.bf16.msra.mxu1 %v9881_v21  ;;  %v12471_v10 = vld [vmem:[%s13193_s23 + $0x1054] sm:$0xf0]  ;;  %v10456_v21 = vld [vmem:[%s13193_s23 + $0x12c8] sm:$0xf]  ;;  %v6230_v38 = vpop.f32.mrf.mxu1 }
 0x104   : > { %6505 = vmatpush.bf16.msrb.mxu3 %v10313_v17  ;;  %v12651_v17 = vld [vmem:[%s13193_s23 + $0x15f4] sm:$0xf0]  ;;  %v10121_v19 = vor.u32 %v12471_v10, %v10120_v9  ;;  %v6254_v23 = vpop.f32.mrf.mxu3  ;;  %v11752_v48 = vld [vmem:[%s13193_s23 + $0x1ce8] sm:$0xf] }
 0x105   : > { %6461 = vmatmul.bf16.vlgmr.msra.gmra.mxu3 %v13304_v7  ;;  %6520 = vmatpush.bf16.msra.mxu0 %v10601_v47  ;;  %v13716_v29 = vadd.f32 %v6254_v23, %v6242_v18  ;;  %v10841_v30 = vor.u32 %v12651_v17, %v10840_v16  ;;  %v12903_v10 = vld [vmem:[%s13193_s23 + $0x1dd4] sm:$0xf0]  ;;  %v12129_v18 = vld [vmem:[%s13193_s23 + $0x5ac] sm:$0xf] }
 0x106   : > { %v12795_v16 = vld [vmem:[%s13193_s23 + $0x1a74] sm:$0xf0]  ;;  %v12021_v23 = vld [vmem:[%s13193_s23 + $0x24c] sm:$0xf] }
 0x107   : > { %6532 = vmatpush.bf16.msrb.mxu2 %v11033_v24  ;;  %6494 = vmatpush.bf16.msra.mxu1 %v9833_v39  ;;  %v9689_v24 = vor.u32 %v12363_v13, %v9688_v12  ;;  %v10457_v39 = vor.u32 %v12555_v22, %v10456_v21  ;;  %v12915_v12 = vld [vmem:[%s13193_s23 + $0x1e34] sm:$0xf0]  ;;  %v10361_v13 = vor.u32 %v12531_v63, %v10360_v59  ;;  %v11997_v59 = vld [vmem:[%s13193_s23 + $0x18c] sm:$0xf] }
 0x108   : > { %6506 = vmatpush.bf16.msrb.mxu3 %v10265_v36  ;;  %v9640_v36 = vld [vmem:[%s13193_s23 + $0xc68] sm:$0xf]  ;;  %v11849_v21 = vor.u32 %v12903_v10, %v11848_v5  ;;  %v12879_v49 = vld [vmem:[%s13193_s23 + $0x1d14] sm:$0xf0]  ;;  %v8634_v10 = vld [vmem:[%s13193_s23 + $0x4b8] sm:$0xf0] }
 0x109   : > { %6521 = vmatpush.bf16.msra.mxu0 %v10553_v0  ;;  %v9641_v47 = vor.u32 %v12351_v37, %v9640_v36  ;;  %v6243_v56 = vpop.f32.mrf.mxu2  ;;  %v12033_v0 = vld [vmem:[%s13193_s23 + $0x2ac] sm:$0xf]  ;;  %v11368_v36 = vld [vmem:[%s13193_s23 + $0x19e8] sm:$0xf]  ;;  %v12783_v37 = vld [vmem:[%s13193_s23 + $0x1a14] sm:$0xf0] }
 0x10a   : > { %v8397_v14 = vor.u32 %v12033_v0, %v8394_v1  ;;  %v8682_v56 = vld [vmem:[%s13193_s23 + $0x518] sm:$0xf0]  ;;  %v12867_v63 = vld [vmem:[%s13193_s23 + $0x1cb4] sm:$0xf0] }
 0x10b   : > { %6533 = vmatpush.bf16.msrb.mxu2 %v10985_v43  ;;  %6495 = vmatpush.bf16.msra.mxu1 %v9785_v54  ;;  %v10073_v43 = vor.u32 %v12459_v27, %v10072_v25  ;;  %v12807_v54 = vld [vmem:[%s13193_s23 + $0x1ad4] sm:$0xf0]  ;;  %v11800_v27 = vld [vmem:[%s13193_s23 + $0x1d48] sm:$0xf] }
 0x10c   : > { %6507 = vmatpush.bf16.msrb.mxu3 %v10217_v50  ;;  %v9592_v50 = vld [vmem:[%s13193_s23 + $0xc08] sm:$0xf]  ;;  %v6256_v31 = vpop.f32.mrf.mxu3 }
 0x10d   : > { %6522 = vmatpush.bf16.msra.mxu0 %v10505_v15  ;;  %v9593_v2 = vor.u32 %v12339_v52, %v9592_v50  ;;  %v11416_v15 = vld [vmem:[%s13193_s23 + $0x1a48] sm:$0xf]  ;;  %v8733_v50 = vor.u32 %v12117_v41, %v8730_v42  ;;  %v12771_v52 = vld [vmem:[%s13193_s23 + $0x19b4] sm:$0xf0] }
 0x10e   : > { %v11417_v25 = vor.u32 %v12795_v16, %v11416_v15  ;;  %v11176_v41 = vld [vmem:[%s13193_s23 + $0x1868] sm:$0xf]  ;;  %v12735_v42 = vld [vmem:[%s13193_s23 + $0x1894] sm:$0xf0] }
 0x10f   : > { %6534 = vmatpush.bf16.msrb.mxu2 %v10937_v61  ;;  %6496 = vmatpush.bf16.msra.mxu1 %v9737_v8  ;;  %v12627_v61 = vld [vmem:[%s13193_s23 + $0x1534] sm:$0xf0]  ;;  %v11465_v8 = vor.u32 %v12807_v54, %v11464_v53  ;;  %v8301_v53 = vor.u32 %v12009_v45, %v8298_v46  ;;  %v12105_v54 = vld [vmem:[%s13193_s23 + $0x4ec] sm:$0xf] }
 0x110   : > { %6508 = vmatpush.bf16.msrb.mxu3 %v10169_v4  ;;  %v12435_v4 = vld [vmem:[%s13193_s23 + $0xf34] sm:$0xf0]  ;;  %v10745_v9 = vor.u32 %v12627_v61, %v10744_v60  ;;  %v8250_v60 = vld [vmem:[%s13193_s23 + $0x1b8] sm:$0xf0]  ;;  %v8685_v1 = vor.u32 %v12105_v54, %v8682_v56  ;;  %v11177_v56 = vor.u32 %v12735_v42, %v11176_v41  ;;  %v12405_v42 = vld [vmem:[%s13193_s23 + $0xe4c] sm:$0xf] }
 0x111   : > { %6523 = vmatpush.bf16.msra.mxu0 %v10457_v39  ;;  %v9977_v17 = vor.u32 %v12435_v4, %v9976_v3  ;;  %v6293_v38 = vpop.f32.mrf.mxu2  ;;  %v12759_v3 = vld [vmem:[%s13193_s23 + $0x1954] sm:$0xf0]  ;;  %v9498_v41 = vld [vmem:[%s13193_s23 + $0xb78] sm:$0xf0] }
 0x113   : > { %6535 = vmatpush.bf16.msrb.mxu2 %v10889_v11  ;;  %6497 = vmatpush.bf16.msra.mxu1 %v9689_v24  ;;  %v11896_v11 = vld [vmem:[%s13193_s23 + $0x1e08] sm:$0xf]  ;;  %v8346_v24 = vld [vmem:[%s13193_s23 + $0x278] sm:$0xf0] }
 0x114   : > { %6509 = vmatpush.bf16.msrb.mxu3 %v10121_v19  ;;  %v8778_v19 = vld [vmem:[%s13193_s23 + $0x5d8] sm:$0xf0]  ;;  %v11897_v22 = vor.u32 %v12915_v12, %v11896_v11  ;;  %v8349_v39 = vor.u32 %v12021_v23, %v8346_v24  ;;  %v1217_v11 = vperm.slane %v13607_v20, 2  ;;  %v12081_v23 = vld [vmem:[%s13193_s23 + $0x42c] sm:$0xf] }
 0x115   : > { %6524 = vmatpush.bf16.msra.mxu0 %v10409_v58  ;;  %v11753_v58 = vor.u32 %v12879_v49, %v11752_v48  ;;  %v8586_v24 = vld [vmem:[%s13193_s23 + $0x458] sm:$0xf0] }
 0x116   : > { %v8538_v48 = vld [vmem:[%s13193_s23 + $0x3f8] sm:$0xf0] }
 0x117   : > { %6536 = vmatpush.bf16.msrb.mxu2 %v10841_v30  ;;  %6498 = vmatpush.bf16.msra.mxu1 %v9641_v47  ;;  %v8781_v30 = vor.u32 %v12129_v18, %v8778_v19  ;;  %v11369_v47 = vor.u32 %v12783_v37, %v11368_v36  ;;  %v11224_v19 = vld [vmem:[%s13193_s23 + $0x18c8] sm:$0xf] }
 0x118   : > { %6510 = vmatpush.bf16.msrb.mxu3 %v10073_v43  ;;  %v11801_v43 = vor.u32 %v12891_v28, %v11800_v27  ;;  %v11973_v28 = vld [vmem:[%s13193_s23 + $0xcc] sm:$0xf]  ;;  %v11608_v37 = vld [vmem:[%s13193_s23 + $0x1bc8] sm:$0xf] }
 0x119   : > { %6525 = vmatpush.bf16.msra.mxu0 %v10361_v13  ;;  %v6267_v0 = vpop.f32.mrf.mxu0  ;;  %v6295_v4 = vpop.f32.mrf.mxu2  ;;  %v11985_v13 = vld [vmem:[%s13193_s23 + $0x12c] sm:$0xf] }
 0x11a   : > { %v6268_v5 = vadd.f32 %v6267_v0, %v13716_v29  ;;  %v11656_v29 = vld [vmem:[%s13193_s23 + $0x1c28] sm:$0xf]  ;;  %v12225_v0 = vld [vmem:[%s13193_s23 + $0x8ac] sm:$0xf]  ;;  %v8490_v4 = vld [vmem:[%s13193_s23 + $0x398] sm:$0xf0] }
 0x11b   : > { %6537 = vmatpush.bf16.msrb.mxu2 %v10793_v51  ;;  %6499 = vmatpush.bf16.msra.mxu1 %v9593_v2  ;;  %v11320_v51 = vld [vmem:[%s13193_s23 + $0x1988] sm:$0xf]  ;;  %v6280_v31 = vpop.f32.mrf.mxu1 }
 0x11c   : > { %6511 = vmatpush.bf16.msrb.mxu3 %v10025_v62  ;;  %6526 = vmatmul.bf16.vlgmr.msra.gmra.mxu0 %v13370_v35  ;;  %v11321_v61 = vor.u32 %v12771_v52, %v11320_v51  ;;  %v11704_v62 = vld [vmem:[%s13193_s23 + $0x1c88] sm:$0xf]  ;;  %v6281_v15 = vadd.f32 %v6280_v31, %v6268_v5  ;;  %v11961_v52 = vld [vmem:[%s13193_s23 + $0x6c] sm:$0xf] }
 0x11d   : > { %6577 = vmatpush.bf16.msrb.mxu0 %v11897_v22  ;;  %v11272_v2 = vld [vmem:[%s13193_s23 + $0x1928] sm:$0xf]  ;;  %v11705_v12 = vor.u32 %v12867_v63, %v11704_v62  ;;  %v12723_v63 = vld [vmem:[%s13193_s23 + $0x1834] sm:$0xf0] }
 0x11e   : > { %6500 = vmatmul.bf16.vlgmr.msra.gmra.mxu1 %v13368_v34  ;;  %v11273_v16 = vor.u32 %v12759_v3, %v11272_v2  ;;  %v13782_v20 = vadd.f32 %v6293_v38, %v6281_v15  ;;  %v8589_v38 = vor.u32 %v12081_v23, %v8586_v24  ;;  %v11128_v62 = vld [vmem:[%s13193_s23 + $0x1808] sm:$0xf]  ;;  %v9162_v2 = vld [vmem:[%s13193_s23 + $0x8d8] sm:$0xf0]  ;;  %v12057_v3 = vld [vmem:[%s13193_s23 + $0x36c] sm:$0xf] }
 0x11f   : > { %6544 = vmatpush.bf16.msrb.mxu1 %v11465_v8  ;;  %6538 = vmatpush.bf16.msrb.mxu2 %v10745_v9  ;;  %v8253_v8 = vor.u32 %v11997_v59, %v8250_v60  ;;  %v12093_v9 = vld [vmem:[%s13193_s23 + $0x48c] sm:$0xf]  ;;  %v12831_v59 = vld [vmem:[%s13193_s23 + $0x1b94] sm:$0xf0]  ;;  %v11512_v31 = vld [vmem:[%s13193_s23 + $0x1b08] sm:$0xf]  ;;  %v8493_v15 = vor.u32 %v12057_v3, %v8490_v4 }
 0x120   : > { %6512 = vmatpush.bf16.msrb.mxu3 %v9977_v17  ;;  %v12855_v17 = vld [vmem:[%s13193_s23 + $0x1c54] sm:$0xf0]  ;;  %v8637_v18 = vor.u32 %v12093_v9, %v8634_v10  ;;  %v8058_v9 = vld [vmem:[%s13193_s23 + $0x38] sm:$0xf0]  ;;  %v11129_v10 = vor.u32 %v12723_v63, %v11128_v62  ;;  %v12489_v63 = vld [vmem:[%s13193_s23 + $0x10ec] sm:$0xf] }
 0x121   : > { %6596 = vmatpush.bf16.msra.mxu0 %v8781_v30  ;;  %v11657_v27 = vor.u32 %v12855_v17, %v11656_v29  ;;  %v8154_v30 = vld [vmem:[%s13193_s23 + $0xf8] sm:$0xf0]  ;;  %v6269_v45 = vpop.f32.mrf.mxu0  ;;  %v12213_v17 = vld [vmem:[%s13193_s23 + $0x84c] sm:$0xf] }
 0x122   : > { %6539 = vmatmul.bf16.vlgmr.msrb.gmra.mxu2 %v13379_v44  ;;  %v8157_v46 = vor.u32 %v11973_v28, %v8154_v30  ;;  %v9930_v29 = vld [vmem:[%s13193_s23 + $0xed8] sm:$0xf0]  ;;  %v12285_v3 = vld [vmem:[%s13193_s23 + $0xa8c] sm:$0xf] }
 0x123   : > { %6583 = vmatpush.bf16.msra.mxu2 %v8397_v14  ;;  %6545 = vmatpush.bf16.msrb.mxu1 %v11417_v25  ;;  %v8202_v14 = vld [vmem:[%s13193_s23 + $0x158] sm:$0xf0]  ;;  %v1241_v25 = vperm.slane %v1217_v11, 0  ;;  %v12819_v11 = vld [vmem:[%s13193_s23 + $0x1b34] sm:$0xf0] }
 0x124   : > { %6557 = vmatpush.bf16.msra.mxu3 %v11849_v21  ;;  %v12747_v21 = vld [vmem:[%s13193_s23 + $0x18f4] sm:$0xf0]  ;;  %v8205_v22 = vor.u32 %v11985_v13, %v8202_v14  ;;  %v9546_v13 = vld [vmem:[%s13193_s23 + $0xbd8] sm:$0xf0]  ;;  %v9165_v14 = vor.u32 %v12225_v0, %v9162_v2  ;;  %v11513_v24 = vor.u32 %v12819_v11, %v11512_v31  ;;  %v12381_v31 = vld [vmem:[%s13193_s23 + $0xd8c] sm:$0xf] }
 0x125   : > { %6513 = vmatmul.bf16.vlgmr.msrb.gmra.mxu3 %v13375_v40  ;;  %6597 = vmatpush.bf16.msra.mxu0 %v8733_v50  ;;  %v11225_v36 = vor.u32 %v12747_v21, %v11224_v19  ;;  %v6282_v50 = vpop.f32.mrf.mxu1  ;;  %v6319_v54 = vpop.f32.mrf.mxu2  ;;  %v9114_v21 = vld [vmem:[%s13193_s23 + $0x878] sm:$0xf0] }
 0x126   : > { %v8442_v23 = vld [vmem:[%s13193_s23 + $0x338] sm:$0xf0] }
 0x127   : > { %6584 = vmatpush.bf16.msra.mxu2 %v8349_v39  ;;  %6546 = vmatpush.bf16.msrb.mxu1 %v11369_v47  ;;  %v12843_v39 = vld [vmem:[%s13193_s23 + $0x1bf4] sm:$0xf0]  ;;  %v12069_v47 = vld [vmem:[%s13193_s23 + $0x3cc] sm:$0xf]  ;;  %v9018_v62 = vld [vmem:[%s13193_s23 + $0x7b8] sm:$0xf0] }
 0x128   : > { %6558 = vmatpush.bf16.msra.mxu3 %v11801_v43  ;;  %v6306_v43 = vpop.f32.mrf.mxu3  ;;  %v11609_v51 = vor.u32 %v12843_v39, %v11608_v37  ;;  %v12309_v37 = vld [vmem:[%s13193_s23 + $0xb4c] sm:$0xf]  ;;  %v9117_v39 = vor.u32 %v12213_v17, %v9114_v21  ;;  %v10218_v0 = vld [vmem:[%s13193_s23 + $0x1118] sm:$0xf0] }
 0x129   : > { %6598 = vmatpush.bf16.msra.mxu0 %v8685_v1  ;;  %v6307_v49 = vadd.f32 %v6306_v43, %v1241_v25  ;;  %v12513_v25 = vld [vmem:[%s13193_s23 + $0x11ac] sm:$0xf]  ;;  %v9882_v43 = vld [vmem:[%s13193_s23 + $0xe78] sm:$0xf0]  ;;  %v9501_v50 = vor.u32 %v12309_v37, %v9498_v41 }
 0x12a   : > { %v8970_v11 = vld [vmem:[%s13193_s23 + $0x758] sm:$0xf0]  ;;  %v12369_v21 = vld [vmem:[%s13193_s23 + $0xd2c] sm:$0xf] }
 0x12b   : > { %6585 = vmatpush.bf16.msra.mxu2 %v8301_v53  ;;  %6547 = vmatpush.bf16.msrb.mxu1 %v11321_v61  ;;  %v8106_v53 = vld [vmem:[%s13193_s23 + $0x98] sm:$0xf0]  ;;  %v13800_v60 = vadd.f32 %v6319_v54, %v6307_v49  ;;  %v8541_v61 = vor.u32 %v12069_v47, %v8538_v48  ;;  %v12501_v48 = vld [vmem:[%s13193_s23 + $0x114c] sm:$0xf] }
 0x12c   : > { %6559 = vmatpush.bf16.msra.mxu3 %v11753_v58  ;;  %v11560_v58 = vld [vmem:[%s13193_s23 + $0x1b68] sm:$0xf]  ;;  %11936 = vmatmul.msk.bf16.vlgmr.msrb.gmra.mxu0 %vm6150_vm0, %v13418_v32  ;;  %v8109_v1 = vor.u32 %v11961_v52, %v8106_v53  ;;  %v9066_v47 = vld [vmem:[%s13193_s23 + $0x818] sm:$0xf0]  ;;  %v12297_v52 = vld [vmem:[%s13193_s23 + $0xaec] sm:$0xf] }
 0x12d   : > { %6599 = vmatpush.bf16.msra.mxu0 %v8637_v18  ;;  %v11561_v5 = vor.u32 %v12831_v59, %v11560_v58  ;;  %v6321_v28 = vpop.f32.mrf.mxu2  ;;  %v10266_v49 = vld [vmem:[%s13193_s23 + $0x1178] sm:$0xf0] }
 0x12e   : > { %v9450_v54 = vld [vmem:[%s13193_s23 + $0xb18] sm:$0xf0]  ;;  %v10269_v59 = vor.u32 %v12501_v48, %v10266_v49  ;;  %v12153_v48 = vld [vmem:[%s13193_s23 + $0x66c] sm:$0xf] }
 0x12f   : > { %6586 = vmatpush.bf16.msra.mxu2 %v8253_v8  ;;  %6548 = vmatpush.bf16.msrb.mxu1 %v11273_v16  ;;  %v11949_v8 = vld [vmem:[%s13193_s23 + $0xc] sm:$0xf]  ;;  %v9834_v58 = vld [vmem:[%s13193_s23 + $0xe18] sm:$0xf0] }
 0x130   : > { %6560 = vmatpush.bf16.msra.mxu3 %v11705_v12  ;;  %v12321_v12 = vld [vmem:[%s13193_s23 + $0xbac] sm:$0xf]  ;;  %v6308_v18 = vpop.f32.mrf.mxu3  ;;  %v8061_v19 = vor.u32 %v11949_v8, %v8058_v9  ;;  %v9786_v8 = vld [vmem:[%s13193_s23 + $0xdb8] sm:$0xf0]  ;;  %v10221_v9 = vor.u32 %v12489_v63, %v10218_v0 }
 0x131   : > { %6600 = vmatpush.bf16.msra.mxu0 %v8589_v38  ;;  %v12417_v16 = vld [vmem:[%s13193_s23 + $0xeac] sm:$0xf]  ;;  %v9549_v30 = vor.u32 %v12321_v12, %v9546_v13  ;;  %v10170_v13 = vld [vmem:[%s13193_s23 + $0x10b8] sm:$0xf0] }
 0x132   : > { %v12477_v12 = vld [vmem:[%s13193_s23 + $0x108c] sm:$0xf]  ;;  %v9306_v41 = vld [vmem:[%s13193_s23 + $0x9f8] sm:$0xf0] }
 0x133   : > { %6587 = vmatpush.bf16.msra.mxu2 %v8205_v22  ;;  %6549 = vmatpush.bf16.msrb.mxu1 %v11225_v36  ;;  %v12045_v22 = vld [vmem:[%s13193_s23 + $0x30c] sm:$0xf]  ;;  %v9933_v36 = vor.u32 %v12417_v16, %v9930_v29  ;;  %v8874_v49 = vld [vmem:[%s13193_s23 + $0x698] sm:$0xf0] }
 0x134   : > { %6561 = vmatpush.bf16.msra.mxu3 %v11657_v27  ;;  %v10314_v27 = vld [vmem:[%s13193_s23 + $0x11d8] sm:$0xf0]  ;;  %v8445_v38 = vor.u32 %v12045_v22, %v8442_v23  ;;  %v12273_v16 = vld [vmem:[%s13193_s23 + $0xa2c] sm:$0xf] }
 0x135   : > { %6601 = vmatpush.bf16.msra.mxu0 %v8541_v61  ;;  %v10317_v45 = vor.u32 %v12513_v25, %v10314_v27  ;;  %v12189_v61 = vld [vmem:[%s13193_s23 + $0x78c] sm:$0xf]  ;;  %v9738_v22 = vld [vmem:[%s13193_s23 + $0xd58] sm:$0xf0] }
 0x136   : > { %v9021_v4 = vor.u32 %v12189_v61, %v9018_v62  ;;  %v12165_v25 = vld [vmem:[%s13193_s23 + $0x6cc] sm:$0xf]  ;;  %v8922_v27 = vld [vmem:[%s13193_s23 + $0x6f8] sm:$0xf0] }
 0x137   : > { %6588 = vmatpush.bf16.msra.mxu2 %v8157_v46  ;;  %6550 = vmatpush.bf16.msrb.mxu1 %v11177_v56  ;;  %v12201_v46 = vld [vmem:[%s13193_s23 + $0x7ec] sm:$0xf]  ;;  %v9258_v62 = vld [vmem:[%s13193_s23 + $0x998] sm:$0xf0] }
 0x138   : > { %6562 = vmatpush.bf16.msra.mxu3 %v11609_v51  ;;  %v9885_v51 = vor.u32 %v12405_v42, %v9882_v43  ;;  %v9069_v53 = vor.u32 %v12201_v46, %v9066_v47  ;;  %v12393_v56 = vld [vmem:[%s13193_s23 + $0xdec] sm:$0xf]  ;;  %v9690_v43 = vld [vmem:[%s13193_s23 + $0xcf8] sm:$0xf0] }
 0x139   : > { %6602 = vmatpush.bf16.msra.mxu0 %v8493_v15  ;;  %v9837_v2 = vor.u32 %v12393_v56, %v9834_v58  ;;  %v9789_v15 = vor.u32 %v12381_v31, %v9786_v8  ;;  %v6332_v29 = vpop.f32.mrf.mxu0  ;;  %v12357_v42 = vld [vmem:[%s13193_s23 + $0xccc] sm:$0xf]  ;;  %v9642_v0 = vld [vmem:[%s13193_s23 + $0xc98] sm:$0xf0] }
 0x13a   : > { %v6333_v23 = vadd.f32 %v6332_v29, %v13800_v60  ;;  %v8925_v60 = vor.u32 %v12165_v25, %v8922_v27  ;;  %v12249_v56 = vld [vmem:[%s13193_s23 + $0x96c] sm:$0xf]  ;;  %v10698_v31 = vld [vmem:[%s13193_s23 + $0x14d8] sm:$0xf0] }
 0x13b   : > { %6589 = vmatpush.bf16.msra.mxu2 %v8109_v1  ;;  %6551 = vmatpush.bf16.msrb.mxu1 %v11129_v10  ;;  %v9453_v1 = vor.u32 %v12297_v52, %v9450_v54  ;;  %v12177_v10 = vld [vmem:[%s13193_s23 + $0x72c] sm:$0xf]  ;;  %v6345_v17 = vpop.f32.mrf.mxu1  ;;  %v10650_v25 = vld [vmem:[%s13193_s23 + $0x1478] sm:$0xf0] }
 0x13c   : > { %6563 = vmatpush.bf16.msra.mxu3 %v11561_v5  ;;  %v9402_v5 = vld [vmem:[%s13193_s23 + $0xab8] sm:$0xf0]  ;;  %v8973_v18 = vor.u32 %v12177_v10, %v8970_v11  ;;  %v6346_v28 = vadd.f32 %v6345_v17, %v6333_v23  ;;  %v12345_v63 = vld [vmem:[%s13193_s23 + $0xc6c] sm:$0xf]  ;;  %v9261_v10 = vor.u32 %v12249_v56, %v9258_v62 }
 0x13d   : > { %6603 = vmatpush.bf16.msra.mxu0 %v8445_v38  ;;  %v12261_v38 = vld [vmem:[%s13193_s23 + $0x9cc] sm:$0xf]  ;;  %v9645_v11 = vor.u32 %v12345_v63, %v9642_v0  ;;  %v11466_v23 = vld [vmem:[%s13193_s23 + $0x1ad8] sm:$0xf0] }
 0x13e   : > { %6552 = vmatmul.bf16.vlgmr.msrb.gmra.mxu1 %v13456_v26  ;;  %v9309_v52 = vor.u32 %v12261_v38, %v9306_v41  ;;  %v12441_v8 = vld [vmem:[%s13193_s23 + $0xf6c] sm:$0xf]  ;;  %v10986_v62 = vld [vmem:[%s13193_s23 + $0x1718] sm:$0xf0] }
 0x13f   : > { %6609 = vmatpush.bf16.msra.mxu1 %v9165_v14  ;;  %6590 = vmatpush.bf16.msra.mxu2 %v8061_v19  ;;  %v9405_v14 = vor.u32 %v12285_v3, %v9402_v5  ;;  %v9354_v19 = vld [vmem:[%s13193_s23 + $0xa58] sm:$0xf0]  ;;  %v12141_v3 = vld [vmem:[%s13193_s23 + $0x60c] sm:$0xf] }
 0x140   : > { %6564 = vmatpush.bf16.msra.mxu3 %v11513_v24  ;;  %6604 = vmatmul.bf16.vlgmr.msra.gmra.mxu0 %v13304_v7  ;;  %v10173_v24 = vor.u32 %v12477_v12, %v10170_v13  ;;  %v9357_v37 = vor.u32 %v12273_v16, %v9354_v19  ;;  %v12609_v5 = vld [vmem:[%s13193_s23 + $0x14ac] sm:$0xf]  ;;  %v9210_v13 = vld [vmem:[%s13193_s23 + $0x938] sm:$0xf0] }
 0x141   : > { %6648 = vmatpush.bf16.msrb.mxu0 %v10317_v45  ;;  %v6334_v58 = vpop.f32.mrf.mxu0  ;;  %v12237_v12 = vld [vmem:[%s13193_s23 + $0x90c] sm:$0xf]  ;;  %v9594_v16 = vld [vmem:[%s13193_s23 + $0xc38] sm:$0xf0]  ;;  %v10701_v19 = vor.u32 %v12609_v5, %v10698_v31 }
 0x142   : > { %6591 = vmatmul.bf16.vlgmr.msra.gmra.mxu2 %v13302_v6  ;;  %v12705_v17 = vld [vmem:[%s13193_s23 + $0x17ac] sm:$0xf]  ;;  %v11370_v0 = vld [vmem:[%s13193_s23 + $0x1a18] sm:$0xf0] }
 0x143   : > { %6635 = vmatpush.bf16.msrb.mxu2 %v9933_v36  ;;  %6610 = vmatpush.bf16.msra.mxu1 %v9117_v39  ;;  %v10122_v36 = vld [vmem:[%s13193_s23 + $0x1058] sm:$0xf0]  ;;  %v9741_v39 = vor.u32 %v12369_v21, %v9738_v22  ;;  %v12801_v22 = vld [vmem:[%s13193_s23 + $0x1aac] sm:$0xf] }
 0x144   : > { %6622 = vmatpush.bf16.msrb.mxu3 %v9549_v30  ;;  %v12465_v30 = vld [vmem:[%s13193_s23 + $0x102c] sm:$0xf]  ;;  %v6358_v45 = vpop.f32.mrf.mxu3  ;;  %v11469_v41 = vor.u32 %v12801_v22, %v11466_v23  ;;  %v11754_v5 = vld [vmem:[%s13193_s23 + $0x1d18] sm:$0xf0] }
 0x145   : > { %6565 = vmatmul.bf16.vlgmr.msra.gmra.mxu3 %v13461_v33  ;;  %6649 = vmatpush.bf16.msrb.mxu0 %v10269_v59  ;;  %v10125_v46 = vor.u32 %v12465_v30, %v10122_v36  ;;  %v6359_v47 = vadd.f32 %v6358_v45, %v6346_v28  ;;  %v6371_v54 = vpop.f32.mrf.mxu2  ;;  %v8877_v59 = vor.u32 %v12153_v48, %v8874_v49  ;;  %v12429_v27 = vld [vmem:[%s13193_s23 + $0xf0c] sm:$0xf]  ;;  %v9978_v28 = vld [vmem:[%s13193_s23 + $0xf38] sm:$0xf0] }
 0x146   : > { %v9213_v30 = vor.u32 %v12237_v12, %v9210_v13  ;;  %v9981_v45 = vor.u32 %v12429_v27, %v9978_v28  ;;  %v11418_v48 = vld [vmem:[%s13193_s23 + $0x1a78] sm:$0xf0]  ;;  %v12681_v58 = vld [vmem:[%s13193_s23 + $0x16ec] sm:$0xf] }
 0x147   : > { %6636 = vmatpush.bf16.msrb.mxu2 %v9885_v51  ;;  %6611 = vmatpush.bf16.msra.mxu1 %v9069_v53  ;;  %v10074_v51 = vld [vmem:[%s13193_s23 + $0xff8] sm:$0xf0]  ;;  %v9693_v53 = vor.u32 %v12357_v42, %v9690_v43  ;;  %v13868_v61 = vadd.f32 %v6371_v54, %v6359_v47  ;;  %v12693_v42 = vld [vmem:[%s13193_s23 + $0x174c] sm:$0xf]  ;;  %v10989_v31 = vor.u32 %v12681_v58, %v10986_v62 }
 0x148   : > { %6623 = vmatpush.bf16.msrb.mxu3 %v9501_v50  ;;  %v12453_v50 = vld [vmem:[%s13193_s23 + $0xfcc] sm:$0xf]  ;;  %v11322_v13 = vld [vmem:[%s13193_s23 + $0x19b8] sm:$0xf0] }
 0x149   : > { %6650 = vmatpush.bf16.msrb.mxu0 %v10221_v9  ;;  %v10026_v9 = vld [vmem:[%s13193_s23 + $0xf98] sm:$0xf0]  ;;  %v12789_v47 = vld [vmem:[%s13193_s23 + $0x1a4c] sm:$0xf] }
 0x14a   : > { %v10029_v21 = vor.u32 %v12441_v8, %v10026_v9  ;;  %v11421_v56 = vor.u32 %v12789_v47, %v11418_v48  ;;  %v12777_v63 = vld [vmem:[%s13193_s23 + $0x19ec] sm:$0xf]  ;;  %v10890_v27 = vld [vmem:[%s13193_s23 + $0x1658] sm:$0xf0] }
 0x14b   : > { %6637 = vmatpush.bf16.msrb.mxu2 %v9837_v2  ;;  %6612 = vmatpush.bf16.msra.mxu1 %v9021_v4  ;;  %v10077_v2 = vor.u32 %v12453_v50, %v10074_v51  ;;  %v8826_v4 = vld [vmem:[%s13193_s23 + $0x638] sm:$0xf0]  ;;  %v12585_v50 = vld [vmem:[%s13193_s23 + $0x13ec] sm:$0xf]  ;;  %v11373_v8 = vor.u32 %v12777_v63, %v11370_v0 }
 0x14c   : > { %6624 = vmatpush.bf16.msrb.mxu3 %v9453_v1  ;;  %v6347_v1 = vpop.f32.mrf.mxu1  ;;  %v6360_v29 = vpop.f32.mrf.mxu3  ;;  %v10602_v51 = vld [vmem:[%s13193_s23 + $0x1418] sm:$0xf0]  ;;  %v12669_v9 = vld [vmem:[%s13193_s23 + $0x168c] sm:$0xf] }
 0x14d   : > { %6651 = vmatpush.bf16.msrb.mxu0 %v10173_v24  ;;  %v12597_v24 = vld [vmem:[%s13193_s23 + $0x144c] sm:$0xf]  ;;  %v6373_v38 = vpop.f32.mrf.mxu2  ;;  %v11226_v48 = vld [vmem:[%s13193_s23 + $0x18f8] sm:$0xf0] }
 0x14e   : > { %v10653_v43 = vor.u32 %v12597_v24, %v10650_v25  ;;  %v12765_v12 = vld [vmem:[%s13193_s23 + $0x198c] sm:$0xf] }
 0x14f   : > { %6638 = vmatpush.bf16.msrb.mxu2 %v9789_v15  ;;  %6613 = vmatpush.bf16.msra.mxu1 %v8973_v18  ;;  %v8829_v15 = vor.u32 %v12141_v3, %v8826_v4  ;;  %v11082_v18 = vld [vmem:[%s13193_s23 + $0x17d8] sm:$0xf0]  ;;  %v12873_v4 = vld [vmem:[%s13193_s23 + $0x1cec] sm:$0xf]  ;;  %v11325_v22 = vor.u32 %v12765_v12, %v11322_v13 }
 0x150   : > { %6625 = vmatpush.bf16.msrb.mxu3 %v9405_v14  ;;  %v12333_v14 = vld [vmem:[%s13193_s23 + $0xc0c] sm:$0xf]  ;;  %v10554_v3 = vld [vmem:[%s13193_s23 + $0x13b8] sm:$0xf0] }
 0x151   : > { %6652 = vmatpush.bf16.msrb.mxu0 %v10125_v46  ;;  %v9597_v36 = vor.u32 %v12333_v14, %v9594_v16  ;;  %v11034_v46 = vld [vmem:[%s13193_s23 + $0x1778] sm:$0xf0]  ;;  %v11757_v14 = vor.u32 %v12873_v4, %v11754_v5  ;;  %v12657_v23 = vld [vmem:[%s13193_s23 + $0x162c] sm:$0xf] }
 0x152   : > { %v11037_v54 = vor.u32 %v12693_v42, %v11034_v46  ;;  %v10506_v16 = vld [vmem:[%s13193_s23 + $0x1358] sm:$0xf0]  ;;  %v12753_v28 = vld [vmem:[%s13193_s23 + $0x192c] sm:$0xf] }
 0x153   : > { %6639 = vmatpush.bf16.msrb.mxu2 %v9741_v39  ;;  %6614 = vmatpush.bf16.msra.mxu1 %v8925_v60  ;;  %v11850_v39 = vld [vmem:[%s13193_s23 + $0x1dd8] sm:$0xf0]  ;;  %v11085_v60 = vor.u32 %v12705_v17, %v11082_v18  ;;  %v12861_v17 = vld [vmem:[%s13193_s23 + $0x1c8c] sm:$0xf] }
 0x154   : > { %6626 = vmatpush.bf16.msrb.mxu3 %v9357_v37  ;;  %v12897_v37 = vld [vmem:[%s13193_s23 + $0x1dac] sm:$0xf]  ;;  %v11706_v18 = vld [vmem:[%s13193_s23 + $0x1cb8] sm:$0xf0] }
 0x155   : > { %6653 = vmatpush.bf16.msrb.mxu0 %v10077_v2  ;;  %v11853_v49 = vor.u32 %v12897_v37, %v11850_v39  ;;  %v12573_v2 = vld [vmem:[%s13193_s23 + $0x138c] sm:$0xf]  ;;  %v10458_v39 = vld [vmem:[%s13193_s23 + $0x12f8] sm:$0xf0] }
 0x156   : > { %v12549_v37 = vld [vmem:[%s13193_s23 + $0x12cc] sm:$0xf]  ;;  %v10842_v46 = vld [vmem:[%s13193_s23 + $0x15f8] sm:$0xf0] }
 0x157   : > { %6640 = vmatpush.bf16.msrb.mxu2 %v9693_v53  ;;  %6615 = vmatpush.bf16.msra.mxu1 %v8877_v59  ;;  %v11802_v53 = vld [vmem:[%s13193_s23 + $0x1d78] sm:$0xf0]  ;;  %v10605_v59 = vor.u32 %v12585_v50, %v10602_v51  ;;  %v12849_v38 = vld [vmem:[%s13193_s23 + $0x1c2c] sm:$0xf] }
 0x158   : > { %6627 = vmatpush.bf16.msrb.mxu3 %v9309_v52  ;;  %v12885_v52 = vld [vmem:[%s13193_s23 + $0x1d4c] sm:$0xf]  ;;  %v11178_v5 = vld [vmem:[%s13193_s23 + $0x1898] sm:$0xf0] }
 0x159   : > { %6654 = vmatpush.bf16.msrb.mxu0 %v10029_v21  ;;  %v11805_v1 = vor.u32 %v12885_v52, %v11802_v53  ;;  %v6384_v29 = vpop.f32.mrf.mxu0  ;;  %v12741_v47 = vld [vmem:[%s13193_s23 + $0x18cc] sm:$0xf]  ;;  %v10410_v52 = vld [vmem:[%s13193_s23 + $0x1298] sm:$0xf0] }
 0x15a   : > { %v12537_v51 = vld [vmem:[%s13193_s23 + $0x126c] sm:$0xf]  ;;  %v11229_v63 = vor.u32 %v12741_v47, %v11226_v48  ;;  %v11562_v12 = vld [vmem:[%s13193_s23 + $0x1b98] sm:$0xf0]  ;;  %v9552_v47 = vld [vmem:[%s13193_s23 + $0xbb0] sm:$0xf] }
 0x15b   : > { %6641 = vmatpush.bf16.msrb.mxu2 %v9645_v11  ;;  %6616 = vmatpush.bf16.msra.mxu1 %v8829_v15  ;;  %v10938_v11 = vld [vmem:[%s13193_s23 + $0x16b8] sm:$0xf0]  ;;  %v12561_v15 = vld [vmem:[%s13193_s23 + $0x132c] sm:$0xf]  ;;  %v6397_v24 = vpop.f32.mrf.mxu1  ;;  %v12328_v48 = vld [vmem:[%s13193_s23 + $0xbdc] sm:$0xf0] }
 0x15c   : > { %6628 = vmatpush.bf16.msrb.mxu3 %v9261_v10  ;;  %v10557_v10 = vor.u32 %v12573_v2, %v10554_v3  ;;  %v10941_v21 = vor.u32 %v12669_v9, %v10938_v11  ;;  %v10509_v25 = vor.u32 %v12561_v15, %v10506_v16  ;;  %v12633_v0 = vld [vmem:[%s13193_s23 + $0x156c] sm:$0xf]  ;;  %v10413_v2 = vor.u32 %v12537_v51, %v10410_v52  ;;  %v10794_v3 = vld [vmem:[%s13193_s23 + $0x1598] sm:$0xf0]  ;;  %v8352_v51 = vld [vmem:[%s13193_s23 + $0x250] sm:$0xf] }
 0x15d   : > { %6655 = vmatpush.bf16.msrb.mxu0 %v9981_v45  ;;  %v10461_v45 = vor.u32 %v12549_v37, %v10458_v39  ;;  %v12729_v4 = vld [vmem:[%s13193_s23 + $0x186c] sm:$0xf]  ;;  %v10797_v15 = vor.u32 %v12633_v0, %v10794_v3  ;;  %v13961_v37 = vld [vmem:[%s13199_s25] sm:$0xff]  ;;  %v7870_v0 = vmax.f32 %v13782_v20, 0.0  ;;  %v8688_v20 = vld [vmem:[%s13193_s23 + $0x4f0] sm:$0xf] }
 0x15e   : > { %6617 = vmatmul.bf16.vlgmr.msra.gmra.mxu1 %v13288_v55  ;;  %v12525_v9 = vld [vmem:[%s13193_s23 + $0x120c] sm:$0xf]  ;;  %v11181_v16 = vor.u32 %v12729_v4, %v11178_v5  ;;  %v7882_v39 = vperm.slane %v13961_v37, 1  ;;  %v12028_v52 = vld [vmem:[%s13193_s23 + $0x27c] sm:$0xf0] }
 0x15f   : > { %6661 = vmatpush.bf16.msrb.mxu1 %v10701_v19  ;;  %6642 = vmatpush.bf16.msrb.mxu2 %v9597_v36  ;;  %v6385_v19 = vadd.f32 %v6384_v29, %v13868_v61  ;;  %v11709_v61 = vor.u32 %v12861_v17, %v11706_v18  ;;  %v12825_v11 = vld [vmem:[%s13193_s23 + $0x1b6c] sm:$0xf]  ;;  %v10746_v18 = vld [vmem:[%s13193_s23 + $0x1538] sm:$0xf0]  ;;  %v8353_v3 = vor.u32 %v12028_v52, %v8352_v51  ;;  %v9504_v4 = vld [vmem:[%s13193_s23 + $0xb50] sm:$0xf] }
 0x160   : > { %6629 = vmatpush.bf16.msrb.mxu3 %v9213_v30  ;;  %6656 = vmatmul.bf16.vlgmr.msrb.gmra.mxu0 %v13375_v40  ;;  %v11274_v30 = vld [vmem:[%s13193_s23 + $0x1958] sm:$0xf0]  ;;  %v12909_v13 = vld [vmem:[%s13193_s23 + $0x1e0c] sm:$0xf]  ;;  %v12316_v5 = vld [vmem:[%s13193_s23 + $0xb7c] sm:$0xf0] }
 0x161   : > { %6700 = vmatpush.bf16.msra.mxu0 %v11853_v49  ;;  %v6398_v36 = vadd.f32 %v6397_v24, %v6385_v19  ;;  %v11277_v42 = vor.u32 %v12753_v28, %v11274_v30  ;;  %v6386_v58 = vpop.f32.mrf.mxu0  ;;  %v12621_v29 = vld [vmem:[%s13193_s23 + $0x150c] sm:$0xf]  ;;  %v8784_v28 = vld [vmem:[%s13193_s23 + $0x5b0] sm:$0xf]  ;;  %v12136_v30 = vld [vmem:[%s13193_s23 + $0x5dc] sm:$0xf0] }
 0x162   : > { %6643 = vmatmul.bf16.vlgmr.msrb.gmra.mxu2 %v13368_v34  ;;  %v12717_v19 = vld [vmem:[%s13193_s23 + $0x180c] sm:$0xf]  ;;  %v9120_v58 = vld [vmem:[%s13193_s23 + $0x850] sm:$0xf] }
 0x163   : > { %6687 = vmatpush.bf16.msra.mxu2 %v11469_v41  ;;  %6662 = vmatpush.bf16.msrb.mxu1 %v10653_v43  ;;  %v10893_v41 = vor.u32 %v12657_v23, %v10890_v27  ;;  %v12645_v43 = vld [vmem:[%s13193_s23 + $0x15cc] sm:$0xf]  ;;  %v11565_v23 = vor.u32 %v12825_v11, %v11562_v12  ;;  %v12040_v27 = vld [vmem:[%s13193_s23 + $0x2dc] sm:$0xf0]  ;;  %v8976_v52 = vld [vmem:[%s13193_s23 + $0x730] sm:$0xf] }
 0x164   : > { %6674 = vmatpush.bf16.msra.mxu3 %v11085_v60  ;;  %v11658_v60 = vld [vmem:[%s13193_s23 + $0x1c58] sm:$0xf0]  ;;  %v6410_v49 = vpop.f32.mrf.mxu3  ;;  %v10845_v62 = vor.u32 %v12645_v43, %v10842_v46  ;;  %v7883_v46 = vperm.slane %v13961_v37, 3  ;;  %v12016_v11 = vld [vmem:[%s13193_s23 + $0x21c] sm:$0xf0] }
 0x165   : > { %6630 = vmatmul.bf16.vlgmr.msrb.gmra.mxu3 %v13293_v57  ;;  %6701 = vmatpush.bf16.msra.mxu0 %v11805_v1  ;;  %v11661_v50 = vor.u32 %v12849_v38, %v11658_v60  ;;  %v6411_v53 = vadd.f32 %v6410_v49, %v6398_v36  ;;  %v9168_v36 = vld [vmem:[%s13193_s23 + $0x8b0] sm:$0xf]  ;;  %v10749_v38 = vor.u32 %v12621_v29, %v10746_v18  ;;  %v12813_v60 = vld [vmem:[%s13193_s23 + $0x1b0c] sm:$0xf] }
 0x166   : > { %v8785_v49 = vor.u32 %v12136_v30, %v8784_v28  ;;  %v9456_v29 = vld [vmem:[%s13193_s23 + $0xaf0] sm:$0xf] }
 0x167   : > { %6688 = vmatpush.bf16.msra.mxu2 %v11421_v56  ;;  %6663 = vmatpush.bf16.msrb.mxu1 %v10605_v59  ;;  %v11610_v56 = vld [vmem:[%s13193_s23 + $0x1bf8] sm:$0xf0]  ;;  %v6423_v59 = vpop.f32.mrf.mxu2  ;;  %v9024_v30 = vld [vmem:[%s13193_s23 + $0x790] sm:$0xf] }
 0x168   : > { %6675 = vmatpush.bf16.msra.mxu3 %v11037_v54  ;;  %v12837_v54 = vld [vmem:[%s13193_s23 + $0x1bcc] sm:$0xf]  ;;  %v13939_v1 = vadd.f32 %v6423_v59, %v6411_v53  ;;  %v8736_v53 = vld [vmem:[%s13193_s23 + $0x550] sm:$0xf]  ;;  %v12220_v59 = vld [vmem:[%s13193_s23 + $0x87c] sm:$0xf0] }
 0x169   : > { %6702 = vmatpush.bf16.msra.mxu0 %v11757_v14  ;;  %v11898_v14 = vld [vmem:[%s13193_s23 + $0x1e38] sm:$0xf0] }
 0x16a   : > { %v11901_v24 = vor.u32 %v12909_v13, %v11898_v14  ;;  %v12112_v13 = vld [vmem:[%s13193_s23 + $0x51c] sm:$0xf0]  ;;  %v9072_v14 = vld [vmem:[%s13193_s23 + $0x7f0] sm:$0xf] }
 0x16b   : > { %6689 = vmatpush.bf16.msra.mxu2 %v11373_v8  ;;  %6664 = vmatpush.bf16.msrb.mxu1 %v10557_v10  ;;  %v11613_v8 = vor.u32 %v12837_v54, %v11610_v56  ;;  %v10362_v10 = vld [vmem:[%s13193_s23 + $0x1238] sm:$0xf0]  ;;  %v12124_v56 = vld [vmem:[%s13193_s23 + $0x57c] sm:$0xf0] }
 0x16c   : > { %6676 = vmatpush.bf16.msra.mxu3 %v10989_v31  ;;  %v6399_v31 = vpop.f32.mrf.mxu1  ;;  %v10365_v17 = vor.u32 %v12525_v9, %v10362_v10  ;;  %v9121_v9 = vor.u32 %v12220_v59, %v9120_v58  ;;  %v8304_v10 = vld [vmem:[%s13193_s23 + $0x1f0] sm:$0xf] }
 0x16d   : > { %6703 = vmatpush.bf16.msra.mxu0 %v11709_v61  ;;  %v12232_v61 = vld [vmem:[%s13193_s23 + $0x8dc] sm:$0xf0]  ;;  %v8305_v18 = vor.u32 %v12016_v11, %v8304_v10 }
 0x16f   : > { %6690 = vmatpush.bf16.msra.mxu2 %v11325_v22  ;;  %6665 = vmatpush.bf16.msrb.mxu1 %v10509_v25  ;;  %v6412_v22 = vpop.f32.mrf.mxu3  ;;  %v8400_v25 = vld [vmem:[%s13193_s23 + $0x2b0] sm:$0xf] }
 0x170   : > { %6677 = vmatpush.bf16.msra.mxu3 %v10941_v21  ;;  %v11130_v21 = vld [vmem:[%s13193_s23 + $0x1838] sm:$0xf0] }
 0x171   : > { %6704 = vmatpush.bf16.msra.mxu0 %v11661_v50  ;;  %v11133_v43 = vor.u32 %v12717_v19, %v11130_v21  ;;  %v9169_v50 = vor.u32 %v12232_v61, %v9168_v36  ;;  %v8256_v19 = vld [vmem:[%s13193_s23 + $0x190] sm:$0xf]  ;;  %v8689_v21 = vor.u32 %v12112_v13, %v8688_v20  ;;  %v12196_v36 = vld [vmem:[%s13193_s23 + $0x7bc] sm:$0xf0]  ;;  %v1218_v61 = vperm.slane %v13961_v37, 4 }
 0x172   : > { %v12268_v13 = vld [vmem:[%s13193_s23 + $0x9fc] sm:$0xf0] }
 0x173   : > { %6691 = vmatpush.bf16.msra.mxu2 %v11277_v42  ;;  %6666 = vmatpush.bf16.msrb.mxu1 %v10461_v45  ;;  %v6425_v42 = vpop.f32.mrf.mxu2  ;;  %v8401_v45 = vor.u32 %v12040_v27, %v8400_v25  ;;  %v12100_v25 = vld [vmem:[%s13193_s23 + $0x4bc] sm:$0xf0] }
 0x174   : > { %6678 = vmatpush.bf16.msra.mxu3 %v10893_v41  ;;  %v11514_v41 = vld [vmem:[%s13193_s23 + $0x1b38] sm:$0xf0]  ;;  %v8208_v42 = vld [vmem:[%s13193_s23 + $0x130] sm:$0xf] }
 0x175   : > { %6705 = vmatpush.bf16.msra.mxu0 %v11613_v8  ;;  %v11517_v54 = vor.u32 %v12813_v60, %v11514_v41  ;;  %v8737_v8 = vor.u32 %v12124_v56, %v8736_v53  ;;  %v9408_v60 = vld [vmem:[%s13193_s23 + $0xa90] sm:$0xf]  ;;  %v12292_v41 = vld [vmem:[%s13193_s23 + $0xabc] sm:$0xf0] }
 0x176   : > { %v12184_v53 = vld [vmem:[%s13193_s23 + $0x75c] sm:$0xf0]  ;;  %v9409_v58 = vor.u32 %v12292_v41, %v9408_v60 }
 0x177   : > { %6692 = vmatpush.bf16.msra.mxu2 %v11229_v63  ;;  %6667 = vmatpush.bf16.msrb.mxu1 %v10413_v2  ;;  %v9553_v63 = vor.u32 %v12328_v48, %v9552_v47  ;;  %v7907_v2 = vperm.slane %v7883_v46, 1  ;;  %v6436_v31 = vpop.f32.mrf.mxu3  ;;  %v9025_v46 = vor.u32 %v12196_v36, %v9024_v30  ;;  %v11992_v48 = vld [vmem:[%s13193_s23 + $0x15c] sm:$0xf0] }
 0x178   : > { %6679 = vmatpush.bf16.msra.mxu3 %v10845_v62  ;;  %v7906_v62 = vperm.slane %v7882_v39, 1  ;;  %v6437_v12 = vadd.f32 %v6436_v31, %v13939_v1  ;;  %v12304_v1 = vld [vmem:[%s13193_s23 + $0xb1c] sm:$0xf0]  ;;  %v8209_v59 = vor.u32 %v11992_v48, %v8208_v42  ;;  %v8448_v42 = vld [vmem:[%s13193_s23 + $0x310] sm:$0xf] }
 0x179   : > { %6706 = vmatpush.bf16.msra.mxu0 %v11565_v23  ;;  %v12004_v23 = vld [vmem:[%s13193_s23 + $0x1bc] sm:$0xf0]  ;;  %v9457_v39 = vor.u32 %v12304_v1, %v9456_v29  ;;  %v6475_v56 = vpop.f32.mrf.mxu0  ;;  %v9936_v48 = vld [vmem:[%s13193_s23 + $0xeb0] sm:$0xf] }
 0x17a   : > { %v7918_v27 = vmul.f32 %v7906_v62, %v7870_v0  ;;  %v9360_v62 = vld [vmem:[%s13193_s23 + $0xa30] sm:$0xf]  ;;  %v12076_v31 = vld [vmem:[%s13193_s23 + $0x3fc] sm:$0xf0] }
 0x17b   : > { %6693 = vmatpush.bf16.msra.mxu2 %v11181_v16  ;;  %6668 = vmatpush.bf16.msrb.mxu1 %v10365_v17  ;;  %v9505_v16 = vor.u32 %v12316_v5, %v9504_v4  ;;  %v7871_v17 = vmax.f32 %v6437_v12, 0.0  ;;  %v6449_v51 = vpop.f32.mrf.mxu1  ;;  %v11980_v4 = vld [vmem:[%s13193_s23 + $0xfc] sm:$0xf0]  ;;  %v8544_v5 = vld [vmem:[%s13193_s23 + $0x3d0] sm:$0xf] }
 0x17c   : > { %6680 = vmatpush.bf16.msra.mxu3 %v10797_v15  ;;  %v12208_v15 = vld [vmem:[%s13193_s23 + $0x81c] sm:$0xf0]  ;;  %v9312_v12 = vld [vmem:[%s13193_s23 + $0x9d0] sm:$0xf] }
 0x17d   : > { %6707 = vmatpush.bf16.msra.mxu0 %v11517_v54  ;;  %v9073_v22 = vor.u32 %v12208_v15, %v9072_v14  ;;  %v7919_v28 = vmul.f32 %v7907_v2, %v7871_v17  ;;  %v1242_v54 = vperm.slane %v1218_v61, 0  ;;  %v8977_v2 = vor.u32 %v12184_v53, %v8976_v52  ;;  %v11968_v29 = vld [vmem:[%s13193_s23 + $0x9c] sm:$0xf0]  ;;  %v8496_v17 = vld [vmem:[%s13193_s23 + $0x370] sm:$0xf] }
 0x17e   : > { %6669 = vmatmul.bf16.vlgmr.msrb.gmra.mxu1 %v13370_v35  ;;  %v8545_v14 = vor.u32 %v12076_v31, %v8544_v5  ;;  %v12256_v36 = vld [vmem:[%s13193_s23 + $0x99c] sm:$0xf0]  ;;  %v8064_v61 = vld [vmem:[%s13193_s23 + $0x10] sm:$0xf] }
 0x17f   : > { %6720 = vmatpush.bf16.msra.mxu1 %v11901_v24  ;;  %6694 = vmatpush.bf16.msra.mxu2 %v11133_v43  ;;  %v8640_v24 = vld [vmem:[%s13193_s23 + $0x490] sm:$0xf]  ;;  %v14001_v43 = vadd.f32 %v7919_v28, %v7918_v27  ;;  %v6438_v47 = vpop.f32.mrf.mxu3  ;;  %v6450_v10 = vadd.f32 %v6449_v51, %v1242_v54  ;;  %v9313_v27 = vor.u32 %v12268_v13, %v9312_v12  ;;  %v12520_v53 = vld [vmem:[%s13193_s23 + $0x11dc] sm:$0xf0] }
 0x180   : > { %6681 = vmatpush.bf16.msra.mxu3 %v10749_v38  ;;  %6708 = vmatmul.bf16.vlgmr.msra.gmra.mxu0 %v13461_v33  ;;  %v8257_v38 = vor.u32 %v12004_v23, %v8256_v19  ;;  %v12064_v19 = vld [vmem:[%s13193_s23 + $0x39c] sm:$0xf0]  ;;  %v9264_v28 = vld [vmem:[%s13193_s23 + $0x970] sm:$0xf] }
 0x181   : > { %6765 = vmatpush.bf16.msrb.mxu0 %v9553_v63  ;;  %v12280_v63 = vld [vmem:[%s13193_s23 + $0xa5c] sm:$0xf0]  ;;  %v8497_v60 = vor.u32 %v12064_v19, %v8496_v17  ;;  %v9265_v51 = vor.u32 %v12256_v36, %v9264_v28  ;;  %v10320_v52 = vld [vmem:[%s13193_s23 + $0x11b0] sm:$0xf] }
 0x182   : > { %6695 = vmatmul.bf16.vlgmr.msra.gmra.mxu2 %v13456_v26  ;;  %v9361_v11 = vor.u32 %v12280_v63, %v9360_v62  ;;  %v12148_v47 = vld [vmem:[%s13193_s23 + $0x63c] sm:$0xf0]  ;;  %v10704_v54 = vld [vmem:[%s13193_s23 + $0x14b0] sm:$0xf]  ;;  %v10321_v31 = vor.u32 %v12520_v53, %v10320_v52 }
 0x183   : > { %6739 = vmatpush.bf16.msrb.mxu1 %v8785_v49  ;;  %6752 = vmatpush.bf16.msrb.mxu2 %v9169_v50  ;;  %v8592_v49 = vld [vmem:[%s13193_s23 + $0x430] sm:$0xf]  ;;  %v12088_v50 = vld [vmem:[%s13193_s23 + $0x45c] sm:$0xf0] }
 0x184   : > { %6726 = vmatpush.bf16.msrb.mxu3 %v8401_v45  ;;  %v8641_v45 = vor.u32 %v12100_v25, %v8640_v24  ;;  %v8593_v0 = vor.u32 %v12088_v50, %v8592_v49  ;;  %v6477_v24 = vpop.f32.mrf.mxu0  ;;  %v12424_v49 = vld [vmem:[%s13193_s23 + $0xedc] sm:$0xf0]  ;;  %v10272_v12 = vld [vmem:[%s13193_s23 + $0x1150] sm:$0xf] }
 0x185   : > { %6682 = vmatmul.bf16.vlgmr.msra.gmra.mxu3 %v13379_v44  ;;  %6766 = vmatpush.bf16.msrb.mxu0 %v9505_v16  ;;  %v8112_v16 = vld [vmem:[%s13193_s23 + $0x70] sm:$0xf]  ;;  %v6488_v25 = vpop.f32.mrf.mxu2  ;;  %v12244_v62 = vld [vmem:[%s13193_s23 + $0x93c] sm:$0xf0]  ;;  %v9937_v5 = vor.u32 %v12424_v49, %v9936_v48 }
 0x186   : > { %v8113_v30 = vor.u32 %v11968_v29, %v8112_v16  ;;  %v12508_v13 = vld [vmem:[%s13193_s23 + $0x117c] sm:$0xf0]  ;;  %v11040_v29 = vld [vmem:[%s13193_s23 + $0x1750] sm:$0xf] }
 0x187   : > { %6740 = vmatpush.bf16.msrb.mxu1 %v8737_v8  ;;  %6753 = vmatpush.bf16.msrb.mxu2 %v9121_v9  ;;  %v8928_v8 = vld [vmem:[%s13193_s23 + $0x6d0] sm:$0xf]  ;;  %v12172_v9 = vld [vmem:[%s13193_s23 + $0x6fc] sm:$0xf0] }
 0x188   : > { %6727 = vmatpush.bf16.msrb.mxu3 %v8353_v3  ;;  %v8160_v3 = vld [vmem:[%s13193_s23 + $0xd0] sm:$0xf]  ;;  %v8929_v15 = vor.u32 %v12172_v9, %v8928_v8  ;;  %v6462_v1 = vpop.f32.mrf.mxu3  ;;  %v12604_v16 = vld [vmem:[%s13193_s23 + $0x147c] sm:$0xf0] }
 0x189   : > { %6767 = vmatpush.bf16.msrb.mxu0 %v9457_v39  ;;  %v8161_v20 = vor.u32 %v11980_v4, %v8160_v3  ;;  %v6463_v23 = vadd.f32 %v6462_v1, %v6450_v10  ;;  %v11956_v39 = vld [vmem:[%s13193_s23 + $0x3c] sm:$0xf0]  ;;  %v9888_v8 = vld [vmem:[%s13193_s23 + $0xe50] sm:$0xf]  ;;  %v10273_v1 = vor.u32 %v12508_v13, %v10272_v12 }
 0x18a   : > { %v12712_v3 = vld [vmem:[%s13193_s23 + $0x17dc] sm:$0xf0]  ;;  %v9840_v19 = vld [vmem:[%s13193_s23 + $0xdf0] sm:$0xf] }
 0x18b   : > { %6741 = vmatpush.bf16.msrb.mxu1 %v8689_v21  ;;  %6754 = vmatpush.bf16.msrb.mxu2 %v9073_v22  ;;  %v8880_v21 = vld [vmem:[%s13193_s23 + $0x670] sm:$0xf]  ;;  %v12160_v22 = vld [vmem:[%s13193_s23 + $0x69c] sm:$0xf0] }
 0x18c   : > { %6728 = vmatpush.bf16.msrb.mxu3 %v8305_v18  ;;  %v6451_v18 = vpop.f32.mrf.mxu1  ;;  %v8881_v41 = vor.u32 %v12160_v22, %v8880_v21  ;;  %v12700_v17 = vld [vmem:[%s13193_s23 + $0x177c] sm:$0xf0]  ;;  %v10080_v12 = vld [vmem:[%s13193_s23 + $0xfd0] sm:$0xf] }
 0x18d   : > { %6768 = vmatpush.bf16.msrb.mxu0 %v9409_v58  ;;  %v12616_v58 = vld [vmem:[%s13193_s23 + $0x14dc] sm:$0xf0]  ;;  %v6490_v9 = vpop.f32.mrf.mxu2 }
 0x18e   : > { %11937 = vmatmul.msk.bf16.vlgmr.msra.gmra.mxu1 %vm6150_vm0, %v13418_v32  ;;  %v10705_v10 = vor.u32 %v12616_v58, %v10704_v54  ;;  %v12400_v22 = vld [vmem:[%s13193_s23 + $0xe1c] sm:$0xf0]  ;;  %v9744_v58 = vld [vmem:[%s13193_s23 + $0xd30] sm:$0xf] }
 0x18f   : > { %6742 = vmatpush.bf16.msrb.mxu1 %v8641_v45  ;;  %6755 = vmatpush.bf16.msrb.mxu2 %v9025_v46  ;;  %v12052_v45 = vld [vmem:[%s13193_s23 + $0x33c] sm:$0xf0]  ;;  %v8832_v46 = vld [vmem:[%s13193_s23 + $0x610] sm:$0xf] }
 0x190   : > { %6729 = vmatpush.bf16.msrb.mxu3 %v8257_v38  ;;  %v6476_v38 = vadd.f32 %v6475_v56, %v6463_v23  ;;  %v8065_v56 = vor.u32 %v11956_v39, %v8064_v61  ;;  %v8449_v63 = vor.u32 %v12052_v45, %v8448_v42  ;;  %v6464_v4 = vpop.f32.mrf.mxu3  ;;  %v10224_v23 = vld [vmem:[%s13193_s23 + $0x10f0] sm:$0xf]  ;;  %v12496_v24 = vld [vmem:[%s13193_s23 + $0x111c] sm:$0xf0]  ;;  %v9841_v61 = vor.u32 %v12400_v22, %v9840_v19 }
 0x191   : > { %6769 = vmatpush.bf16.msrb.mxu0 %v9361_v11  ;;  %v12592_v28 = vld [vmem:[%s13193_s23 + $0x141c] sm:$0xf0]  ;;  %v10225_v39 = vor.u32 %v12496_v24, %v10224_v23  ;;  %v10176_v42 = vld [vmem:[%s13193_s23 + $0x1090] sm:$0xf] }
 0x192   : > { %v14036_v50 = vadd.f32 %v6488_v25, %v6476_v38  ;;  %v11041_v25 = vor.u32 %v12700_v17, %v11040_v29  ;;  %v12688_v36 = vld [vmem:[%s13193_s23 + $0x171c] sm:$0xf0]  ;;  %v9792_v38 = vld [vmem:[%s13193_s23 + $0xd90] sm:$0xf] }
 0x193   : > { %6743 = vmatpush.bf16.msrb.mxu1 %v8593_v0  ;;  %6756 = vmatpush.bf16.msrb.mxu2 %v8977_v2  ;;  %v8833_v0 = vor.u32 %v12148_v47, %v8832_v46  ;;  %v11088_v2 = vld [vmem:[%s13193_s23 + $0x17b0] sm:$0xf]  ;;  %v12484_v45 = vld [vmem:[%s13193_s23 + $0x10bc] sm:$0xf0] }
 0x194   : > { %6730 = vmatpush.bf16.msrb.mxu3 %v8209_v59  ;;  %v9216_v59 = vld [vmem:[%s13193_s23 + $0x910] sm:$0xf]  ;;  %v12580_v48 = vld [vmem:[%s13193_s23 + $0x13bc] sm:$0xf0] }
 0x195   : > { %6770 = vmatpush.bf16.msrb.mxu0 %v9313_v27  ;;  %v9217_v11 = vor.u32 %v12244_v62, %v9216_v59  ;;  %v10608_v27 = vld [vmem:[%s13193_s23 + $0x13f0] sm:$0xf]  ;;  %v12676_v52 = vld [vmem:[%s13193_s23 + $0x16bc] sm:$0xf0] }
 0x196   : > { %v10560_v47 = vld [vmem:[%s13193_s23 + $0x1390] sm:$0xf]  ;;  %v12568_v4 = vld [vmem:[%s13193_s23 + $0x135c] sm:$0xf0] }
 0x197   : > { %6744 = vmatpush.bf16.msrb.mxu1 %v8545_v14  ;;  %6757 = vmatpush.bf16.msrb.mxu2 %v8929_v15  ;;  %v11089_v14 = vor.u32 %v12712_v3, %v11088_v2  ;;  %v10656_v15 = vld [vmem:[%s13193_s23 + $0x1450] sm:$0xf]  ;;  %v10561_v62 = vor.u32 %v12580_v48, %v10560_v47  ;;  %v12472_v2 = vld [vmem:[%s13193_s23 + $0x105c] sm:$0xf0] }
 0x198   : > { %6731 = vmatpush.bf16.msrb.mxu3 %v8161_v20  ;;  %v12412_v20 = vld [vmem:[%s13193_s23 + $0xe7c] sm:$0xf0]  ;;  %v10657_v21 = vor.u32 %v12604_v16, %v10656_v15  ;;  %v10464_v15 = vld [vmem:[%s13193_s23 + $0x12d0] sm:$0xf] }
 0x199   : > { %6771 = vmatpush.bf16.msrb.mxu0 %v9265_v51  ;;  %v9889_v18 = vor.u32 %v12412_v20, %v9888_v8  ;;  %v10944_v51 = vld [vmem:[%s13193_s23 + $0x1690] sm:$0xf]  ;;  %v6527_v59 = vpop.f32.mrf.mxu0  ;;  %v12364_v20 = vld [vmem:[%s13193_s23 + $0xcfc] sm:$0xf0] }
 0x19a   : > { %v10945_v3 = vor.u32 %v12676_v52, %v10944_v51  ;;  %v12460_v13 = vld [vmem:[%s13193_s23 + $0xffc] sm:$0xf0]  ;;  %v10848_v29 = vld [vmem:[%s13193_s23 + $0x15d0] sm:$0xf] }
 0x19b   : > { %6745 = vmatpush.bf16.msrb.mxu1 %v8497_v60  ;;  %6758 = vmatpush.bf16.msrb.mxu2 %v8881_v41  ;;  %v10609_v60 = vor.u32 %v12592_v28, %v10608_v27  ;;  %v12388_v41 = vld [vmem:[%s13193_s23 + $0xdbc] sm:$0xf0]  ;;  %v6501_v49 = vpop.f32.mrf.mxu1  ;;  %v9648_v22 = vld [vmem:[%s13193_s23 + $0xc70] sm:$0xf] }
 0x19c   : > { %6732 = vmatpush.bf16.msrb.mxu3 %v8113_v30  ;;  %v10992_v30 = vld [vmem:[%s13193_s23 + $0x16f0] sm:$0xf]  ;;  %v6502_v53 = vadd.f32 %v6501_v49, %v14036_v50  ;;  %v9793_v54 = vor.u32 %v12388_v41, %v9792_v38  ;;  %v12556_v16 = vld [vmem:[%s13193_s23 + $0x12fc] sm:$0xf0] }
 0x19d   : > { %6772 = vmatpush.bf16.msrb.mxu0 %v9217_v11  ;;  %v10993_v46 = vor.u32 %v12688_v36, %v10992_v30  ;;  %v10512_v50 = vld [vmem:[%s13193_s23 + $0x1330] sm:$0xf]  ;;  %v12652_v17 = vld [vmem:[%s13193_s23 + $0x15fc] sm:$0xf0] }
 0x19e   : > { %v10513_v11 = vor.u32 %v12568_v4, %v10512_v50  ;;  %v12352_v27 = vld [vmem:[%s13193_s23 + $0xc9c] sm:$0xf0]  ;;  %v10032_v28 = vld [vmem:[%s13193_s23 + $0xf70] sm:$0xf] }
 0x19f   : > { %6746 = vmatpush.bf16.msrb.mxu1 %v8449_v63  ;;  %6759 = vmatpush.bf16.msrb.mxu2 %v8833_v0  ;;  %v12376_v63 = vld [vmem:[%s13193_s23 + $0xd5c] sm:$0xf0]  ;;  %v10128_v0 = vld [vmem:[%s13193_s23 + $0x1030] sm:$0xf] }
 0x1a0   : > { %6733 = vmatpush.bf16.msrb.mxu3 %v8065_v56  ;;  %6773 = vmatmul.bf16.vlgmr.msrb.gmra.mxu0 %v13293_v57  ;;  %v10177_v56 = vor.u32 %v12484_v45, %v10176_v42  ;;  %v9745_v8 = vor.u32 %v12376_v63, %v9744_v58  ;;  %v10129_v9 = vor.u32 %v12472_v2, %v10128_v0  ;;  %v12448_v30 = vld [vmem:[%s13193_s23 + $0xf9c] sm:$0xf0]  ;;  %v10800_v41 = vld [vmem:[%s13193_s23 + $0x1570] sm:$0xf] }
 0x1a1   : > { %6817 = vmatpush.bf16.msra.mxu0 %v11089_v14  ;;  %v6529_v24 = vpop.f32.mrf.mxu0  ;;  %v12544_v38 = vld [vmem:[%s13193_s23 + $0x129c] sm:$0xf0]  ;;  %v9649_v45 = vor.u32 %v12352_v27, %v9648_v22  ;;  %v9600_v47 = vld [vmem:[%s13193_s23 + $0xc10] sm:$0xf]  ;;  %v8354_v27 = vld [vmem:[%s13193_s23 + $0x280] sm:$0xf0] }
 0x1a2   : > { %6760 = vmatmul.bf16.vlgmr.msrb.gmra.mxu2 %v13288_v55  ;;  %6747 = vmatmul.bf16.vlgmr.msrb.gmra.mxu1 %v13304_v7  ;;  %v12640_v42 = vld [vmem:[%s13193_s23 + $0x159c] sm:$0xf0]  ;;  %v9984_v49 = vld [vmem:[%s13193_s23 + $0xf10] sm:$0xf] }
 0x1a3   : > { %6791 = vmatpush.bf16.msra.mxu1 %v10321_v31  ;;  %6804 = vmatpush.bf16.msra.mxu2 %v10705_v10  ;;  %v12664_v31 = vld [vmem:[%s13193_s23 + $0x165c] sm:$0xf0]  ;;  %v9696_v10 = vld [vmem:[%s13193_s23 + $0xcd0] sm:$0xf]  ;;  %v10801_v58 = vor.u32 %v12640_v42, %v10800_v41 }
 0x1a4   : > { %6778 = vmatpush.bf16.msra.mxu3 %v9937_v5  ;;  %v10896_v5 = vld [vmem:[%s13193_s23 + $0x1630] sm:$0xf]  ;;  %v9697_v19 = vor.u32 %v12364_v20, %v9696_v10  ;;  %v12340_v48 = vld [vmem:[%s13193_s23 + $0xc3c] sm:$0xf0]  ;;  %v8402_v20 = vld [vmem:[%s13193_s23 + $0x2e0] sm:$0xf0] }
 0x1a5   : > { %6734 = vmatmul.bf16.vlgmr.msrb.gmra.mxu3 %v13302_v6  ;;  %6818 = vmatpush.bf16.msra.mxu0 %v11041_v25  ;;  %v10897_v14 = vor.u32 %v12664_v31, %v10896_v5  ;;  %v10465_v25 = vor.u32 %v12556_v16, %v10464_v15  ;;  %v6540_v36 = vpop.f32.mrf.mxu2  ;;  %v11856_v63 = vld [vmem:[%s13193_s23 + $0x1db0] sm:$0xf]  ;;  %v12904_v0 = vld [vmem:[%s13193_s23 + $0x1ddc] sm:$0xf0]  ;;  %v9601_v50 = vor.u32 %v12340_v48, %v9600_v47  ;;  %v8786_v16 = vld [vmem:[%s13193_s23 + $0x5e0] sm:$0xf0] }
 0x1a6   : > { %v10752_v2 = vld [vmem:[%s13193_s23 + $0x1510] sm:$0xf]  ;;  %v12916_v31 = vld [vmem:[%s13193_s23 + $0x1e3c] sm:$0xf0]  ;;  %v8306_v47 = vld [vmem:[%s13193_s23 + $0x220] sm:$0xf0] }
 0x1a7   : > { %6792 = vmatpush.bf16.msra.mxu1 %v10273_v1  ;;  %6805 = vmatpush.bf16.msra.mxu2 %v10657_v21  ;;  %v10081_v21 = vor.u32 %v12460_v13, %v10080_v12  ;;  %v11904_v5 = vld [vmem:[%s13193_s23 + $0x1e10] sm:$0xf]  ;;  %v12130_v12 = vld [vmem:[%s13193_s23 + $0x5b4] sm:$0xf] }
 0x1a8   : > { %6779 = vmatpush.bf16.msra.mxu3 %v9889_v18  ;;  %v6503_v18 = vpop.f32.mrf.mxu1  ;;  %v6514_v1 = vpop.f32.mrf.mxu3  ;;  %v12106_v48 = vld [vmem:[%s13193_s23 + $0x4f4] sm:$0xf] }
 0x1a9   : > { %6819 = vmatpush.bf16.msra.mxu0 %v10993_v46  ;;  %v6515_v23 = vadd.f32 %v6514_v1, %v6502_v53  ;;  %v10033_v46 = vor.u32 %v12448_v30, %v10032_v28  ;;  %v12436_v53 = vld [vmem:[%s13193_s23 + $0xf3c] sm:$0xf0]  ;;  %v14118_v13 = vpop.f32.mrf.mxu0  ;;  %v11905_v1 = vor.u32 %v12916_v31, %v11904_v5  ;;  %v12118_v28 = vld [vmem:[%s13193_s23 + $0x554] sm:$0xf] }
 0x1aa   : > { %v9985_v4 = vor.u32 %v12436_v53, %v9984_v49  ;;  %v8690_v53 = vld [vmem:[%s13193_s23 + $0x520] sm:$0xf0]  ;;  %v12094_v5 = vld [vmem:[%s13193_s23 + $0x494] sm:$0xf] }
 0x1ab   : > { %6793 = vmatpush.bf16.msra.mxu1 %v10225_v39  ;;  %6806 = vmatpush.bf16.msra.mxu2 %v10609_v60  ;;  %v10416_v39 = vld [vmem:[%s13193_s23 + $0x1270] sm:$0xf]  ;;  %v6528_v60 = vadd.f32 %v6527_v59, %v6515_v23  ;;  %v8789_v23 = vor.u32 %v12130_v12, %v8786_v16  ;;  %v8210_v16 = vld [vmem:[%s13193_s23 + $0x160] sm:$0xf0] }
 0x1ac   : > { %6780 = vmatpush.bf16.msra.mxu3 %v9841_v61  ;;  %v10849_v61 = vor.u32 %v12652_v17, %v10848_v29  ;;  %v10417_v52 = vor.u32 %v12544_v38, %v10416_v39  ;;  %v11472_v59 = vld [vmem:[%s13193_s23 + $0x1ab0] sm:$0xf]  ;;  %v12796_v17 = vld [vmem:[%s13193_s23 + $0x1a7c] sm:$0xf0] }
 0x1ad   : > { %6820 = vmatpush.bf16.msra.mxu0 %v10945_v3  ;;  %v14102_v51 = vadd.f32 %v6540_v36, %v6528_v60  ;;  %v12628_v3 = vld [vmem:[%s13193_s23 + $0x153c] sm:$0xf0]  ;;  %v11424_v29 = vld [vmem:[%s13193_s23 + $0x1a50] sm:$0xf]  ;;  %v6542_v18 = vpop.f32.mrf.mxu2  ;;  %v8738_v36 = vld [vmem:[%s13193_s23 + $0x580] sm:$0xf0] }
 0x1ae   : > { %v10753_v15 = vor.u32 %v12628_v3, %v10752_v2  ;;  %v11425_v24 = vor.u32 %v12796_v17, %v11424_v29  ;;  %v12784_v39 = vld [vmem:[%s13193_s23 + $0x1a1c] sm:$0xf0]  ;;  %v11760_v38 = vld [vmem:[%s13193_s23 + $0x1cf0] sm:$0xf]  ;;  %v8741_v42 = vor.u32 %v12118_v28, %v8738_v36  ;;  %v8693_v2 = vor.u32 %v12106_v48, %v8690_v53  ;;  %v12082_v29 = vld [vmem:[%s13193_s23 + $0x434] sm:$0xf] }
 0x1af   : > { %6794 = vmatpush.bf16.msra.mxu1 %v10177_v56  ;;  %6807 = vmatpush.bf16.msra.mxu2 %v10561_v62  ;;  %v12532_v56 = vld [vmem:[%s13193_s23 + $0x123c] sm:$0xf0]  ;;  %v8594_v18 = vld [vmem:[%s13193_s23 + $0x460] sm:$0xf0]  ;;  %v11962_v53 = vld [vmem:[%s13193_s23 + $0x74] sm:$0xf] }
 0x1b0   : > { %6781 = vmatpush.bf16.msra.mxu3 %v9793_v54  ;;  %v10368_v54 = vld [vmem:[%s13193_s23 + $0x1210] sm:$0xf]  ;;  %v12808_v62 = vld [vmem:[%s13193_s23 + $0x1adc] sm:$0xf0] }
 0x1b1   : > { %6821 = vmatpush.bf16.msra.mxu0 %v10897_v14  ;;  %v11473_v10 = vor.u32 %v12808_v62, %v11472_v59  ;;  %v11857_v14 = vor.u32 %v12904_v0, %v11856_v63  ;;  %v12880_v60 = vld [vmem:[%s13193_s23 + $0x1d1c] sm:$0xf0]  ;;  %v6581_v49 = vpop.f32.mrf.mxu0 }
 0x1b2   : > { %v12868_v59 = vld [vmem:[%s13193_s23 + $0x1cbc] sm:$0xf0] }
 0x1b3   : > { %6795 = vmatpush.bf16.msra.mxu1 %v10129_v9  ;;  %6808 = vmatpush.bf16.msra.mxu2 %v10513_v11  ;;  %v10369_v9 = vor.u32 %v12532_v56, %v10368_v54  ;;  %v12034_v11 = vld [vmem:[%s13193_s23 + $0x2b4] sm:$0xf]  ;;  %v11328_v54 = vld [vmem:[%s13193_s23 + $0x1990] sm:$0xf]  ;;  %v12772_v56 = vld [vmem:[%s13193_s23 + $0x19bc] sm:$0xf0] }
 0x1b4   : > { %6782 = vmatpush.bf16.msra.mxu3 %v9745_v8  ;;  %v6516_v8 = vpop.f32.mrf.mxu3  ;;  %v8405_v22 = vor.u32 %v12034_v11, %v8402_v20  ;;  %v11329_v3 = vor.u32 %v12772_v56, %v11328_v54  ;;  %v11664_v11 = vld [vmem:[%s13193_s23 + $0x1c30] sm:$0xf]  ;;  %v12856_v20 = vld [vmem:[%s13193_s23 + $0x1c5c] sm:$0xf0]  ;;  %v8114_v54 = vld [vmem:[%s13193_s23 + $0xa0] sm:$0xf0] }
 0x1b5   : > { %6822 = vmatpush.bf16.msra.mxu0 %v10849_v61  ;;  %v11376_v61 = vld [vmem:[%s13193_s23 + $0x19f0] sm:$0xf]  ;;  %v8642_v8 = vld [vmem:[%s13193_s23 + $0x4c0] sm:$0xf0]  ;;  %v11665_v17 = vor.u32 %v12856_v20, %v11664_v11  ;;  %v12832_v48 = vld [vmem:[%s13193_s23 + $0x1b9c] sm:$0xf0] }
 0x1b6   : > { %v8645_v12 = vor.u32 %v12094_v5, %v8642_v8  ;;  %v12820_v5 = vld [vmem:[%s13193_s23 + $0x1b3c] sm:$0xf0]  ;;  %v9170_v8 = vld [vmem:[%s13193_s23 + $0x8e0] sm:$0xf0]  ;;  %v11950_v20 = vld [vmem:[%s13193_s23 + $0x14] sm:$0xf] }
 0x1b7   : > { %6796 = vmatpush.bf16.msra.mxu1 %v10081_v21  ;;  %6809 = vmatpush.bf16.msra.mxu2 %v10465_v25  ;;  %v12892_v21 = vld [vmem:[%s13193_s23 + $0x1d7c] sm:$0xf0]  ;;  %v12022_v25 = vld [vmem:[%s13193_s23 + $0x254] sm:$0xf]  ;;  %v9554_v11 = vld [vmem:[%s13193_s23 + $0xbe0] sm:$0xf0] }
 0x1b8   : > { %6783 = vmatpush.bf16.msra.mxu3 %v9697_v19  ;;  %v11808_v19 = vld [vmem:[%s13193_s23 + $0x1d50] sm:$0xf]  ;;  %v8357_v41 = vor.u32 %v12022_v25, %v8354_v27  ;;  %v7884_v27 = vperm.slane %v13961_v37, 5 }
 0x1b9   : > { %6823 = vmatpush.bf16.msra.mxu0 %v10801_v58  ;;  %v11809_v30 = vor.u32 %v12892_v21, %v11808_v19  ;;  %v11712_v58 = vld [vmem:[%s13193_s23 + $0x1c90] sm:$0xf]  ;;  %v12748_v19 = vld [vmem:[%s13193_s23 + $0x18fc] sm:$0xf0] }
 0x1ba   : > { %v11713_v31 = vor.u32 %v12868_v59, %v11712_v58  ;;  %v7908_v56 = vperm.slane %v7884_v27, 1 }
 0x1bb   : > { %6797 = vmatpush.bf16.msra.mxu1 %v10033_v46  ;;  %6810 = vmatpush.bf16.msra.mxu2 %v10417_v52  ;;  %v12010_v46 = vld [vmem:[%s13193_s23 + $0x1f4] sm:$0xf]  ;;  %v11761_v52 = vor.u32 %v12880_v60, %v11760_v38  ;;  %v6553_v62 = vpop.f32.mrf.mxu1 }
 0x1bc   : > { %6784 = vmatpush.bf16.msra.mxu3 %v9649_v45  ;;  %v11377_v45 = vor.u32 %v12784_v39, %v11376_v61  ;;  %v8309_v63 = vor.u32 %v12010_v46, %v8306_v47  ;;  %v6554_v0 = vadd.f32 %v6553_v62, %v14102_v51  ;;  %v11974_v61 = vld [vmem:[%s13193_s23 + $0xd4] sm:$0xf]  ;;  %v8162_v39 = vld [vmem:[%s13193_s23 + $0x100] sm:$0xf0]  ;;  %v12736_v46 = vld [vmem:[%s13193_s23 + $0x189c] sm:$0xf0] }
 0x1bd   : > { %6824 = vmatpush.bf16.msra.mxu0 %v10753_v15  ;;  %v11986_v15 = vld [vmem:[%s13193_s23 + $0x134] sm:$0xf]  ;;  %v14160_v21 = vpop.f32.mrf.mxu0  ;;  %v11568_v47 = vld [vmem:[%s13193_s23 + $0x1b70] sm:$0xf]  ;;  %v8498_v62 = vld [vmem:[%s13193_s23 + $0x3a0] sm:$0xf0] }
 0x1be   : > { %v12070_v38 = vld [vmem:[%s13193_s23 + $0x3d4] sm:$0xf] }
 0x1bf   : > { %6798 = vmatpush.bf16.msra.mxu1 %v9985_v4  ;;  %6811 = vmatpush.bf16.msra.mxu2 %v10369_v9  ;;  %v8258_v4 = vld [vmem:[%s13193_s23 + $0x1c0] sm:$0xf0]  ;;  %v11280_v9 = vld [vmem:[%s13193_s23 + $0x1930] sm:$0xf] }
 0x1c0   : > { %6785 = vmatpush.bf16.msra.mxu3 %v9601_v50  ;;  %6825 = vmatmul.bf16.vlgmr.msra.gmra.mxu0 %v13379_v44  ;;  %v11998_v50 = vld [vmem:[%s13193_s23 + $0x194] sm:$0xf] }
 0x1c1   : > { %6869 = vmatpush.bf16.msrb.mxu0 %v8405_v22  ;;  %v8261_v51 = vor.u32 %v11998_v50, %v8258_v4  ;;  %v11616_v22 = vld [vmem:[%s13193_s23 + $0x1bd0] sm:$0xf] }
 0x1c2   : > { %6812 = vmatmul.bf16.vlgmr.msra.gmra.mxu2 %v13370_v35  ;;  %6799 = vmatmul.bf16.vlgmr.msra.gmra.mxu1 %v13375_v40  ;;  %v11520_v50 = vld [vmem:[%s13193_s23 + $0x1b10] sm:$0xf] }
 0x1c3   : > { %6843 = vmatpush.bf16.msrb.mxu1 %v11857_v14  ;;  %6786 = vmatmul.bf16.vlgmr.msra.gmra.mxu3 %v13368_v34  ;;  %v6555_v25 = vpop.f32.mrf.mxu1 }
 0x1c4   : > { %6830 = vmatpush.bf16.msrb.mxu3 %v11473_v10  ;;  %6863 = vmatpush.bf16.msrb.mxu2 %v11905_v1  ;;  %v12760_v10 = vld [vmem:[%s13193_s23 + $0x195c] sm:$0xf0]  ;;  %v11232_v1 = vld [vmem:[%s13193_s23 + $0x18d0] sm:$0xf] }
 0x1c5   : > { %6870 = vmatpush.bf16.msrb.mxu0 %v8357_v41  ;;  %v11281_v14 = vor.u32 %v12760_v10, %v11280_v9  ;;  %v11233_v36 = vor.u32 %v12748_v19, %v11232_v1  ;;  %v14171_v37 = vpop.f32.mrf.mxu2  ;;  %v6607_v4 = vpop.f32.mrf.mxu0  ;;  %v8117_v9 = vor.u32 %v11962_v53, %v8114_v54  ;;  %v12322_v10 = vld [vmem:[%s13193_s23 + $0xbb4] sm:$0xf]  ;;  %v9074_v53 = vld [vmem:[%s13193_s23 + $0x820] sm:$0xf0] }
 0x1c6   : > { %v12418_v19 = vld [vmem:[%s13193_s23 + $0xeb4] sm:$0xf]  ;;  %v9557_v27 = vor.u32 %v12322_v10, %v9554_v11  ;;  %v9026_v4 = vld [vmem:[%s13193_s23 + $0x7c0] sm:$0xf0] }
 0x1c7   : > { %6844 = vmatpush.bf16.msrb.mxu1 %v11809_v30  ;;  %v8597_v30 = vor.u32 %v12082_v29, %v8594_v18  ;;  %v8450_v29 = vld [vmem:[%s13193_s23 + $0x340] sm:$0xf0]  ;;  %v11521_v18 = vor.u32 %v12820_v5, %v11520_v50  ;;  %v12298_v54 = vld [vmem:[%s13193_s23 + $0xaf4] sm:$0xf] }
 0x1c8   : > { %6882 = vmatpush.bf16.msra.mxu2 %v8789_v23  ;;  %6831 = vmatpush.bf16.msrb.mxu3 %v11425_v24  ;;  %v12844_v23 = vld [vmem:[%s13193_s23 + $0x1bfc] sm:$0xf0]  ;;  %v8213_v24 = vor.u32 %v11986_v15, %v8210_v16  ;;  %v6566_v28 = vpop.f32.mrf.mxu3  ;;  %v8066_v15 = vld [vmem:[%s13193_s23 + $0x40] sm:$0xf0]  ;;  %v12046_v16 = vld [vmem:[%s13193_s23 + $0x314] sm:$0xf] }
 0x1c9   : > { %6871 = vmatpush.bf16.msrb.mxu0 %v8309_v63  ;;  %v6567_v60 = vadd.f32 %v6566_v28, %v6554_v0  ;;  %v11617_v41 = vor.u32 %v12844_v23, %v11616_v22  ;;  %v11136_v63 = vld [vmem:[%s13193_s23 + $0x1810] sm:$0xf]  ;;  %v9938_v22 = vld [vmem:[%s13193_s23 + $0xee0] sm:$0xf0]  ;;  %v12514_v23 = vld [vmem:[%s13193_s23 + $0x11b4] sm:$0xf] }
 0x1ca   : > { %v10322_v28 = vld [vmem:[%s13193_s23 + $0x11e0] sm:$0xf0]  ;;  %v12190_v50 = vld [vmem:[%s13193_s23 + $0x794] sm:$0xf] }
 0x1cb   : > { %6845 = vmatpush.bf16.msrb.mxu1 %v11761_v52  ;;  %v6580_v49 = vadd.f32 %v14118_v13, %v6567_v60  ;;  %v8165_v52 = vor.u32 %v11974_v61, %v8162_v39  ;;  %v12058_v13 = vld [vmem:[%s13193_s23 + $0x374] sm:$0xf]  ;;  %v8069_v61 = vor.u32 %v11950_v20, %v8066_v15  ;;  %v8453_v60 = vor.u32 %v12046_v16, %v8450_v29  ;;  %v9794_v20 = vld [vmem:[%s13193_s23 + $0xdc0] sm:$0xf0] }
 0x1cc   : > { %6883 = vmatpush.bf16.msra.mxu2 %v8741_v42  ;;  %6832 = vmatpush.bf16.msrb.mxu3 %v11377_v45  ;;  %v8546_v42 = vld [vmem:[%s13193_s23 + $0x400] sm:$0xf0]  ;;  %v11184_v45 = vld [vmem:[%s13193_s23 + $0x1870] sm:$0xf]  ;;  %v12310_v39 = vld [vmem:[%s13193_s23 + $0xb54] sm:$0xf]  ;;  %v9029_v10 = vor.u32 %v12190_v50, %v9026_v4 }
 0x1cd   : > { %6872 = vmatpush.bf16.msrb.mxu0 %v8261_v51  ;;  %v8549_v58 = vor.u32 %v12070_v38, %v8546_v42  ;;  %v11185_v59 = vor.u32 %v12736_v46, %v11184_v45  ;;  %v7872_v0 = vmax.f32 %v6580_v49, 0.0  ;;  %v9506_v38 = vld [vmem:[%s13193_s23 + $0xb80] sm:$0xf0]  ;;  %v12406_v45 = vld [vmem:[%s13193_s23 + $0xe54] sm:$0xf] }
 0x1ce   : > { %v9890_v46 = vld [vmem:[%s13193_s23 + $0xe80] sm:$0xf0]  ;;  %v12286_v5 = vld [vmem:[%s13193_s23 + $0xa94] sm:$0xf] }
 0x1cf   : > { %6846 = vmatpush.bf16.msrb.mxu1 %v11713_v31  ;;  %v12226_v31 = vld [vmem:[%s13193_s23 + $0x8b4] sm:$0xf]  ;;  %v7920_v51 = vmul.f32 %v7908_v56, %v7872_v0  ;;  %v10274_v49 = vld [vmem:[%s13193_s23 + $0x1180] sm:$0xf0] }
 0x1d0   : > { %6884 = vmatpush.bf16.msra.mxu2 %v8693_v2  ;;  %6833 = vmatpush.bf16.msrb.mxu3 %v11329_v3  ;;  %v11569_v2 = vor.u32 %v12832_v48, %v11568_v47  ;;  %v12724_v3 = vld [vmem:[%s13193_s23 + $0x183c] sm:$0xf0]  ;;  %v9173_v1 = vor.u32 %v12226_v31, %v9170_v8  ;;  %v12502_v47 = vld [vmem:[%s13193_s23 + $0x1154] sm:$0xf]  ;;  %v9509_v48 = vor.u32 %v12310_v39, %v9506_v38  ;;  %v9458_v56 = vld [vmem:[%s13193_s23 + $0xb20] sm:$0xf0] }
 0x1d1   : > { %6873 = vmatpush.bf16.msrb.mxu0 %v8213_v24  ;;  %v6594_v24 = vpop.f32.mrf.mxu2  ;;  %v14198_v25 = vadd.f32 %v14001_v43, %v7920_v51  ;;  %v9941_v43 = vor.u32 %v12418_v19, %v9938_v22  ;;  %v12490_v0 = vld [vmem:[%s13193_s23 + $0x10f4] sm:$0xf]  ;;  %v9410_v31 = vld [vmem:[%s13193_s23 + $0xac0] sm:$0xf0] }
 0x1d2   : > { %11938 = vmatmul.msk.bf16.vlgmr.msrb.gmra.mxu2 %vm6150_vm0, %v13418_v32  ;;  %v12382_v11 = vld [vmem:[%s13193_s23 + $0xd94] sm:$0xf]  ;;  %v8978_v16 = vld [vmem:[%s13193_s23 + $0x760] sm:$0xf0] }
 0x1d3   : > { %6847 = vmatpush.bf16.msrb.mxu1 %v11665_v17  ;;  %v6568_v17 = vpop.f32.mrf.mxu3  ;;  %v12478_v51 = vld [vmem:[%s13193_s23 + $0x1094] sm:$0xf]  ;;  %v9746_v24 = vld [vmem:[%s13193_s23 + $0xd60] sm:$0xf0] }
 0x1d4   : > { %6885 = vmatpush.bf16.msra.mxu2 %v8645_v12  ;;  %6834 = vmatpush.bf16.msrb.mxu3 %v11281_v14  ;;  %v8501_v12 = vor.u32 %v12058_v13, %v8498_v62  ;;  %v11137_v14 = vor.u32 %v12724_v3, %v11136_v63  ;;  %v12394_v62 = vld [vmem:[%s13193_s23 + $0xdf4] sm:$0xf]  ;;  %v9842_v63 = vld [vmem:[%s13193_s23 + $0xe20] sm:$0xf0] }
 0x1d5   : > { %6874 = vmatpush.bf16.msrb.mxu0 %v8165_v52  ;;  %v12202_v52 = vld [vmem:[%s13193_s23 + $0x7f4] sm:$0xf]  ;;  %v10226_v3 = vld [vmem:[%s13193_s23 + $0x1120] sm:$0xf0]  ;;  %v9845_v8 = vor.u32 %v12394_v62, %v9842_v63 }
 0x1d6   : > { %v9077_v13 = vor.u32 %v12202_v52, %v9074_v53  ;;  %v12178_v15 = vld [vmem:[%s13193_s23 + $0x734] sm:$0xf]  ;;  %v14244_v38 = vld [vmem:[%s13199_s25] sm:$0xff] }
 0x1d7   : > { %6848 = vmatpush.bf16.msrb.mxu1 %v11617_v41  ;;  %v10325_v41 = vor.u32 %v12514_v23, %v10322_v28  ;;  %v12274_v17 = vld [vmem:[%s13193_s23 + $0xa34] sm:$0xf]  ;;  %v8981_v22 = vor.u32 %v12178_v15, %v8978_v16  ;;  %v10082_v53 = vld [vmem:[%s13193_s23 + $0x1000] sm:$0xf0] }
 0x1d8   : > { %6886 = vmatpush.bf16.msra.mxu2 %v8597_v30  ;;  %6835 = vmatpush.bf16.msrb.mxu3 %v11233_v36  ;;  %v12214_v30 = vld [vmem:[%s13193_s23 + $0x854] sm:$0xf]  ;;  %v9122_v36 = vld [vmem:[%s13193_s23 + $0x880] sm:$0xf0] }
 0x1d9   : > { %6875 = vmatpush.bf16.msrb.mxu0 %v8117_v9  ;;  %v9125_v42 = vor.u32 %v12214_v30, %v9122_v36  ;;  %v10229_v9 = vor.u32 %v12490_v0, %v10226_v3  ;;  %v12370_v23 = vld [vmem:[%s13193_s23 + $0xd34] sm:$0xf]  ;;  %v10130_v30 = vld [vmem:[%s13193_s23 + $0x1060] sm:$0xf0] }
 0x1da   : > { %v12166_v36 = vld [vmem:[%s13193_s23 + $0x6d4] sm:$0xf]  ;;  %v9266_v0 = vld [vmem:[%s13193_s23 + $0x9a0] sm:$0xf0] }
 0x1db   : > { %6849 = vmatpush.bf16.msrb.mxu1 %v11569_v2  ;;  %v9461_v2 = vor.u32 %v12298_v54, %v9458_v56  ;;  %v14231_v29 = vpop.f32.mrf.mxu1  ;;  %v12154_v56 = vld [vmem:[%s13193_s23 + $0x674] sm:$0xf]  ;;  %v10706_v16 = vld [vmem:[%s13193_s23 + $0x14e0] sm:$0xf0] }
 0x1dc   : > { %6887 = vmatpush.bf16.msra.mxu2 %v8549_v58  ;;  %6836 = vmatpush.bf16.msrb.mxu3 %v11185_v59  ;;  %v9893_v58 = vor.u32 %v12406_v45, %v9890_v46  ;;  %v10277_v59 = vor.u32 %v12502_v47, %v10274_v49  ;;  %v12358_v47 = vld [vmem:[%s13193_s23 + $0xcd4] sm:$0xf] }
 0x1dd   : > { %6876 = vmatpush.bf16.msrb.mxu0 %v8069_v61  ;;  %v8930_v61 = vld [vmem:[%s13193_s23 + $0x700] sm:$0xf0]  ;;  %v14241_v39 = vpop.f32.mrf.mxu0  ;;  %v12454_v49 = vld [vmem:[%s13193_s23 + $0xfd4] sm:$0xf] }
 0x1de   : > { %v8933_v46 = vor.u32 %v12166_v36, %v8930_v61  ;;  %v12250_v63 = vld [vmem:[%s13193_s23 + $0x974] sm:$0xf]  ;;  %v10085_v50 = vor.u32 %v12454_v49, %v10082_v53  ;;  %v11474_v61 = vld [vmem:[%s13193_s23 + $0x1ae0] sm:$0xf0] }
 0x1df   : > { %6850 = vmatpush.bf16.msrb.mxu1 %v11521_v18  ;;  %v9362_v18 = vld [vmem:[%s13193_s23 + $0xa60] sm:$0xf0]  ;;  %v12346_v3 = vld [vmem:[%s13193_s23 + $0xc74] sm:$0xf] }
 0x1e0   : > { %6888 = vmatpush.bf16.msra.mxu2 %v8501_v12  ;;  %6837 = vmatpush.bf16.msrb.mxu3 %v11137_v14  ;;  %v9413_v12 = vor.u32 %v12286_v5, %v9410_v31  ;;  %v10178_v14 = vld [vmem:[%s13193_s23 + $0x10c0] sm:$0xf0]  ;;  %v9365_v28 = vor.u32 %v12274_v17, %v9362_v18  ;;  %v12442_v31 = vld [vmem:[%s13193_s23 + $0xf74] sm:$0xf] }
 0x1e1   : > { %6921 = vmatpush.bf16.msra.mxu0 %v9941_v43  ;;  %v10181_v19 = vor.u32 %v12478_v51, %v10178_v14  ;;  %v12262_v43 = vld [vmem:[%s13193_s23 + $0x9d4] sm:$0xf]  ;;  %v9650_v5 = vld [vmem:[%s13193_s23 + $0xca0] sm:$0xf0] }
 0x1e2   : > { %6877 = vmatmul.bf16.vlgmr.msrb.gmra.mxu0 %v13302_v6  ;;  %6851 = vmatmul.bf16.vlgmr.msrb.gmra.mxu1 %v13461_v33  ;;  %v9218_v14 = vld [vmem:[%s13193_s23 + $0x940] sm:$0xf0]  ;;  %v12610_v15 = vld [vmem:[%s13193_s23 + $0x14b4] sm:$0xf]  ;;  %v9653_v17 = vor.u32 %v12346_v3, %v9650_v5 }
 0x1e3   : > { %6908 = vmatpush.bf16.msra.mxu1 %v9557_v27  ;;  %6838 = vmatmul.bf16.vlgmr.msrb.gmra.mxu3 %v13456_v26  ;;  %v12466_v27 = vld [vmem:[%s13193_s23 + $0x1034] sm:$0xf]  ;;  %v6620_v62 = vpop.f32.mrf.mxu1  ;;  %v11042_v53 = vld [vmem:[%s13193_s23 + $0x1780] sm:$0xf0] }
 0x1e4   : > { %6895 = vmatpush.bf16.msra.mxu3 %v9173_v1  ;;  %6889 = vmatpush.bf16.msra.mxu2 %v8453_v60  ;;  %v9797_v1 = vor.u32 %v12382_v11, %v9794_v20  ;;  %v1219_v60 = vperm.slane %v14244_v38, 6  ;;  %v10133_v45 = vor.u32 %v12466_v27, %v10130_v30  ;;  %v8834_v11 = vld [vmem:[%s13193_s23 + $0x640] sm:$0xf0]  ;;  %v12238_v20 = vld [vmem:[%s13193_s23 + $0x914] sm:$0xf]  ;;  %v10709_v30 = vor.u32 %v12610_v15, %v10706_v16 }
 0x1e5   : > { %6922 = vmatpush.bf16.msra.mxu0 %v9893_v58  ;;  %v8882_v58 = vld [vmem:[%s13193_s23 + $0x6a0] sm:$0xf0]  ;;  %v6659_v51 = vpop.f32.mrf.mxu0  ;;  %v12706_v18 = vld [vmem:[%s13193_s23 + $0x17b4] sm:$0xf] }
 0x1e6   : > { %v8885_v4 = vor.u32 %v12154_v56, %v8882_v58  ;;  %v9986_v27 = vld [vmem:[%s13193_s23 + $0xf40] sm:$0xf0]  ;;  %v12802_v36 = vld [vmem:[%s13193_s23 + $0x1ab4] sm:$0xf] }
 0x1e7   : > { %6909 = vmatpush.bf16.msra.mxu1 %v9509_v48  ;;  %6890 = vmatmul.bf16.vlgmr.msra.gmra.mxu2 %v13304_v7  ;;  %v9698_v48 = vld [vmem:[%s13193_s23 + $0xd00] sm:$0xf0]  ;;  %v11477_v58 = vor.u32 %v12802_v36, %v11474_v61  ;;  %v12790_v62 = vld [vmem:[%s13193_s23 + $0x1a54] sm:$0xf] }
 0x1e8   : > { %6934 = vmatpush.bf16.msrb.mxu2 %v10325_v41  ;;  %6896 = vmatpush.bf16.msra.mxu3 %v9125_v42  ;;  %v9314_v41 = vld [vmem:[%s13193_s23 + $0xa00] sm:$0xf0]  ;;  %v9749_v42 = vor.u32 %v12370_v23, %v9746_v24  ;;  %v14253_v54 = vpop.f32.mrf.mxu3  ;;  %v12874_v51 = vld [vmem:[%s13193_s23 + $0x1cf4] sm:$0xf] }
 0x1e9   : > { %6923 = vmatpush.bf16.msra.mxu0 %v9845_v8  ;;  %v9317_v52 = vor.u32 %v12262_v43, %v9314_v41  ;;  %v10034_v8 = vld [vmem:[%s13193_s23 + $0xfa0] sm:$0xf0]  ;;  %v12574_v16 = vld [vmem:[%s13193_s23 + $0x1394] sm:$0xf] }
 0x1ea   : > { %v9602_v24 = vld [vmem:[%s13193_s23 + $0xc40] sm:$0xf0]  ;;  %v12562_v61 = vld [vmem:[%s13193_s23 + $0x1334] sm:$0xf] }
 0x1eb   : > { %6910 = vmatpush.bf16.msra.mxu1 %v9461_v2  ;;  %v9701_v2 = vor.u32 %v12358_v47, %v9698_v48  ;;  %v12598_v47 = vld [vmem:[%s13193_s23 + $0x1454] sm:$0xf]  ;;  %v10658_v48 = vld [vmem:[%s13193_s23 + $0x1480] sm:$0xf0] }
 0x1ec   : > { %6935 = vmatpush.bf16.msrb.mxu2 %v10277_v59  ;;  %6897 = vmatpush.bf16.msra.mxu3 %v9077_v13  ;;  %v14257_v59 = vpop.f32.mrf.mxu2  ;;  %v1243_v13 = vperm.slane %v1219_v60, 0  ;;  %v12898_v60 = vld [vmem:[%s13193_s23 + $0x1db4] sm:$0xf]  ;;  %v10610_v5 = vld [vmem:[%s13193_s23 + $0x1420] sm:$0xf0] }
 0x1ed   : > { %6924 = vmatpush.bf16.msra.mxu0 %v9797_v1  ;;  %v11090_v1 = vld [vmem:[%s13193_s23 + $0x17e0] sm:$0xf0] }
 0x1ee   : > { %v11762_v15 = vld [vmem:[%s13193_s23 + $0x1d20] sm:$0xf0] }
 0x1ef   : > { %6911 = vmatpush.bf16.msra.mxu1 %v9413_v12  ;;  %v6593_v12 = vadd.f32 %v14171_v37, %v1243_v13  ;;  %v12430_v37 = vld [vmem:[%s13193_s23 + $0xf14] sm:$0xf]  ;;  %v10661_v13 = vor.u32 %v12598_v47, %v10658_v48  ;;  %v11714_v36 = vld [vmem:[%s13193_s23 + $0x1cc0] sm:$0xf0] }
 0x1f0   : > { %6936 = vmatpush.bf16.msrb.mxu2 %v10229_v9  ;;  %6898 = vmatpush.bf16.msra.mxu3 %v9029_v10  ;;  %v9269_v9 = vor.u32 %v12250_v63, %v9266_v0  ;;  %v12142_v10 = vld [vmem:[%s13193_s23 + $0x614] sm:$0xf]  ;;  %v6633_v43 = vpop.f32.mrf.mxu3  ;;  %v9989_v56 = vor.u32 %v12430_v37, %v9986_v27  ;;  %v11426_v63 = vld [vmem:[%s13193_s23 + $0x1a80] sm:$0xf0] }
 0x1f1   : > { %6925 = vmatpush.bf16.msra.mxu0 %v9749_v42  ;;  %v8837_v23 = vor.u32 %v12142_v10, %v8834_v11  ;;  %v6606_v42 = vadd.f32 %v14160_v21, %v6593_v12  ;;  %v12886_v0 = vld [vmem:[%s13193_s23 + $0x1d54] sm:$0xf]  ;;  %v11330_v37 = vld [vmem:[%s13193_s23 + $0x19c0] sm:$0xf0] }
 0x1f2   : > { %v12778_v11 = vld [vmem:[%s13193_s23 + $0x19f4] sm:$0xf]  ;;  %v11282_v47 = vld [vmem:[%s13193_s23 + $0x1960] sm:$0xf0] }
 0x1f3   : > { %6912 = vmatpush.bf16.msra.mxu1 %v9365_v28  ;;  %v9221_v28 = vor.u32 %v12238_v20, %v9218_v14  ;;  %v11378_v20 = vld [vmem:[%s13193_s23 + $0x1a20] sm:$0xf0]  ;;  %v12862_v27 = vld [vmem:[%s13193_s23 + $0x1c94] sm:$0xf] }
 0x1f4   : > { %6937 = vmatpush.bf16.msrb.mxu2 %v10181_v19  ;;  %6899 = vmatpush.bf16.msra.mxu3 %v8981_v22  ;;  %v12334_v19 = vld [vmem:[%s13193_s23 + $0xc14] sm:$0xf]  ;;  %v10037_v22 = vor.u32 %v12442_v31, %v10034_v8  ;;  %v6646_v41 = vpop.f32.mrf.mxu2  ;;  %v10994_v8 = vld [vmem:[%s13193_s23 + $0x1720] sm:$0xf0] }
 0x1f5   : > { %6926 = vmatpush.bf16.msra.mxu0 %v9701_v2  ;;  %v9605_v49 = vor.u32 %v12334_v19, %v9602_v24  ;;  %v6619_v2 = vadd.f32 %v14231_v29, %v6606_v42  ;;  %v12682_v31 = vld [vmem:[%s13193_s23 + $0x16f4] sm:$0xf]  ;;  %v11429_v29 = vor.u32 %v12790_v62, %v11426_v63  ;;  %v11381_v19 = vor.u32 %v12778_v11, %v11378_v20  ;;  %v10898_v41 = vld [vmem:[%s13193_s23 + $0x1660] sm:$0xf0] }
 0x1f6   : > { %v10997_v14 = vor.u32 %v12682_v31, %v10994_v8  ;;  %v12766_v24 = vld [vmem:[%s13193_s23 + $0x1994] sm:$0xf]  ;;  %v10418_v20 = vld [vmem:[%s13193_s23 + $0x12a0] sm:$0xf0] }
 0x1f7   : > { %6913 = vmatpush.bf16.msra.mxu1 %v9317_v52  ;;  %v12694_v52 = vld [vmem:[%s13193_s23 + $0x1754] sm:$0xf]  ;;  %v6632_v12 = vadd.f32 %v14253_v54, %v6619_v2  ;;  %v11333_v42 = vor.u32 %v12766_v24, %v11330_v37  ;;  %v7885_v24 = vperm.slane %v14244_v38, 7  ;;  %v11138_v38 = vld [vmem:[%s13193_s23 + $0x1840] sm:$0xf0] }
 0x1f8   : > { %6938 = vmatpush.bf16.msrb.mxu2 %v10133_v45  ;;  %6900 = vmatpush.bf16.msra.mxu3 %v8933_v46  ;;  %v11093_v45 = vor.u32 %v12706_v18, %v11090_v1  ;;  %v11858_v46 = vld [vmem:[%s13193_s23 + $0x1de0] sm:$0xf0]  ;;  %v11045_v3 = vor.u32 %v12694_v52, %v11042_v53  ;;  %v12670_v18 = vld [vmem:[%s13193_s23 + $0x1694] sm:$0xf] }
 0x1f9   : > { %6927 = vmatpush.bf16.msra.mxu0 %v9653_v17  ;;  %v11861_v21 = vor.u32 %v12898_v60, %v11858_v46  ;;  %v10562_v17 = vld [vmem:[%s13193_s23 + $0x13c0] sm:$0xf0]  ;;  %v12658_v43 = vld [vmem:[%s13193_s23 + $0x1634] sm:$0xf] }
 0x1fa   : > { %v10946_v1 = vld [vmem:[%s13193_s23 + $0x16c0] sm:$0xf0]  ;;  %v12850_v48 = vld [vmem:[%s13193_s23 + $0x1c34] sm:$0xf]  ;;  %v10901_v52 = vor.u32 %v12658_v43, %v10898_v41 }
 0x1fb   : > { %6914 = vmatpush.bf16.msra.mxu1 %v9269_v9  ;;  %v6670_v54 = vpop.f32.mrf.mxu1  ;;  %v10514_v60 = vld [vmem:[%s13193_s23 + $0x1360] sm:$0xf0]  ;;  %v12838_v31 = vld [vmem:[%s13193_s23 + $0x1bd4] sm:$0xf] }
 0x1fc   : > { %6939 = vmatpush.bf16.msrb.mxu2 %v10085_v50  ;;  %6901 = vmatpush.bf16.msra.mxu3 %v8885_v4  ;;  %v11810_v50 = vld [vmem:[%s13193_s23 + $0x1d80] sm:$0xf0]  ;;  %v12586_v4 = vld [vmem:[%s13193_s23 + $0x13f4] sm:$0xf]  ;;  %v10517_v46 = vor.u32 %v12562_v61, %v10514_v60  ;;  %v12041_v61 = vld [vmem:[%s13193_s23 + $0x2e4] sm:$0xf0] }
 0x1fd   : > { %6928 = vmatpush.bf16.msra.mxu0 %v9605_v49  ;;  %v11813_v9 = vor.u32 %v12886_v0, %v11810_v50  ;;  %v10613_v10 = vor.u32 %v12586_v4, %v10610_v5  ;;  %v11666_v53 = vld [vmem:[%s13193_s23 + $0x1c60] sm:$0xf0]  ;;  %v6709_v62 = vpop.f32.mrf.mxu0  ;;  %v12742_v4 = vld [vmem:[%s13193_s23 + $0x18d4] sm:$0xf] }
 0x1fe   : > { %v11234_v5 = vld [vmem:[%s13193_s23 + $0x1900] sm:$0xf0]  ;;  %v12538_v11 = vld [vmem:[%s13193_s23 + $0x1274] sm:$0xf] }
 0x1ff   : > { %6915 = vmatpush.bf16.msra.mxu1 %v9221_v28  ;;  %v6645_v28 = vadd.f32 %v14257_v59, %v6632_v12  ;;  %v12754_v59 = vld [vmem:[%s13193_s23 + $0x1934] sm:$0xf]  ;;  %v10802_v12 = vld [vmem:[%s13193_s23 + $0x15a0] sm:$0xf0] }
 0x200   : > { %6940 = vmatpush.bf16.msrb.mxu2 %v10037_v22  ;;  %6902 = vmatpush.bf16.msra.mxu3 %v8837_v23  ;;  %v11765_v22 = vor.u32 %v12874_v51, %v11762_v15  ;;  %v10565_v23 = vor.u32 %v12574_v16, %v10562_v17  ;;  %v11285_v2 = vor.u32 %v12754_v59, %v11282_v47  ;;  %v12634_v51 = vld [vmem:[%s13193_s23 + $0x1574] sm:$0xf]  ;;  %v11186_v17 = vld [vmem:[%s13193_s23 + $0x18a0] sm:$0xf0] }
 0x201   : > { %6973 = vmatpush.bf16.msrb.mxu0 %v11477_v58  ;;  %v6658_v49 = vadd.f32 %v14241_v39, %v6645_v28  ;;  %v10466_v58 = vld [vmem:[%s13193_s23 + $0x1300] sm:$0xf0]  ;;  %v11237_v16 = vor.u32 %v12742_v4, %v11234_v5  ;;  %v12622_v28 = vld [vmem:[%s13193_s23 + $0x1514] sm:$0xf]  ;;  %v12329_v4 = vld [vmem:[%s13193_s23 + $0xbe4] sm:$0xf0] }
 0x202   : > { %6929 = vmatmul.bf16.vlgmr.msra.gmra.mxu0 %v13368_v34  ;;  %6916 = vmatmul.bf16.vlgmr.msra.gmra.mxu1 %v13293_v57  ;;  %v12910_v60 = vld [vmem:[%s13193_s23 + $0x1e14] sm:$0xf]  ;;  %v11906_v43 = vld [vmem:[%s13193_s23 + $0x1e40] sm:$0xf0] }
 0x203   : > { %6960 = vmatpush.bf16.msrb.mxu1 %v11093_v45  ;;  %6903 = vmatmul.bf16.vlgmr.msra.gmra.mxu3 %v13288_v55  ;;  %v11717_v45 = vor.u32 %v12862_v27, %v11714_v36  ;;  %v6671_v63 = vadd.f32 %v6670_v54, %v6658_v49  ;;  %v6672_v0 = vpop.f32.mrf.mxu1  ;;  %v10805_v27 = vor.u32 %v12634_v51, %v10802_v12  ;;  %v8408_v36 = vld [vmem:[%s13193_s23 + $0x2b8] sm:$0xf]  ;;  %v12814_v59 = vld [vmem:[%s13193_s23 + $0x1b14] sm:$0xf]  ;;  %v12125_v12 = vld [vmem:[%s13193_s23 + $0x584] sm:$0xf0] }
 0x204   : > { %6947 = vmatpush.bf16.msrb.mxu3 %v10709_v30  ;;  %6941 = vmatpush.bf16.msrb.mxu2 %v9989_v56  ;;  %v10949_v30 = vor.u32 %v12670_v18, %v10946_v1  ;;  %v12550_v56 = vld [vmem:[%s13193_s23 + $0x12d4] sm:$0xf]  ;;  %v11570_v1 = vld [vmem:[%s13193_s23 + $0x1ba0] sm:$0xf0]  ;;  %v12233_v0 = vld [vmem:[%s13193_s23 + $0x8e4] sm:$0xf0] }
 0x205   : > { %6974 = vmatpush.bf16.msrb.mxu0 %v11429_v29  ;;  %v10469_v50 = vor.u32 %v12550_v56, %v10466_v58  ;;  %v6696_v29 = vpop.f32.mrf.mxu2  ;;  %v12826_v18 = vld [vmem:[%s13193_s23 + $0x1b74] sm:$0xf]  ;;  %v6711_v41 = vpop.f32.mrf.mxu0  ;;  %v7909_v56 = vperm.slane %v7885_v24, 1  ;;  %v8744_v51 = vld [vmem:[%s13193_s23 + $0x558] sm:$0xf] }
 0x206   : > { %v12005_v41 = vld [vmem:[%s13193_s23 + $0x1c4] sm:$0xf0] }
 0x207   : > { %6961 = vmatpush.bf16.msrb.mxu1 %v11045_v3  ;;  %6942 = vmatmul.bf16.vlgmr.msrb.gmra.mxu2 %v13375_v40  ;;  %v11669_v3 = vor.u32 %v12850_v48, %v11666_v53  ;;  %v11573_v48 = vor.u32 %v12826_v18, %v11570_v1  ;;  %v8792_v53 = vld [vmem:[%s13193_s23 + $0x5b8] sm:$0xf]  ;;  %v12317_v1 = vld [vmem:[%s13193_s23 + $0xb84] sm:$0xf0] }
 0x208   : > { %6986 = vmatpush.bf16.msra.mxu2 %v11861_v21  ;;  %6948 = vmatpush.bf16.msrb.mxu3 %v10661_v13  ;;  %v12646_v21 = vld [vmem:[%s13193_s23 + $0x15d4] sm:$0xf]  ;;  %v10850_v13 = vld [vmem:[%s13193_s23 + $0x1600] sm:$0xf0]  ;;  %v6683_v39 = vpop.f32.mrf.mxu3  ;;  %v9512_v18 = vld [vmem:[%s13193_s23 + $0xb58] sm:$0xf] }
 0x209   : > { %6975 = vmatpush.bf16.msrb.mxu0 %v11381_v19  ;;  %v6684_v8 = vadd.f32 %v6683_v39, %v6671_v63  ;;  %v10421_v19 = vor.u32 %v12538_v11, %v10418_v20  ;;  %v9176_v63 = vld [vmem:[%s13193_s23 + $0x8b8] sm:$0xf]  ;;  %v9513_v24 = vor.u32 %v12317_v1, %v9512_v18  ;;  %v12173_v18 = vld [vmem:[%s13193_s23 + $0x704] sm:$0xf0] }
 0x20a   : > { %v9177_v11 = vor.u32 %v12233_v0, %v9176_v63  ;;  %v9320_v1 = vld [vmem:[%s13193_s23 + $0x9d8] sm:$0xf] }
 0x20b   : > { %6962 = vmatpush.bf16.msrb.mxu1 %v10997_v14  ;;  %v12730_v14 = vld [vmem:[%s13193_s23 + $0x1874] sm:$0xf]  ;;  %v6697_v15 = vadd.f32 %v6696_v29, %v6684_v8  ;;  %v12029_v8 = vld [vmem:[%s13193_s23 + $0x284] sm:$0xf0] }
 0x20c   : > { %6987 = vmatpush.bf16.msra.mxu2 %v11813_v9  ;;  %6949 = vmatpush.bf16.msrb.mxu3 %v10613_v10  ;;  %v10853_v9 = vor.u32 %v12646_v21, %v10850_v13  ;;  %v11618_v10 = vld [vmem:[%s13193_s23 + $0x1c00] sm:$0xf0]  ;;  %v11909_v13 = vor.u32 %v12910_v60, %v11906_v43  ;;  %v12305_v60 = vld [vmem:[%s13193_s23 + $0xb24] sm:$0xf0]  ;;  %v8264_v43 = vld [vmem:[%s13193_s23 + $0x198] sm:$0xf] }
 0x20d   : > { %6976 = vmatpush.bf16.msrb.mxu0 %v11333_v42  ;;  %v11621_v54 = vor.u32 %v12838_v31, %v11618_v10  ;;  %v6710_v37 = vadd.f32 %v6709_v62, %v6697_v15  ;;  %v6722_v42 = vpop.f32.mrf.mxu1  ;;  %v12137_v62 = vld [vmem:[%s13193_s23 + $0x5e4] sm:$0xf0]  ;;  %v8360_v31 = vld [vmem:[%s13193_s23 + $0x258] sm:$0xf] }
 0x20e   : > { %v8361_v15 = vor.u32 %v12029_v8, %v8360_v31  ;;  %v9368_v31 = vld [vmem:[%s13193_s23 + $0xa38] sm:$0xf]  ;;  %v12281_v8 = vld [vmem:[%s13193_s23 + $0xa64] sm:$0xf0] }
 0x20f   : > { %6963 = vmatpush.bf16.msrb.mxu1 %v10949_v30  ;;  %v10754_v30 = vld [vmem:[%s13193_s23 + $0x1540] sm:$0xf0]  ;;  %v6723_v47 = vadd.f32 %v6722_v42, %v6710_v37  ;;  %v8696_v37 = vld [vmem:[%s13193_s23 + $0x4f8] sm:$0xf] }
 0x210   : > { %6988 = vmatpush.bf16.msra.mxu2 %v11765_v22  ;;  %6950 = vmatpush.bf16.msrb.mxu3 %v10565_v23  ;;  %v12526_v22 = vld [vmem:[%s13193_s23 + $0x1214] sm:$0xf]  ;;  %v10370_v23 = vld [vmem:[%s13193_s23 + $0x1240] sm:$0xf0]  ;;  %v6685_v58 = vpop.f32.mrf.mxu3  ;;  %v10757_v21 = vor.u32 %v12622_v28, %v10754_v30  ;;  %v9080_v28 = vld [vmem:[%s13193_s23 + $0x7f8] sm:$0xf] }
 0x211   : > { %6977 = vmatpush.bf16.msrb.mxu0 %v11285_v2  ;;  %v10373_v49 = vor.u32 %v12526_v22, %v10370_v23  ;;  %v6698_v2 = vpop.f32.mrf.mxu2  ;;  %v7873_v39 = vmax.f32 %v6723_v47, 0.0  ;;  %v8745_v23 = vor.u32 %v12125_v12, %v8744_v51  ;;  %v9032_v47 = vld [vmem:[%s13193_s23 + $0x798] sm:$0xf]  ;;  %v9369_v12 = vor.u32 %v12281_v8, %v9368_v31 }
 0x212   : > { %v8216_v58 = vld [vmem:[%s13193_s23 + $0x138] sm:$0xf] }
 0x213   : > { %6964 = vmatpush.bf16.msrb.mxu1 %v10901_v52  ;;  %v11522_v52 = vld [vmem:[%s13193_s23 + $0x1b40] sm:$0xf0]  ;;  %v7921_v10 = vmul.f32 %v7909_v56, %v7873_v39  ;;  %v12293_v56 = vld [vmem:[%s13193_s23 + $0xac4] sm:$0xf0]  ;;  %v8600_v2 = vld [vmem:[%s13193_s23 + $0x438] sm:$0xf] }
 0x214   : > { %6989 = vmatpush.bf16.msra.mxu2 %v11717_v45  ;;  %6951 = vmatpush.bf16.msrb.mxu3 %v10517_v46  ;;  %v11189_v45 = vor.u32 %v12730_v14, %v11186_v17  ;;  %v12718_v46 = vld [vmem:[%s13193_s23 + $0x1814] sm:$0xf]  ;;  %v11525_v29 = vor.u32 %v12814_v59, %v11522_v52  ;;  %v9128_v14 = vld [vmem:[%s13193_s23 + $0x858] sm:$0xf]  ;;  %v12221_v17 = vld [vmem:[%s13193_s23 + $0x884] sm:$0xf0] }
 0x215   : > { %6978 = vmatpush.bf16.msrb.mxu0 %v11237_v16  ;;  %v11141_v5 = vor.u32 %v12718_v46, %v11138_v38  ;;  %v7932_v16 = vadd.f32 %v14198_v25, %v7921_v10  ;;  %v6724_v22 = vpop.f32.mrf.mxu1  ;;  %v9129_v25 = vor.u32 %v12221_v17, %v9128_v14  ;;  %v12101_v59 = vld [vmem:[%s13193_s23 + $0x4c4] sm:$0xf0]  ;;  %v8552_v14 = vld [vmem:[%s13193_s23 + $0x3d8] sm:$0xf] }
 0x216   : > { %v12197_v52 = vld [vmem:[%s13193_s23 + $0x7c4] sm:$0xf0]  ;;  %v8120_v22 = vld [vmem:[%s13193_s23 + $0x78] sm:$0xf] }
 0x217   : > { %6965 = vmatpush.bf16.msrb.mxu1 %v10853_v9  ;;  %v8793_v9 = vor.u32 %v12137_v62, %v8792_v53  ;;  %7933 = vadd.xlane.f32.xlu0 %v7932_v16  ;;  %v9416_v53 = vld [vmem:[%s13193_s23 + $0xa98] sm:$0xf]  ;;  %v9033_v63 = vor.u32 %v12197_v52, %v9032_v47  ;;  %v12089_v39 = vld [vmem:[%s13193_s23 + $0x464] sm:$0xf0] }
 0x218   : > { %6990 = vmatpush.bf16.msra.mxu2 %v11669_v3  ;;  %6952 = vmatpush.bf16.msrb.mxu3 %v10469_v50  ;;  %v8409_v3 = vor.u32 %v12041_v61, %v8408_v36  ;;  %v9560_v50 = vld [vmem:[%s13193_s23 + $0xbb8] sm:$0xf]  ;;  %v12209_v36 = vld [vmem:[%s13193_s23 + $0x824] sm:$0xf0]  ;;  %v9417_v0 = vor.u32 %v12293_v56, %v9416_v53 }
 0x219   : > { %6979 = vmatpush.bf16.msrb.mxu0 %v11189_v45  ;;  %v9561_v20 = vor.u32 %v12329_v4, %v9560_v50  ;;  %v9464_v61 = vld [vmem:[%s13193_s23 + $0xaf8] sm:$0xf]  ;;  %v9081_v46 = vor.u32 %v12209_v36, %v9080_v28  ;;  %v12065_v36 = vld [vmem:[%s13193_s23 + $0x3a4] sm:$0xf0] }
 0x21a   : > { %v8648_v45 = vld [vmem:[%s13193_s23 + $0x498] sm:$0xf]  ;;  %v9465_v38 = vor.u32 %v12305_v60, %v9464_v61  ;;  %v12425_v53 = vld [vmem:[%s13193_s23 + $0xee4] sm:$0xf0] }
 0x21b   : > { %6966 = vmatpush.bf16.msrb.mxu1 %v10805_v27  ;;  %v12113_v27 = vld [vmem:[%s13193_s23 + $0x524] sm:$0xf0]  ;;  %v8936_v16 = vld [vmem:[%s13193_s23 + $0x6d8] sm:$0xf] }
 0x21c   : > { %6991 = vmatpush.bf16.msra.mxu2 %v11621_v54  ;;  %6953 = vmatpush.bf16.msrb.mxu3 %v10421_v19  ;;  %v8312_v54 = vld [vmem:[%s13193_s23 + $0x1f8] sm:$0xf]  ;;  %v12017_v19 = vld [vmem:[%s13193_s23 + $0x224] sm:$0xf0]  ;;  %v8697_v42 = vor.u32 %v12113_v27, %v8696_v37  ;;  %v8937_v27 = vor.u32 %v12173_v18, %v8936_v16 }
 0x21d   : > { %6980 = vmatpush.bf16.msrb.mxu0 %v11141_v5  ;;  %v8313_v30 = vor.u32 %v12017_v19, %v8312_v54  ;;  %v12185_v5 = vld [vmem:[%s13193_s23 + $0x764] sm:$0xf0]  ;;  %v6774_v10 = vpop.f32.mrf.mxu0  ;;  %v8888_v61 = vld [vmem:[%s13193_s23 + $0x678] sm:$0xf] }
 0x21e   : > { %v12269_v54 = vld [vmem:[%s13193_s23 + $0xa04] sm:$0xf0]  ;;  %v9944_v47 = vld [vmem:[%s13193_s23 + $0xeb8] sm:$0xf] }
 0x21f   : > { %6967 = vmatpush.bf16.msrb.mxu1 %v10757_v21  ;;  %v11993_v21 = vld [vmem:[%s13193_s23 + $0x164] sm:$0xf0]  ;;  %v6748_v50 = vpop.f32.mrf.mxu1  ;;  %v9321_v28 = vor.u32 %v12269_v54, %v9320_v1  ;;  %v8456_v56 = vld [vmem:[%s13193_s23 + $0x318] sm:$0xf]  ;;  %v9945_v8 = vor.u32 %v12425_v53, %v9944_v47 }
 0x220   : > { %6992 = vmatpush.bf16.msra.mxu2 %v11573_v48  ;;  %6954 = vmatpush.bf16.msrb.mxu3 %v10373_v49  ;;  %v14385_v48 = vld [vmem:[%s13199_s25 + $0x8] sm:$0xff]  ;;  %v8265_v49 = vor.u32 %v12005_v41, %v8264_v43  ;;  %v8217_v4 = vor.u32 %v11993_v21, %v8216_v58  ;;  %v10280_v1 = vld [vmem:[%s13193_s23 + $0x1158] sm:$0xf] }
 0x221   : > { %7038 = vmatpush.bf16.msra.mxu0 %v9177_v11  ;;  %v1220_v62 = vperm.slane %v14385_v48, 0  ;;  %v8601_v11 = vor.u32 %v12089_v39, %v8600_v2  ;;  %v12161_v41 = vld [vmem:[%s13193_s23 + $0x6a4] sm:$0xf0]  ;;  %v9224_v2 = vld [vmem:[%s13193_s23 + $0x918] sm:$0xf] }
 0x222   : > { %6968 = vmatmul.bf16.vlgmr.msrb.gmra.mxu1 %v13379_v44  ;;  %6981 = vmatmul.bf16.vlgmr.msrb.gmra.mxu0 %v13456_v26  ;;  %v12053_v58 = vld [vmem:[%s13193_s23 + $0x344] sm:$0xf0]  ;;  %v10184_v53 = vld [vmem:[%s13193_s23 + $0x1098] sm:$0xf] }
 0x223   : > { %7012 = vmatpush.bf16.msra.mxu1 %v8409_v3  ;;  %6955 = vmatmul.bf16.vlgmr.msrb.gmra.mxu3 %v13370_v35  ;;  %v8984_v3 = vld [vmem:[%s13193_s23 + $0x738] sm:$0xf]  ;;  %v12509_v54 = vld [vmem:[%s13193_s23 + $0x1184] sm:$0xf0] }
 0x224   : > { %7006 = vmatpush.bf16.msra.mxu3 %v11909_v13  ;;  %6993 = vmatpush.bf16.msra.mxu2 %v11525_v29  ;;  %v8649_v13 = vor.u32 %v12101_v59, %v8648_v45  ;;  %v8168_v29 = vld [vmem:[%s13193_s23 + $0xd8] sm:$0xf]  ;;  %v8985_v51 = vor.u32 %v12185_v5, %v8984_v3  ;;  %v12257_v45 = vld [vmem:[%s13193_s23 + $0x9a4] sm:$0xf0] }
 0x225   : > { %7039 = vmatpush.bf16.msra.mxu0 %v9129_v25  ;;  %v6761_v19 = vpop.f32.mrf.mxu2  ;;  %v11957_v59 = vld [vmem:[%s13193_s23 + $0x44] sm:$0xf0] }
 0x226   : > { %v12245_v3 = vld [vmem:[%s13193_s23 + $0x944] sm:$0xf0] }
 0x227   : > { %7013 = vmatpush.bf16.msra.mxu1 %v8361_v15  ;;  %6994 = vmatmul.bf16.vlgmr.msra.gmra.mxu2 %v13461_v33  ;;  %v12077_v15 = vld [vmem:[%s13193_s23 + $0x404] sm:$0xf0]  ;;  %v6750_v60 = vpop.f32.mrf.mxu1  ;;  %v9225_v16 = vor.u32 %v12245_v3, %v9224_v2  ;;  %v9752_v2 = vld [vmem:[%s13193_s23 + $0xd38] sm:$0xf] }
 0x228   : > { %7025 = vmatpush.bf16.msrb.mxu3 %v8793_v9  ;;  %7051 = vmatpush.bf16.msrb.mxu2 %v9561_v20  ;;  %v11981_v9 = vld [vmem:[%s13193_s23 + $0x104] sm:$0xf0]  ;;  %v1244_v20 = vperm.slane %v1220_v62, 0  ;;  %v6735_v25 = vpop.f32.mrf.mxu3 }
 0x229   : > { %7040 = vmatpush.bf16.msra.mxu0 %v9081_v46  ;;  %v8169_v17 = vor.u32 %v11981_v9, %v8168_v29  ;;  %v10712_v29 = vld [vmem:[%s13193_s23 + $0x14b8] sm:$0xf]  ;;  %v12617_v9 = vld [vmem:[%s13193_s23 + $0x14e4] sm:$0xf0] }
 0x22a   : > { %v6736_v37 = vadd.f32 %v6735_v25, %v1244_v20  ;;  %v10713_v18 = vor.u32 %v12617_v9, %v10712_v29  ;;  %v12605_v25 = vld [vmem:[%s13193_s23 + $0x1484] sm:$0xf0]  ;;  %v10520_v9 = vld [vmem:[%s13193_s23 + $0x1338] sm:$0xf] }
 0x22b   : > { %7014 = vmatpush.bf16.msra.mxu1 %v8313_v30  ;;  %v8504_v30 = vld [vmem:[%s13193_s23 + $0x378] sm:$0xf]  ;;  %v12497_v60 = vld [vmem:[%s13193_s23 + $0x1124] sm:$0xf0] }
 0x22c   : > { %7026 = vmatpush.bf16.msrb.mxu3 %v8745_v23  ;;  %7052 = vmatpush.bf16.msrb.mxu2 %v9513_v24  ;;  %v11969_v23 = vld [vmem:[%s13193_s23 + $0xa4] sm:$0xf0]  ;;  %v8553_v24 = vor.u32 %v12077_v15, %v8552_v14  ;;  %v6749_v46 = vadd.f32 %v6748_v50, %v6736_v37  ;;  %v8505_v52 = vor.u32 %v12065_v36, %v8504_v30  ;;  %v10328_v50 = vld [vmem:[%s13193_s23 + $0x11b8] sm:$0xf] }
 0x22d   : > { %7041 = vmatpush.bf16.msra.mxu0 %v9033_v63  ;;  %v8121_v43 = vor.u32 %v11969_v23, %v8120_v22  ;;  %v8840_v63 = vld [vmem:[%s13193_s23 + $0x618] sm:$0xf]  ;;  %v6763_v5 = vpop.f32.mrf.mxu2  ;;  %v12413_v15 = vld [vmem:[%s13193_s23 + $0xe84] sm:$0xf0]  ;;  %v10281_v30 = vor.u32 %v12509_v54, %v10280_v1 }
 0x22e   : > { %v6762_v21 = vadd.f32 %v6761_v19, %v6749_v46  ;;  %v9896_v14 = vld [vmem:[%s13193_s23 + $0xe58] sm:$0xf]  ;;  %v12701_v37 = vld [vmem:[%s13193_s23 + $0x1784] sm:$0xf0] }
 0x22f   : > { %7015 = vmatpush.bf16.msra.mxu1 %v8265_v49  ;;  %v6776_v49 = vpop.f32.mrf.mxu0  ;;  %v9897_v22 = vor.u32 %v12413_v15, %v9896_v14  ;;  %v10664_v23 = vld [vmem:[%s13193_s23 + $0x1458] sm:$0xf]  ;;  %v12389_v47 = vld [vmem:[%s13193_s23 + $0xdc4] sm:$0xf0] }
 0x230   : > { %7027 = vmatpush.bf16.msrb.mxu3 %v8697_v42  ;;  %7053 = vmatpush.bf16.msrb.mxu2 %v9465_v38  ;;  %v9272_v42 = vld [vmem:[%s13193_s23 + $0x978] sm:$0xf]  ;;  %v14429_v31 = vadd.f32 %v6774_v10, %v6762_v21  ;;  %v6737_v20 = vpop.f32.mrf.mxu3  ;;  %v10665_v36 = vor.u32 %v12605_v25, %v10664_v23  ;;  %v12473_v5 = vld [vmem:[%s13193_s23 + $0x1064] sm:$0xf0] }
 0x231   : > { %7042 = vmatpush.bf16.msra.mxu0 %v8985_v51  ;;  %v8072_v38 = vld [vmem:[%s13193_s23 + $0x18] sm:$0xf]  ;;  %v9273_v62 = vor.u32 %v12257_v45, %v9272_v42  ;;  %v8457_v51 = vor.u32 %v12053_v58, %v8456_v56  ;;  %v12593_v45 = vld [vmem:[%s13193_s23 + $0x1424] sm:$0xf0] }
 0x232   : > { %v8073_v39 = vor.u32 %v11957_v59, %v8072_v38  ;;  %v10616_v42 = vld [vmem:[%s13193_s23 + $0x13f8] sm:$0xf]  ;;  %v12689_v38 = vld [vmem:[%s13193_s23 + $0x1724] sm:$0xf0] }
 0x233   : > { %7016 = vmatpush.bf16.msra.mxu1 %v8217_v4  ;;  %11939 = vmatmul.msk.bf16.vlgmr.msra.gmra.mxu3 %vm6150_vm0, %v13418_v32  ;;  %v12521_v4 = vld [vmem:[%s13193_s23 + $0x11e4] sm:$0xf0]  ;;  %v11000_v46 = vld [vmem:[%s13193_s23 + $0x16f8] sm:$0xf] }
 0x234   : > { %7028 = vmatpush.bf16.msrb.mxu3 %v8649_v13  ;;  %7054 = vmatpush.bf16.msrb.mxu2 %v9417_v0  ;;  %v8889_v13 = vor.u32 %v12161_v41, %v8888_v61  ;;  %v12149_v0 = vld [vmem:[%s13193_s23 + $0x644] sm:$0xf0]  ;;  %v10232_v61 = vld [vmem:[%s13193_s23 + $0x10f8] sm:$0xf]  ;;  %v11001_v58 = vor.u32 %v12689_v38, %v11000_v46 }
 0x235   : > { %7043 = vmatpush.bf16.msra.mxu0 %v8937_v27  ;;  %v8841_v10 = vor.u32 %v12149_v0, %v8840_v63  ;;  %v9848_v27 = vld [vmem:[%s13193_s23 + $0xdf8] sm:$0xf]  ;;  %v10233_v49 = vor.u32 %v12497_v60, %v10232_v61  ;;  %v12485_v56 = vld [vmem:[%s13193_s23 + $0x10c4] sm:$0xf0] }
 0x236   : > { %v9800_v59 = vld [vmem:[%s13193_s23 + $0xd98] sm:$0xf]  ;;  %v12677_v0 = vld [vmem:[%s13193_s23 + $0x16c4] sm:$0xf0]  ;;  %v10185_v3 = vor.u32 %v12485_v56, %v10184_v53 }
 0x237   : > { %7017 = vmatpush.bf16.msra.mxu1 %v8169_v17  ;;  %v10329_v17 = vor.u32 %v12521_v4, %v10328_v50  ;;  %v9801_v21 = vor.u32 %v12389_v47, %v9800_v59  ;;  %v10952_v63 = vld [vmem:[%s13193_s23 + $0x1698] sm:$0xf]  ;;  %v12365_v14 = vld [vmem:[%s13193_s23 + $0xd04] sm:$0xf0] }
 0x238   : > { %7029 = vmatpush.bf16.msrb.mxu3 %v8601_v11  ;;  %7055 = vmatpush.bf16.msrb.mxu2 %v9369_v12  ;;  %v11096_v11 = vld [vmem:[%s13193_s23 + $0x17b8] sm:$0xf]  ;;  %v12713_v12 = vld [vmem:[%s13193_s23 + $0x17e4] sm:$0xf0] }
 0x239   : > { %7044 = vmatpush.bf16.msra.mxu0 %v8889_v13  ;;  %v11097_v19 = vor.u32 %v12713_v12, %v11096_v11  ;;  %v10568_v13 = vld [vmem:[%s13193_s23 + $0x1398] sm:$0xf]  ;;  %v12569_v11 = vld [vmem:[%s13193_s23 + $0x1364] sm:$0xf0] }
 0x23a   : > { %v10136_v4 = vld [vmem:[%s13193_s23 + $0x1038] sm:$0xf]  ;;  %v12461_v1 = vld [vmem:[%s13193_s23 + $0x1004] sm:$0xf0] }
 0x23b   : > { %7018 = vmatpush.bf16.msra.mxu1 %v8121_v43  ;;  %v10904_v20 = vld [vmem:[%s13193_s23 + $0x1638] sm:$0xf]  ;;  %v12557_v25 = vld [vmem:[%s13193_s23 + $0x1304] sm:$0xf0] }
 0x23c   : > { %7030 = vmatpush.bf16.msrb.mxu3 %v8553_v24  ;;  %7056 = vmatpush.bf16.msrb.mxu2 %v9321_v28  ;;  %v11048_v24 = vld [vmem:[%s13193_s23 + $0x1758] sm:$0xf]  ;;  %v12401_v28 = vld [vmem:[%s13193_s23 + $0xe24] sm:$0xf0] }
 0x23d   : > { %7045 = vmatpush.bf16.msra.mxu0 %v8841_v10  ;;  %v11049_v43 = vor.u32 %v12701_v37, %v11048_v24  ;;  %v9849_v41 = vor.u32 %v12401_v28, %v9848_v27  ;;  %v9704_v12 = vld [vmem:[%s13193_s23 + $0xcd8] sm:$0xf]  ;;  %v6826_v15 = vpop.f32.mrf.mxu0  ;;  %v12653_v28 = vld [vmem:[%s13193_s23 + $0x1604] sm:$0xf0] }
 0x23e   : > { %v10472_v23 = vld [vmem:[%s13193_s23 + $0x12d8] sm:$0xf]  ;;  %v12545_v38 = vld [vmem:[%s13193_s23 + $0x12a4] sm:$0xf0] }
 0x23f   : > { %7019 = vmatpush.bf16.msra.mxu1 %v8073_v39  ;;  %v12377_v39 = vld [vmem:[%s13193_s23 + $0xd64] sm:$0xf0]  ;;  %v6800_v10 = vpop.f32.mrf.mxu1  ;;  %v10856_v24 = vld [vmem:[%s13193_s23 + $0x15d8] sm:$0xf] }
 0x240   : > { %7031 = vmatpush.bf16.msrb.mxu3 %v8505_v52  ;;  %7057 = vmatpush.bf16.msrb.mxu2 %v9273_v62  ;;  %v10617_v52 = vor.u32 %v12593_v45, %v10616_v42  ;;  %v12581_v62 = vld [vmem:[%s13193_s23 + $0x13c4] sm:$0xf0]  ;;  %v9753_v29 = vor.u32 %v12377_v39, %v9752_v2  ;;  %v10424_v46 = vld [vmem:[%s13193_s23 + $0x1278] sm:$0xf] }
 0x241   : > { %7090 = vmatpush.bf16.msrb.mxu0 %v10713_v18  ;;  %v10569_v50 = vor.u32 %v12581_v62, %v10568_v13  ;;  %v10088_v18 = vld [vmem:[%s13193_s23 + $0xfd8] sm:$0xf]  ;;  %v12449_v42 = vld [vmem:[%s13193_s23 + $0xfa4] sm:$0xf0] }
 0x242   : > { %7020 = vmatmul.bf16.vlgmr.msra.gmra.mxu1 %v13302_v6  ;;  %7046 = vmatmul.bf16.vlgmr.msra.gmra.mxu0 %v13288_v55  ;;  %v10089_v60 = vor.u32 %v12461_v1, %v10088_v18  ;;  %v10808_v59 = vld [vmem:[%s13193_s23 + $0x1578] sm:$0xf]  ;;  %v12341_v53 = vld [vmem:[%s13193_s23 + $0xc44] sm:$0xf0] }
 0x243   : > { %7064 = vmatpush.bf16.msrb.mxu1 %v9945_v8  ;;  %v10953_v8 = vor.u32 %v12677_v0, %v10952_v63  ;;  %v10425_v0 = vor.u32 %v12545_v38, %v10424_v46  ;;  %v9992_v2 = vld [vmem:[%s13193_s23 + $0xf18] sm:$0xf] }
 0x244   : > { %7032 = vmatpush.bf16.msrb.mxu3 %v8457_v51  ;;  %7058 = vmatpush.bf16.msrb.mxu2 %v9225_v16  ;;  %v12665_v51 = vld [vmem:[%s13193_s23 + $0x1664] sm:$0xf0]  ;;  %v10137_v16 = vor.u32 %v12473_v5, %v10136_v4  ;;  %v10376_v4 = vld [vmem:[%s13193_s23 + $0x1218] sm:$0xf] }
 0x245   : > { %7091 = vmatpush.bf16.msrb.mxu0 %v10665_v36  ;;  %v6813_v27 = vpop.f32.mrf.mxu2  ;;  %v12353_v36 = vld [vmem:[%s13193_s23 + $0xca4] sm:$0xf0]  ;;  %v6828_v56 = vpop.f32.mrf.mxu0 }
 0x246   : > { %v6787_v54 = vpop.f32.mrf.mxu3  ;;  %v12533_v5 = vld [vmem:[%s13193_s23 + $0x1244] sm:$0xf0]  ;;  %v11336_v56 = vld [vmem:[%s13193_s23 + $0x1998] sm:$0xf] }
 0x247   : > { %7065 = vmatpush.bf16.msrb.mxu1 %v9897_v22  ;;  %7033 = vmatmul.bf16.vlgmr.msrb.gmra.mxu3 %v13304_v7  ;;  %v9705_v22 = vor.u32 %v12365_v14, %v9704_v12  ;;  %v6788_v37 = vadd.f32 %v6787_v54, %v14429_v31  ;;  %v10857_v31 = vor.u32 %v12653_v28, %v10856_v24  ;;  %v6802_v13 = vpop.f32.mrf.mxu1  ;;  %v12905_v12 = vld [vmem:[%s13193_s23 + $0x1de4] sm:$0xf0]  ;;  %v12035_v14 = vld [vmem:[%s13193_s23 + $0x2bc] sm:$0xf]  ;;  %v11912_v54 = vld [vmem:[%s13193_s23 + $0x1e18] sm:$0xf] }
 0x248   : > { %7077 = vmatpush.bf16.msra.mxu3 %v10329_v17  ;;  %7103 = vmatpush.bf16.msra.mxu2 %v11097_v19  ;;  %v10521_v17 = vor.u32 %v12569_v11, %v10520_v9  ;;  %v10905_v19 = vor.u32 %v12665_v51, %v10904_v20  ;;  %v10760_v11 = vld [vmem:[%s13193_s23 + $0x1518] sm:$0xf]  ;;  %v12629_v20 = vld [vmem:[%s13193_s23 + $0x1544] sm:$0xf0]  ;;  %v10377_v18 = vor.u32 %v12533_v5, %v10376_v4  ;;  %v8794_v24 = vld [vmem:[%s13193_s23 + $0x5e8] sm:$0xf0] }
 0x249   : > { %7059 = vmatmul.bf16.vlgmr.msrb.gmra.mxu2 %v13293_v57  ;;  %7092 = vmatpush.bf16.msrb.mxu0 %v10617_v52  ;;  %v6801_v61 = vadd.f32 %v6800_v10, %v6788_v37  ;;  %v9608_v52 = vld [vmem:[%s13193_s23 + $0xc18] sm:$0xf]  ;;  %v10761_v1 = vor.u32 %v12629_v20, %v10760_v11  ;;  %v12893_v28 = vld [vmem:[%s13193_s23 + $0x1d84] sm:$0xf0]  ;;  %v11999_v4 = vld [vmem:[%s13193_s23 + $0x19c] sm:$0xf] }
 0x24a   : > { %v11864_v51 = vld [vmem:[%s13193_s23 + $0x1db8] sm:$0xf]  ;;  %v1221_v5 = vperm.slane %v14385_v48, 2  ;;  %v12095_v11 = vld [vmem:[%s13193_s23 + $0x49c] sm:$0xf] }
 0x24b   : > { %7066 = vmatpush.bf16.msrb.mxu1 %v9849_v41  ;;  %v10040_v41 = vld [vmem:[%s13193_s23 + $0xf78] sm:$0xf]  ;;  %v6814_v47 = vadd.f32 %v6813_v27, %v6801_v61  ;;  %v8362_v61 = vld [vmem:[%s13193_s23 + $0x288] sm:$0xf0] }
 0x24c   : > { %7078 = vmatpush.bf16.msra.mxu3 %v10281_v30  ;;  %7104 = vmatpush.bf16.msra.mxu2 %v11049_v43  ;;  %v9656_v30 = vld [vmem:[%s13193_s23 + $0xc78] sm:$0xf]  ;;  %v10473_v43 = vor.u32 %v12557_v25, %v10472_v23  ;;  %v10041_v63 = vor.u32 %v12449_v42, %v10040_v41  ;;  %v12131_v25 = vld [vmem:[%s13193_s23 + $0x5bc] sm:$0xf] }
 0x24d   : > { %7093 = vmatpush.bf16.msrb.mxu0 %v10569_v50  ;;  %v9657_v45 = vor.u32 %v12353_v36, %v9656_v30  ;;  %v14492_v62 = vadd.f32 %v6826_v15, %v6814_v47  ;;  %v12437_v50 = vld [vmem:[%s13193_s23 + $0xf44] sm:$0xf0]  ;;  %v8410_v15 = vld [vmem:[%s13193_s23 + $0x2e8] sm:$0xf0]  ;;  %v11816_v27 = vld [vmem:[%s13193_s23 + $0x1d58] sm:$0xf]  ;;  %v8797_v41 = vor.u32 %v12131_v25, %v8794_v24 }
 0x24e   : > { %v9993_v10 = vor.u32 %v12437_v50, %v9992_v2  ;;  %v8413_v23 = vor.u32 %v12035_v14, %v8410_v15  ;;  %v12023_v30 = vld [vmem:[%s13193_s23 + $0x25c] sm:$0xf]  ;;  %v11817_v42 = vor.u32 %v12893_v28, %v11816_v27  ;;  %v11768_v47 = vld [vmem:[%s13193_s23 + $0x1cf8] sm:$0xf]  ;;  %v12869_v50 = vld [vmem:[%s13193_s23 + $0x1cc4] sm:$0xf0] }
 0x24f   : > { %7067 = vmatpush.bf16.msrb.mxu1 %v9801_v21  ;;  %v12809_v21 = vld [vmem:[%s13193_s23 + $0x1ae4] sm:$0xf0]  ;;  %v8365_v38 = vor.u32 %v12023_v30, %v8362_v61  ;;  %v11720_v2 = vld [vmem:[%s13193_s23 + $0x1c98] sm:$0xf]  ;;  %v12083_v28 = vld [vmem:[%s13193_s23 + $0x43c] sm:$0xf] }
 0x250   : > { %7079 = vmatpush.bf16.msra.mxu3 %v10233_v49  ;;  %7105 = vmatpush.bf16.msra.mxu2 %v11001_v58  ;;  %v12641_v49 = vld [vmem:[%s13193_s23 + $0x15a4] sm:$0xf0]  ;;  %v11480_v58 = vld [vmem:[%s13193_s23 + $0x1ab8] sm:$0xf]  ;;  %v8602_v30 = vld [vmem:[%s13193_s23 + $0x468] sm:$0xf0] }
 0x251   : > { %7094 = vmatpush.bf16.msrb.mxu0 %v10521_v17  ;;  %v10809_v39 = vor.u32 %v12641_v49, %v10808_v59  ;;  %v11481_v9 = vor.u32 %v12809_v21, %v11480_v58  ;;  %v12797_v17 = vld [vmem:[%s13193_s23 + $0x1a84] sm:$0xf0]  ;;  %v11672_v14 = vld [vmem:[%s13193_s23 + $0x1c38] sm:$0xf] }
 0x252   : > { %v12881_v49 = vld [vmem:[%s13193_s23 + $0x1d24] sm:$0xf0] }
 0x253   : > { %7068 = vmatpush.bf16.msrb.mxu1 %v9753_v29  ;;  %v6815_v29 = vpop.f32.mrf.mxu2  ;;  %v12773_v58 = vld [vmem:[%s13193_s23 + $0x19c4] sm:$0xf0]  ;;  %v11769_v13 = vor.u32 %v12881_v49, %v11768_v47  ;;  %v8605_v47 = vor.u32 %v12083_v28, %v8602_v30  ;;  %v12047_v28 = vld [vmem:[%s13193_s23 + $0x31c] sm:$0xf]  ;;  %v8458_v30 = vld [vmem:[%s13193_s23 + $0x348] sm:$0xf0] }
 0x254   : > { %7080 = vmatpush.bf16.msra.mxu3 %v10185_v3  ;;  %7106 = vmatpush.bf16.msra.mxu2 %v10953_v8  ;;  %v9609_v3 = vor.u32 %v12341_v53, %v9608_v52  ;;  %v6789_v8 = vpop.f32.mrf.mxu3  ;;  %v12011_v52 = vld [vmem:[%s13193_s23 + $0x1fc] sm:$0xf]  ;;  %v8314_v53 = vld [vmem:[%s13193_s23 + $0x228] sm:$0xf0]  ;;  %v11288_v29 = vld [vmem:[%s13193_s23 + $0x1938] sm:$0xf] }
 0x255   : > { %7095 = vmatpush.bf16.msrb.mxu0 %v10473_v43  ;;  %v12785_v43 = vld [vmem:[%s13193_s23 + $0x1a24] sm:$0xf0]  ;;  %v8266_v8 = vld [vmem:[%s13193_s23 + $0x1c8] sm:$0xf0] }
 0x256   : > { %v12857_v15 = vld [vmem:[%s13193_s23 + $0x1c64] sm:$0xf0]  ;;  %v8269_v48 = vor.u32 %v11999_v4, %v8266_v8  ;;  %v12227_v8 = vld [vmem:[%s13193_s23 + $0x8bc] sm:$0xf] }
 0x257   : > { %7069 = vmatpush.bf16.msrb.mxu1 %v9705_v22  ;;  %v11865_v22 = vor.u32 %v12905_v12, %v11864_v51  ;;  %v11721_v51 = vor.u32 %v12869_v50, %v11720_v2  ;;  %v8650_v12 = vld [vmem:[%s13193_s23 + $0x4c8] sm:$0xf0]  ;;  %v11144_v50 = vld [vmem:[%s13193_s23 + $0x1818] sm:$0xf]  ;;  %v12725_v4 = vld [vmem:[%s13193_s23 + $0x1844] sm:$0xf0] }
 0x258   : > { %7081 = vmatpush.bf16.msra.mxu3 %v10137_v16  ;;  %7107 = vmatpush.bf16.msra.mxu2 %v10905_v19  ;;  %v11432_v16 = vld [vmem:[%s13193_s23 + $0x1a58] sm:$0xf]  ;;  %v12917_v19 = vld [vmem:[%s13193_s23 + $0x1e44] sm:$0xf0]  ;;  %v8653_v24 = vor.u32 %v12095_v11, %v8650_v12  ;;  %v12059_v11 = vld [vmem:[%s13193_s23 + $0x37c] sm:$0xf]  ;;  %v11145_v12 = vor.u32 %v12725_v4, %v11144_v50 }
 0x259   : > { %7096 = vmatpush.bf16.msrb.mxu0 %v10425_v0  ;;  %v11433_v37 = vor.u32 %v12797_v17, %v11432_v16  ;;  %v11913_v36 = vor.u32 %v12917_v19, %v11912_v54  ;;  %v8698_v0 = vld [vmem:[%s13193_s23 + $0x528] sm:$0xf0]  ;;  %v11987_v17 = vld [vmem:[%s13193_s23 + $0x13c] sm:$0xf] }
 0x25a   : > { %v12191_v50 = vld [vmem:[%s13193_s23 + $0x79c] sm:$0xf]  ;;  %v9034_v4 = vld [vmem:[%s13193_s23 + $0x7c8] sm:$0xf0] }
 0x25b   : > { %7070 = vmatpush.bf16.msrb.mxu1 %v9657_v45  ;;  %v8746_v45 = vld [vmem:[%s13193_s23 + $0x588] sm:$0xf0]  ;;  %v14519_v46 = vpop.f32.mrf.mxu2 }
 0x25c   : > { %7082 = vmatpush.bf16.msra.mxu3 %v10089_v60  ;;  %7108 = vmatpush.bf16.msra.mxu2 %v10857_v31  ;;  %v11384_v60 = vld [vmem:[%s13193_s23 + $0x19f8] sm:$0xf]  ;;  %v12119_v31 = vld [vmem:[%s13193_s23 + $0x55c] sm:$0xf] }
 0x25d   : > { %7097 = vmatpush.bf16.msrb.mxu0 %v10377_v18  ;;  %v11385_v59 = vor.u32 %v12785_v43, %v11384_v60  ;;  %v8749_v21 = vor.u32 %v12119_v31, %v8746_v45  ;;  %v8218_v18 = vld [vmem:[%s13193_s23 + $0x168] sm:$0xf0]  ;;  %v12845_v43 = vld [vmem:[%s13193_s23 + $0x1c04] sm:$0xf0]  ;;  %v11192_v45 = vld [vmem:[%s13193_s23 + $0x1878] sm:$0xf] }
 0x25e   : > { %v8221_v27 = vor.u32 %v11987_v17, %v8218_v18  ;;  %v8074_v17 = vld [vmem:[%s13193_s23 + $0x48] sm:$0xf0]  ;;  %v12323_v18 = vld [vmem:[%s13193_s23 + $0xbbc] sm:$0xf] }
 0x25f   : > { %7071 = vmatpush.bf16.msrb.mxu1 %v9609_v3  ;;  %v11337_v3 = vor.u32 %v12773_v58, %v11336_v56  ;;  %v6878_v54 = vpop.f32.mrf.mxu0  ;;  %v6852_v19 = vpop.f32.mrf.mxu1 }
 0x260   : > { %7083 = vmatpush.bf16.msra.mxu3 %v10041_v63  ;;  %7109 = vmatpush.bf16.msra.mxu2 %v10809_v39  ;;  %v12107_v63 = vld [vmem:[%s13193_s23 + $0x4fc] sm:$0xf]  ;;  %v8317_v39 = vor.u32 %v12011_v52, %v8314_v53  ;;  %v8554_v53 = vld [vmem:[%s13193_s23 + $0x408] sm:$0xf0] }
 0x261   : > { %7149 = vmatpush.bf16.msra.mxu0 %v11913_v36  ;;  %v8701_v20 = vor.u32 %v12107_v63, %v8698_v0  ;;  %v11624_v36 = vld [vmem:[%s13193_s23 + $0x1bd8] sm:$0xf]  ;;  %v12833_v63 = vld [vmem:[%s13193_s23 + $0x1ba4] sm:$0xf0]  ;;  %v11963_v0 = vld [vmem:[%s13193_s23 + $0x7c] sm:$0xf] }
 0x262   : > { %7072 = vmatmul.bf16.vlgmr.msrb.gmra.mxu1 %v13368_v34  ;;  %7098 = vmatmul.bf16.vlgmr.msrb.gmra.mxu0 %v13370_v35  ;;  %v11625_v49 = vor.u32 %v12845_v43, %v11624_v36  ;;  %v10330_v43 = vld [vmem:[%s13193_s23 + $0x11e8] sm:$0xf0] }
 0x263   : > { %7116 = vmatpush.bf16.msra.mxu1 %v11481_v9  ;;  %v12761_v9 = vld [vmem:[%s13193_s23 + $0x1964] sm:$0xf0] }
 0x264   : > { %7084 = vmatpush.bf16.msra.mxu3 %v9993_v10  ;;  %7110 = vmatpush.bf16.msra.mxu2 %v10761_v1  ;;  %v6867_v10 = vpop.f32.mrf.mxu2  ;;  %v11289_v16 = vor.u32 %v12761_v9, %v11288_v29  ;;  %v1245_v1 = vperm.slane %v1221_v5, 0 }
 0x265   : > { %7168 = vmatpush.bf16.msrb.mxu0 %v8797_v41  ;;  %v11975_v41 = vld [vmem:[%s13193_s23 + $0xdc] sm:$0xf]  ;;  %v12821_v10 = vld [vmem:[%s13193_s23 + $0x1b44] sm:$0xf0] }
 0x266   : > { %v6839_v25 = vpop.f32.mrf.mxu3  ;;  %v6879_v31 = vadd.f32 %v6878_v54, %v1245_v1  ;;  %v9562_v1 = vld [vmem:[%s13193_s23 + $0xbe8] sm:$0xf0]  ;;  %v12419_v54 = vld [vmem:[%s13193_s23 + $0xebc] sm:$0xf] }
 0x267   : > { %7117 = vmatpush.bf16.msra.mxu1 %v11433_v37  ;;  %7085 = vmatmul.bf16.vlgmr.msra.gmra.mxu3 %v13375_v40  ;;  %v11673_v37 = vor.u32 %v12857_v15, %v11672_v14  ;;  %v6840_v61 = vadd.f32 %v6839_v25, %v14492_v62  ;;  %v12071_v62 = vld [vmem:[%s13193_s23 + $0x3dc] sm:$0xf]  ;;  %v6854_v5 = vpop.f32.mrf.mxu1  ;;  %v8506_v14 = vld [vmem:[%s13193_s23 + $0x3a8] sm:$0xf0]  ;;  %v11528_v15 = vld [vmem:[%s13193_s23 + $0x1b18] sm:$0xf]  ;;  %v9565_v36 = vor.u32 %v12323_v18, %v9562_v1 }
 0x268   : > { %7129 = vmatpush.bf16.msrb.mxu3 %v11865_v22  ;;  %7155 = vmatpush.bf16.msrb.mxu2 %v8413_v23  ;;  %v11240_v22 = vld [vmem:[%s13193_s23 + $0x18d8] sm:$0xf]  ;;  %v12749_v23 = vld [vmem:[%s13193_s23 + $0x1904] sm:$0xf0]  ;;  %v8557_v29 = vor.u32 %v12071_v62, %v8554_v53  ;;  %v9130_v25 = vld [vmem:[%s13193_s23 + $0x888] sm:$0xf0] }
 0x269   : > { %7111 = vmatmul.bf16.vlgmr.msra.gmra.mxu2 %v13379_v44  ;;  %7169 = vmatpush.bf16.msrb.mxu0 %v8749_v21  ;;  %v11241_v60 = vor.u32 %v12749_v23, %v11240_v22  ;;  %v8509_v22 = vor.u32 %v12059_v11, %v8506_v14  ;;  %v12215_v23 = vld [vmem:[%s13193_s23 + $0x85c] sm:$0xf]  ;;  %v9802_v14 = vld [vmem:[%s13193_s23 + $0xdc8] sm:$0xf0] }
 0x26a   : > { %v12287_v11 = vld [vmem:[%s13193_s23 + $0xa9c] sm:$0xf]  ;;  %v10186_v1 = vld [vmem:[%s13193_s23 + $0x10c8] sm:$0xf0] }
 0x26b   : > { %7118 = vmatpush.bf16.msra.mxu1 %v11385_v59  ;;  %v6853_v59 = vadd.f32 %v6852_v19, %v6840_v61  ;;  %v9946_v19 = vld [vmem:[%s13193_s23 + $0xee8] sm:$0xf0]  ;;  %v12479_v18 = vld [vmem:[%s13193_s23 + $0x109c] sm:$0xf] }
 0x26c   : > { %7130 = vmatpush.bf16.msrb.mxu3 %v11817_v42  ;;  %7156 = vmatpush.bf16.msrb.mxu2 %v8365_v38  ;;  %v8170_v42 = vld [vmem:[%s13193_s23 + $0x108] sm:$0xf0]  ;;  %v12737_v38 = vld [vmem:[%s13193_s23 + $0x18a4] sm:$0xf0]  ;;  %v6891_v56 = vpop.f32.mrf.mxu2  ;;  %v9949_v61 = vor.u32 %v12419_v54, %v9946_v19  ;;  %v12275_v54 = vld [vmem:[%s13193_s23 + $0xa3c] sm:$0xf] }
 0x26d   : > { %7170 = vmatpush.bf16.msrb.mxu0 %v8701_v20  ;;  %v8173_v52 = vor.u32 %v11975_v41, %v8170_v42  ;;  %v14559_v58 = vadd.f32 %v14519_v46, %v6853_v59  ;;  %v11193_v21 = vor.u32 %v12737_v38, %v11192_v45  ;;  %v14564_v2 = vadd.f32 %v6891_v56, %v6879_v31  ;;  %v9178_v46 = vld [vmem:[%s13193_s23 + $0x8e8] sm:$0xf0]  ;;  %v12311_v41 = vld [vmem:[%s13193_s23 + $0xb5c] sm:$0xf] }
 0x26e   : > { %v6841_v20 = vpop.f32.mrf.mxu3  ;;  %v9133_v42 = vor.u32 %v12215_v23, %v9130_v25  ;;  %v9514_v31 = vld [vmem:[%s13193_s23 + $0xb88] sm:$0xf0]  ;;  %v12407_v45 = vld [vmem:[%s13193_s23 + $0xe5c] sm:$0xf]  ;;  %v8461_v59 = vor.u32 %v12047_v28, %v8458_v30  ;;  %v10189_v30 = vor.u32 %v12479_v18, %v10186_v1 }
 0x26f   : > { %7119 = vmatpush.bf16.msra.mxu1 %v11337_v3  ;;  %v8122_v3 = vld [vmem:[%s13193_s23 + $0xa8] sm:$0xf0]  ;;  %v9517_v62 = vor.u32 %v12311_v41, %v9514_v31  ;;  %v12503_v56 = vld [vmem:[%s13193_s23 + $0x115c] sm:$0xf]  ;;  %v9037_v20 = vor.u32 %v12191_v50, %v9034_v4 }
 0x270   : > { %7131 = vmatpush.bf16.msrb.mxu3 %v11769_v13  ;;  %7157 = vmatpush.bf16.msrb.mxu2 %v8317_v39  ;;  %v11576_v13 = vld [vmem:[%s13193_s23 + $0x1b78] sm:$0xf]  ;;  %v6880_v39 = vpop.f32.mrf.mxu0  ;;  %v9898_v38 = vld [vmem:[%s13193_s23 + $0xe88] sm:$0xf0]  ;;  %v12371_v25 = vld [vmem:[%s13193_s23 + $0xd3c] sm:$0xf] }
 0x271   : > { %7171 = vmatpush.bf16.msrb.mxu0 %v8653_v24  ;;  %v11577_v9 = vor.u32 %v12833_v63, %v11576_v13  ;;  %v9901_v53 = vor.u32 %v12407_v45, %v9898_v38  ;;  %v12299_v13 = vld [vmem:[%s13193_s23 + $0xafc] sm:$0xf]  ;;  %v9370_v23 = vld [vmem:[%s13193_s23 + $0xa68] sm:$0xf0] }
 0x272   : > { %11940 = vmatmul.msk.bf16.vlgmr.msra.gmra.mxu0 %vm6150_vm0, %v13418_v32  ;;  %v12395_v39 = vld [vmem:[%s13193_s23 + $0xdfc] sm:$0xf]  ;;  %v8938_v28 = vld [vmem:[%s13193_s23 + $0x708] sm:$0xf0] }
 0x273   : > { %7120 = vmatpush.bf16.msra.mxu1 %v11289_v16  ;;  %v11951_v16 = vld [vmem:[%s13193_s23 + $0x1c] sm:$0xf]  ;;  %v10138_v41 = vld [vmem:[%s13193_s23 + $0x1068] sm:$0xf0] }
 0x274   : > { %7132 = vmatpush.bf16.msrb.mxu3 %v11721_v51  ;;  %7158 = vmatpush.bf16.msrb.mxu2 %v8269_v48  ;;  %v8125_v51 = vor.u32 %v11963_v0, %v8122_v3  ;;  %v9181_v48 = vor.u32 %v12227_v8, %v9178_v46  ;;  %v6893_v24 = vpop.f32.mrf.mxu2  ;;  %v9466_v0 = vld [vmem:[%s13193_s23 + $0xb28] sm:$0xf0]  ;;  %v12263_v31 = vld [vmem:[%s13193_s23 + $0x9dc] sm:$0xf] }
 0x275   : > { %7172 = vmatpush.bf16.msrb.mxu0 %v8605_v47  ;;  %v12203_v47 = vld [vmem:[%s13193_s23 + $0x7fc] sm:$0xf]  ;;  %v9850_v3 = vld [vmem:[%s13193_s23 + $0xe28] sm:$0xf0]  ;;  %v9469_v8 = vor.u32 %v12299_v13, %v9466_v0 }
 0x276   : > { %v9853_v46 = vor.u32 %v12395_v39, %v9850_v3  ;;  %v9754_v24 = vld [vmem:[%s13193_s23 + $0xd68] sm:$0xf0]  ;;  %v12455_v13 = vld [vmem:[%s13193_s23 + $0xfdc] sm:$0xf] }
 0x277   : > { %7121 = vmatpush.bf16.msra.mxu1 %v11241_v60  ;;  %v12515_v60 = vld [vmem:[%s13193_s23 + $0x11bc] sm:$0xf]  ;;  %v9322_v38 = vld [vmem:[%s13193_s23 + $0xa08] sm:$0xf0] }
 0x278   : > { %7133 = vmatpush.bf16.msrb.mxu3 %v11673_v37  ;;  %7159 = vmatpush.bf16.msrb.mxu2 %v8221_v27  ;;  %v11529_v37 = vor.u32 %v12821_v10, %v11528_v15  ;;  %v8077_v27 = vor.u32 %v11951_v16, %v8074_v17  ;;  %v12179_v15 = vld [vmem:[%s13193_s23 + $0x73c] sm:$0xf]  ;;  %v8986_v10 = vld [vmem:[%s13193_s23 + $0x768] sm:$0xf0] }
 0x279   : > { %7173 = vmatpush.bf16.msrb.mxu0 %v8557_v29  ;;  %v12491_v29 = vld [vmem:[%s13193_s23 + $0x10fc] sm:$0xf]  ;;  %v9274_v4 = vld [vmem:[%s13193_s23 + $0x9a8] sm:$0xf0] }
 0x27a   : > { %v12251_v39 = vld [vmem:[%s13193_s23 + $0x97c] sm:$0xf]  ;;  %v9226_v18 = vld [vmem:[%s13193_s23 + $0x948] sm:$0xf0] }
 0x27b   : > { %7122 = vmatpush.bf16.msra.mxu1 %v11193_v21  ;;  %v10282_v21 = vld [vmem:[%s13193_s23 + $0x1188] sm:$0xf0] }
 0x27c   : > { %7134 = vmatpush.bf16.msrb.mxu3 %v11625_v49  ;;  %7160 = vmatpush.bf16.msrb.mxu2 %v8173_v52  ;;  %v9082_v49 = vld [vmem:[%s13193_s23 + $0x828] sm:$0xf0]  ;;  %v10333_v52 = vor.u32 %v12515_v60, %v10330_v43  ;;  %v10285_v5 = vor.u32 %v12503_v56, %v10282_v21  ;;  %v9757_v60 = vor.u32 %v12371_v25, %v9754_v24  ;;  %v12467_v43 = vld [vmem:[%s13193_s23 + $0x103c] sm:$0xf] }
 0x27d   : > { %7174 = vmatpush.bf16.msrb.mxu0 %v8509_v22  ;;  %v9085_v63 = vor.u32 %v12203_v47, %v9082_v49  ;;  %v8989_v22 = vor.u32 %v12179_v15, %v8986_v10  ;;  %v9706_v47 = vld [vmem:[%s13193_s23 + $0xd08] sm:$0xf0]  ;;  %v12155_v49 = vld [vmem:[%s13193_s23 + $0x67c] sm:$0xf]  ;;  %v9277_v10 = vor.u32 %v12251_v39, %v9274_v4 }
 0x27e   : > { %v11098_v25 = vld [vmem:[%s13193_s23 + $0x17e8] sm:$0xf0]  ;;  %v12803_v24 = vld [vmem:[%s13193_s23 + $0x1abc] sm:$0xf] }
 0x27f   : > { %7123 = vmatpush.bf16.msra.mxu1 %v11145_v12  ;;  %v12383_v12 = vld [vmem:[%s13193_s23 + $0xd9c] sm:$0xf]  ;;  %v6930_v19 = vpop.f32.mrf.mxu0  ;;  %v11818_v39 = vld [vmem:[%s13193_s23 + $0x1d88] sm:$0xf0] }
 0x280   : > { %7135 = vmatpush.bf16.msrb.mxu3 %v11577_v9  ;;  %7161 = vmatpush.bf16.msrb.mxu2 %v8125_v51  ;;  %v10234_v9 = vld [vmem:[%s13193_s23 + $0x1128] sm:$0xf0]  ;;  %v9805_v17 = vor.u32 %v12383_v12, %v9802_v14  ;;  %v12443_v14 = vld [vmem:[%s13193_s23 + $0xf7c] sm:$0xf] }
 0x281   : > { %7175 = vmatpush.bf16.msrb.mxu0 %v8461_v59  ;;  %v9418_v51 = vld [vmem:[%s13193_s23 + $0xac8] sm:$0xf0]  ;;  %v12359_v59 = vld [vmem:[%s13193_s23 + $0xcdc] sm:$0xf] }
 0x282   : > { %7124 = vmatmul.bf16.vlgmr.msra.gmra.mxu1 %v13456_v26  ;;  %v9421_v16 = vor.u32 %v12287_v11, %v9418_v51  ;;  %v9709_v21 = vor.u32 %v12359_v59, %v9706_v47  ;;  %v12611_v51 = vld [vmem:[%s13193_s23 + $0x14bc] sm:$0xf]  ;;  %v10714_v12 = vld [vmem:[%s13193_s23 + $0x14e8] sm:$0xf0] }
 0x283   : > { %7181 = vmatpush.bf16.msrb.mxu1 %v9181_v48  ;;  %v10237_v48 = vor.u32 %v12491_v29, %v10234_v9  ;;  %v12143_v29 = vld [vmem:[%s13193_s23 + $0x61c] sm:$0xf]  ;;  %v8842_v9 = vld [vmem:[%s13193_s23 + $0x648] sm:$0xf0] }
 0x284   : > { %7136 = vmatpush.bf16.msrb.mxu3 %v11529_v37  ;;  %7162 = vmatpush.bf16.msrb.mxu2 %v8077_v27  ;;  %v6917_v37 = vpop.f32.mrf.mxu1  ;;  %v12167_v27 = vld [vmem:[%s13193_s23 + $0x6dc] sm:$0xf]  ;;  %v8845_v1 = vor.u32 %v12143_v29, %v8842_v9  ;;  %v11002_v4 = vld [vmem:[%s13193_s23 + $0x1728] sm:$0xf0] }
 0x285   : > { %7220 = vmatpush.bf16.msra.mxu0 %v10333_v52  ;;  %v8941_v45 = vor.u32 %v12167_v27, %v8938_v28  ;;  %v8890_v52 = vld [vmem:[%s13193_s23 + $0x6a8] sm:$0xf0]  ;;  %v12599_v28 = vld [vmem:[%s13193_s23 + $0x145c] sm:$0xf] }
 0x286   : > { %7176 = vmatmul.bf16.vlgmr.msrb.gmra.mxu0 %v13304_v7  ;;  %v8893_v50 = vor.u32 %v12155_v49, %v8890_v52  ;;  %v12695_v59 = vld [vmem:[%s13193_s23 + $0x175c] sm:$0xf]  ;;  %v11050_v49 = vld [vmem:[%s13193_s23 + $0x1788] sm:$0xf0] }
 0x287   : > { %7182 = vmatpush.bf16.msrb.mxu1 %v9133_v42  ;;  %7137 = vmatmul.bf16.vlgmr.msrb.gmra.mxu3 %v13461_v33  ;;  %v6932_v3 = vpop.f32.mrf.mxu0  ;;  %v12791_v52 = vld [vmem:[%s13193_s23 + $0x1a5c] sm:$0xf]  ;;  %v10570_v29 = vld [vmem:[%s13193_s23 + $0x13c8] sm:$0xf0] }
 0x288   : > { %7194 = vmatpush.bf16.msra.mxu3 %v9565_v36  ;;  %7207 = vmatpush.bf16.msra.mxu2 %v9949_v61  ;;  %v6904_v36 = vpop.f32.mrf.mxu3  ;;  %v9373_v61 = vor.u32 %v12275_v54, %v9370_v23  ;;  %v12335_v54 = vld [vmem:[%s13193_s23 + $0xc1c] sm:$0xf]  ;;  %v10717_v23 = vor.u32 %v12611_v51, %v10714_v12 }
 0x289   : > { %7163 = vmatmul.bf16.vlgmr.msrb.gmra.mxu2 %v13302_v6  ;;  %7221 = vmatpush.bf16.msra.mxu0 %v10285_v5  ;;  %v6905_v42 = vadd.f32 %v6904_v36, %v14564_v2  ;;  %v9325_v2 = vor.u32 %v12263_v31, %v9322_v38  ;;  %v12347_v5 = vld [vmem:[%s13193_s23 + $0xc7c] sm:$0xf]  ;;  %v11866_v38 = vld [vmem:[%s13193_s23 + $0x1de8] sm:$0xf0] }
 0x28a   : > { %v6943_v56 = vpop.f32.mrf.mxu2  ;;  %v12683_v3 = vld [vmem:[%s13193_s23 + $0x16fc] sm:$0xf] }
 0x28b   : > { %7183 = vmatpush.bf16.msrb.mxu1 %v9085_v63  ;;  %v10090_v63 = vld [vmem:[%s13193_s23 + $0x1008] sm:$0xf0]  ;;  %v12875_v12 = vld [vmem:[%s13193_s23 + $0x1cfc] sm:$0xf] }
 0x28c   : > { %7195 = vmatpush.bf16.msra.mxu3 %v9517_v62  ;;  %7208 = vmatpush.bf16.msra.mxu2 %v9901_v53  ;;  %v6918_v62 = vadd.f32 %v6917_v37, %v6905_v42  ;;  %v10141_v53 = vor.u32 %v12467_v43, %v10138_v41  ;;  %v11482_v37 = vld [vmem:[%s13193_s23 + $0x1ae8] sm:$0xf0]  ;;  %v12431_v43 = vld [vmem:[%s13193_s23 + $0xf1c] sm:$0xf] }
 0x28d   : > { %7222 = vmatpush.bf16.msra.mxu0 %v10237_v48  ;;  %v9994_v41 = vld [vmem:[%s13193_s23 + $0xf48] sm:$0xf0]  ;;  %v11485_v31 = vor.u32 %v12803_v24, %v11482_v37  ;;  %v12659_v24 = vld [vmem:[%s13193_s23 + $0x163c] sm:$0xf] }
 0x28e   : > { %v6931_v0 = vadd.f32 %v6930_v19, %v6918_v62  ;;  %v9610_v19 = vld [vmem:[%s13193_s23 + $0xc48] sm:$0xf0] }
 0x28f   : > { %7184 = vmatpush.bf16.msrb.mxu1 %v9037_v20  ;;  %v10093_v20 = vor.u32 %v12455_v13, %v10090_v63  ;;  %v11434_v62 = vld [vmem:[%s13193_s23 + $0x1a88] sm:$0xf0]  ;;  %v11053_v13 = vor.u32 %v12695_v59, %v11050_v49  ;;  %v12851_v59 = vld [vmem:[%s13193_s23 + $0x1c3c] sm:$0xf] }
 0x290   : > { %7196 = vmatpush.bf16.msra.mxu3 %v9469_v8  ;;  %7209 = vmatpush.bf16.msra.mxu2 %v9853_v46  ;;  %v9658_v8 = vld [vmem:[%s13193_s23 + $0xca8] sm:$0xf0]  ;;  %v6919_v46 = vpop.f32.mrf.mxu1  ;;  %v14640_v11 = vadd.f32 %v6943_v56, %v6931_v0  ;;  %v6906_v15 = vpop.f32.mrf.mxu3  ;;  %v12587_v56 = vld [vmem:[%s13193_s23 + $0x13fc] sm:$0xf]  ;;  %v11437_v63 = vor.u32 %v12791_v52, %v11434_v62 }
 0x291   : > { %7223 = vmatpush.bf16.msra.mxu0 %v10189_v30  ;;  %v9661_v48 = vor.u32 %v12347_v5, %v9658_v8  ;;  %v10666_v30 = vld [vmem:[%s13193_s23 + $0x1488] sm:$0xf0]  ;;  %v12887_v0 = vld [vmem:[%s13193_s23 + $0x1d5c] sm:$0xf] }
 0x292   : > { %v6945_v36 = vpop.f32.mrf.mxu2  ;;  %v10669_v47 = vor.u32 %v12599_v28, %v10666_v30  ;;  %v12779_v5 = vld [vmem:[%s13193_s23 + $0x19fc] sm:$0xf]  ;;  %v11386_v8 = vld [vmem:[%s13193_s23 + $0x1a28] sm:$0xf0]  ;;  %v11821_v9 = vor.u32 %v12887_v0, %v11818_v39 }
 0x293   : > { %7185 = vmatpush.bf16.msrb.mxu1 %v8989_v22  ;;  %v12707_v22 = vld [vmem:[%s13193_s23 + $0x17bc] sm:$0xf]  ;;  %v11389_v51 = vor.u32 %v12779_v5, %v11386_v8  ;;  %v10906_v28 = vld [vmem:[%s13193_s23 + $0x1668] sm:$0xf0] }
 0x294   : > { %7197 = vmatpush.bf16.msra.mxu3 %v9421_v16  ;;  %7210 = vmatpush.bf16.msra.mxu2 %v9805_v17  ;;  %v10042_v16 = vld [vmem:[%s13193_s23 + $0xfa8] sm:$0xf0]  ;;  %v12239_v17 = vld [vmem:[%s13193_s23 + $0x91c] sm:$0xf]  ;;  %v11101_v42 = vor.u32 %v12707_v22, %v11098_v25 }
 0x295   : > { %7224 = vmatpush.bf16.msra.mxu0 %v10141_v53  ;;  %v10045_v27 = vor.u32 %v12443_v14, %v10042_v16  ;;  %v9997_v53 = vor.u32 %v12431_v43, %v9994_v41  ;;  %v12575_v46 = vld [vmem:[%s13193_s23 + $0x139c] sm:$0xf]  ;;  %v11770_v14 = vld [vmem:[%s13193_s23 + $0x1d28] sm:$0xf0] }
 0x296   : > { %v12671_v15 = vld [vmem:[%s13193_s23 + $0x169c] sm:$0xf]  ;;  %v11722_v25 = vld [vmem:[%s13193_s23 + $0x1cc8] sm:$0xf0] }
 0x297   : > { %7186 = vmatpush.bf16.msrb.mxu1 %v8941_v45  ;;  %v12899_v45 = vld [vmem:[%s13193_s23 + $0x1dbc] sm:$0xf]  ;;  %v11290_v36 = vld [vmem:[%s13193_s23 + $0x1968] sm:$0xf0] }
 0x298   : > { %7198 = vmatpush.bf16.msra.mxu3 %v9373_v61  ;;  %7211 = vmatpush.bf16.msra.mxu2 %v9757_v60  ;;  %v9229_v61 = vor.u32 %v12239_v17, %v9226_v18  ;;  %v9613_v60 = vor.u32 %v12335_v54, %v9610_v19  ;;  %v12767_v16 = vld [vmem:[%s13193_s23 + $0x199c] sm:$0xf]  ;;  %v11338_v17 = vld [vmem:[%s13193_s23 + $0x19c8] sm:$0xf0]  ;;  %v11773_v54 = vor.u32 %v12875_v12, %v11770_v14 }
 0x299   : > { %7225 = vmatpush.bf16.msra.mxu0 %v10093_v20  ;;  %v11005_v20 = vor.u32 %v12683_v3, %v11002_v4  ;;  %v12563_v18 = vld [vmem:[%s13193_s23 + $0x133c] sm:$0xf]  ;;  %v11341_v22 = vor.u32 %v12767_v16, %v11338_v17  ;;  %v10858_v62 = vld [vmem:[%s13193_s23 + $0x1608] sm:$0xf0] }
 0x29a   : > { %v12755_v30 = vld [vmem:[%s13193_s23 + $0x193c] sm:$0xf]  ;;  %v11626_v4 = vld [vmem:[%s13193_s23 + $0x1c08] sm:$0xf0] }
 0x29b   : > { %7187 = vmatpush.bf16.msrb.mxu1 %v8893_v50  ;;  %v12647_v49 = vld [vmem:[%s13193_s23 + $0x15dc] sm:$0xf]  ;;  %v10378_v14 = vld [vmem:[%s13193_s23 + $0x1248] sm:$0xf0] }
 0x29c   : > { %7199 = vmatpush.bf16.msra.mxu3 %v9325_v2  ;;  %7212 = vmatpush.bf16.msra.mxu2 %v9709_v21  ;;  %v10618_v2 = vld [vmem:[%s13193_s23 + $0x1428] sm:$0xf0]  ;;  %v11869_v21 = vor.u32 %v12899_v45, %v11866_v38  ;;  %v10909_v45 = vor.u32 %v12659_v24, %v10906_v28  ;;  %v11293_v38 = vor.u32 %v12755_v30, %v11290_v36  ;;  %v12635_v5 = vld [vmem:[%s13193_s23 + $0x157c] sm:$0xf]  ;;  %v8416_v36 = vld [vmem:[%s13193_s23 + $0x2c0] sm:$0xf] }
 0x29d   : > { %7226 = vmatpush.bf16.msra.mxu0 %v10045_v27  ;;  %v10621_v50 = vor.u32 %v12587_v56, %v10618_v2  ;;  %v11242_v56 = vld [vmem:[%s13193_s23 + $0x1908] sm:$0xf0]  ;;  %v10861_v39 = vor.u32 %v12647_v49, %v10858_v62  ;;  %v12527_v12 = vld [vmem:[%s13193_s23 + $0x121c] sm:$0xf] }
 0x29e   : > { %v10381_v24 = vor.u32 %v12527_v12, %v10378_v14  ;;  %v11146_v28 = vld [vmem:[%s13193_s23 + $0x1848] sm:$0xf0]  ;;  %v9520_v12 = vld [vmem:[%s13193_s23 + $0xb60] sm:$0xf]  ;;  %v12318_v14 = vld [vmem:[%s13193_s23 + $0xb8c] sm:$0xf0] }
 0x29f   : > { %7188 = vmatpush.bf16.msrb.mxu1 %v8845_v1  ;;  %v10522_v1 = vld [vmem:[%s13193_s23 + $0x1368] sm:$0xf0]  ;;  %v6969_v27 = vpop.f32.mrf.mxu1  ;;  %v6982_v43 = vpop.f32.mrf.mxu0 }
 0x2a0   : > { %7200 = vmatpush.bf16.msra.mxu3 %v9277_v10  ;;  %7213 = vmatpush.bf16.msra.mxu2 %v9661_v48  ;;  %v10573_v10 = vor.u32 %v12575_v46, %v10570_v29  ;;  %v10954_v48 = vld [vmem:[%s13193_s23 + $0x16c8] sm:$0xf0]  ;;  %v10525_v37 = vor.u32 %v12563_v18, %v10522_v1  ;;  %v12731_v29 = vld [vmem:[%s13193_s23 + $0x187c] sm:$0xf] }
 0x2a1   : > { %7227 = vmatpush.bf16.msra.mxu0 %v9997_v53  ;;  %v10957_v19 = vor.u32 %v12671_v15, %v10954_v48  ;;  %v12743_v53 = vld [vmem:[%s13193_s23 + $0x18dc] sm:$0xf]  ;;  %v10810_v46 = vld [vmem:[%s13193_s23 + $0x15a8] sm:$0xf0] }
 0x2a2   : > { %7189 = vmatmul.bf16.vlgmr.msrb.gmra.mxu1 %v13288_v55  ;;  %v11245_v3 = vor.u32 %v12743_v53, %v11242_v56  ;;  %v12911_v18 = vld [vmem:[%s13193_s23 + $0x1e1c] sm:$0xf]  ;;  %v11914_v1 = vld [vmem:[%s13193_s23 + $0x1e48] sm:$0xf0]  ;;  %v9568_v56 = vld [vmem:[%s13193_s23 + $0xbc0] sm:$0xf] }
 0x2a3   : > { %7233 = vmatpush.bf16.msra.mxu1 %v10717_v23  ;;  %v12863_v23 = vld [vmem:[%s13193_s23 + $0x1c9c] sm:$0xf]  ;;  %v11917_v30 = vor.u32 %v12911_v18, %v11914_v1  ;;  %v11530_v49 = vld [vmem:[%s13193_s23 + $0x1b48] sm:$0xf0]  ;;  %v12114_v18 = vld [vmem:[%s13193_s23 + $0x52c] sm:$0xf0] }
 0x2a4   : > { %7201 = vmatpush.bf16.msra.mxu3 %v9229_v61  ;;  %7214 = vmatpush.bf16.msra.mxu2 %v9613_v60  ;;  %v12551_v61 = vld [vmem:[%s13193_s23 + $0x12dc] sm:$0xf]  ;;  %v10474_v60 = vld [vmem:[%s13193_s23 + $0x1308] sm:$0xf0]  ;;  %v9088_v1 = vld [vmem:[%s13193_s23 + $0x800] sm:$0xf] }
 0x2a5   : > { %7272 = vmatpush.bf16.msrb.mxu0 %v11869_v21  ;;  %v10477_v52 = vor.u32 %v12551_v61, %v10474_v60  ;;  %v12539_v21 = vld [vmem:[%s13193_s23 + $0x127c] sm:$0xf]  ;;  %v12042_v61 = vld [vmem:[%s13193_s23 + $0x2ec] sm:$0xf0]  ;;  %v8800_v60 = vld [vmem:[%s13193_s23 + $0x5c0] sm:$0xf] }
 0x2a6   : > { %7228 = vmatmul.bf16.vlgmr.msra.gmra.mxu0 %v13375_v40  ;;  %v6956_v41 = vpop.f32.mrf.mxu3  ;;  %v8417_v53 = vor.u32 %v12042_v61, %v8416_v36  ;;  %v8272_v61 = vld [vmem:[%s13193_s23 + $0x1a0] sm:$0xf] }
 0x2a7   : > { %7234 = vmatpush.bf16.msra.mxu1 %v10669_v47  ;;  %7202 = vmatmul.bf16.vlgmr.msra.gmra.mxu3 %v13293_v57  ;;  %v11674_v47 = vld [vmem:[%s13193_s23 + $0x1c68] sm:$0xf0]  ;;  %v6984_v15 = vpop.f32.mrf.mxu0 }
 0x2a8   : > { %7246 = vmatpush.bf16.msrb.mxu3 %v11101_v42  ;;  %7259 = vmatpush.bf16.msrb.mxu2 %v11485_v31  ;;  %v11725_v42 = vor.u32 %v12863_v23, %v11722_v25  ;;  %v6957_v31 = vadd.f32 %v6956_v41, %v14640_v11  ;;  %v11677_v11 = vor.u32 %v12851_v59, %v11674_v47  ;;  %v11578_v23 = vld [vmem:[%s13193_s23 + $0x1ba8] sm:$0xf0]  ;;  %v12623_v25 = vld [vmem:[%s13193_s23 + $0x151c] sm:$0xf]  ;;  %v12138_v41 = vld [vmem:[%s13193_s23 + $0x5ec] sm:$0xf0] }
 0x2a9   : > { %7215 = vmatmul.bf16.vlgmr.msra.gmra.mxu2 %v13368_v34  ;;  %7273 = vmatpush.bf16.msrb.mxu0 %v11821_v9  ;;  %v11194_v9 = vld [vmem:[%s13193_s23 + $0x18a8] sm:$0xf0]  ;;  %v12815_v47 = vld [vmem:[%s13193_s23 + $0x1b1c] sm:$0xf]  ;;  %v8320_v15 = vld [vmem:[%s13193_s23 + $0x200] sm:$0xf] }
 0x2aa   : > { %v6970_v2 = vadd.f32 %v6969_v27, %v6957_v31  ;;  %v12719_v27 = vld [vmem:[%s13193_s23 + $0x181c] sm:$0xf]  ;;  %v12234_v31 = vld [vmem:[%s13193_s23 + $0x8ec] sm:$0xf0] }
 0x2ab   : > { %7235 = vmatpush.bf16.msra.mxu1 %v10621_v50  ;;  %v12839_v50 = vld [vmem:[%s13193_s23 + $0x1bdc] sm:$0xf]  ;;  %v11149_v62 = vor.u32 %v12719_v27, %v11146_v28 }
 0x2ac   : > { %7247 = vmatpush.bf16.msrb.mxu3 %v11053_v13  ;;  %7260 = vmatpush.bf16.msrb.mxu2 %v11437_v63  ;;  %v10426_v13 = vld [vmem:[%s13193_s23 + $0x12a8] sm:$0xf0]  ;;  %v6995_v63 = vpop.f32.mrf.mxu2  ;;  %v6983_v0 = vadd.f32 %v6982_v43, %v6970_v2  ;;  %v11629_v17 = vor.u32 %v12839_v50, %v11626_v4  ;;  %v12330_v2 = vld [vmem:[%s13193_s23 + $0xbec] sm:$0xf0]  ;;  %v9136_v4 = vld [vmem:[%s13193_s23 + $0x860] sm:$0xf] }
 0x2ad   : > { %7274 = vmatpush.bf16.msrb.mxu0 %v11773_v54  ;;  %v10429_v8 = vor.u32 %v12539_v21, %v10426_v13  ;;  %v10813_v54 = vor.u32 %v12635_v5, %v10810_v46  ;;  %v8801_v21 = vor.u32 %v12138_v41, %v8800_v60  ;;  %v12126_v50 = vld [vmem:[%s13193_s23 + $0x58c] sm:$0xf0] }
 0x2ae   : > { %v6958_v16 = vpop.f32.mrf.mxu3  ;;  %v12222_v5 = vld [vmem:[%s13193_s23 + $0x88c] sm:$0xf0] }
 0x2af   : > { %7236 = vmatpush.bf16.msra.mxu1 %v10573_v10  ;;  %v14712_v10 = vld [vmem:[%s13199_s25 + $0x8] sm:$0xff]  ;;  %v9137_v16 = vor.u32 %v12222_v5, %v9136_v4  ;;  %v12006_v60 = vld [vmem:[%s13193_s23 + $0x1cc] sm:$0xf0] }
 0x2b0   : > { %7248 = vmatpush.bf16.msrb.mxu3 %v11005_v20  ;;  %7261 = vmatpush.bf16.msrb.mxu2 %v11389_v51  ;;  %v6971_v20 = vpop.f32.mrf.mxu1  ;;  %v6996_v51 = vadd.f32 %v6995_v63, %v6983_v0  ;;  %v7886_v48 = vperm.slane %v14712_v10, 1  ;;  %v7887_v59 = vperm.slane %v14712_v10, 3  ;;  %v12030_v63 = vld [vmem:[%s13193_s23 + $0x28c] sm:$0xf0]  ;;  %v8752_v0 = vld [vmem:[%s13193_s23 + $0x560] sm:$0xf] }
 0x2b1   : > { %7275 = vmatpush.bf16.msrb.mxu0 %v11725_v42  ;;  %v9184_v42 = vld [vmem:[%s13193_s23 + $0x8c0] sm:$0xf]  ;;  %v1222_v27 = vperm.slane %v14712_v10, 4  ;;  %v12102_v41 = vld [vmem:[%s13193_s23 + $0x4cc] sm:$0xf0] }
 0x2b2   : > { %v9185_v13 = vor.u32 %v12234_v31, %v9184_v42  ;;  %v9040_v42 = vld [vmem:[%s13193_s23 + $0x7a0] sm:$0xf]  ;;  %v12198_v31 = vld [vmem:[%s13193_s23 + $0x7cc] sm:$0xf0] }
 0x2b3   : > { %7237 = vmatpush.bf16.msra.mxu1 %v10525_v37  ;;  %v10762_v37 = vld [vmem:[%s13193_s23 + $0x1548] sm:$0xf0]  ;;  %v9376_v4 = vld [vmem:[%s13193_s23 + $0xa40] sm:$0xf]  ;;  %v12282_v5 = vld [vmem:[%s13193_s23 + $0xa6c] sm:$0xf0] }
 0x2b4   : > { %7249 = vmatpush.bf16.msrb.mxu3 %v10957_v19  ;;  %7262 = vmatpush.bf16.msrb.mxu2 %v11341_v22  ;;  %v11197_v19 = vor.u32 %v12731_v29, %v11194_v9  ;;  %v12827_v22 = vld [vmem:[%s13193_s23 + $0x1b7c] sm:$0xf]  ;;  %v7911_v29 = vperm.slane %v7887_v59, 1  ;;  %v9569_v9 = vor.u32 %v12330_v2, %v9568_v56  ;;  %v8273_v59 = vor.u32 %v12006_v60, %v8272_v61  ;;  %v8224_v56 = vld [vmem:[%s13193_s23 + $0x140] sm:$0xf] }
 0x2b5   : > { %7276 = vmatpush.bf16.msrb.mxu0 %v11677_v11  ;;  %v11581_v43 = vor.u32 %v12827_v22, %v11578_v23  ;;  %v8368_v11 = vld [vmem:[%s13193_s23 + $0x260] sm:$0xf]  ;;  %v9521_v23 = vor.u32 %v12318_v14, %v9520_v12  ;;  %v11994_v2 = vld [vmem:[%s13193_s23 + $0x16c] sm:$0xf0] }
 0x2b6   : > { %v8369_v20 = vor.u32 %v12030_v63, %v8368_v11  ;;  %v12090_v11 = vld [vmem:[%s13193_s23 + $0x46c] sm:$0xf0]  ;;  %v8992_v63 = vld [vmem:[%s13193_s23 + $0x740] sm:$0xf] }
 0x2b7   : > { %7238 = vmatpush.bf16.msra.mxu1 %v10477_v52  ;;  %v7910_v52 = vperm.slane %v7886_v48, 1  ;;  %v8753_v48 = vor.u32 %v12126_v50, %v8752_v0  ;;  %v12186_v0 = vld [vmem:[%s13193_s23 + $0x76c] sm:$0xf0]  ;;  %v8225_v50 = vor.u32 %v11994_v2, %v8224_v56  ;;  %v8560_v12 = vld [vmem:[%s13193_s23 + $0x3e0] sm:$0xf] }
 0x2b8   : > { %7250 = vmatpush.bf16.msrb.mxu3 %v10909_v45  ;;  %7263 = vmatpush.bf16.msrb.mxu2 %v11293_v38  ;;  %v6997_v45 = vpop.f32.mrf.mxu2  ;;  %v10765_v38 = vor.u32 %v12623_v25, %v10762_v37  ;;  %v12306_v37 = vld [vmem:[%s13193_s23 + $0xb2c] sm:$0xf0]  ;;  %v9952_v2 = vld [vmem:[%s13193_s23 + $0xec0] sm:$0xf] }
 0x2b9   : > { %7277 = vmatpush.bf16.msrb.mxu0 %v11629_v17  ;;  %v12018_v17 = vld [vmem:[%s13193_s23 + $0x22c] sm:$0xf0] }
 0x2ba   : > { %v8321_v25 = vor.u32 %v12018_v17, %v8320_v15  ;;  %v12078_v14 = vld [vmem:[%s13193_s23 + $0x40c] sm:$0xf0]  ;;  %v8944_v15 = vld [vmem:[%s13193_s23 + $0x6e0] sm:$0xf] }
 0x2bb   : > { %7239 = vmatpush.bf16.msra.mxu1 %v10429_v8  ;;  %v7874_v8 = vmax.f32 %v14559_v58, 0.0  ;;  %v12150_v56 = vld [vmem:[%s13193_s23 + $0x64c] sm:$0xf0] }
 0x2bc   : > { %7251 = vmatpush.bf16.msrb.mxu3 %v10861_v39  ;;  %7264 = vmatpush.bf16.msrb.mxu2 %v11245_v3  ;;  %v7008_v39 = vpop.f32.mrf.mxu3  ;;  %v11533_v3 = vor.u32 %v12815_v47, %v11530_v49  ;;  %v9424_v47 = vld [vmem:[%s13193_s23 + $0xaa0] sm:$0xf]  ;;  %v12294_v49 = vld [vmem:[%s13193_s23 + $0xacc] sm:$0xf0] }
 0x2bd   : > { %7278 = vmatpush.bf16.msrb.mxu0 %v11581_v43  ;;  %v7009_v46 = vadd.f32 %v7008_v39, %v6996_v51  ;;  %v8704_v51 = vld [vmem:[%s13193_s23 + $0x500] sm:$0xf] }
 0x2be   : > { %v8656_v43 = vld [vmem:[%s13193_s23 + $0x4a0] sm:$0xf] }
 0x2bf   : > { %7240 = vmatpush.bf16.msra.mxu1 %v10381_v24  ;;  %v7875_v58 = vmax.f32 %v7009_v46, 0.0  ;;  %v9472_v24 = vld [vmem:[%s13193_s23 + $0xb00] sm:$0xf]  ;;  %v7047_v39 = vpop.f32.mrf.mxu0 }
 0x2c0   : > { %7252 = vmatpush.bf16.msrb.mxu3 %v10813_v54  ;;  %7265 = vmatpush.bf16.msrb.mxu2 %v11197_v19  ;;  %v12210_v54 = vld [vmem:[%s13193_s23 + $0x82c] sm:$0xf0]  ;;  %v7922_v19 = vmul.f32 %v7910_v52, %v7874_v8  ;;  %v1246_v52 = vperm.slane %v1222_v27, 0 }
 0x2c1   : > { %7279 = vmatpush.bf16.msrb.mxu0 %v11533_v3  ;;  %v7923_v22 = vmul.f32 %v7911_v29, %v7875_v58  ;;  %v9089_v36 = vor.u32 %v12210_v54, %v9088_v1  ;;  %v9425_v3 = vor.u32 %v12294_v49, %v9424_v47  ;;  %v8993_v29 = vor.u32 %v12186_v0, %v8992_v63  ;;  %v12174_v58 = vld [vmem:[%s13193_s23 + $0x70c] sm:$0xf0]  ;;  %v10720_v0 = vld [vmem:[%s13193_s23 + $0x14c0] sm:$0xf] }
 0x2c2   : > { %7241 = vmatmul.bf16.vlgmr.msra.gmra.mxu1 %v13370_v35  ;;  %v12066_v27 = vld [vmem:[%s13193_s23 + $0x3ac] sm:$0xf0] }
 0x2c3   : > { %7292 = vmatpush.bf16.msrb.mxu1 %v11917_v30  ;;  %v14755_v28 = vadd.f32 %v7923_v22, %v7922_v19  ;;  %v8705_v30 = vor.u32 %v12114_v18, %v8704_v51  ;;  %v9328_v51 = vld [vmem:[%s13193_s23 + $0x9e0] sm:$0xf]  ;;  %v12270_v18 = vld [vmem:[%s13193_s23 + $0xa0c] sm:$0xf0]  ;;  %v8561_v19 = vor.u32 %v12078_v14, %v8560_v12  ;;  %v8945_v22 = vor.u32 %v12174_v58, %v8944_v15 }
 0x2c4   : > { %7253 = vmatpush.bf16.msrb.mxu3 %v10765_v38  ;;  %7266 = vmatpush.bf16.msrb.mxu2 %v11149_v62  ;;  %v7010_v45 = vpop.f32.mrf.mxu3  ;;  %v9473_v38 = vor.u32 %v12306_v37, %v9472_v24  ;;  %v8657_v62 = vor.u32 %v12102_v41, %v8656_v43  ;;  %v8512_v24 = vld [vmem:[%s13193_s23 + $0x380] sm:$0xf]  ;;  %v9329_v43 = vor.u32 %v12270_v18, %v9328_v51  ;;  %v12522_v63 = vld [vmem:[%s13193_s23 + $0x11ec] sm:$0xf0] }
 0x2c5   : > { %7337 = vmatpush.bf16.msra.mxu0 %v9569_v9  ;;  %v8176_v9 = vld [vmem:[%s13193_s23 + $0xe0] sm:$0xf]  ;;  %v8513_v47 = vor.u32 %v12066_v27, %v8512_v24  ;;  %v12510_v51 = vld [vmem:[%s13193_s23 + $0x118c] sm:$0xf0] }
 0x2c6   : > { %7280 = vmatmul.bf16.vlgmr.msrb.gmra.mxu0 %v13461_v33  ;;  %v9280_v41 = vld [vmem:[%s13193_s23 + $0x980] sm:$0xf]  ;;  %v12402_v27 = vld [vmem:[%s13193_s23 + $0xe2c] sm:$0xf0] }
 0x2c7   : > { %7311 = vmatpush.bf16.msra.mxu1 %v8801_v21  ;;  %7254 = vmatmul.bf16.vlgmr.msrb.gmra.mxu3 %v13379_v44  ;;  %v8608_v21 = vld [vmem:[%s13193_s23 + $0x440] sm:$0xf]  ;;  %v7049_v61 = vpop.f32.mrf.mxu0 }
 0x2c8   : > { %7298 = vmatpush.bf16.msra.mxu3 %v8417_v53  ;;  %7324 = vmatpush.bf16.msra.mxu2 %v9185_v13  ;;  %v9041_v53 = vor.u32 %v12198_v31, %v9040_v42  ;;  %v7021_v13 = vpop.f32.mrf.mxu1  ;;  %v8609_v46 = vor.u32 %v12090_v11, %v8608_v21  ;;  %v12258_v31 = vld [vmem:[%s13193_s23 + $0x9ac] sm:$0xf0]  ;;  %v8080_v45 = vld [vmem:[%s13193_s23 + $0x20] sm:$0xf] }
 0x2c9   : > { %7267 = vmatmul.bf16.vlgmr.msrb.gmra.mxu2 %v13456_v26  ;;  %7338 = vmatpush.bf16.msra.mxu0 %v9521_v23  ;;  %v7022_v8 = vadd.f32 %v7021_v13, %v1246_v52  ;;  %v8128_v23 = vld [vmem:[%s13193_s23 + $0x80] sm:$0xf]  ;;  %v12426_v21 = vld [vmem:[%s13193_s23 + $0xeec] sm:$0xf0]  ;;  %v9281_v13 = vor.u32 %v12258_v31, %v9280_v41 }
 0x2ca   : > { %v8464_v52 = vld [vmem:[%s13193_s23 + $0x320] sm:$0xf]  ;;  %v9953_v12 = vor.u32 %v12426_v21, %v9952_v2 }
 0x2cb   : > { %7312 = vmatpush.bf16.msra.mxu1 %v8753_v48  ;;  %v9377_v48 = vor.u32 %v12282_v5, %v9376_v4  ;;  %v10336_v11 = vld [vmem:[%s13193_s23 + $0x11c0] sm:$0xf]  ;;  %v12246_v5 = vld [vmem:[%s13193_s23 + $0x94c] sm:$0xf0] }
 0x2cc   : > { %7299 = vmatpush.bf16.msra.mxu3 %v8369_v20  ;;  %7325 = vmatpush.bf16.msra.mxu2 %v9137_v16  ;;  %v11982_v20 = vld [vmem:[%s13193_s23 + $0x10c] sm:$0xf0]  ;;  %v7034_v16 = vpop.f32.mrf.mxu3  ;;  %v7060_v54 = vpop.f32.mrf.mxu2  ;;  %v9232_v4 = vld [vmem:[%s13193_s23 + $0x920] sm:$0xf]  ;;  %v10337_v14 = vor.u32 %v12522_v63, %v10336_v11 }
 0x2cd   : > { %7339 = vmatpush.bf16.msra.mxu0 %v9473_v38  ;;  %v8177_v17 = vor.u32 %v11982_v20, %v8176_v9  ;;  %v7035_v1 = vadd.f32 %v7034_v16, %v7022_v8  ;;  %v11958_v38 = vld [vmem:[%s13193_s23 + $0x4c] sm:$0xf0]  ;;  %v11104_v9 = vld [vmem:[%s13193_s23 + $0x17c0] sm:$0xf] }
 0x2ce   : > { %v12714_v20 = vld [vmem:[%s13193_s23 + $0x17ec] sm:$0xf0]  ;;  %v9904_v15 = vld [vmem:[%s13193_s23 + $0xe60] sm:$0xf] }
 0x2cf   : > { %7313 = vmatpush.bf16.msra.mxu1 %v8705_v30  ;;  %v8896_v30 = vld [vmem:[%s13193_s23 + $0x680] sm:$0xf]  ;;  %v7048_v60 = vadd.f32 %v7047_v39, %v7035_v1  ;;  %v12414_v16 = vld [vmem:[%s13193_s23 + $0xe8c] sm:$0xf0]  ;;  %v11105_v18 = vor.u32 %v12714_v20, %v11104_v9 }
 0x2d0   : > { %7300 = vmatpush.bf16.msra.mxu3 %v8321_v25  ;;  %7326 = vmatpush.bf16.msra.mxu2 %v9089_v36  ;;  %v11970_v25 = vld [vmem:[%s13193_s23 + $0xac] sm:$0xf0]  ;;  %v7023_v37 = vpop.f32.mrf.mxu1  ;;  %v10672_v1 = vld [vmem:[%s13193_s23 + $0x1460] sm:$0xf] }
 0x2d1   : > { %7340 = vmatpush.bf16.msra.mxu0 %v9425_v3  ;;  %v12162_v36 = vld [vmem:[%s13193_s23 + $0x6ac] sm:$0xf0]  ;;  %v8129_v42 = vor.u32 %v11970_v25, %v8128_v23  ;;  %v8081_v3 = vor.u32 %v11958_v38, %v8080_v45  ;;  %v9905_v23 = vor.u32 %v12414_v16, %v9904_v15  ;;  %v9856_v24 = vld [vmem:[%s13193_s23 + $0xe00] sm:$0xf] }
 0x2d2   : > { %11941 = vmatmul.msk.bf16.vlgmr.msrb.gmra.mxu1 %vm6150_vm0, %v13418_v32  ;;  %v8897_v49 = vor.u32 %v12162_v36, %v8896_v30  ;;  %v10240_v30 = vld [vmem:[%s13193_s23 + $0x1100] sm:$0xf]  ;;  %v12498_v36 = vld [vmem:[%s13193_s23 + $0x112c] sm:$0xf0]  ;;  %v9857_v31 = vor.u32 %v12402_v27, %v9856_v24 }
 0x2d3   : > { %7314 = vmatpush.bf16.msra.mxu1 %v8657_v62  ;;  %v12054_v62 = vld [vmem:[%s13193_s23 + $0x34c] sm:$0xf0]  ;;  %v11008_v41 = vld [vmem:[%s13193_s23 + $0x1700] sm:$0xf]  ;;  %v10241_v45 = vor.u32 %v12498_v36, %v10240_v30 }
 0x2d4   : > { %7301 = vmatpush.bf16.msra.mxu3 %v8273_v59  ;;  %7327 = vmatpush.bf16.msra.mxu2 %v9041_v53  ;;  %v14794_v59 = vadd.f32 %v7060_v54, %v7048_v60  ;;  %v8848_v53 = vld [vmem:[%s13193_s23 + $0x620] sm:$0xf]  ;;  %v7036_v39 = vpop.f32.mrf.mxu3  ;;  %v7062_v8 = vpop.f32.mrf.mxu2  ;;  %v12606_v54 = vld [vmem:[%s13193_s23 + $0x148c] sm:$0xf0] }
 0x2d5   : > { %7341 = vmatpush.bf16.msra.mxu0 %v9377_v48  ;;  %v9233_v48 = vor.u32 %v12246_v5, %v9232_v4  ;;  %v10673_v37 = vor.u32 %v12606_v54, %v10672_v1  ;;  %v10624_v60 = vld [vmem:[%s13193_s23 + $0x1400] sm:$0xf]  ;;  %v12678_v63 = vld [vmem:[%s13193_s23 + $0x16cc] sm:$0xf0] }
 0x2d6   : > { %v9808_v38 = vld [vmem:[%s13193_s23 + $0xda0] sm:$0xf]  ;;  %v12378_v4 = vld [vmem:[%s13193_s23 + $0xd6c] sm:$0xf0] }
 0x2d7   : > { %7315 = vmatpush.bf16.msra.mxu1 %v8609_v46  ;;  %v8465_v46 = vor.u32 %v12054_v62, %v8464_v52  ;;  %v12390_v52 = vld [vmem:[%s13193_s23 + $0xdcc] sm:$0xf0]  ;;  %v10192_v62 = vld [vmem:[%s13193_s23 + $0x10a0] sm:$0xf] }
 0x2d8   : > { %7302 = vmatpush.bf16.msra.mxu3 %v8225_v50  ;;  %7328 = vmatpush.bf16.msra.mxu2 %v8993_v29  ;;  %v12618_v50 = vld [vmem:[%s13193_s23 + $0x14ec] sm:$0xf0]  ;;  %v8849_v29 = vor.u32 %v12150_v56, %v8848_v53  ;;  %v10576_v21 = vld [vmem:[%s13193_s23 + $0x13a0] sm:$0xf] }
 0x2d9   : > { %7342 = vmatpush.bf16.msra.mxu0 %v9329_v43  ;;  %v10721_v58 = vor.u32 %v12618_v50, %v10720_v0  ;;  %v12594_v43 = vld [vmem:[%s13193_s23 + $0x142c] sm:$0xf0]  ;;  %v10960_v11 = vld [vmem:[%s13193_s23 + $0x16a0] sm:$0xf]  ;;  %v9809_v0 = vor.u32 %v12390_v52, %v9808_v38 }
 0x2da   : > { %v12486_v53 = vld [vmem:[%s13193_s23 + $0x10cc] sm:$0xf0]  ;;  %v10144_v5 = vld [vmem:[%s13193_s23 + $0x1040] sm:$0xf] }
 0x2db   : > { %7316 = vmatpush.bf16.msra.mxu1 %v8561_v19  ;;  %v11056_v19 = vld [vmem:[%s13193_s23 + $0x1760] sm:$0xf]  ;;  %v10193_v39 = vor.u32 %v12486_v53, %v10192_v62  ;;  %v12570_v9 = vld [vmem:[%s13193_s23 + $0x136c] sm:$0xf0] }
 0x2dc   : > { %7303 = vmatpush.bf16.msra.mxu3 %v8177_v17  ;;  %7329 = vmatpush.bf16.msra.mxu2 %v8945_v22  ;;  %v10288_v17 = vld [vmem:[%s13193_s23 + $0x1160] sm:$0xf]  ;;  %v12702_v22 = vld [vmem:[%s13193_s23 + $0x178c] sm:$0xf0] }
 0x2dd   : > { %7343 = vmatpush.bf16.msra.mxu0 %v9281_v13  ;;  %v10289_v25 = vor.u32 %v12510_v51, %v10288_v17  ;;  %v11057_v61 = vor.u32 %v12702_v22, %v11056_v19  ;;  %v12582_v13 = vld [vmem:[%s13193_s23 + $0x13cc] sm:$0xf0]  ;;  %v10912_v20 = vld [vmem:[%s13193_s23 + $0x1640] sm:$0xf] }
 0x2de   : > { %v10577_v50 = vor.u32 %v12582_v13, %v10576_v21  ;;  %v12366_v16 = vld [vmem:[%s13193_s23 + $0xd0c] sm:$0xf0]  ;;  %v10096_v17 = vld [vmem:[%s13193_s23 + $0xfe0] sm:$0xf] }
 0x2df   : > { %7317 = vmatpush.bf16.msra.mxu1 %v8513_v47  ;;  %v7073_v47 = vpop.f32.mrf.mxu1  ;;  %v7099_v8 = vpop.f32.mrf.mxu0  ;;  %v12462_v51 = vld [vmem:[%s13193_s23 + $0x100c] sm:$0xf0]  ;;  %v10480_v19 = vld [vmem:[%s13193_s23 + $0x12e0] sm:$0xf] }
 0x2e0   : > { %7304 = vmatpush.bf16.msra.mxu3 %v8129_v42  ;;  %7330 = vmatpush.bf16.msra.mxu2 %v8897_v49  ;;  %v12690_v42 = vld [vmem:[%s13193_s23 + $0x172c] sm:$0xf0]  ;;  %v10625_v49 = vor.u32 %v12594_v43, %v10624_v60  ;;  %v7074_v56 = vadd.f32 %v7073_v47, %v14794_v59  ;;  %v10864_v24 = vld [vmem:[%s13193_s23 + $0x15e0] sm:$0xf]  ;;  %v10097_v30 = vor.u32 %v12462_v51, %v10096_v17  ;;  %v8418_v17 = vld [vmem:[%s13193_s23 + $0x2f0] sm:$0xf0] }
 0x2e1   : > { %7344 = vmatpush.bf16.msra.mxu0 %v9233_v48  ;;  %v11009_v2 = vor.u32 %v12690_v42, %v11008_v41  ;;  %v12474_v59 = vld [vmem:[%s13193_s23 + $0x106c] sm:$0xf0]  ;;  %v9664_v36 = vld [vmem:[%s13193_s23 + $0xc80] sm:$0xf]  ;;  %v12132_v51 = vld [vmem:[%s13193_s23 + $0x5c4] sm:$0xf] }
 0x2e2   : > { %v10145_v15 = vor.u32 %v12474_v59, %v10144_v5  ;;  %v12558_v22 = vld [vmem:[%s13193_s23 + $0x130c] sm:$0xf0]  ;;  %v10048_v41 = vld [vmem:[%s13193_s23 + $0xf80] sm:$0xf] }
 0x2e3   : > { %7318 = vmatpush.bf16.msra.mxu1 %v8465_v46  ;;  %v10961_v46 = vor.u32 %v12678_v63, %v10960_v11  ;;  %v12354_v43 = vld [vmem:[%s13193_s23 + $0xcac] sm:$0xf0]  ;;  %v10432_v38 = vld [vmem:[%s13193_s23 + $0x1280] sm:$0xf] }
 0x2e4   : > { %7305 = vmatpush.bf16.msra.mxu3 %v8081_v3  ;;  %7331 = vmatpush.bf16.msra.mxu2 %v8849_v29  ;;  %v9760_v3 = vld [vmem:[%s13193_s23 + $0xd40] sm:$0xf]  ;;  %v12450_v42 = vld [vmem:[%s13193_s23 + $0xfac] sm:$0xf0]  ;;  %v9665_v53 = vor.u32 %v12354_v43, %v9664_v36  ;;  %v12120_v43 = vld [vmem:[%s13193_s23 + $0x564] sm:$0xf] }
 0x2e5   : > { %7389 = vmatpush.bf16.msrb.mxu0 %v11105_v18  ;;  %v10528_v29 = vld [vmem:[%s13193_s23 + $0x1340] sm:$0xf]  ;;  %v12546_v47 = vld [vmem:[%s13193_s23 + $0x12ac] sm:$0xf0] }
 0x2e6   : > { %7319 = vmatmul.bf16.vlgmr.msra.gmra.mxu1 %v13304_v7  ;;  %7345 = vmatmul.bf16.vlgmr.msra.gmra.mxu0 %v13293_v57  ;;  %v10529_v48 = vor.u32 %v12570_v9, %v10528_v29  ;;  %v10816_v52 = vld [vmem:[%s13193_s23 + $0x1580] sm:$0xf]  ;;  %v12642_v62 = vld [vmem:[%s13193_s23 + $0x15ac] sm:$0xf0]  ;;  %v10433_v11 = vor.u32 %v12546_v47, %v10432_v38 }
 0x2e7   : > { %7363 = vmatpush.bf16.msrb.mxu1 %v10337_v14  ;;  %7332 = vmatmul.bf16.vlgmr.msra.gmra.mxu2 %v13288_v55  ;;  %v9761_v14 = vor.u32 %v12378_v4, %v9760_v3  ;;  %v7075_v18 = vpop.f32.mrf.mxu1  ;;  %v12342_v21 = vld [vmem:[%s13193_s23 + $0xc4c] sm:$0xf0]  ;;  %v10000_v13 = vld [vmem:[%s13193_s23 + $0xf20] sm:$0xf]  ;;  %v10817_v3 = vor.u32 %v12642_v62, %v10816_v52 }
 0x2e8   : > { %7350 = vmatpush.bf16.msrb.mxu3 %v9953_v12  ;;  %7376 = vmatpush.bf16.msrb.mxu2 %v10721_v58  ;;  %v12666_v12 = vld [vmem:[%s13193_s23 + $0x166c] sm:$0xf0]  ;;  %v9712_v58 = vld [vmem:[%s13193_s23 + $0xce0] sm:$0xf] }
 0x2e9   : > { %7306 = vmatmul.bf16.vlgmr.msra.gmra.mxu3 %v13302_v6  ;;  %7390 = vmatpush.bf16.msrb.mxu0 %v11057_v61  ;;  %v10913_v54 = vor.u32 %v12666_v12, %v10912_v20  ;;  %v9713_v27 = vor.u32 %v12366_v16, %v9712_v58  ;;  %v10481_v61 = vor.u32 %v12558_v22, %v10480_v19  ;;  %v12438_v63 = vld [vmem:[%s13193_s23 + $0xf4c] sm:$0xf0]  ;;  %v11872_v5 = vld [vmem:[%s13193_s23 + $0x1dc0] sm:$0xf]  ;;  %v12036_v16 = vld [vmem:[%s13193_s23 + $0x2c4] sm:$0xf] }
 0x2ea   : > { %v7086_v1 = vpop.f32.mrf.mxu3  ;;  %v12810_v4 = vld [vmem:[%s13193_s23 + $0x1aec] sm:$0xf0]  ;;  %v10001_v12 = vor.u32 %v12438_v63, %v10000_v13  ;;  %v11440_v19 = vld [vmem:[%s13193_s23 + $0x1a60] sm:$0xf] }
 0x2eb   : > { %7364 = vmatpush.bf16.msrb.mxu1 %v10289_v25  ;;  %v12630_v29 = vld [vmem:[%s13193_s23 + $0x154c] sm:$0xf0]  ;;  %v11776_v38 = vld [vmem:[%s13193_s23 + $0x1d00] sm:$0xf] }
 0x2ec   : > { %7351 = vmatpush.bf16.msrb.mxu3 %v9905_v23  ;;  %7377 = vmatpush.bf16.msrb.mxu2 %v10673_v37  ;;  %v7087_v23 = vadd.f32 %v7086_v1, %v7074_v56  ;;  %v7112_v25 = vpop.f32.mrf.mxu2  ;;  %v12654_v37 = vld [vmem:[%s13193_s23 + $0x160c] sm:$0xf0]  ;;  %v10049_v56 = vor.u32 %v12450_v42, %v10048_v41  ;;  %v8754_v42 = vld [vmem:[%s13193_s23 + $0x590] sm:$0xf0]  ;;  %v11344_v63 = vld [vmem:[%s13193_s23 + $0x19a0] sm:$0xf] }
 0x2ed   : > { %7391 = vmatpush.bf16.msrb.mxu0 %v11009_v2  ;;  %v9616_v2 = vld [vmem:[%s13193_s23 + $0xc20] sm:$0xf]  ;;  %v12798_v22 = vld [vmem:[%s13193_s23 + $0x1a8c] sm:$0xf0]  ;;  %v8757_v62 = vor.u32 %v12120_v43, %v8754_v42 }
 0x2ee   : > { %v7100_v60 = vadd.f32 %v7099_v8, %v7087_v23  ;;  %v12906_v8 = vld [vmem:[%s13193_s23 + $0x1dec] sm:$0xf0]  ;;  %v9617_v20 = vor.u32 %v12342_v21, %v9616_v2  ;;  %v11441_v36 = vor.u32 %v12798_v22, %v11440_v19  ;;  %v8322_v2 = vld [vmem:[%s13193_s23 + $0x230] sm:$0xf0]  ;;  %v12108_v21 = vld [vmem:[%s13193_s23 + $0x504] sm:$0xf] }
 0x2ef   : > { %7365 = vmatpush.bf16.msrb.mxu1 %v10241_v45  ;;  %v10865_v45 = vor.u32 %v12654_v37, %v10864_v24  ;;  %v11873_v18 = vor.u32 %v12906_v8, %v11872_v5  ;;  %v11824_v24 = vld [vmem:[%s13193_s23 + $0x1d60] sm:$0xf]  ;;  %v12894_v37 = vld [vmem:[%s13193_s23 + $0x1d8c] sm:$0xf0]  ;;  %v8610_v22 = vld [vmem:[%s13193_s23 + $0x470] sm:$0xf0] }
 0x2f0   : > { %7352 = vmatpush.bf16.msrb.mxu3 %v9857_v31  ;;  %7378 = vmatpush.bf16.msrb.mxu2 %v10625_v49  ;;  %v7101_v31 = vpop.f32.mrf.mxu0  ;;  %v14861_v49 = vadd.f32 %v7112_v25, %v7100_v60  ;;  %v8370_v60 = vld [vmem:[%s13193_s23 + $0x290] sm:$0xf0]  ;;  %v11825_v41 = vor.u32 %v12894_v37, %v11824_v24  ;;  %v12882_v47 = vld [vmem:[%s13193_s23 + $0x1d2c] sm:$0xf0] }
 0x2f1   : > { %7392 = vmatpush.bf16.msrb.mxu0 %v10961_v46  ;;  %v10768_v46 = vld [vmem:[%s13193_s23 + $0x1520] sm:$0xf]  ;;  %v11777_v13 = vor.u32 %v12882_v47, %v11776_v38  ;;  %v12750_v24 = vld [vmem:[%s13193_s23 + $0x190c] sm:$0xf0]  ;;  %v12072_v38 = vld [vmem:[%s13193_s23 + $0x3e4] sm:$0xf] }
 0x2f2   : > { %v7088_v59 = vpop.f32.mrf.mxu3  ;;  %v10769_v1 = vor.u32 %v12630_v29, %v10768_v46  ;;  %v11392_v31 = vld [vmem:[%s13193_s23 + $0x1a00] sm:$0xf]  ;;  %v12000_v29 = vld [vmem:[%s13193_s23 + $0x1a4] sm:$0xf] }
 0x2f3   : > { %7366 = vmatpush.bf16.msrb.mxu1 %v10193_v39  ;;  %v12534_v39 = vld [vmem:[%s13193_s23 + $0x124c] sm:$0xf0] }
 0x2f4   : > { %7353 = vmatpush.bf16.msrb.mxu3 %v9809_v0  ;;  %7379 = vmatpush.bf16.msrb.mxu2 %v10577_v50  ;;  %v10384_v0 = vld [vmem:[%s13193_s23 + $0x1220] sm:$0xf]  ;;  %v7114_v9 = vpop.f32.mrf.mxu2 }
 0x2f5   : > { %7393 = vmatpush.bf16.msrb.mxu0 %v10913_v54  ;;  %v11488_v50 = vld [vmem:[%s13193_s23 + $0x1ac0] sm:$0xf]  ;;  %v10385_v58 = vor.u32 %v12534_v39, %v10384_v0  ;;  %v8802_v54 = vld [vmem:[%s13193_s23 + $0x5f0] sm:$0xf0]  ;;  %v12774_v0 = vld [vmem:[%s13193_s23 + $0x19cc] sm:$0xf0] }
 0x2f6   : > { %v11345_v46 = vor.u32 %v12774_v0, %v11344_v63  ;;  %v8274_v9 = vld [vmem:[%s13193_s23 + $0x1d0] sm:$0xf0]  ;;  %v11964_v0 = vld [vmem:[%s13193_s23 + $0x84] sm:$0xf] }
 0x2f7   : > { %7367 = vmatpush.bf16.msrb.mxu1 %v10145_v15  ;;  %v12918_v15 = vld [vmem:[%s13193_s23 + $0x1e4c] sm:$0xf0] }
 0x2f8   : > { %7354 = vmatpush.bf16.msrb.mxu3 %v9761_v14  ;;  %7380 = vmatpush.bf16.msrb.mxu2 %v10529_v48  ;;  %v11920_v14 = vld [vmem:[%s13193_s23 + $0x1e20] sm:$0xf]  ;;  %v11489_v48 = vor.u32 %v12810_v4, %v11488_v50  ;;  %v14885_v23 = vpop.f32.mrf.mxu0  ;;  %v12870_v4 = vld [vmem:[%s13193_s23 + $0x1ccc] sm:$0xf0] }
 0x2f9   : > { %7394 = vmatpush.bf16.msrb.mxu0 %v10865_v45  ;;  %v11921_v25 = vor.u32 %v12918_v15, %v11920_v14  ;;  %v12786_v45 = vld [vmem:[%s13193_s23 + $0x1a2c] sm:$0xf0]  ;;  %v11728_v50 = vld [vmem:[%s13193_s23 + $0x1ca0] sm:$0xf]  ;;  %v8658_v14 = vld [vmem:[%s13193_s23 + $0x4d0] sm:$0xf0] }
 0x2fa   : > { %v11296_v15 = vld [vmem:[%s13193_s23 + $0x1940] sm:$0xf] }
 0x2fb   : > { %7368 = vmatpush.bf16.msrb.mxu1 %v10097_v30  ;;  %v8805_v30 = vor.u32 %v12132_v51, %v8802_v54  ;;  %v12084_v54 = vld [vmem:[%s13193_s23 + $0x444] sm:$0xf] }
 0x2fc   : > { %7355 = vmatpush.bf16.msrb.mxu3 %v9713_v27  ;;  %7381 = vmatpush.bf16.msrb.mxu2 %v10481_v61  ;;  %v8421_v27 = vor.u32 %v12036_v16, %v8418_v17  ;;  %v12024_v61 = vld [vmem:[%s13193_s23 + $0x264] sm:$0xf]  ;;  %v8277_v16 = vor.u32 %v12000_v29, %v8274_v9  ;;  %v11536_v29 = vld [vmem:[%s13193_s23 + $0x1b20] sm:$0xf] }
 0x2fd   : > { %7395 = vmatpush.bf16.msrb.mxu0 %v10817_v3  ;;  %v8373_v52 = vor.u32 %v12024_v61, %v8370_v60  ;;  %v7888_v61 = vperm.slane %v14712_v10, 5  ;;  %v12738_v10 = vld [vmem:[%s13193_s23 + $0x18ac] sm:$0xf0] }
 0x2ff   : > { %7369 = vmatpush.bf16.msrb.mxu1 %v10049_v56  ;;  %v12012_v56 = vld [vmem:[%s13193_s23 + $0x204] sm:$0xf]  ;;  %v7125_v3 = vpop.f32.mrf.mxu1 }
 0x300   : > { %7356 = vmatpush.bf16.msrb.mxu3 %v9665_v53  ;;  %7382 = vmatpush.bf16.msrb.mxu2 %v10433_v11  ;;  %v11393_v53 = vor.u32 %v12786_v45, %v11392_v31  ;;  %v8706_v11 = vld [vmem:[%s13193_s23 + $0x530] sm:$0xf0]  ;;  %v7153_v39 = vpop.f32.mrf.mxu0  ;;  %v7126_v5 = vadd.f32 %v7125_v3, %v14861_v49  ;;  %v8325_v59 = vor.u32 %v12012_v56, %v8322_v2  ;;  %v11680_v49 = vld [vmem:[%s13193_s23 + $0x1c40] sm:$0xf]  ;;  %v11976_v31 = vld [vmem:[%s13193_s23 + $0xe4] sm:$0xf] }
 0x301   : > { %7396 = vmatpush.bf16.msrb.mxu0 %v10769_v1  ;;  %v8709_v8 = vor.u32 %v12108_v21, %v8706_v11  ;;  %v8226_v1 = vld [vmem:[%s13193_s23 + $0x170] sm:$0xf0]  ;;  %v11584_v2 = vld [vmem:[%s13193_s23 + $0x1b80] sm:$0xf]  ;;  %v12834_v21 = vld [vmem:[%s13193_s23 + $0x1bac] sm:$0xf0] }
 0x302   : > { %v8178_v45 = vld [vmem:[%s13193_s23 + $0x110] sm:$0xf0]  ;;  %v7912_v11 = vperm.slane %v7888_v61, 1 }
 0x303   : > { %7370 = vmatpush.bf16.msrb.mxu1 %v10001_v12  ;;  %v11729_v12 = vor.u32 %v12870_v4, %v11728_v50  ;;  %v8181_v63 = vor.u32 %v11976_v31, %v8178_v45  ;;  %v8130_v39 = vld [vmem:[%s13193_s23 + $0xb0] sm:$0xf0]  ;;  %v12060_v4 = vld [vmem:[%s13193_s23 + $0x384] sm:$0xf] }
 0x304   : > { %7357 = vmatpush.bf16.msrb.mxu3 %v9617_v20  ;;  %7383 = vmatpush.bf16.msrb.mxu2 %v10385_v58  ;;  %v12096_v20 = vld [vmem:[%s13193_s23 + $0x4a4] sm:$0xf]  ;;  %v12762_v58 = vld [vmem:[%s13193_s23 + $0x196c] sm:$0xf0] }
 0x305   : > { %7441 = vmatpush.bf16.msra.mxu0 %v8421_v27  ;;  %v8661_v17 = vor.u32 %v12096_v20, %v8658_v14  ;;  %v11297_v51 = vor.u32 %v12762_v58, %v11296_v15  ;;  %v11632_v27 = vld [vmem:[%s13193_s23 + $0x1be0] sm:$0xf]  ;;  %v12822_v20 = vld [vmem:[%s13193_s23 + $0x1b4c] sm:$0xf0]  ;;  %v9186_v14 = vld [vmem:[%s13193_s23 + $0x8f0] sm:$0xf0]  ;;  %v8133_v58 = vor.u32 %v11964_v0, %v8130_v39 }
 0x306   : > { %7397 = vmatmul.bf16.vlgmr.msrb.gmra.mxu0 %v13379_v44  ;;  %7371 = vmatmul.bf16.vlgmr.msrb.gmra.mxu1 %v13375_v40  ;;  %v12312_v45 = vld [vmem:[%s13193_s23 + $0xb64] sm:$0xf]  ;;  %v9474_v39 = vld [vmem:[%s13193_s23 + $0xb30] sm:$0xf0] }
 0x307   : > { %7415 = vmatpush.bf16.msra.mxu1 %v11873_v18  ;;  %7358 = vmatmul.bf16.vlgmr.msrb.gmra.mxu3 %v13368_v34  ;;  %v11988_v18 = vld [vmem:[%s13193_s23 + $0x144] sm:$0xf] }
 0x308   : > { %7402 = vmatpush.bf16.msra.mxu3 %v11489_v48  ;;  %7435 = vmatpush.bf16.msra.mxu2 %v11921_v25  ;;  %v12858_v48 = vld [vmem:[%s13193_s23 + $0x1c6c] sm:$0xf0]  ;;  %v11248_v25 = vld [vmem:[%s13193_s23 + $0x18e0] sm:$0xf]  ;;  %v14924_v37 = vpop.f32.mrf.mxu0  ;;  %v8229_v60 = vor.u32 %v11988_v18, %v8226_v1  ;;  %v8082_v18 = vld [vmem:[%s13193_s23 + $0x50] sm:$0xf0] }
 0x309   : > { %7384 = vmatmul.bf16.vlgmr.msrb.gmra.mxu2 %v13370_v35  ;;  %7442 = vmatpush.bf16.msra.mxu0 %v8373_v52  ;;  %v11681_v19 = vor.u32 %v12858_v48, %v11680_v49  ;;  %v11249_v42 = vor.u32 %v12750_v24, %v11248_v25  ;;  %v12324_v49 = vld [vmem:[%s13193_s23 + $0xbc4] sm:$0xf]  ;;  %v9570_v48 = vld [vmem:[%s13193_s23 + $0xbf0] sm:$0xf0] }
 0x30a   : > { %v7138_v43 = vpop.f32.mrf.mxu3  ;;  %v12048_v1 = vld [vmem:[%s13193_s23 + $0x324] sm:$0xf] }
 0x30b   : > { %7416 = vmatpush.bf16.msra.mxu1 %v11825_v41  ;;  %v8613_v41 = vor.u32 %v12084_v54, %v8610_v22  ;;  %v7139_v47 = vadd.f32 %v7138_v43, %v7126_v5  ;;  %v11152_v5 = vld [vmem:[%s13193_s23 + $0x1820] sm:$0xf]  ;;  %v8466_v54 = vld [vmem:[%s13193_s23 + $0x350] sm:$0xf0]  ;;  %v11537_v22 = vor.u32 %v12822_v20, %v11536_v29  ;;  %v12420_v24 = vld [vmem:[%s13193_s23 + $0xec4] sm:$0xf] }
 0x30c   : > { %7454 = vmatpush.bf16.msrb.mxu2 %v8805_v30  ;;  %7403 = vmatpush.bf16.msra.mxu3 %v11441_v36  ;;  %v12846_v30 = vld [vmem:[%s13193_s23 + $0x1c0c] sm:$0xf0]  ;;  %v7127_v36 = vpop.f32.mrf.mxu1  ;;  %v14935_v56 = vpop.f32.mrf.mxu2  ;;  %v10338_v43 = vld [vmem:[%s13193_s23 + $0x11f0] sm:$0xf0]  ;;  %v12300_v0 = vld [vmem:[%s13193_s23 + $0xb04] sm:$0xf] }
 0x30d   : > { %7443 = vmatpush.bf16.msra.mxu0 %v8325_v59  ;;  %v11633_v52 = vor.u32 %v12846_v30, %v11632_v27  ;;  %v9954_v27 = vld [vmem:[%s13193_s23 + $0xef0] sm:$0xf0]  ;;  %v12516_v30 = vld [vmem:[%s13193_s23 + $0x11c4] sm:$0xf] }
 0x30e   : > { %v12192_v29 = vld [vmem:[%s13193_s23 + $0x7a4] sm:$0xf] }
 0x30f   : > { %7417 = vmatpush.bf16.msra.mxu1 %v11777_v13  ;;  %v7152_v13 = vadd.f32 %v14885_v23, %v7139_v47  ;;  %v8514_v23 = vld [vmem:[%s13193_s23 + $0x3b0] sm:$0xf0]  ;;  %v8469_v47 = vor.u32 %v12048_v1, %v8466_v54  ;;  %v12288_v20 = vld [vmem:[%s13193_s23 + $0xaa4] sm:$0xf] }
 0x310   : > { %7455 = vmatpush.bf16.msrb.mxu2 %v8757_v62  ;;  %7404 = vmatpush.bf16.msra.mxu3 %v11393_v53  ;;  %v8562_v62 = vld [vmem:[%s13193_s23 + $0x410] sm:$0xf0]  ;;  %v11200_v53 = vld [vmem:[%s13193_s23 + $0x1880] sm:$0xf]  ;;  %v7179_v9 = vpop.f32.mrf.mxu0 }
 0x311   : > { %7444 = vmatpush.bf16.msra.mxu0 %v8277_v16  ;;  %v8565_v3 = vor.u32 %v12072_v38, %v8562_v62  ;;  %v11201_v50 = vor.u32 %v12738_v10, %v11200_v53  ;;  %v7876_v59 = vmax.f32 %v7152_v13, 0.0  ;;  %v11952_v16 = vld [vmem:[%s13193_s23 + $0x24] sm:$0xf]  ;;  %v9522_v38 = vld [vmem:[%s13193_s23 + $0xb90] sm:$0xf0] }
 0x312   : > { %v8085_v31 = vor.u32 %v11952_v16, %v8082_v18  ;;  %v12408_v53 = vld [vmem:[%s13193_s23 + $0xe64] sm:$0xf]  ;;  %v9906_v10 = vld [vmem:[%s13193_s23 + $0xe90] sm:$0xf0] }
 0x313   : > { %7418 = vmatpush.bf16.msra.mxu1 %v11729_v12  ;;  %v12228_v12 = vld [vmem:[%s13193_s23 + $0x8c4] sm:$0xf]  ;;  %v7924_v15 = vmul.f32 %v7912_v11, %v7876_v59  ;;  %v10290_v13 = vld [vmem:[%s13193_s23 + $0x1190] sm:$0xf0] }
 0x314   : > { %7456 = vmatpush.bf16.msrb.mxu2 %v8709_v8  ;;  %7405 = vmatpush.bf16.msra.mxu3 %v11345_v46  ;;  %v11585_v8 = vor.u32 %v12834_v21, %v11584_v2  ;;  %v12726_v46 = vld [vmem:[%s13193_s23 + $0x184c] sm:$0xf0]  ;;  %v9189_v25 = vor.u32 %v12228_v12, %v9186_v14  ;;  %v7166_v36 = vpop.f32.mrf.mxu2  ;;  %v12504_v2 = vld [vmem:[%s13193_s23 + $0x1164] sm:$0xf]  ;;  %v9525_v21 = vor.u32 %v12312_v45, %v9522_v38  ;;  %v9042_v9 = vld [vmem:[%s13193_s23 + $0x7d0] sm:$0xf0] }
 0x315   : > { %7445 = vmatpush.bf16.msra.mxu0 %v8229_v60  ;;  %v14962_v61 = vadd.f32 %v14755_v28, %v7924_v15  ;;  %v9573_v60 = vor.u32 %v12324_v49, %v9570_v48  ;;  %v9957_v28 = vor.u32 %v12420_v24, %v9954_v27  ;;  %v12204_v11 = vld [vmem:[%s13193_s23 + $0x804] sm:$0xf]  ;;  %v9426_v12 = vld [vmem:[%s13193_s23 + $0xad0] sm:$0xf0] }
 0x316   : > { %v12492_v59 = vld [vmem:[%s13193_s23 + $0x1104] sm:$0xf]  ;;  %v9810_v48 = vld [vmem:[%s13193_s23 + $0xdd0] sm:$0xf0] }
 0x317   : > { %7419 = vmatpush.bf16.msra.mxu1 %v11681_v19  ;;  %v7140_v19 = vpop.f32.mrf.mxu3  ;;  %v12384_v49 = vld [vmem:[%s13193_s23 + $0xda4] sm:$0xf]  ;;  %v8994_v1 = vld [vmem:[%s13193_s23 + $0x770] sm:$0xf0] }
 0x318   : > { %7457 = vmatpush.bf16.msrb.mxu2 %v8661_v17  ;;  %7406 = vmatpush.bf16.msra.mxu3 %v11297_v51  ;;  %v8517_v17 = vor.u32 %v12060_v4, %v8514_v23  ;;  %v11153_v51 = vor.u32 %v12726_v46, %v11152_v5  ;;  %v12396_v23 = vld [vmem:[%s13193_s23 + $0xe04] sm:$0xf]  ;;  %v9858_v5 = vld [vmem:[%s13193_s23 + $0xe30] sm:$0xf0] }
 0x319   : > { %11942 = vmatmul.msk.bf16.vlgmr.msra.gmra.mxu2 %vm6150_vm0, %v13418_v32  ;;  %7446 = vmatpush.bf16.msra.mxu0 %v8181_v63  ;;  %v9090_v63 = vld [vmem:[%s13193_s23 + $0x830] sm:$0xf0]  ;;  %v9861_v14 = vor.u32 %v12396_v23, %v9858_v5  ;;  %v12480_v16 = vld [vmem:[%s13193_s23 + $0x10a4] sm:$0xf] }
 0x31a   : > { %v9093_v4 = vor.u32 %v12204_v11, %v9090_v63  ;;  %v10242_v46 = vld [vmem:[%s13193_s23 + $0x1130] sm:$0xf0]  ;;  %v12180_v18 = vld [vmem:[%s13193_s23 + $0x744] sm:$0xf] }
 0x31b   : > { %7420 = vmatpush.bf16.msra.mxu1 %v11633_v52  ;;  %v10341_v52 = vor.u32 %v12516_v30, %v10338_v43  ;;  %v10245_v15 = vor.u32 %v12492_v59, %v10242_v46  ;;  %v12276_v19 = vld [vmem:[%s13193_s23 + $0xa44] sm:$0xf]  ;;  %v8997_v27 = vor.u32 %v12180_v18, %v8994_v1  ;;  %v9762_v36 = vld [vmem:[%s13193_s23 + $0xd70] sm:$0xf0] }
 0x31c   : > { %7458 = vmatpush.bf16.msrb.mxu2 %v8613_v41  ;;  %7407 = vmatpush.bf16.msra.mxu3 %v11249_v42  ;;  %v12216_v41 = vld [vmem:[%s13193_s23 + $0x864] sm:$0xf]  ;;  %v9138_v42 = vld [vmem:[%s13193_s23 + $0x890] sm:$0xf0] }
 0x31d   : > { %7447 = vmatpush.bf16.msra.mxu0 %v8133_v58  ;;  %v9141_v62 = vor.u32 %v12216_v41, %v9138_v42  ;;  %v9045_v58 = vor.u32 %v12192_v29, %v9042_v9  ;;  %v12372_v30 = vld [vmem:[%s13193_s23 + $0xd44] sm:$0xf]  ;;  %v10146_v41 = vld [vmem:[%s13193_s23 + $0x1070] sm:$0xf0] }
 0x31e   : > { %v12168_v42 = vld [vmem:[%s13193_s23 + $0x6e4] sm:$0xf]  ;;  %v10098_v63 = vld [vmem:[%s13193_s23 + $0x1010] sm:$0xf0] }
 0x31f   : > { %7421 = vmatpush.bf16.msra.mxu1 %v11585_v8  ;;  %v9477_v8 = vor.u32 %v12300_v0, %v9474_v39  ;;  %v14995_v54 = vpop.f32.mrf.mxu1  ;;  %v15006_v45 = vld [vmem:[%s13199_s25 + $0x8] sm:$0xff]  ;;  %v9282_v5 = vld [vmem:[%s13193_s23 + $0x9b0] sm:$0xf0] }
 0x320   : > { %7459 = vmatpush.bf16.msrb.mxu2 %v8565_v3  ;;  %7408 = vmatpush.bf16.msra.mxu3 %v11201_v50  ;;  %v9909_v3 = vor.u32 %v12408_v53, %v9906_v10  ;;  %v10293_v50 = vor.u32 %v12504_v2, %v10290_v13  ;;  %v1223_v38 = vperm.slane %v15006_v45, 6  ;;  %v12360_v2 = vld [vmem:[%s13193_s23 + $0xce4] sm:$0xf]  ;;  %v10722_v18 = vld [vmem:[%s13193_s23 + $0x14f0] sm:$0xf0] }
 0x321   : > { %7448 = vmatpush.bf16.msra.mxu0 %v8085_v31  ;;  %v8946_v31 = vld [vmem:[%s13193_s23 + $0x710] sm:$0xf0]  ;;  %v12456_v13 = vld [vmem:[%s13193_s23 + $0xfe4] sm:$0xf] }
 0x322   : > { %v8949_v10 = vor.u32 %v12168_v42, %v8946_v31  ;;  %v12156_v39 = vld [vmem:[%s13193_s23 + $0x684] sm:$0xf]  ;;  %v10101_v29 = vor.u32 %v12456_v13, %v10098_v63  ;;  %v11490_v31 = vld [vmem:[%s13193_s23 + $0x1af0] sm:$0xf0] }
 0x323   : > { %7422 = vmatpush.bf16.msra.mxu1 %v11537_v22  ;;  %v9378_v22 = vld [vmem:[%s13193_s23 + $0xa70] sm:$0xf0]  ;;  %v12252_v23 = vld [vmem:[%s13193_s23 + $0x984] sm:$0xf] }
 0x324   : > { %7460 = vmatpush.bf16.msrb.mxu2 %v8517_v17  ;;  %7409 = vmatpush.bf16.msra.mxu3 %v11153_v51  ;;  %v9429_v17 = vor.u32 %v12288_v20, %v9426_v12  ;;  %v10194_v51 = vld [vmem:[%s13193_s23 + $0x10d0] sm:$0xf0]  ;;  %v9381_v43 = vor.u32 %v12276_v19, %v9378_v22  ;;  %v12348_v46 = vld [vmem:[%s13193_s23 + $0xc84] sm:$0xf] }
 0x325   : > { %7493 = vmatpush.bf16.msrb.mxu0 %v9957_v28  ;;  %v10197_v24 = vor.u32 %v12480_v16, %v10194_v51  ;;  %v9330_v28 = vld [vmem:[%s13193_s23 + $0xa10] sm:$0xf0]  ;;  %v12444_v12 = vld [vmem:[%s13193_s23 + $0xf84] sm:$0xf] }
 0x326   : > { %7449 = vmatmul.bf16.vlgmr.msra.gmra.mxu0 %v13302_v6  ;;  %7423 = vmatmul.bf16.vlgmr.msra.gmra.mxu1 %v13461_v33  ;;  %v9666_v20 = vld [vmem:[%s13193_s23 + $0xcb0] sm:$0xf0]  ;;  %v12612_v51 = vld [vmem:[%s13193_s23 + $0x14c4] sm:$0xf] }
 0x327   : > { %7480 = vmatpush.bf16.msrb.mxu1 %v9573_v60  ;;  %7410 = vmatmul.bf16.vlgmr.msra.gmra.mxu3 %v13456_v26  ;;  %v12468_v60 = vld [vmem:[%s13193_s23 + $0x1044] sm:$0xf]  ;;  %v9669_v19 = vor.u32 %v12348_v46, %v9666_v20  ;;  %v10626_v20 = vld [vmem:[%s13193_s23 + $0x1430] sm:$0xf0] }
 0x328   : > { %7467 = vmatpush.bf16.msrb.mxu3 %v9189_v25  ;;  %7461 = vmatpush.bf16.msrb.mxu2 %v8469_v47  ;;  %v9813_v25 = vor.u32 %v12384_v49, %v9810_v48  ;;  %v12264_v47 = vld [vmem:[%s13193_s23 + $0x9e4] sm:$0xf]  ;;  %v10149_v53 = vor.u32 %v12468_v60, %v10146_v41  ;;  %v8850_v49 = vld [vmem:[%s13193_s23 + $0x650] sm:$0xf0]  ;;  %v10725_v41 = vor.u32 %v12612_v51, %v10722_v18 }
 0x329   : > { %7494 = vmatpush.bf16.msrb.mxu0 %v9909_v3  ;;  %v9333_v11 = vor.u32 %v12264_v47, %v9330_v28  ;;  %v8898_v3 = vld [vmem:[%s13193_s23 + $0x6b0] sm:$0xf0]  ;;  %v12240_v48 = vld [vmem:[%s13193_s23 + $0x924] sm:$0xf] }
 0x32a   : > { %v15017_v0 = vpop.f32.mrf.mxu3  ;;  %v8901_v9 = vor.u32 %v12156_v39, %v8898_v3  ;;  %v12708_v22 = vld [vmem:[%s13193_s23 + $0x17c4] sm:$0xf]  ;;  %v10002_v60 = vld [vmem:[%s13193_s23 + $0xf50] sm:$0xf0] }
 0x32b   : > { %7481 = vmatpush.bf16.msrb.mxu1 %v9525_v21  ;;  %7462 = vmatmul.bf16.vlgmr.msrb.gmra.mxu2 %v13304_v7  ;;  %v9714_v21 = vld [vmem:[%s13193_s23 + $0xd10] sm:$0xf0]  ;;  %v12804_v42 = vld [vmem:[%s13193_s23 + $0x1ac4] sm:$0xf] }
 0x32c   : > { %7506 = vmatpush.bf16.msra.mxu2 %v10341_v52  ;;  %7468 = vmatpush.bf16.msrb.mxu3 %v9141_v62  ;;  %v15011_v52 = vpop.f32.mrf.mxu0  ;;  %v9765_v62 = vor.u32 %v12372_v30, %v9762_v36  ;;  %v9717_v59 = vor.u32 %v12360_v2, %v9714_v21  ;;  %v9618_v30 = vld [vmem:[%s13193_s23 + $0xc50] sm:$0xf0]  ;;  %v12432_v36 = vld [vmem:[%s13193_s23 + $0xf24] sm:$0xf]  ;;  %v11493_v3 = vor.u32 %v12804_v42, %v11490_v31 }
 0x32d   : > { %7495 = vmatpush.bf16.msrb.mxu0 %v9861_v14  ;;  %v10050_v14 = vld [vmem:[%s13193_s23 + $0xfb0] sm:$0xf0]  ;;  %v12696_v13 = vld [vmem:[%s13193_s23 + $0x1764] sm:$0xf]  ;;  %v10005_v39 = vor.u32 %v12432_v36, %v10002_v60 }
 0x32e   : > { %v10674_v2 = vld [vmem:[%s13193_s23 + $0x1490] sm:$0xf0]  ;;  %v12864_v60 = vld [vmem:[%s13193_s23 + $0x1ca4] sm:$0xf] }
 0x32f   : > { %7482 = vmatpush.bf16.msrb.mxu1 %v9477_v8  ;;  %v15023_v8 = vpop.f32.mrf.mxu2  ;;  %v11778_v18 = vld [vmem:[%s13193_s23 + $0x1d30] sm:$0xf0]  ;;  %v12564_v31 = vld [vmem:[%s13193_s23 + $0x1344] sm:$0xf] }
 0x330   : > { %7507 = vmatpush.bf16.msra.mxu2 %v10293_v50  ;;  %7469 = vmatpush.bf16.msrb.mxu3 %v9093_v4  ;;  %v1247_v50 = vperm.slane %v1223_v38, 0  ;;  %v7192_v4 = vpop.f32.mrf.mxu1  ;;  %v12900_v38 = vld [vmem:[%s13193_s23 + $0x1dc4] sm:$0xf]  ;;  %v11346_v36 = vld [vmem:[%s13193_s23 + $0x19d0] sm:$0xf0] }
 0x331   : > { %7496 = vmatpush.bf16.msrb.mxu0 %v9813_v25  ;;  %v11106_v25 = vld [vmem:[%s13193_s23 + $0x17f0] sm:$0xf0]  ;;  %v12792_v4 = vld [vmem:[%s13193_s23 + $0x1a64] sm:$0xf] }
 0x332   : > { %v7165_v16 = vadd.f32 %v14935_v56, %v1247_v50  ;;  %v7205_v47 = vpop.f32.mrf.mxu3  ;;  %v11730_v42 = vld [vmem:[%s13193_s23 + $0x1cd0] sm:$0xf0] }
 0x333   : > { %7483 = vmatpush.bf16.msrb.mxu1 %v9429_v17  ;;  %v9234_v17 = vld [vmem:[%s13193_s23 + $0x950] sm:$0xf0]  ;;  %v12660_v47 = vld [vmem:[%s13193_s23 + $0x1644] sm:$0xf] }
 0x334   : > { %7508 = vmatpush.bf16.msra.mxu2 %v10245_v15  ;;  %7470 = vmatpush.bf16.msrb.mxu3 %v9045_v58  ;;  %v9285_v15 = vor.u32 %v12252_v23, %v9282_v5  ;;  %v12144_v58 = vld [vmem:[%s13193_s23 + $0x624] sm:$0xf]  ;;  %v7231_v1 = vpop.f32.mrf.mxu0  ;;  %v7178_v28 = vadd.f32 %v14924_v37, %v7165_v16  ;;  %v11442_v23 = vld [vmem:[%s13193_s23 + $0x1a90] sm:$0xf0] }
 0x335   : > { %7497 = vmatpush.bf16.msrb.mxu0 %v9765_v62  ;;  %v8853_v56 = vor.u32 %v12144_v58, %v8850_v49  ;;  %v11109_v62 = vor.u32 %v12708_v22, %v11106_v25  ;;  %v12888_v5 = vld [vmem:[%s13193_s23 + $0x1d64] sm:$0xf]  ;;  %v10962_v25 = vld [vmem:[%s13193_s23 + $0x16d0] sm:$0xf0] }
 0x336   : > { %v12780_v49 = vld [vmem:[%s13193_s23 + $0x1a04] sm:$0xf] }
 0x337   : > { %7484 = vmatpush.bf16.msrb.mxu1 %v9381_v43  ;;  %v9237_v43 = vor.u32 %v12240_v48, %v9234_v17  ;;  %v7218_v63 = vpop.f32.mrf.mxu2  ;;  %v11394_v48 = vld [vmem:[%s13193_s23 + $0x1a30] sm:$0xf0]  ;;  %v12876_v16 = vld [vmem:[%s13193_s23 + $0x1d04] sm:$0xf] }
 0x338   : > { %7509 = vmatpush.bf16.msra.mxu2 %v10197_v24  ;;  %7471 = vmatpush.bf16.msrb.mxu3 %v8997_v27  ;;  %v12336_v24 = vld [vmem:[%s13193_s23 + $0xc24] sm:$0xf]  ;;  %v10053_v27 = vor.u32 %v12444_v12, %v10050_v14  ;;  %v11010_v14 = vld [vmem:[%s13193_s23 + $0x1730] sm:$0xf0] }
 0x339   : > { %7498 = vmatpush.bf16.msrb.mxu0 %v9717_v59  ;;  %v9621_v21 = vor.u32 %v12336_v24, %v9618_v30  ;;  %v7191_v59 = vadd.f32 %v14995_v54, %v7178_v28  ;;  %v12684_v12 = vld [vmem:[%s13193_s23 + $0x1704] sm:$0xf]  ;;  %v11445_v54 = vor.u32 %v12792_v4, %v11442_v23  ;;  %v11397_v24 = vor.u32 %v12780_v49, %v11394_v48  ;;  %v10914_v28 = vld [vmem:[%s13193_s23 + $0x1670] sm:$0xf0] }
 0x33a   : > { %v11013_v51 = vor.u32 %v12684_v12, %v11010_v14  ;;  %v12576_v1 = vld [vmem:[%s13193_s23 + $0x13a4] sm:$0xf]  ;;  %v11682_v63 = vld [vmem:[%s13193_s23 + $0x1c70] sm:$0xf0]  ;;  %v7889_v49 = vperm.slane %v15006_v45, 7 }
 0x33b   : > { %7485 = vmatpush.bf16.msrb.mxu1 %v9333_v11  ;;  %v11058_v11 = vld [vmem:[%s13193_s23 + $0x1790] sm:$0xf0]  ;;  %v7204_v17 = vadd.f32 %v15017_v0, %v7191_v59  ;;  %v12672_v22 = vld [vmem:[%s13193_s23 + $0x16a4] sm:$0xf] }
 0x33c   : > { %7510 = vmatpush.bf16.msra.mxu2 %v10149_v53  ;;  %7472 = vmatpush.bf16.msrb.mxu3 %v8949_v10  ;;  %v11874_v53 = vld [vmem:[%s13193_s23 + $0x1df0] sm:$0xf0]  ;;  %v12600_v10 = vld [vmem:[%s13193_s23 + $0x1464] sm:$0xf]  ;;  %v11061_v46 = vor.u32 %v12696_v13, %v11058_v11  ;;  %v10917_v11 = vor.u32 %v12660_v47, %v10914_v28 }
 0x33d   : > { %7499 = vmatpush.bf16.msrb.mxu0 %v9669_v19  ;;  %v11877_v37 = vor.u32 %v12900_v38, %v11874_v53  ;;  %v10677_v50 = vor.u32 %v12600_v10, %v10674_v2  ;;  %v10578_v19 = vld [vmem:[%s13193_s23 + $0x13d0] sm:$0xf0]  ;;  %v12768_v30 = vld [vmem:[%s13193_s23 + $0x19a4] sm:$0xf]  ;;  %v11733_v53 = vor.u32 %v12864_v60, %v11730_v42  ;;  %v8424_v42 = vld [vmem:[%s13193_s23 + $0x2c8] sm:$0xf] }
 0x33e   : > { %v10530_v38 = vld [vmem:[%s13193_s23 + $0x1370] sm:$0xf0]  ;;  %v12840_v12 = vld [vmem:[%s13193_s23 + $0x1be4] sm:$0xf] }
 0x33f   : > { %7486 = vmatpush.bf16.msrb.mxu1 %v9285_v15  ;;  %v7242_v0 = vpop.f32.mrf.mxu1  ;;  %v10533_v10 = vor.u32 %v12564_v31, %v10530_v38  ;;  %v11298_v2 = vld [vmem:[%s13193_s23 + $0x1970] sm:$0xf0]  ;;  %v12540_v48 = vld [vmem:[%s13193_s23 + $0x1284] sm:$0xf] }
 0x340   : > { %7511 = vmatpush.bf16.msra.mxu2 %v10101_v29  ;;  %7473 = vmatpush.bf16.msrb.mxu3 %v8901_v9  ;;  %v11826_v29 = vld [vmem:[%s13193_s23 + $0x1d90] sm:$0xf0]  ;;  %v12588_v9 = vld [vmem:[%s13193_s23 + $0x1404] sm:$0xf] }
 0x341   : > { %7500 = vmatpush.bf16.msrb.mxu0 %v9621_v21  ;;  %v11829_v15 = vor.u32 %v12888_v5, %v11826_v29  ;;  %v10629_v58 = vor.u32 %v12588_v9, %v10626_v20  ;;  %v12852_v21 = vld [vmem:[%s13193_s23 + $0x1c44] sm:$0xf]  ;;  %v11250_v20 = vld [vmem:[%s13193_s23 + $0x1910] sm:$0xf0] }
 0x342   : > { %v11685_v29 = vor.u32 %v12852_v21, %v11682_v63  ;;  %v11634_v14 = vld [vmem:[%s13193_s23 + $0x1c10] sm:$0xf0]  ;;  %v12912_v31 = vld [vmem:[%s13193_s23 + $0x1e24] sm:$0xf] }
 0x343   : > { %7487 = vmatpush.bf16.msrb.mxu1 %v9237_v43  ;;  %v7217_v43 = vadd.f32 %v15023_v8, %v7204_v17  ;;  %v12756_v8 = vld [vmem:[%s13193_s23 + $0x1944] sm:$0xf]  ;;  %v7281_v4 = vpop.f32.mrf.mxu0  ;;  %v11637_v45 = vor.u32 %v12840_v12, %v11634_v14  ;;  %v11922_v38 = vld [vmem:[%s13193_s23 + $0x1e50] sm:$0xf0]  ;;  %v8376_v12 = vld [vmem:[%s13193_s23 + $0x268] sm:$0xf] }
 0x344   : > { %7512 = vmatpush.bf16.msra.mxu2 %v10053_v27  ;;  %7474 = vmatpush.bf16.msrb.mxu3 %v8853_v56  ;;  %v11781_v27 = vor.u32 %v12876_v16, %v11778_v18  ;;  %v10581_v56 = vor.u32 %v12576_v1, %v10578_v19  ;;  %v11301_v59 = vor.u32 %v12756_v8, %v11298_v2  ;;  %v10434_v16 = vld [vmem:[%s13193_s23 + $0x12b0] sm:$0xf0]  ;;  %v12636_v17 = vld [vmem:[%s13193_s23 + $0x1584] sm:$0xf]  ;;  %v12031_v14 = vld [vmem:[%s13193_s23 + $0x294] sm:$0xf0] }
 0x345   : > { %7545 = vmatpush.bf16.msra.mxu0 %v11493_v3  ;;  %v7230_v13 = vadd.f32 %v15011_v52, %v7217_v43  ;;  %v10482_v3 = vld [vmem:[%s13193_s23 + $0x1310] sm:$0xf0]  ;;  %v12732_v19 = vld [vmem:[%s13193_s23 + $0x1884] sm:$0xf] }
 0x346   : > { %7501 = vmatmul.bf16.vlgmr.msrb.gmra.mxu0 %v13368_v34  ;;  %7488 = vmatmul.bf16.vlgmr.msrb.gmra.mxu1 %v13293_v57  ;;  %v12624_v43 = vld [vmem:[%s13193_s23 + $0x1524] sm:$0xf]  ;;  %v11154_v8 = vld [vmem:[%s13193_s23 + $0x1850] sm:$0xf0] }
 0x347   : > { %7532 = vmatpush.bf16.msra.mxu1 %v11109_v62  ;;  %7475 = vmatmul.bf16.vlgmr.msrb.gmra.mxu3 %v13288_v55  ;;  %v11349_v62 = vor.u32 %v12768_v30, %v11346_v36  ;;  %v7243_v23 = vadd.f32 %v7242_v0, %v7230_v13  ;;  %v7244_v5 = vpop.f32.mrf.mxu1  ;;  %v10437_v0 = vor.u32 %v12540_v48, %v10434_v16  ;;  %v7913_v36 = vperm.slane %v7889_v49, 1  ;;  %v11538_v63 = vld [vmem:[%s13193_s23 + $0x1b50] sm:$0xf0]  ;;  %v8760_v16 = vld [vmem:[%s13193_s23 + $0x568] sm:$0xf] }
 0x348   : > { %7519 = vmatpush.bf16.msra.mxu3 %v10725_v41  ;;  %7513 = vmatpush.bf16.msra.mxu2 %v10005_v39  ;;  %v10965_v41 = vor.u32 %v12672_v22, %v10962_v25  ;;  %v12552_v39 = vld [vmem:[%s13193_s23 + $0x12e4] sm:$0xf]  ;;  %v11202_v22 = vld [vmem:[%s13193_s23 + $0x18b0] sm:$0xf0]  ;;  %v12235_v5 = vld [vmem:[%s13193_s23 + $0x8f4] sm:$0xf0] }
 0x349   : > { %7546 = vmatpush.bf16.msra.mxu0 %v11445_v54  ;;  %v10485_v9 = vor.u32 %v12552_v39, %v10482_v3  ;;  %v12828_v25 = vld [vmem:[%s13193_s23 + $0x1b84] sm:$0xf]  ;;  %v8808_v39 = vld [vmem:[%s13193_s23 + $0x5c8] sm:$0xf] }
 0x34a   : > { %v7255_v52 = vpop.f32.mrf.mxu3 }
 0x34b   : > { %7533 = vmatpush.bf16.msra.mxu1 %v11061_v46  ;;  %7514 = vmatmul.bf16.vlgmr.msra.gmra.mxu2 %v13375_v40  ;;  %v12744_v46 = vld [vmem:[%s13193_s23 + $0x18e4] sm:$0xf]  ;;  %v7256_v54 = vadd.f32 %v7255_v52, %v7243_v23  ;;  %v7283_v47 = vpop.f32.mrf.mxu0  ;;  %v9192_v23 = vld [vmem:[%s13193_s23 + $0x8c8] sm:$0xf] }
 0x34c   : > { %7558 = vmatpush.bf16.msrb.mxu2 %v11877_v37  ;;  %7520 = vmatpush.bf16.msra.mxu3 %v10677_v50  ;;  %v12648_v37 = vld [vmem:[%s13193_s23 + $0x15e4] sm:$0xf]  ;;  %v10866_v50 = vld [vmem:[%s13193_s23 + $0x1610] sm:$0xf0]  ;;  %v11253_v1 = vor.u32 %v12744_v46, %v11250_v20  ;;  %v9193_v49 = vor.u32 %v12235_v5, %v9192_v23  ;;  %v12007_v47 = vld [vmem:[%s13193_s23 + $0x1d4] sm:$0xf0] }
 0x34d   : > { %7547 = vmatpush.bf16.msra.mxu0 %v11397_v24  ;;  %v11586_v24 = vld [vmem:[%s13193_s23 + $0x1bb0] sm:$0xf0] }
 0x34e   : > { %v11589_v21 = vor.u32 %v12828_v25, %v11586_v24  ;;  %v12319_v25 = vld [vmem:[%s13193_s23 + $0xb94] sm:$0xf0] }
 0x34f   : > { %7534 = vmatpush.bf16.msra.mxu1 %v11013_v51  ;;  %v10818_v51 = vld [vmem:[%s13193_s23 + $0x15b0] sm:$0xf0]  ;;  %v7294_v28 = vpop.f32.mrf.mxu1 }
 0x350   : > { %7559 = vmatpush.bf16.msrb.mxu2 %v11829_v15  ;;  %7521 = vmatpush.bf16.msra.mxu3 %v10629_v58  ;;  %v7268_v15 = vpop.f32.mrf.mxu2  ;;  %v10869_v58 = vor.u32 %v12648_v37, %v10866_v50  ;;  %v10821_v60 = vor.u32 %v12636_v17, %v10818_v51  ;;  %v11925_v50 = vor.u32 %v12912_v31, %v11922_v38  ;;  %v12127_v17 = vld [vmem:[%s13193_s23 + $0x594] sm:$0xf0]  ;;  %v9144_v51 = vld [vmem:[%s13193_s23 + $0x868] sm:$0xf] }
 0x351   : > { %7548 = vmatpush.bf16.msra.mxu0 %v11349_v62  ;;  %v7269_v18 = vadd.f32 %v7268_v15, %v7256_v54  ;;  %v11205_v62 = vor.u32 %v12732_v19, %v11202_v22  ;;  %v12223_v19 = vld [vmem:[%s13193_s23 + $0x894] sm:$0xf0]  ;;  %v9528_v22 = vld [vmem:[%s13193_s23 + $0xb68] sm:$0xf] }
 0x352   : > { %v7257_v3 = vpop.f32.mrf.mxu3  ;;  %v12307_v31 = vld [vmem:[%s13193_s23 + $0xb34] sm:$0xf0]  ;;  %v8280_v38 = vld [vmem:[%s13193_s23 + $0x1a8] sm:$0xf] }
 0x353   : > { %7535 = vmatpush.bf16.msra.mxu1 %v10965_v41  ;;  %v7282_v30 = vadd.f32 %v7281_v4, %v7269_v18  ;;  %v10770_v41 = vld [vmem:[%s13193_s23 + $0x1550] sm:$0xf0]  ;;  %v12139_v4 = vld [vmem:[%s13193_s23 + $0x5f4] sm:$0xf0]  ;;  %v8377_v18 = vor.u32 %v12031_v14, %v8376_v12  ;;  %v8232_v3 = vld [vmem:[%s13193_s23 + $0x148] sm:$0xf] }
 0x354   : > { %7560 = vmatpush.bf16.msrb.mxu2 %v11781_v27  ;;  %7522 = vmatpush.bf16.msra.mxu3 %v10581_v56  ;;  %v12528_v27 = vld [vmem:[%s13193_s23 + $0x1224] sm:$0xf]  ;;  %v10386_v56 = vld [vmem:[%s13193_s23 + $0x1250] sm:$0xf0]  ;;  %v10773_v37 = vor.u32 %v12624_v43, %v10770_v41  ;;  %v12211_v41 = vld [vmem:[%s13193_s23 + $0x834] sm:$0xf0] }
 0x355   : > { %7549 = vmatpush.bf16.msra.mxu0 %v11301_v59  ;;  %v7295_v2 = vadd.f32 %v7294_v28, %v7282_v30  ;;  %v10389_v13 = vor.u32 %v12528_v27, %v10386_v56  ;;  %v8761_v27 = vor.u32 %v12127_v17, %v8760_v16  ;;  %v9529_v56 = vor.u32 %v12319_v25, %v9528_v22  ;;  %v8712_v30 = vld [vmem:[%s13193_s23 + $0x508] sm:$0xf]  ;;  %v12283_v14 = vld [vmem:[%s13193_s23 + $0xa74] sm:$0xf0] }
 0x356   : > { %v9384_v12 = vld [vmem:[%s13193_s23 + $0xa48] sm:$0xf]  ;;  %v12175_v22 = vld [vmem:[%s13193_s23 + $0x714] sm:$0xf0] }
 0x357   : > { %7536 = vmatpush.bf16.msra.mxu1 %v10917_v11  ;;  %v12816_v11 = vld [vmem:[%s13193_s23 + $0x1b24] sm:$0xf]  ;;  %v7877_v46 = vmax.f32 %v7295_v2, 0.0  ;;  %v7296_v24 = vpop.f32.mrf.mxu1  ;;  %v9048_v2 = vld [vmem:[%s13193_s23 + $0x7a8] sm:$0xf]  ;;  %v9385_v17 = vor.u32 %v12283_v14, %v9384_v12 }
 0x358   : > { %7561 = vmatpush.bf16.msrb.mxu2 %v11733_v53  ;;  %7523 = vmatpush.bf16.msra.mxu3 %v10533_v10  ;;  %v12043_v53 = vld [vmem:[%s13193_s23 + $0x2f4] sm:$0xf0]  ;;  %v12720_v10 = vld [vmem:[%s13193_s23 + $0x1824] sm:$0xf]  ;;  %v7270_v59 = vpop.f32.mrf.mxu2  ;;  %v11541_v15 = vor.u32 %v12816_v11, %v11538_v63  ;;  %v9432_v63 = vld [vmem:[%s13193_s23 + $0xaa8] sm:$0xf] }
 0x359   : > { %7550 = vmatpush.bf16.msra.mxu0 %v11253_v1  ;;  %v8425_v52 = vor.u32 %v12043_v53, %v8424_v42  ;;  %v11157_v20 = vor.u32 %v12720_v10, %v11154_v8  ;;  %v7925_v54 = vmul.f32 %v7913_v36, %v7877_v46  ;;  %v12115_v36 = vld [vmem:[%s13193_s23 + $0x534] sm:$0xf0]  ;;  %v9480_v42 = vld [vmem:[%s13193_s23 + $0xb08] sm:$0xf] }
 0x35a   : > { %v8713_v28 = vor.u32 %v12115_v36, %v8712_v30  ;;  %v9481_v10 = vor.u32 %v12307_v31, %v9480_v42  ;;  %v12103_v8 = vld [vmem:[%s13193_s23 + $0x4d4] sm:$0xf0]  ;;  %v8616_v59 = vld [vmem:[%s13193_s23 + $0x448] sm:$0xf] }
 0x35b   : > { %7537 = vmatpush.bf16.msra.mxu1 %v10869_v58  ;;  %v8809_v58 = vor.u32 %v12139_v4, %v8808_v39  ;;  %v7937_v1 = vadd.f32 %v14962_v61, %v7925_v54  ;;  %v9145_v61 = vor.u32 %v12223_v19, %v9144_v51  ;;  %v12199_v11 = vld [vmem:[%s13193_s23 + $0x7d4] sm:$0xf0]  ;;  %v8184_v54 = vld [vmem:[%s13193_s23 + $0xe8] sm:$0xf] }
 0x35c   : > { %7562 = vmatpush.bf16.msrb.mxu2 %v11685_v29  ;;  %7524 = vmatpush.bf16.msra.mxu3 %v10485_v9  ;;  %v9576_v29 = vld [vmem:[%s13193_s23 + $0xbc8] sm:$0xf]  ;;  %v12331_v9 = vld [vmem:[%s13193_s23 + $0xbf4] sm:$0xf0]  ;;  %v9049_v23 = vor.u32 %v12199_v11, %v9048_v2 }
 0x35d   : > { %7551 = vmatpush.bf16.msra.mxu0 %v11205_v62  ;;  %v9577_v48 = vor.u32 %v12331_v9, %v9576_v29  ;;  %7938 = vadd.xlane.f32.xlu0 %v7937_v1  ;;  %v8664_v62 = vld [vmem:[%s13193_s23 + $0x4a8] sm:$0xf]  ;;  %v12295_v39 = vld [vmem:[%s13193_s23 + $0xad4] sm:$0xf0] }
 0x35e   : > { %v9433_v5 = vor.u32 %v12295_v39, %v9432_v63  ;;  %v12091_v46 = vld [vmem:[%s13193_s23 + $0x474] sm:$0xf0]  ;;  %v8568_v51 = vld [vmem:[%s13193_s23 + $0x3e8] sm:$0xf] }
 0x35f   : > { %7538 = vmatpush.bf16.msra.mxu1 %v10821_v60  ;;  %v9096_v60 = vld [vmem:[%s13193_s23 + $0x808] sm:$0xf]  ;;  %v12427_v63 = vld [vmem:[%s13193_s23 + $0xef4] sm:$0xf0] }
 0x360   : > { %7563 = vmatpush.bf16.msrb.mxu2 %v11637_v45  ;;  %7525 = vmatpush.bf16.msra.mxu3 %v10437_v0  ;;  %v8328_v45 = vld [vmem:[%s13193_s23 + $0x208] sm:$0xf]  ;;  %v12019_v0 = vld [vmem:[%s13193_s23 + $0x234] sm:$0xf0]  ;;  %v9097_v53 = vor.u32 %v12211_v41, %v9096_v60 }
 0x361   : > { %7552 = vmatpush.bf16.msra.mxu0 %v11157_v20  ;;  %v8329_v43 = vor.u32 %v12019_v0, %v8328_v45  ;;  %v12187_v20 = vld [vmem:[%s13193_s23 + $0x774] sm:$0xf0]  ;;  %v8952_v1 = vld [vmem:[%s13193_s23 + $0x6e8] sm:$0xf] }
 0x362   : > { %v9336_v25 = vld [vmem:[%s13193_s23 + $0x9e8] sm:$0xf]  ;;  %v12271_v45 = vld [vmem:[%s13193_s23 + $0xa14] sm:$0xf0]  ;;  %v8953_v36 = vor.u32 %v12175_v22, %v8952_v1 }
 0x363   : > { %7539 = vmatpush.bf16.msra.mxu1 %v10773_v37  ;;  %v11995_v37 = vld [vmem:[%s13193_s23 + $0x174] sm:$0xf0]  ;;  %v7320_v29 = vpop.f32.mrf.mxu1  ;;  %v8136_v24 = vld [vmem:[%s13193_s23 + $0x88] sm:$0xf]  ;;  %v9337_v60 = vor.u32 %v12271_v45, %v9336_v25 }
 0x364   : > { %7564 = vmatpush.bf16.msrb.mxu2 %v11589_v21  ;;  %7526 = vmatpush.bf16.msra.mxu3 %v10389_v13  ;;  %v15149_v21 = vld [vmem:[%s13199_s25 + $0x10] sm:$0xff]  ;;  %v8281_v13 = vor.u32 %v12007_v47, %v8280_v38  ;;  %v8233_v9 = vor.u32 %v11995_v37, %v8232_v3  ;;  %v12067_v41 = vld [vmem:[%s13193_s23 + $0x3b4] sm:$0xf0] }
 0x365   : > { %7610 = vmatpush.bf16.msrb.mxu0 %v9193_v49  ;;  %v1224_v4 = vperm.slane %v15149_v21, 0  ;;  %v8617_v49 = vor.u32 %v12091_v46, %v8616_v59  ;;  %v8904_v42 = vld [vmem:[%s13193_s23 + $0x688] sm:$0xf]  ;;  %v12163_v47 = vld [vmem:[%s13193_s23 + $0x6b4] sm:$0xf0] }
 0x366   : > { %7540 = vmatmul.bf16.vlgmr.msra.gmra.mxu1 %v13379_v44  ;;  %7553 = vmatmul.bf16.vlgmr.msra.gmra.mxu0 %v13456_v26  ;;  %v9960_v2 = vld [vmem:[%s13193_s23 + $0xec8] sm:$0xf]  ;;  %v12055_v3 = vld [vmem:[%s13193_s23 + $0x354] sm:$0xf0] }
 0x367   : > { %7584 = vmatpush.bf16.msrb.mxu1 %v8425_v52  ;;  %7527 = vmatmul.bf16.vlgmr.msra.gmra.mxu3 %v13370_v35  ;;  %v9000_v52 = vld [vmem:[%s13193_s23 + $0x748] sm:$0xf]  ;;  %v9961_v14 = vor.u32 %v12427_v63, %v9960_v2  ;;  %v12511_v45 = vld [vmem:[%s13193_s23 + $0x1194] sm:$0xf0] }
 0x368   : > { %7578 = vmatpush.bf16.msrb.mxu3 %v11925_v50  ;;  %7565 = vmatpush.bf16.msrb.mxu2 %v11541_v15  ;;  %v8665_v50 = vor.u32 %v12103_v8, %v8664_v62  ;;  %v11983_v15 = vld [vmem:[%s13193_s23 + $0x114] sm:$0xf0]  ;;  %v9001_v16 = vor.u32 %v12187_v20, %v9000_v52  ;;  %v8472_v39 = vld [vmem:[%s13193_s23 + $0x328] sm:$0xf] }
 0x369   : > { %7611 = vmatpush.bf16.msrb.mxu0 %v9145_v61  ;;  %v8185_v19 = vor.u32 %v11983_v15, %v8184_v54  ;;  %v12259_v62 = vld [vmem:[%s13193_s23 + $0x9b4] sm:$0xf0]  ;;  %v9240_v59 = vld [vmem:[%s13193_s23 + $0x928] sm:$0xf] }
 0x36a   : > { %v7333_v0 = vpop.f32.mrf.mxu2  ;;  %v11959_v8 = vld [vmem:[%s13193_s23 + $0x54] sm:$0xf0]  ;;  %v10728_v54 = vld [vmem:[%s13193_s23 + $0x14c8] sm:$0xf] }
 0x36b   : > { %7585 = vmatpush.bf16.msrb.mxu1 %v8377_v18  ;;  %7566 = vmatmul.bf16.vlgmr.msrb.gmra.mxu2 %v13461_v33  ;;  %v12079_v18 = vld [vmem:[%s13193_s23 + $0x414] sm:$0xf0]  ;;  %v7322_v31 = vpop.f32.mrf.mxu1  ;;  %v10296_v25 = vld [vmem:[%s13193_s23 + $0x1168] sm:$0xf] }
 0x36c   : > { %7597 = vmatpush.bf16.msra.mxu3 %v8809_v58  ;;  %7623 = vmatpush.bf16.msra.mxu2 %v9577_v48  ;;  %v7346_v58 = vpop.f32.mrf.mxu0  ;;  %v1248_v48 = vperm.slane %v1224_v4, 0  ;;  %v7307_v61 = vpop.f32.mrf.mxu3  ;;  %v12247_v52 = vld [vmem:[%s13193_s23 + $0x954] sm:$0xf0]  ;;  %v10200_v63 = vld [vmem:[%s13193_s23 + $0x10a8] sm:$0xf] }
 0x36d   : > { %7612 = vmatpush.bf16.msrb.mxu0 %v9097_v53  ;;  %v12619_v15 = vld [vmem:[%s13193_s23 + $0x14f4] sm:$0xf0]  ;;  %v9241_v1 = vor.u32 %v12247_v52, %v9240_v59  ;;  %v9768_v59 = vld [vmem:[%s13193_s23 + $0xd48] sm:$0xf] }
 0x36e   : > { %v7308_v30 = vadd.f32 %v7307_v61, %v1248_v48  ;;  %v10729_v22 = vor.u32 %v12619_v15, %v10728_v54  ;;  %v12607_v61 = vld [vmem:[%s13193_s23 + $0x1494] sm:$0xf0]  ;;  %v10536_v15 = vld [vmem:[%s13193_s23 + $0x1348] sm:$0xf] }
 0x36f   : > { %7586 = vmatpush.bf16.msrb.mxu1 %v8329_v43  ;;  %v8520_v43 = vld [vmem:[%s13193_s23 + $0x388] sm:$0xf]  ;;  %v12499_v31 = vld [vmem:[%s13193_s23 + $0x1134] sm:$0xf0] }
 0x370   : > { %7598 = vmatpush.bf16.msra.mxu3 %v8761_v27  ;;  %7624 = vmatpush.bf16.msra.mxu2 %v9529_v56  ;;  %v11971_v27 = vld [vmem:[%s13193_s23 + $0xb4] sm:$0xf0]  ;;  %v8569_v56 = vor.u32 %v12079_v18, %v8568_v51  ;;  %v7321_v53 = vadd.f32 %v7320_v29, %v7308_v30  ;;  %v8521_v11 = vor.u32 %v12067_v41, %v8520_v43  ;;  %v10344_v29 = vld [vmem:[%s13193_s23 + $0x11c8] sm:$0xf] }
 0x371   : > { %7613 = vmatpush.bf16.msrb.mxu0 %v9049_v23  ;;  %v8137_v38 = vor.u32 %v11971_v27, %v8136_v24  ;;  %v8856_v23 = vld [vmem:[%s13193_s23 + $0x628] sm:$0xf]  ;;  %v12415_v18 = vld [vmem:[%s13193_s23 + $0xe94] sm:$0xf0]  ;;  %v10297_v43 = vor.u32 %v12511_v45, %v10296_v25 }
 0x372   : > { %v7334_v37 = vadd.f32 %v7333_v0, %v7321_v53  ;;  %v7335_v20 = vpop.f32.mrf.mxu2  ;;  %v9912_v51 = vld [vmem:[%s13193_s23 + $0xe68] sm:$0xf]  ;;  %v12703_v30 = vld [vmem:[%s13193_s23 + $0x1794] sm:$0xf0] }
 0x373   : > { %7587 = vmatpush.bf16.msrb.mxu1 %v8281_v13  ;;  %v9913_v24 = vor.u32 %v12415_v18, %v9912_v51  ;;  %v10680_v27 = vld [vmem:[%s13193_s23 + $0x1468] sm:$0xf]  ;;  %v12391_v2 = vld [vmem:[%s13193_s23 + $0xdd4] sm:$0xf0] }
 0x374   : > { %7599 = vmatpush.bf16.msra.mxu3 %v8713_v28  ;;  %7625 = vmatpush.bf16.msra.mxu2 %v9481_v10  ;;  %v9288_v28 = vld [vmem:[%s13193_s23 + $0x988] sm:$0xf]  ;;  %v7348_v13 = vpop.f32.mrf.mxu0  ;;  %v15193_v12 = vadd.f32 %v7346_v58, %v7334_v37  ;;  %v7309_v48 = vpop.f32.mrf.mxu3  ;;  %v10681_v41 = vor.u32 %v12607_v61, %v10680_v27  ;;  %v12475_v20 = vld [vmem:[%s13193_s23 + $0x1074] sm:$0xf0] }
 0x375   : > { %7614 = vmatpush.bf16.msrb.mxu0 %v9001_v16  ;;  %v8088_v10 = vld [vmem:[%s13193_s23 + $0x28] sm:$0xf]  ;;  %v9289_v4 = vor.u32 %v12259_v62, %v9288_v28  ;;  %v8473_v16 = vor.u32 %v12055_v3, %v8472_v39  ;;  %v12595_v62 = vld [vmem:[%s13193_s23 + $0x1434] sm:$0xf0] }
 0x376   : > { %v8089_v46 = vor.u32 %v11959_v8, %v8088_v10  ;;  %v10632_v28 = vld [vmem:[%s13193_s23 + $0x1408] sm:$0xf]  ;;  %v12691_v10 = vld [vmem:[%s13193_s23 + $0x1734] sm:$0xf0] }
 0x377   : > { %7588 = vmatpush.bf16.msrb.mxu1 %v8233_v9  ;;  %11943 = vmatmul.msk.bf16.vlgmr.msrb.gmra.mxu3 %vm6150_vm0, %v13418_v32  ;;  %v12523_v9 = vld [vmem:[%s13193_s23 + $0x11f4] sm:$0xf0]  ;;  %v11016_v53 = vld [vmem:[%s13193_s23 + $0x1708] sm:$0xf] }
 0x378   : > { %7600 = vmatpush.bf16.msra.mxu3 %v8665_v50  ;;  %7626 = vmatpush.bf16.msra.mxu2 %v9433_v5  ;;  %v8905_v50 = vor.u32 %v12163_v47, %v8904_v42  ;;  %v12151_v5 = vld [vmem:[%s13193_s23 + $0x654] sm:$0xf0]  ;;  %v10248_v42 = vld [vmem:[%s13193_s23 + $0x1108] sm:$0xf]  ;;  %v11017_v3 = vor.u32 %v12691_v10, %v11016_v53 }
 0x379   : > { %7615 = vmatpush.bf16.msrb.mxu0 %v8953_v36  ;;  %v8857_v58 = vor.u32 %v12151_v5, %v8856_v23  ;;  %v9864_v36 = vld [vmem:[%s13193_s23 + $0xe08] sm:$0xf]  ;;  %v10249_v13 = vor.u32 %v12499_v31, %v10248_v42  ;;  %v12487_v39 = vld [vmem:[%s13193_s23 + $0x10d4] sm:$0xf0] }
 0x37a   : > { %v9816_v8 = vld [vmem:[%s13193_s23 + $0xda8] sm:$0xf]  ;;  %v12679_v5 = vld [vmem:[%s13193_s23 + $0x16d4] sm:$0xf0]  ;;  %v10201_v52 = vor.u32 %v12487_v39, %v10200_v63 }
 0x37b   : > { %7589 = vmatpush.bf16.msrb.mxu1 %v8185_v19  ;;  %v10345_v19 = vor.u32 %v12523_v9, %v10344_v29  ;;  %v9817_v37 = vor.u32 %v12391_v2, %v9816_v8  ;;  %v10968_v23 = vld [vmem:[%s13193_s23 + $0x16a8] sm:$0xf]  ;;  %v12367_v51 = vld [vmem:[%s13193_s23 + $0xd14] sm:$0xf0] }
 0x37c   : > { %7601 = vmatpush.bf16.msra.mxu3 %v8617_v49  ;;  %7627 = vmatpush.bf16.msra.mxu2 %v9385_v17  ;;  %v11112_v49 = vld [vmem:[%s13193_s23 + $0x17c8] sm:$0xf]  ;;  %v12715_v17 = vld [vmem:[%s13193_s23 + $0x17f4] sm:$0xf0] }
 0x37d   : > { %7616 = vmatpush.bf16.msrb.mxu0 %v8905_v50  ;;  %v11113_v0 = vor.u32 %v12715_v17, %v11112_v49  ;;  %v10584_v50 = vld [vmem:[%s13193_s23 + $0x13a8] sm:$0xf]  ;;  %v12571_v49 = vld [vmem:[%s13193_s23 + $0x1374] sm:$0xf0] }
 0x37e   : > { %v10152_v9 = vld [vmem:[%s13193_s23 + $0x1048] sm:$0xf]  ;;  %v12463_v25 = vld [vmem:[%s13193_s23 + $0x1014] sm:$0xf0] }
 0x37f   : > { %7590 = vmatpush.bf16.msrb.mxu1 %v8137_v38  ;;  %v10920_v48 = vld [vmem:[%s13193_s23 + $0x1648] sm:$0xf]  ;;  %v12559_v61 = vld [vmem:[%s13193_s23 + $0x1314] sm:$0xf0] }
 0x380   : > { %7602 = vmatpush.bf16.msra.mxu3 %v8569_v56  ;;  %7628 = vmatpush.bf16.msra.mxu2 %v9337_v60  ;;  %v11064_v56 = vld [vmem:[%s13193_s23 + $0x1768] sm:$0xf]  ;;  %v12403_v60 = vld [vmem:[%s13193_s23 + $0xe34] sm:$0xf0] }
 0x381   : > { %7617 = vmatpush.bf16.msrb.mxu0 %v8857_v58  ;;  %v11065_v38 = vor.u32 %v12703_v30, %v11064_v56  ;;  %v9865_v47 = vor.u32 %v12403_v60, %v9864_v36  ;;  %v9720_v17 = vld [vmem:[%s13193_s23 + $0xce8] sm:$0xf]  ;;  %v12655_v60 = vld [vmem:[%s13193_s23 + $0x1614] sm:$0xf0] }
 0x382   : > { %v10488_v27 = vld [vmem:[%s13193_s23 + $0x12e8] sm:$0xf]  ;;  %v12547_v10 = vld [vmem:[%s13193_s23 + $0x12b4] sm:$0xf0] }
 0x383   : > { %7591 = vmatpush.bf16.msrb.mxu1 %v8089_v46  ;;  %v12379_v46 = vld [vmem:[%s13193_s23 + $0xd74] sm:$0xf0]  ;;  %v7398_v18 = vpop.f32.mrf.mxu0  ;;  %v7372_v58 = vpop.f32.mrf.mxu1  ;;  %v10872_v56 = vld [vmem:[%s13193_s23 + $0x15e8] sm:$0xf] }
 0x384   : > { %7603 = vmatpush.bf16.msra.mxu3 %v8521_v11  ;;  %7629 = vmatpush.bf16.msra.mxu2 %v9289_v4  ;;  %v10633_v11 = vor.u32 %v12595_v62, %v10632_v28  ;;  %v12583_v4 = vld [vmem:[%s13193_s23 + $0x13d4] sm:$0xf0]  ;;  %v9769_v54 = vor.u32 %v12379_v46, %v9768_v59  ;;  %v10440_v53 = vld [vmem:[%s13193_s23 + $0x1288] sm:$0xf] }
 0x385   : > { %7662 = vmatpush.bf16.msra.mxu0 %v10729_v22  ;;  %v10585_v29 = vor.u32 %v12583_v4, %v10584_v50  ;;  %v10104_v22 = vld [vmem:[%s13193_s23 + $0xfe8] sm:$0xf]  ;;  %v12451_v28 = vld [vmem:[%s13193_s23 + $0xfb4] sm:$0xf0] }
 0x386   : > { %7592 = vmatmul.bf16.vlgmr.msrb.gmra.mxu1 %v13302_v6  ;;  %7618 = vmatmul.bf16.vlgmr.msrb.gmra.mxu0 %v13288_v55  ;;  %v10105_v31 = vor.u32 %v12463_v25, %v10104_v22  ;;  %v10824_v8 = vld [vmem:[%s13193_s23 + $0x1588] sm:$0xf]  ;;  %v12343_v63 = vld [vmem:[%s13193_s23 + $0xc54] sm:$0xf0] }
 0x387   : > { %7636 = vmatpush.bf16.msra.mxu1 %v9961_v14  ;;  %v10969_v14 = vor.u32 %v12679_v5, %v10968_v23  ;;  %v10441_v5 = vor.u32 %v12547_v10, %v10440_v53  ;;  %v10008_v59 = vld [vmem:[%s13193_s23 + $0xf28] sm:$0xf] }
 0x388   : > { %7604 = vmatpush.bf16.msra.mxu3 %v8473_v16  ;;  %7630 = vmatpush.bf16.msra.mxu2 %v9241_v1  ;;  %v12667_v16 = vld [vmem:[%s13193_s23 + $0x1674] sm:$0xf0]  ;;  %v10153_v1 = vor.u32 %v12475_v20, %v10152_v9  ;;  %v10392_v9 = vld [vmem:[%s13193_s23 + $0x1228] sm:$0xf] }
 0x389   : > { %7663 = vmatpush.bf16.msra.mxu0 %v10681_v41  ;;  %v12355_v41 = vld [vmem:[%s13193_s23 + $0xcb4] sm:$0xf0] }
 0x38a   : > { %v7359_v45 = vpop.f32.mrf.mxu3  ;;  %v12535_v20 = vld [vmem:[%s13193_s23 + $0x1254] sm:$0xf0] }
 0x38b   : > { %7637 = vmatpush.bf16.msra.mxu1 %v9913_v24  ;;  %7605 = vmatmul.bf16.vlgmr.msra.gmra.mxu3 %v13304_v7  ;;  %v9721_v24 = vor.u32 %v12367_v51, %v9720_v17  ;;  %v7360_v30 = vadd.f32 %v7359_v45, %v15193_v12  ;;  %v10873_v12 = vor.u32 %v12655_v60, %v10872_v56  ;;  %v7400_v39 = vpop.f32.mrf.mxu0  ;;  %v7374_v50 = vpop.f32.mrf.mxu1  ;;  %v12907_v17 = vld [vmem:[%s13193_s23 + $0x1df4] sm:$0xf0]  ;;  %v12037_v51 = vld [vmem:[%s13193_s23 + $0x2cc] sm:$0xf]  ;;  %v11928_v45 = vld [vmem:[%s13193_s23 + $0x1e28] sm:$0xf] }
 0x38c   : > { %7649 = vmatpush.bf16.msrb.mxu3 %v10345_v19  ;;  %7675 = vmatpush.bf16.msrb.mxu2 %v11113_v0  ;;  %v10537_v19 = vor.u32 %v12571_v49, %v10536_v15  ;;  %v10921_v0 = vor.u32 %v12667_v16, %v10920_v48  ;;  %v7385_v36 = vpop.f32.mrf.mxu2  ;;  %v10776_v49 = vld [vmem:[%s13193_s23 + $0x1528] sm:$0xf]  ;;  %v12631_v48 = vld [vmem:[%s13193_s23 + $0x1554] sm:$0xf0]  ;;  %v10393_v22 = vor.u32 %v12535_v20, %v10392_v9  ;;  %v8810_v56 = vld [vmem:[%s13193_s23 + $0x5f8] sm:$0xf0] }
 0x38d   : > { %7631 = vmatmul.bf16.vlgmr.msra.gmra.mxu2 %v13293_v57  ;;  %7664 = vmatpush.bf16.msra.mxu0 %v10633_v11  ;;  %v7373_v42 = vadd.f32 %v7372_v58, %v7360_v30  ;;  %v9624_v11 = vld [vmem:[%s13193_s23 + $0xc28] sm:$0xf]  ;;  %v10777_v25 = vor.u32 %v12631_v48, %v10776_v49  ;;  %v12895_v60 = vld [vmem:[%s13193_s23 + $0x1d94] sm:$0xf0]  ;;  %v12001_v9 = vld [vmem:[%s13193_s23 + $0x1ac] sm:$0xf] }
 0x38e   : > { %v11880_v16 = vld [vmem:[%s13193_s23 + $0x1dc8] sm:$0xf]  ;;  %v1225_v20 = vperm.slane %v15149_v21, 2  ;;  %v12097_v49 = vld [vmem:[%s13193_s23 + $0x4ac] sm:$0xf] }
 0x38f   : > { %7638 = vmatpush.bf16.msra.mxu1 %v9865_v47  ;;  %v10056_v47 = vld [vmem:[%s13193_s23 + $0xf88] sm:$0xf]  ;;  %v7386_v2 = vadd.f32 %v7385_v36, %v7373_v42  ;;  %v8378_v42 = vld [vmem:[%s13193_s23 + $0x298] sm:$0xf0] }
 0x390   : > { %7650 = vmatpush.bf16.msrb.mxu3 %v10297_v43  ;;  %7676 = vmatpush.bf16.msrb.mxu2 %v11065_v38  ;;  %v9672_v43 = vld [vmem:[%s13193_s23 + $0xc88] sm:$0xf]  ;;  %v10489_v38 = vor.u32 %v12559_v61, %v10488_v27  ;;  %v10057_v23 = vor.u32 %v12451_v28, %v10056_v47  ;;  %v12133_v61 = vld [vmem:[%s13193_s23 + $0x5cc] sm:$0xf] }
 0x391   : > { %7665 = vmatpush.bf16.msra.mxu0 %v10585_v29  ;;  %v9673_v62 = vor.u32 %v12355_v41, %v9672_v43  ;;  %v15256_v4 = vadd.f32 %v7398_v18, %v7386_v2  ;;  %v12439_v29 = vld [vmem:[%s13193_s23 + $0xf54] sm:$0xf0]  ;;  %v8426_v18 = vld [vmem:[%s13193_s23 + $0x2f8] sm:$0xf0]  ;;  %v11832_v36 = vld [vmem:[%s13193_s23 + $0x1d68] sm:$0xf]  ;;  %v8813_v47 = vor.u32 %v12133_v61, %v8810_v56 }
 0x392   : > { %v10009_v58 = vor.u32 %v12439_v29, %v10008_v59  ;;  %v8429_v27 = vor.u32 %v12037_v51, %v8426_v18  ;;  %v12025_v43 = vld [vmem:[%s13193_s23 + $0x26c] sm:$0xf]  ;;  %v11833_v28 = vor.u32 %v12895_v60, %v11832_v36  ;;  %v11784_v2 = vld [vmem:[%s13193_s23 + $0x1d08] sm:$0xf]  ;;  %v12871_v29 = vld [vmem:[%s13193_s23 + $0x1cd4] sm:$0xf0] }
 0x393   : > { %7639 = vmatpush.bf16.msra.mxu1 %v9817_v37  ;;  %v12811_v37 = vld [vmem:[%s13193_s23 + $0x1af4] sm:$0xf0]  ;;  %v8381_v10 = vor.u32 %v12025_v43, %v8378_v42  ;;  %v11352_v39 = vld [vmem:[%s13193_s23 + $0x19a8] sm:$0xf]  ;;  %v12085_v60 = vld [vmem:[%s13193_s23 + $0x44c] sm:$0xf] }
 0x394   : > { %7651 = vmatpush.bf16.msrb.mxu3 %v10249_v13  ;;  %7677 = vmatpush.bf16.msrb.mxu2 %v11017_v3  ;;  %v12643_v13 = vld [vmem:[%s13193_s23 + $0x15b4] sm:$0xf0]  ;;  %v11496_v3 = vld [vmem:[%s13193_s23 + $0x1ac8] sm:$0xf]  ;;  %v8618_v43 = vld [vmem:[%s13193_s23 + $0x478] sm:$0xf0] }
 0x395   : > { %7666 = vmatpush.bf16.msra.mxu0 %v10537_v19  ;;  %v10825_v46 = vor.u32 %v12643_v13, %v10824_v8  ;;  %v11497_v15 = vor.u32 %v12811_v37, %v11496_v3  ;;  %v12799_v19 = vld [vmem:[%s13193_s23 + $0x1a94] sm:$0xf0]  ;;  %v11736_v59 = vld [vmem:[%s13193_s23 + $0x1ca8] sm:$0xf] }
 0x396   : > { %v12883_v13 = vld [vmem:[%s13193_s23 + $0x1d34] sm:$0xf0]  ;;  %v11688_v51 = vld [vmem:[%s13193_s23 + $0x1c48] sm:$0xf] }
 0x397   : > { %7640 = vmatpush.bf16.msra.mxu1 %v9769_v54  ;;  %v7387_v54 = vpop.f32.mrf.mxu2  ;;  %v12775_v3 = vld [vmem:[%s13193_s23 + $0x19d4] sm:$0xf0]  ;;  %v11785_v50 = vor.u32 %v12883_v13, %v11784_v2  ;;  %v8621_v2 = vor.u32 %v12085_v60, %v8618_v43  ;;  %v12049_v60 = vld [vmem:[%s13193_s23 + $0x32c] sm:$0xf]  ;;  %v8474_v43 = vld [vmem:[%s13193_s23 + $0x358] sm:$0xf0] }
 0x398   : > { %7652 = vmatpush.bf16.msrb.mxu3 %v10201_v52  ;;  %7678 = vmatpush.bf16.msrb.mxu2 %v10969_v14  ;;  %v9625_v52 = vor.u32 %v12343_v63, %v9624_v11  ;;  %v7361_v14 = vpop.f32.mrf.mxu3  ;;  %v12013_v11 = vld [vmem:[%s13193_s23 + $0x20c] sm:$0xf]  ;;  %v8330_v63 = vld [vmem:[%s13193_s23 + $0x238] sm:$0xf0]  ;;  %v11304_v54 = vld [vmem:[%s13193_s23 + $0x1948] sm:$0xf] }
 0x399   : > { %7667 = vmatpush.bf16.msra.mxu0 %v10489_v38  ;;  %v12787_v38 = vld [vmem:[%s13193_s23 + $0x1a34] sm:$0xf0]  ;;  %v8282_v14 = vld [vmem:[%s13193_s23 + $0x1d8] sm:$0xf0] }
 0x39a   : > { %v12859_v18 = vld [vmem:[%s13193_s23 + $0x1c74] sm:$0xf0]  ;;  %v8285_v21 = vor.u32 %v12001_v9, %v8282_v14  ;;  %v12229_v14 = vld [vmem:[%s13193_s23 + $0x8cc] sm:$0xf] }
 0x39b   : > { %7641 = vmatpush.bf16.msra.mxu1 %v9721_v24  ;;  %v11881_v24 = vor.u32 %v12907_v17, %v11880_v16  ;;  %v11737_v16 = vor.u32 %v12871_v29, %v11736_v59  ;;  %v8666_v17 = vld [vmem:[%s13193_s23 + $0x4d8] sm:$0xf0]  ;;  %v11160_v29 = vld [vmem:[%s13193_s23 + $0x1828] sm:$0xf]  ;;  %v12727_v9 = vld [vmem:[%s13193_s23 + $0x1854] sm:$0xf0] }
 0x39c   : > { %7653 = vmatpush.bf16.msrb.mxu3 %v10153_v1  ;;  %7679 = vmatpush.bf16.msrb.mxu2 %v10921_v0  ;;  %v11448_v1 = vld [vmem:[%s13193_s23 + $0x1a68] sm:$0xf]  ;;  %v12919_v0 = vld [vmem:[%s13193_s23 + $0x1e54] sm:$0xf0]  ;;  %v8669_v56 = vor.u32 %v12097_v49, %v8666_v17  ;;  %v12061_v49 = vld [vmem:[%s13193_s23 + $0x38c] sm:$0xf]  ;;  %v11161_v17 = vor.u32 %v12727_v9, %v11160_v29 }
 0x39d   : > { %7668 = vmatpush.bf16.msra.mxu0 %v10441_v5  ;;  %v11449_v30 = vor.u32 %v12799_v19, %v11448_v1  ;;  %v11929_v41 = vor.u32 %v12919_v0, %v11928_v45  ;;  %v8714_v5 = vld [vmem:[%s13193_s23 + $0x538] sm:$0xf0]  ;;  %v11989_v19 = vld [vmem:[%s13193_s23 + $0x14c] sm:$0xf] }
 0x39e   : > { %v12193_v29 = vld [vmem:[%s13193_s23 + $0x7ac] sm:$0xf]  ;;  %v9050_v9 = vld [vmem:[%s13193_s23 + $0x7d8] sm:$0xf0] }
 0x39f   : > { %7642 = vmatpush.bf16.msra.mxu1 %v9673_v62  ;;  %v8762_v62 = vld [vmem:[%s13193_s23 + $0x598] sm:$0xf0]  ;;  %v15283_v53 = vpop.f32.mrf.mxu2 }
 0x3a0   : > { %7654 = vmatpush.bf16.msrb.mxu3 %v10105_v31  ;;  %7680 = vmatpush.bf16.msrb.mxu2 %v10873_v12  ;;  %v11400_v31 = vld [vmem:[%s13193_s23 + $0x1a08] sm:$0xf]  ;;  %v12121_v12 = vld [vmem:[%s13193_s23 + $0x56c] sm:$0xf] }
 0x3a1   : > { %7669 = vmatpush.bf16.msra.mxu0 %v10393_v22  ;;  %v11401_v8 = vor.u32 %v12787_v38, %v11400_v31  ;;  %v8765_v37 = vor.u32 %v12121_v12, %v8762_v62  ;;  %v8234_v22 = vld [vmem:[%s13193_s23 + $0x178] sm:$0xf0]  ;;  %v12847_v38 = vld [vmem:[%s13193_s23 + $0x1c14] sm:$0xf0]  ;;  %v11208_v62 = vld [vmem:[%s13193_s23 + $0x1888] sm:$0xf] }
 0x3a2   : > { %v8237_v36 = vor.u32 %v11989_v19, %v8234_v22  ;;  %v8090_v19 = vld [vmem:[%s13193_s23 + $0x58] sm:$0xf0]  ;;  %v12325_v22 = vld [vmem:[%s13193_s23 + $0xbcc] sm:$0xf] }
 0x3a3   : > { %7643 = vmatpush.bf16.msra.mxu1 %v9625_v52  ;;  %v11353_v52 = vor.u32 %v12775_v3, %v11352_v39  ;;  %v7450_v45 = vpop.f32.mrf.mxu0  ;;  %v7424_v0 = vpop.f32.mrf.mxu1 }
 0x3a4   : > { %7655 = vmatpush.bf16.msrb.mxu3 %v10057_v23  ;;  %7681 = vmatpush.bf16.msrb.mxu2 %v10825_v46  ;;  %v12109_v23 = vld [vmem:[%s13193_s23 + $0x50c] sm:$0xf]  ;;  %v8333_v46 = vor.u32 %v12013_v11, %v8330_v63  ;;  %v8570_v63 = vld [vmem:[%s13193_s23 + $0x418] sm:$0xf0] }
 0x3a5   : > { %7721 = vmatpush.bf16.msrb.mxu0 %v11929_v41  ;;  %v8717_v48 = vor.u32 %v12109_v23, %v8714_v5  ;;  %v11640_v41 = vld [vmem:[%s13193_s23 + $0x1be8] sm:$0xf]  ;;  %v12835_v23 = vld [vmem:[%s13193_s23 + $0x1bb4] sm:$0xf0]  ;;  %v11965_v5 = vld [vmem:[%s13193_s23 + $0x8c] sm:$0xf] }
 0x3a6   : > { %7644 = vmatmul.bf16.vlgmr.msra.gmra.mxu1 %v13368_v34  ;;  %7670 = vmatmul.bf16.vlgmr.msra.gmra.mxu0 %v13370_v35  ;;  %v11641_v13 = vor.u32 %v12847_v38, %v11640_v41  ;;  %v10346_v38 = vld [vmem:[%s13193_s23 + $0x11f8] sm:$0xf0] }
 0x3a7   : > { %7688 = vmatpush.bf16.msrb.mxu1 %v11497_v15  ;;  %v12763_v15 = vld [vmem:[%s13193_s23 + $0x1974] sm:$0xf0] }
 0x3a8   : > { %7656 = vmatpush.bf16.msrb.mxu3 %v10009_v58  ;;  %7682 = vmatpush.bf16.msrb.mxu2 %v10777_v25  ;;  %v7439_v58 = vpop.f32.mrf.mxu2  ;;  %v11305_v1 = vor.u32 %v12763_v15, %v11304_v54  ;;  %v1249_v25 = vperm.slane %v1225_v20, 0 }
 0x3a9   : > { %7740 = vmatpush.bf16.msra.mxu0 %v8813_v47  ;;  %v11977_v47 = vld [vmem:[%s13193_s23 + $0xec] sm:$0xf]  ;;  %v12823_v58 = vld [vmem:[%s13193_s23 + $0x1b54] sm:$0xf0] }
 0x3aa   : > { %v7411_v61 = vpop.f32.mrf.mxu3  ;;  %v7451_v12 = vadd.f32 %v7450_v45, %v1249_v25  ;;  %v9578_v25 = vld [vmem:[%s13193_s23 + $0xbf8] sm:$0xf0]  ;;  %v12421_v45 = vld [vmem:[%s13193_s23 + $0xecc] sm:$0xf] }
 0x3ab   : > { %7689 = vmatpush.bf16.msrb.mxu1 %v11449_v30  ;;  %7657 = vmatmul.bf16.vlgmr.msrb.gmra.mxu3 %v13375_v40  ;;  %v11689_v30 = vor.u32 %v12859_v18, %v11688_v51  ;;  %v7412_v42 = vadd.f32 %v7411_v61, %v15256_v4  ;;  %v12073_v4 = vld [vmem:[%s13193_s23 + $0x3ec] sm:$0xf]  ;;  %v7426_v20 = vpop.f32.mrf.mxu1  ;;  %v8522_v51 = vld [vmem:[%s13193_s23 + $0x3b8] sm:$0xf0]  ;;  %v11544_v18 = vld [vmem:[%s13193_s23 + $0x1b28] sm:$0xf]  ;;  %v9581_v41 = vor.u32 %v12325_v22, %v9578_v25 }
 0x3ac   : > { %7701 = vmatpush.bf16.msra.mxu3 %v11881_v24  ;;  %7727 = vmatpush.bf16.msra.mxu2 %v8429_v27  ;;  %v11256_v24 = vld [vmem:[%s13193_s23 + $0x18e8] sm:$0xf]  ;;  %v12751_v27 = vld [vmem:[%s13193_s23 + $0x1914] sm:$0xf0]  ;;  %v8573_v54 = vor.u32 %v12073_v4, %v8570_v63  ;;  %v9146_v61 = vld [vmem:[%s13193_s23 + $0x898] sm:$0xf0] }
 0x3ad   : > { %7683 = vmatmul.bf16.vlgmr.msrb.gmra.mxu2 %v13379_v44  ;;  %7741 = vmatpush.bf16.msra.mxu0 %v8765_v37  ;;  %v11257_v31 = vor.u32 %v12751_v27, %v11256_v24  ;;  %v8525_v24 = vor.u32 %v12061_v49, %v8522_v51  ;;  %v12217_v27 = vld [vmem:[%s13193_s23 + $0x86c] sm:$0xf]  ;;  %v9818_v51 = vld [vmem:[%s13193_s23 + $0xdd8] sm:$0xf0] }
 0x3ae   : > { %v12289_v49 = vld [vmem:[%s13193_s23 + $0xaac] sm:$0xf]  ;;  %v10202_v22 = vld [vmem:[%s13193_s23 + $0x10d8] sm:$0xf0] }
 0x3af   : > { %7690 = vmatpush.bf16.msrb.mxu1 %v11401_v8  ;;  %v7425_v8 = vadd.f32 %v7424_v0, %v7412_v42  ;;  %v9962_v0 = vld [vmem:[%s13193_s23 + $0xef8] sm:$0xf0]  ;;  %v12277_v25 = vld [vmem:[%s13193_s23 + $0xa4c] sm:$0xf] }
 0x3b0   : > { %7702 = vmatpush.bf16.msra.mxu3 %v11833_v28  ;;  %7728 = vmatpush.bf16.msra.mxu2 %v8381_v10  ;;  %v8186_v28 = vld [vmem:[%s13193_s23 + $0x118] sm:$0xf0]  ;;  %v12739_v10 = vld [vmem:[%s13193_s23 + $0x18b4] sm:$0xf0]  ;;  %v7463_v39 = vpop.f32.mrf.mxu2  ;;  %v9965_v42 = vor.u32 %v12421_v45, %v9962_v0 }
 0x3b1   : > { %7742 = vmatpush.bf16.msra.mxu0 %v8717_v48  ;;  %v8189_v11 = vor.u32 %v11977_v47, %v8186_v28  ;;  %v15323_v3 = vadd.f32 %v15283_v53, %v7425_v8  ;;  %v11209_v37 = vor.u32 %v12739_v10, %v11208_v62  ;;  %v15328_v59 = vadd.f32 %v7463_v39, %v7451_v12  ;;  %v9194_v53 = vld [vmem:[%s13193_s23 + $0x8f8] sm:$0xf0]  ;;  %v12313_v47 = vld [vmem:[%s13193_s23 + $0xb6c] sm:$0xf] }
 0x3b2   : > { %v7413_v48 = vpop.f32.mrf.mxu3  ;;  %v9149_v28 = vor.u32 %v12217_v27, %v9146_v61  ;;  %v9530_v12 = vld [vmem:[%s13193_s23 + $0xb98] sm:$0xf0]  ;;  %v12409_v62 = vld [vmem:[%s13193_s23 + $0xe6c] sm:$0xf]  ;;  %v8477_v8 = vor.u32 %v12049_v60, %v8474_v43 }
 0x3b3   : > { %7691 = vmatpush.bf16.msrb.mxu1 %v11353_v52  ;;  %v8138_v52 = vld [vmem:[%s13193_s23 + $0xb8] sm:$0xf0]  ;;  %v9533_v4 = vor.u32 %v12313_v47, %v9530_v12  ;;  %v12505_v39 = vld [vmem:[%s13193_s23 + $0x116c] sm:$0xf]  ;;  %v9053_v48 = vor.u32 %v12193_v29, %v9050_v9 }
 0x3b4   : > { %7703 = vmatpush.bf16.msra.mxu3 %v11785_v50  ;;  %7729 = vmatpush.bf16.msra.mxu2 %v8333_v46  ;;  %v11592_v50 = vld [vmem:[%s13193_s23 + $0x1b88] sm:$0xf]  ;;  %v7452_v46 = vpop.f32.mrf.mxu0  ;;  %v9914_v10 = vld [vmem:[%s13193_s23 + $0xe98] sm:$0xf0]  ;;  %v12265_v47 = vld [vmem:[%s13193_s23 + $0x9ec] sm:$0xf] }
 0x3b5   : > { %7743 = vmatpush.bf16.msra.mxu0 %v8669_v56  ;;  %v11593_v15 = vor.u32 %v12835_v23, %v11592_v50  ;;  %v9917_v63 = vor.u32 %v12409_v62, %v9914_v10  ;;  %v12301_v50 = vld [vmem:[%s13193_s23 + $0xb0c] sm:$0xf]  ;;  %v9386_v0 = vld [vmem:[%s13193_s23 + $0xa78] sm:$0xf0] }
 0x3b6   : > { %11944 = vmatmul.msk.bf16.vlgmr.msrb.gmra.mxu0 %vm6150_vm0, %v13418_v32  ;;  %v12397_v46 = vld [vmem:[%s13193_s23 + $0xe0c] sm:$0xf]  ;;  %v9770_v27 = vld [vmem:[%s13193_s23 + $0xd78] sm:$0xf0]  ;;  %v9389_v43 = vor.u32 %v12277_v25, %v9386_v0 }
 0x3b7   : > { %7692 = vmatpush.bf16.msrb.mxu1 %v11305_v1  ;;  %v11953_v1 = vld [vmem:[%s13193_s23 + $0x2c] sm:$0xf]  ;;  %v9338_v12 = vld [vmem:[%s13193_s23 + $0xa18] sm:$0xf0] }
 0x3b8   : > { %7704 = vmatpush.bf16.msra.mxu3 %v11737_v16  ;;  %7730 = vmatpush.bf16.msra.mxu2 %v8285_v21  ;;  %v8141_v16 = vor.u32 %v11965_v5, %v8138_v52  ;;  %v9197_v21 = vor.u32 %v12229_v14, %v9194_v53  ;;  %v7465_v56 = vpop.f32.mrf.mxu2  ;;  %v9482_v5 = vld [vmem:[%s13193_s23 + $0xb38] sm:$0xf0]  ;;  %v12361_v62 = vld [vmem:[%s13193_s23 + $0xcec] sm:$0xf] }
 0x3b9   : > { %7744 = vmatpush.bf16.msra.mxu0 %v8621_v2  ;;  %v12205_v2 = vld [vmem:[%s13193_s23 + $0x80c] sm:$0xf]  ;;  %v9866_v52 = vld [vmem:[%s13193_s23 + $0xe38] sm:$0xf0]  ;;  %v9485_v14 = vor.u32 %v12301_v50, %v9482_v5 }
 0x3ba   : > { %v9869_v53 = vor.u32 %v12397_v46, %v9866_v52  ;;  %v12169_v56 = vld [vmem:[%s13193_s23 + $0x6ec] sm:$0xf]  ;;  %v9722_v10 = vld [vmem:[%s13193_s23 + $0xd18] sm:$0xf0] }
 0x3bb   : > { %7693 = vmatpush.bf16.msrb.mxu1 %v11257_v31  ;;  %v12517_v31 = vld [vmem:[%s13193_s23 + $0x11cc] sm:$0xf]  ;;  %v9290_v52 = vld [vmem:[%s13193_s23 + $0x9b8] sm:$0xf0] }
 0x3bc   : > { %7705 = vmatpush.bf16.msra.mxu3 %v11689_v30  ;;  %7731 = vmatpush.bf16.msra.mxu2 %v8237_v36  ;;  %v11545_v30 = vor.u32 %v12823_v58, %v11544_v18  ;;  %v8093_v36 = vor.u32 %v11953_v1, %v8090_v19  ;;  %v9002_v18 = vld [vmem:[%s13193_s23 + $0x778] sm:$0xf0]  ;;  %v12481_v19 = vld [vmem:[%s13193_s23 + $0x10ac] sm:$0xf] }
 0x3bd   : > { %7745 = vmatpush.bf16.msra.mxu0 %v8573_v54  ;;  %v12493_v54 = vld [vmem:[%s13193_s23 + $0x110c] sm:$0xf]  ;;  %v9674_v9 = vld [vmem:[%s13193_s23 + $0xcb8] sm:$0xf0] }
 0x3be   : > { %v12349_v29 = vld [vmem:[%s13193_s23 + $0xc8c] sm:$0xf] }
 0x3bf   : > { %7694 = vmatpush.bf16.msrb.mxu1 %v11209_v37  ;;  %v10298_v37 = vld [vmem:[%s13193_s23 + $0x1198] sm:$0xf0]  ;;  %v12709_v25 = vld [vmem:[%s13193_s23 + $0x17cc] sm:$0xf] }
 0x3c0   : > { %7706 = vmatpush.bf16.msra.mxu3 %v11641_v13  ;;  %7732 = vmatpush.bf16.msra.mxu2 %v8189_v11  ;;  %v9098_v13 = vld [vmem:[%s13193_s23 + $0x838] sm:$0xf0]  ;;  %v10349_v11 = vor.u32 %v12517_v31, %v10346_v38  ;;  %v10301_v20 = vor.u32 %v12505_v39, %v10298_v37  ;;  %v12457_v39 = vld [vmem:[%s13193_s23 + $0xfec] sm:$0xf] }
 0x3c1   : > { %7746 = vmatpush.bf16.msra.mxu0 %v8525_v24  ;;  %v9101_v23 = vor.u32 %v12205_v2, %v9098_v13  ;;  %v12373_v24 = vld [vmem:[%s13193_s23 + $0xd4c] sm:$0xf]  ;;  %v10154_v31 = vld [vmem:[%s13193_s23 + $0x1078] sm:$0xf0] }
 0x3c2   : > { %v8906_v2 = vld [vmem:[%s13193_s23 + $0x6b8] sm:$0xf0]  ;;  %v12805_v0 = vld [vmem:[%s13193_s23 + $0x1acc] sm:$0xf] }
 0x3c3   : > { %7695 = vmatpush.bf16.msrb.mxu1 %v11161_v17  ;;  %v12385_v17 = vld [vmem:[%s13193_s23 + $0xdac] sm:$0xf]  ;;  %v7502_v45 = vpop.f32.mrf.mxu0  ;;  %v7489_v61 = vpop.f32.mrf.mxu1  ;;  %v10106_v37 = vld [vmem:[%s13193_s23 + $0x1018] sm:$0xf0] }
 0x3c4   : > { %7707 = vmatpush.bf16.msra.mxu3 %v11593_v15  ;;  %7733 = vmatpush.bf16.msra.mxu2 %v8141_v16  ;;  %v10250_v15 = vld [vmem:[%s13193_s23 + $0x1138] sm:$0xf0]  ;;  %v9821_v1 = vor.u32 %v12385_v17, %v9818_v51 }
 0x3c5   : > { %7747 = vmatpush.bf16.msra.mxu0 %v8477_v8  ;;  %v9434_v16 = vld [vmem:[%s13193_s23 + $0xad8] sm:$0xf0]  ;;  %v10253_v58 = vor.u32 %v12493_v54, %v10250_v15  ;;  %v12157_v8 = vld [vmem:[%s13193_s23 + $0x68c] sm:$0xf]  ;;  %v10109_v15 = vor.u32 %v12457_v39, %v10106_v37 }
 0x3c6   : > { %7696 = vmatmul.bf16.vlgmr.msrb.gmra.mxu1 %v13456_v26  ;;  %v8909_v46 = vor.u32 %v12157_v8, %v8906_v2  ;;  %v11450_v8 = vld [vmem:[%s13193_s23 + $0x1a98] sm:$0xf0]  ;;  %v12889_v39 = vld [vmem:[%s13193_s23 + $0x1d6c] sm:$0xf] }
 0x3c7   : > { %7753 = vmatpush.bf16.msra.mxu1 %v9197_v21  ;;  %v9437_v21 = vor.u32 %v12289_v49, %v9434_v16  ;;  %v12613_v49 = vld [vmem:[%s13193_s23 + $0x14cc] sm:$0xf]  ;;  %v11834_v37 = vld [vmem:[%s13193_s23 + $0x1d98] sm:$0xf0] }
 0x3c8   : > { %7708 = vmatpush.bf16.msra.mxu3 %v11545_v30  ;;  %7734 = vmatpush.bf16.msra.mxu2 %v8093_v36  ;;  %v8954_v30 = vld [vmem:[%s13193_s23 + $0x718] sm:$0xf0]  ;;  %v10205_v36 = vor.u32 %v12481_v19, %v10202_v22  ;;  %v12445_v16 = vld [vmem:[%s13193_s23 + $0xf8c] sm:$0xf] }
 0x3c9   : > { %7792 = vmatpush.bf16.msrb.mxu0 %v10349_v11  ;;  %v12337_v19 = vld [vmem:[%s13193_s23 + $0xc2c] sm:$0xf]  ;;  %v9626_v22 = vld [vmem:[%s13193_s23 + $0xc58] sm:$0xf0] }
 0x3ca   : > { %7748 = vmatmul.bf16.vlgmr.msra.gmra.mxu0 %v13304_v7  ;;  %v7476_v60 = vpop.f32.mrf.mxu3 }
 0x3cb   : > { %7754 = vmatpush.bf16.msra.mxu1 %v9149_v28  ;;  %7709 = vmatmul.bf16.vlgmr.msra.gmra.mxu3 %v13461_v33  ;;  %v7477_v38 = vadd.f32 %v7476_v60, %v15328_v59  ;;  %v8957_v28 = vor.u32 %v12169_v56, %v8954_v30  ;;  %v9341_v59 = vor.u32 %v12265_v47, %v9338_v12  ;;  %v7504_v5 = vpop.f32.mrf.mxu0  ;;  %v10682_v56 = vld [vmem:[%s13193_s23 + $0x1498] sm:$0xf0] }
 0x3cc   : > { %7766 = vmatpush.bf16.msrb.mxu3 %v9581_v41  ;;  %7779 = vmatpush.bf16.msrb.mxu2 %v9965_v42  ;;  %v9773_v41 = vor.u32 %v12373_v24, %v9770_v27  ;;  %v12469_v42 = vld [vmem:[%s13193_s23 + $0x104c] sm:$0xf]  ;;  %v11498_v24 = vld [vmem:[%s13193_s23 + $0x1af8] sm:$0xf0]  ;;  %v9629_v60 = vor.u32 %v12337_v19, %v9626_v22 }
 0x3cd   : > { %7735 = vmatmul.bf16.vlgmr.msra.gmra.mxu2 %v13302_v6  ;;  %v12181_v6 = vld [vmem:[%s13193_s23 + $0x74c] sm:$0xf]  ;;  %7793 = vmatpush.bf16.msrb.mxu0 %v10301_v20  ;;  %v7490_v13 = vadd.f32 %v7489_v61, %v7477_v38  ;;  %v10157_v11 = vor.u32 %v12469_v42, %v10154_v31  ;;  %v7491_v20 = vpop.f32.mrf.mxu1  ;;  %v11501_v31 = vor.u32 %v12805_v0, %v11498_v24  ;;  %v11882_v47 = vld [vmem:[%s13193_s23 + $0x1df8] sm:$0xf0] }
 0x3ce   : > { %v9005_v7 = vor.u32 %v12181_v6, %v9002_v18  ;;  %v9677_v6 = vor.u32 %v12349_v29, %v9674_v9  ;;  %v10058_v18 = vld [vmem:[%s13193_s23 + $0xfb8] sm:$0xf0]  ;;  %v12601_v61 = vld [vmem:[%s13193_s23 + $0x146c] sm:$0xf]  ;;  %v11837_v20 = vor.u32 %v12889_v39, %v11834_v37 }
 0x3cf   : > { %7755 = vmatpush.bf16.msra.mxu1 %v9101_v23  ;;  %v7503_v50 = vadd.f32 %v7502_v45, %v7490_v13  ;;  %v12253_v23 = vld [vmem:[%s13193_s23 + $0x98c] sm:$0xf]  ;;  %v10061_v27 = vor.u32 %v12445_v16, %v10058_v18  ;;  %v10685_v12 = vor.u32 %v12601_v61, %v10682_v56  ;;  %v11018_v5 = vld [vmem:[%s13193_s23 + $0x1738] sm:$0xf0] }
 0x3d0   : > { %7767 = vmatpush.bf16.msrb.mxu3 %v9533_v4  ;;  %7780 = vmatpush.bf16.msrb.mxu2 %v9917_v63  ;;  %v7515_v4 = vpop.f32.mrf.mxu2  ;;  %v9725_v63 = vor.u32 %v12361_v62, %v9722_v10  ;;  %v9293_v51 = vor.u32 %v12253_v23, %v9290_v52  ;;  %v12901_v38 = vld [vmem:[%s13193_s23 + $0x1dcc] sm:$0xf]  ;;  %v11066_v62 = vld [vmem:[%s13193_s23 + $0x1798] sm:$0xf0] }
 0x3d1   : > { %7794 = vmatpush.bf16.msrb.mxu0 %v10253_v58  ;;  %v15404_v54 = vadd.f32 %v7515_v4, %v7503_v50  ;;  %v12241_v58 = vld [vmem:[%s13193_s23 + $0x92c] sm:$0xf]  ;;  %v11885_v4 = vor.u32 %v12901_v38, %v11882_v47  ;;  %v11402_v52 = vld [vmem:[%s13193_s23 + $0x1a38] sm:$0xf0] }
 0x3d2   : > { %v7478_v17 = vpop.f32.mrf.mxu3  ;;  %v12793_v10 = vld [vmem:[%s13193_s23 + $0x1a6c] sm:$0xf]  ;;  %v10586_v9 = vld [vmem:[%s13193_s23 + $0x13d8] sm:$0xf0] }
 0x3d3   : > { %7756 = vmatpush.bf16.msra.mxu1 %v9053_v48  ;;  %v10730_v48 = vld [vmem:[%s13193_s23 + $0x14f8] sm:$0xf0]  ;;  %v12589_v13 = vld [vmem:[%s13193_s23 + $0x140c] sm:$0xf] }
 0x3d4   : > { %7768 = vmatpush.bf16.msrb.mxu3 %v9485_v14  ;;  %7781 = vmatpush.bf16.msrb.mxu2 %v9869_v53  ;;  %v12145_v14 = vld [vmem:[%s13193_s23 + $0x62c] sm:$0xf]  ;;  %v8858_v53 = vld [vmem:[%s13193_s23 + $0x658] sm:$0xf0]  ;;  %v10733_v45 = vor.u32 %v12613_v49, %v10730_v48 }
 0x3d5   : > { %7795 = vmatpush.bf16.msrb.mxu0 %v10205_v36  ;;  %v12685_v50 = vld [vmem:[%s13193_s23 + $0x170c] sm:$0xf]  ;;  %v11786_v49 = vld [vmem:[%s13193_s23 + $0x1d38] sm:$0xf0] }
 0x3d6   : > { %v12577_v29 = vld [vmem:[%s13193_s23 + $0x13ac] sm:$0xf]  ;;  %v10970_v16 = vld [vmem:[%s13193_s23 + $0x16d8] sm:$0xf0] }
 0x3d7   : > { %7757 = vmatpush.bf16.msra.mxu1 %v9005_v7  ;;  %v11114_v7 = vld [vmem:[%s13193_s23 + $0x17f8] sm:$0xf0]  ;;  %v12673_v48 = vld [vmem:[%s13193_s23 + $0x16ac] sm:$0xf] }
 0x3d8   : > { %7769 = vmatpush.bf16.msrb.mxu3 %v9437_v21  ;;  %7782 = vmatpush.bf16.msrb.mxu2 %v9821_v1  ;;  %v9242_v21 = vld [vmem:[%s13193_s23 + $0x958] sm:$0xf0]  ;;  %v8861_v1 = vor.u32 %v12145_v14, %v8858_v53  ;;  %v7517_v30 = vpop.f32.mrf.mxu2  ;;  %v11117_v42 = vor.u32 %v12709_v25, %v11114_v7  ;;  %v11021_v14 = vor.u32 %v12685_v50, %v11018_v5  ;;  %v12769_v17 = vld [vmem:[%s13193_s23 + $0x19ac] sm:$0xf] }
 0x3d9   : > { %7796 = vmatpush.bf16.msrb.mxu0 %v10157_v11  ;;  %v9245_v36 = vor.u32 %v12241_v58, %v9242_v21  ;;  %v10634_v11 = vld [vmem:[%s13193_s23 + $0x1438] sm:$0xf0]  ;;  %v10973_v58 = vor.u32 %v12673_v48, %v10970_v16  ;;  %v12661_v19 = vld [vmem:[%s13193_s23 + $0x164c] sm:$0xf] }
 0x3da   : > { %v10637_v23 = vor.u32 %v12589_v13, %v10634_v11  ;;  %v12757_v7 = vld [vmem:[%s13193_s23 + $0x194c] sm:$0xf]  ;;  %v10490_v24 = vld [vmem:[%s13193_s23 + $0x1318] sm:$0xf0] }
 0x3db   : > { %7758 = vmatpush.bf16.msra.mxu1 %v8957_v28  ;;  %v12697_v28 = vld [vmem:[%s13193_s23 + $0x176c] sm:$0xf]  ;;  %v10874_v38 = vld [vmem:[%s13193_s23 + $0x1618] sm:$0xf0] }
 0x3dc   : > { %7770 = vmatpush.bf16.msrb.mxu3 %v9389_v43  ;;  %7783 = vmatpush.bf16.msrb.mxu2 %v9773_v41  ;;  %v12433_v43 = vld [vmem:[%s13193_s23 + $0xf2c] sm:$0xf]  ;;  %v10010_v41 = vld [vmem:[%s13193_s23 + $0xf58] sm:$0xf0] }
 0x3dd   : > { %7797 = vmatpush.bf16.msrb.mxu0 %v10109_v15  ;;  %v10013_v2 = vor.u32 %v12433_v43, %v10010_v41  ;;  %v12877_v15 = vld [vmem:[%s13193_s23 + $0x1d0c] sm:$0xf]  ;;  %v11690_v41 = vld [vmem:[%s13193_s23 + $0x1c78] sm:$0xf0] }
 0x3de   : > { %v11789_v18 = vor.u32 %v12877_v15, %v11786_v49  ;;  %v12553_v0 = vld [vmem:[%s13193_s23 + $0x12ec] sm:$0xf]  ;;  %v10826_v37 = vld [vmem:[%s13193_s23 + $0x15b8] sm:$0xf0] }
 0x3df   : > { %7759 = vmatpush.bf16.msra.mxu1 %v8909_v46  ;;  %v12781_v46 = vld [vmem:[%s13193_s23 + $0x1a0c] sm:$0xf]  ;;  %v11930_v15 = vld [vmem:[%s13193_s23 + $0x1e58] sm:$0xf0] }
 0x3e0   : > { %7771 = vmatpush.bf16.msrb.mxu3 %v9341_v59  ;;  %7784 = vmatpush.bf16.msrb.mxu2 %v9725_v63  ;;  %v11069_v59 = vor.u32 %v12697_v28, %v11066_v62  ;;  %v11453_v63 = vor.u32 %v12793_v10, %v11450_v8  ;;  %v11405_v53 = vor.u32 %v12781_v46, %v11402_v52  ;;  %v12853_v43 = vld [vmem:[%s13193_s23 + $0x1c4c] sm:$0xf]  ;;  %v11258_v28 = vld [vmem:[%s13193_s23 + $0x1918] sm:$0xf0] }
 0x3e1   : > { %7798 = vmatpush.bf16.msrb.mxu0 %v10061_v27  ;;  %v12745_v47 = vld [vmem:[%s13193_s23 + $0x18ec] sm:$0xf]  ;;  %v10442_v10 = vld [vmem:[%s13193_s23 + $0x12b8] sm:$0xf0] }
 0x3e2   : > { %v12541_v62 = vld [vmem:[%s13193_s23 + $0x128c] sm:$0xf]  ;;  %v11261_v11 = vor.u32 %v12745_v47, %v11258_v28  ;;  %v11594_v16 = vld [vmem:[%s13193_s23 + $0x1bb8] sm:$0xf0] }
 0x3e3   : > { %7760 = vmatpush.bf16.msra.mxu1 %v8861_v1  ;;  %v12865_v1 = vld [vmem:[%s13193_s23 + $0x1cac] sm:$0xf]  ;;  %v7541_v25 = vpop.f32.mrf.mxu1  ;;  %v7554_v27 = vpop.f32.mrf.mxu0  ;;  %v10445_v39 = vor.u32 %v12541_v62, %v10442_v10 }
 0x3e4   : > { %7772 = vmatpush.bf16.msrb.mxu3 %v9293_v51  ;;  %7785 = vmatpush.bf16.msrb.mxu2 %v9677_v6  ;;  %v11354_v51 = vld [vmem:[%s13193_s23 + $0x19d8] sm:$0xf0]  ;;  %v12565_v6 = vld [vmem:[%s13193_s23 + $0x134c] sm:$0xf] }
 0x3e5   : > { %7799 = vmatpush.bf16.msrb.mxu0 %v10013_v2  ;;  %v11357_v21 = vor.u32 %v12769_v17, %v11354_v51  ;;  %v12733_v50 = vld [vmem:[%s13193_s23 + $0x188c] sm:$0xf] }
 0x3e6   : > { %7761 = vmatmul.bf16.vlgmr.msra.gmra.mxu1 %v13288_v55  ;;  %v10589_v55 = vor.u32 %v12577_v29, %v10586_v9  ;;  %v12529_v52 = vld [vmem:[%s13193_s23 + $0x122c] sm:$0xf]  ;;  %v10394_v29 = vld [vmem:[%s13193_s23 + $0x1258] sm:$0xf0] }
 0x3e7   : > { %7805 = vmatpush.bf16.msrb.mxu1 %v10733_v45  ;;  %v10922_v45 = vld [vmem:[%s13193_s23 + $0x1678] sm:$0xf0]  ;;  %v10397_v17 = vor.u32 %v12529_v52, %v10394_v29  ;;  %v12625_v51 = vld [vmem:[%s13193_s23 + $0x152c] sm:$0xf] }
 0x3e8   : > { %7773 = vmatpush.bf16.msrb.mxu3 %v9245_v36  ;;  %7786 = vmatpush.bf16.msrb.mxu2 %v9629_v60  ;;  %v10925_v36 = vor.u32 %v12661_v19, %v10922_v45  ;;  %v12817_v45 = vld [vmem:[%s13193_s23 + $0x1b2c] sm:$0xf] }
 0x3e9   : > { %7844 = vmatpush.bf16.msra.mxu0 %v11885_v4  ;;  %v12841_v4 = vld [vmem:[%s13193_s23 + $0x1bec] sm:$0xf] }
 0x3ea   : > { %7800 = vmatmul.bf16.vlgmr.msrb.gmra.mxu0 %v13375_v40  ;;  %v11306_v40 = vld [vmem:[%s13193_s23 + $0x1978] sm:$0xf0]  ;;  %v7528_v61 = vpop.f32.mrf.mxu3 }
 0x3eb   : > { %7806 = vmatpush.bf16.msrb.mxu1 %v10685_v12  ;;  %7774 = vmatmul.bf16.vlgmr.msrb.gmra.mxu3 %v13293_v57  ;;  %v10538_v57 = vld [vmem:[%s13193_s23 + $0x1378] sm:$0xf0]  ;;  %v7529_v30 = vadd.f32 %v7528_v61, %v15404_v54  ;;  %v11309_v60 = vor.u32 %v12757_v7, %v11306_v40  ;;  %v11693_v54 = vor.u32 %v12853_v43, %v11690_v41  ;;  %v7543_v5 = vpop.f32.mrf.mxu1  ;;  %v7556_v9 = vpop.f32.mrf.mxu0 }
 0x3ec   : > { %7818 = vmatpush.bf16.msra.mxu3 %v11117_v42  ;;  %7831 = vmatpush.bf16.msra.mxu2 %v11501_v31  ;;  %v10541_v22 = vor.u32 %v12565_v6, %v10538_v57  ;;  %v12649_v42 = vld [vmem:[%s13193_s23 + $0x15ec] sm:$0xf]  ;;  %v10493_v31 = vor.u32 %v12553_v0, %v10490_v24  ;;  %v10778_v6 = vld [vmem:[%s13193_s23 + $0x1558] sm:$0xf0] }
 0x3ed   : > { %7787 = vmatmul.bf16.vlgmr.msrb.gmra.mxu2 %v13368_v34  ;;  %7845 = vmatpush.bf16.msra.mxu0 %v11837_v20  ;;  %v11738_v34 = vld [vmem:[%s13193_s23 + $0x1cd8] sm:$0xf0]  ;;  %v7542_v12 = vadd.f32 %v7541_v25, %v7529_v30  ;;  %v10877_v13 = vor.u32 %v12649_v42, %v10874_v38  ;;  %v12721_v57 = vld [vmem:[%s13193_s23 + $0x182c] sm:$0xf] }
 0x3ee   : > { %v11741_v56 = vor.u32 %v12865_v1, %v11738_v34  ;;  %v7567_v8 = vpop.f32.mrf.mxu2  ;;  %v15484_v34 = vld [vmem:[%s13199_s25 + $0x10] sm:$0xff]  ;;  %v11546_v7 = vld [vmem:[%s13193_s23 + $0x1b58] sm:$0xf0] }
 0x3ef   : > { %7807 = vmatpush.bf16.msrb.mxu1 %v10637_v23  ;;  %v7555_v2 = vadd.f32 %v7554_v27, %v7542_v12  ;;  %v11210_v23 = vld [vmem:[%s13193_s23 + $0x18b8] sm:$0xf0]  ;;  %v7890_v19 = vperm.slane %v15484_v34, 1  ;;  %v7891_v25 = vperm.slane %v15484_v34, 3  ;;  %v11549_v24 = vor.u32 %v12817_v45, %v11546_v7 }
 0x3f0   : > { %7819 = vmatpush.bf16.msra.mxu3 %v11069_v59  ;;  %7832 = vmatpush.bf16.msra.mxu2 %v11453_v63  ;;  %v11642_v59 = vld [vmem:[%s13193_s23 + $0x1c18] sm:$0xf0]  ;;  %v12637_v63 = vld [vmem:[%s13193_s23 + $0x158c] sm:$0xf]  ;;  %v11213_v48 = vor.u32 %v12733_v50, %v11210_v23  ;;  %v7878_v27 = vmax.f32 %v15323_v3, 0.0  ;;  %v1226_v41 = vperm.slane %v15484_v34, 4 }
 0x3f1   : > { %7846 = vmatpush.bf16.msra.mxu0 %v11789_v18  ;;  %v7568_v46 = vadd.f32 %v7567_v8, %v7555_v2  ;;  %v10829_v49 = vor.u32 %v12637_v63, %v10826_v37  ;;  %v11162_v18 = vld [vmem:[%s13193_s23 + $0x1858] sm:$0xf0]  ;;  %v7914_v61 = vperm.slane %v7890_v19, 1  ;;  %v7915_v30 = vperm.slane %v7891_v25, 1 }
 0x3f2   : > { %v7530_v20 = vpop.f32.mrf.mxu3  ;;  %v11165_v40 = vor.u32 %v12721_v57, %v11162_v18 }
 0x3f3   : > { %7808 = vmatpush.bf16.msrb.mxu1 %v10589_v55  ;;  %v12829_v55 = vld [vmem:[%s13193_s23 + $0x1b8c] sm:$0xf] }
 0x3f4   : > { %7820 = vmatpush.bf16.msra.mxu3 %v11021_v14  ;;  %7833 = vmatpush.bf16.msra.mxu2 %v11405_v53  ;;  %v11645_v14 = vor.u32 %v12841_v4, %v11642_v59  ;;  %v12913_v53 = vld [vmem:[%s13193_s23 + $0x1e2c] sm:$0xf] }
 0x3f5   : > { %7847 = vmatpush.bf16.msra.mxu0 %v11741_v56 }
 0x3f6   : > { %v7569_v1 = vpop.f32.mrf.mxu2 }
 0x3f7   : > { %7809 = vmatpush.bf16.msrb.mxu1 %v10541_v22  ;;  %v10781_v22 = vor.u32 %v12625_v51, %v10778_v6  ;;  %v1227_v1 = vperm.slane %v15484_v34, 6 }
 0x3f8   : > { %7821 = vmatpush.bf16.msra.mxu3 %v10973_v58  ;;  %7834 = vmatpush.bf16.msra.mxu2 %v11357_v21  ;;  %v11933_v58 = vor.u32 %v12913_v53, %v11930_v15  ;;  %v11597_v21 = vor.u32 %v12829_v55, %v11594_v16  ;;  %v7892_v53 = vperm.slane %v15484_v34, 5 }
 0x3f9   : > { %7848 = vmatpush.bf16.msra.mxu0 %v11693_v54  ;;  %v1251_v25 = vperm.slane %v1227_v1, 0 }
 0x3fa   : > { %v7580_v0 = vpop.f32.mrf.mxu3  ;;  %v7916_v16 = vperm.slane %v7892_v53, 1 }
 0x3fb   : > { %7810 = vmatpush.bf16.msrb.mxu1 %v10493_v31  ;;  %v7581_v56 = vadd.f32 %v7580_v0, %v7568_v46  ;;  %v1250_v31 = vperm.slane %v1226_v41, 0 }
 0x3fc   : > { %7822 = vmatpush.bf16.msra.mxu3 %v10925_v36  ;;  %7835 = vmatpush.bf16.msra.mxu2 %v11309_v60  ;;  %v7926_v60 = vmul.f32 %v7914_v61, %v7878_v27 }
 0x3fd   : > { %7849 = vmatpush.bf16.msra.mxu0 %v11645_v14  ;;  %v7879_v36 = vmax.f32 %v7581_v56, 0.0 }
 0x3ff   : > { %7811 = vmatpush.bf16.msrb.mxu1 %v10445_v39  ;;  %v7927_v43 = vmul.f32 %v7915_v30, %v7879_v36 }
 0x400   : > { %7823 = vmatpush.bf16.msra.mxu3 %v10877_v13  ;;  %7836 = vmatpush.bf16.msra.mxu2 %v11261_v11 }
 0x401   : > { %7850 = vmatpush.bf16.msra.mxu0 %v11597_v21  ;;  %v7940_v3 = vadd.f32 %v7927_v43, %v7926_v60 }
 0x402   : > { %v7582_v42 = vpop.f32.mrf.mxu3 }
 0x403   : > { %7812 = vmatpush.bf16.msrb.mxu1 %v10397_v17  ;;  %v7619_v38 = vpop.f32.mrf.mxu0 }
 0x404   : > { %7824 = vmatpush.bf16.msra.mxu3 %v10829_v49  ;;  %7837 = vmatpush.bf16.msra.mxu2 %v11213_v48 }
 0x405   : > { %7851 = vmatpush.bf16.msra.mxu0 %v11549_v24 }
 0x406   : > { %7813 = vmatmul.bf16.vlgmr.msrb.gmra.mxu1 %v13370_v35  ;;  %v7593_v35 = vpop.f32.mrf.mxu1 }
 0x407   : > { %7864 = vmatpush.bf16.msra.mxu1 %v11933_v58  ;;  %v7594_v47 = vadd.f32 %v7593_v35, %v1250_v31 }
 0x408   : > { %7825 = vmatpush.bf16.msra.mxu3 %v10781_v22  ;;  %7838 = vmatpush.bf16.msra.mxu2 %v11165_v40 }
 0x409   : > { %7852 = vmatmul.bf16.vlgmr.msra.gmra.mxu0 %v13461_v33 }
 0x40b   : > { %7826 = vmatmul.bf16.vlgmr.msra.gmra.mxu3 %v13379_v44  ;;  %7839 = vmatmul.bf16.vlgmr.msra.gmra.mxu2 %v13456_v26  ;;  %v7621_v10 = vpop.f32.mrf.mxu0 }
 0x40e   : > { %v7606_v28 = vpop.f32.mrf.mxu3  ;;  %v7595_v62 = vpop.f32.mrf.mxu1 }
 0x40f   : > { %v7607_v44 = vadd.f32 %v7606_v28, %v7594_v47  ;;  %v7893_v28 = vperm.slane %v15484_v34, 7 }
 0x410   : > { %v7632_v12 = vpop.f32.mrf.mxu2 }
 0x411   : > { %v7620_v54 = vadd.f32 %v7619_v38, %v7607_v44 }
 0x413   : > { %v7633_v26 = vadd.f32 %v7632_v12, %v7620_v54 }
 0x416   : > { %11945 = vmatmul.msk.bf16.vlgmr.msra.gmra.mxu1 %vm6150_vm0, %v13418_v32  ;;  %v7608_v8 = vpop.f32.mrf.mxu3 }
 0x418   : > { %v7634_v2 = vpop.f32.mrf.mxu2 }
 0x423   : > { %v7645_v13 = vpop.f32.mrf.mxu1  ;;  %v7671_v11 = vpop.f32.mrf.mxu0 }
 0x424   : > { %v7646_v33 = vadd.f32 %v7645_v13, %v7633_v26  ;;  %v7917_v26 = vperm.slane %v7893_v28, 1 }
 0x42b   : > { %v7647_v4 = vpop.f32.mrf.mxu1  ;;  %v7673_v50 = vpop.f32.mrf.mxu0 }
 0x42c   : > { %v7934_v4 = vpop.xlane.xlu0 %7933 }
 0x42e   : > { %v7658_v59 = vpop.f32.mrf.mxu3 }
 0x42f   : > { %v7659_v63 = vadd.f32 %v7658_v59, %v7646_v33 }
 0x430   : > { %v7684_v39 = vpop.f32.mrf.mxu2 }
 0x431   : > { %v7672_v37 = vadd.f32 %v7671_v11, %v7659_v63 }
 0x433   : > { %v7685_v23 = vadd.f32 %v7684_v39, %v7672_v37  ;;  %v7723_v46 = vpop.f32.mrf.mxu0 }
 0x434   : > { %v7939_v59 = vpop.xlane.xlu0 %7938 }
 0x435   : > { %v7946_v34 = vsel %vm7945_vm1, %v7934_v4, %v7939_v59 }
 0x436   : > { %v7660_v32 = vpop.f32.mrf.mxu3 }
 0x438   : > { %v7686_v5 = vpop.f32.mrf.mxu2 }
 0x43b   : > { %v7725_v52 = vpop.f32.mrf.mxu0 }
 0x443   : > { %v7697_v29 = vpop.f32.mrf.mxu1 }
 0x444   : > { %v7698_v9 = vadd.f32 %v7697_v29, %v7685_v23 }
 0x447   : > { %v7749_v20 = vpop.f32.mrf.mxu0 }
 0x44b   : > { %v7699_v14 = vpop.f32.mrf.mxu1 }
 0x44e   : > { %v7710_v15 = vpop.f32.mrf.mxu3 }
 0x44f   : > { %v7711_v49 = vadd.f32 %v7710_v15, %v7698_v9  ;;  %v7751_v51 = vpop.f32.mrf.mxu0 }
 0x450   : > { %v7736_v48 = vpop.f32.mrf.mxu2 }
 0x451   : > { %v7724_v55 = vadd.f32 %v7723_v46, %v7711_v49  ;;  %v7737_v40 = vadd.f32 %v7736_v48, %v1251_v25 }
 0x453   : > { %v7880_v17 = vmax.f32 %v7724_v55, 0.0  ;;  %v7750_v27 = vadd.f32 %v7749_v20, %v7737_v40 }
 0x455   : > { %v7928_v6 = vmul.f32 %v7916_v16, %v7880_v17 }
 0x456   : > { %v7712_v57 = vpop.f32.mrf.mxu3 }
 0x457   : > { %v7941_v58 = vadd.f32 %v7940_v3, %v7928_v6 }
 0x458   : > { %v7738_v18 = vpop.f32.mrf.mxu2 }
 0x463   : > { %v7762_v21 = vpop.f32.mrf.mxu1 }
 0x464   : > { %v7763_v56 = vadd.f32 %v7762_v21, %v7750_v27 }
 0x467   : > { %v7801_v19 = vpop.f32.mrf.mxu0 }
 0x46b   : > { %v7764_v45 = vpop.f32.mrf.mxu1 }
 0x46e   : > { %v7775_v22 = vpop.f32.mrf.mxu3 }
 0x46f   : > { %v7803_v0 = vpop.f32.mrf.mxu0  ;;  %v7776_v30 = vadd.f32 %v7775_v22, %v7763_v56 }
 0x470   : > { %v7788_v7 = vpop.f32.mrf.mxu2 }
 0x471   : > { %v7789_v60 = vadd.f32 %v7788_v7, %v7776_v30 }
 0x473   : > { %v7802_v43 = vadd.f32 %v7801_v19, %v7789_v60 }
 0x476   : > { %v7777_v24 = vpop.f32.mrf.mxu3 }
 0x478   : > { %v7790_v61 = vpop.f32.mrf.mxu2 }
 0x483   : > { %v7814_v36 = vpop.f32.mrf.mxu1 }
 0x484   : > { %v7815_v3 = vadd.f32 %v7814_v36, %v7802_v43 }
 0x486   : > { %v7853_v41 = vpop.f32.mrf.mxu0 }
 0x48b   : > { %v7816_v42 = vpop.f32.mrf.mxu1 }
 0x48e   : > { %v7827_v31 = vpop.f32.mrf.mxu3  ;;  %v7840_v38 = vpop.f32.mrf.mxu2 }
 0x48f   : > { %v7828_v35 = vadd.f32 %v7827_v31, %v7815_v3  ;;  %v7855_v44 = vpop.f32.mrf.mxu0 }
 0x491   : > { %v7841_v47 = vadd.f32 %v7840_v38, %v7828_v35 }
 0x493   : > { %v7854_v12 = vadd.f32 %v7853_v41, %v7841_v47  ;;  %v7866_v62 = vpop.f32.mrf.mxu1 }
 0x495   : > { %v7867_v10 = vadd.f32 %v7866_v62, %v7854_v12 }
 0x496   : > { %v7829_v54 = vpop.f32.mrf.mxu3  ;;  %v7842_v8 = vpop.f32.mrf.mxu2 }
 0x497   : > { %v7881_v2 = vmax.f32 %v7867_v10, 0.0 }
 0x499   : > { %v7929_v13 = vmul.f32 %v7917_v26, %v7881_v2 }
 0x49b   : > { %v7942_v33 = vadd.f32 %v7941_v58, %v7929_v13  ;;  %v7868_v11 = vpop.f32.mrf.mxu1 }
 0x49d   : > { %7943 = vadd.xlane.f32.xlu1 %v7942_v33 }
 0x510   : > { %v7944_v63 = vpop.xlane.xlu1 %7943 }
 0x511   : > { %v7948_v39 = vsel %vm7947_vm2, %v7946_v34, %v7944_v63 }
 0x512   : > { %7950 = vst.msk [vmem:[%s230_s22] sm:$0xff] %vm7949_vm3, %v7948_v39 }
 0x513 PF: > { %p16_p8 = scmp.ge.s32.totalorder %s13121_s17, 4   ;;  %s15526_s12 = smov %s13067_s13 }
 0x514   : > { %s15527_s13 = smov %s13071_s14  ;;  %s15528_s14 = smov %s13131_s20 }
 0x515   : > { %s15529_s15 = smov %s13121_s17  ;;  %18 = sbr.rel (!%p16_p8) target bundleno = 5 (0x5), region = 85 }
 0x51a   :  { %7970 = vsyncpa [#allocation3], 1 }
 0x51b   :  { %7972 = vsyncpa [#allocation3 + $0x1], 1 }
 0x51c   :  { %7973 = vsyncpa [#allocation5], 1 }
 0x51d   :  { %7975 = vsyncpa [#allocation5 + $0x1], 1 }

</bundles_post_ra>
